<compile_context>
chip_gen: v5e
topology: v5e:2x2
jax: 0.10.0
libtpu: 0.0.40
codegen_flags: <defaults>
</compile_context>

<pallas_src>
import jax
import jax.numpy as jnp
from jax.experimental import pallas as pl
from jax.experimental.pallas import tpu as pltpu


def _round_up(x, m):
    return ((x + m - 1) // m) * m


def regressor_kernel(x_ref, w1_ref, b1_ref, w2_ref, b2_ref, o_ref):
    """One batch-tile grid step: the full fused Sharedfc -> LeakyReLU -> fc1 -> ReLU."""
    # ---- Sharedfc + LeakyReLU(0.2); bf16 inputs, f32 MXU accumulation ----
    h = jnp.dot(x_ref[...], w1_ref[...], preferred_element_type=jnp.float32)
    h = h + b1_ref[...]                      # (1, H) broadcasts over the batch tile
    h = jnp.maximum(h, 0.2 * h)              # LeakyReLU(negative_slope=0.2)

    # ---- fc1 + ReLU; result stays in vregs, single store to o_ref ----
    y = jnp.dot(h.astype(w2_ref.dtype), w2_ref[...],
                preferred_element_type=jnp.float32)
    y = y + b2_ref[...]
    o_ref[...] = jnp.maximum(y, 0.0).astype(o_ref.dtype)


def prepare_regressor_params(w_shared, b_shared, w_fc1, b_fc1):
    """One-time parameter prep: bf16 cast + lane-dense (128-multiple) attSize pad.

    w_shared: [resSize, H], w_fc1: [H, attSize] — i.e. nn.Linear weights already
    transposed to [in_features, out_features] so the hot path is plain matmuls.
    """
    R, H = w_shared.shape
    A = w_fc1.shape[1]
    Ap = _round_up(A, 128)                   # e.g. 312 -> 384, lane-dense stores

    w1 = w_shared.astype(jnp.bfloat16)
    b1 = b_shared.reshape(1, H).astype(jnp.float32)
    w2 = jnp.pad(w_fc1.astype(jnp.bfloat16), ((0, 0), (0, Ap - A)))
    b2 = jnp.pad(b_fc1.reshape(1, A).astype(jnp.float32), ((0, 0), (0, Ap - A)))
    return (w1, b1, w2, b2), A


def regressor_forward(x, params, att_size, *, batch_tile=256):
    """x: [B, resSize] f32; params from prepare_regressor_params."""
    w1, b1, w2, b2 = params
    B, R = x.shape
    H = w1.shape[1]
    Ap = w2.shape[1]
    assert w1.shape == (R, H) and w2.shape[0] == H

    # Batch tiling: tile a multiple of 16 (bf16 sublane packing); pad B up.
    tB = min(batch_tile, _round_up(B, 16))
    Bp = _round_up(B, tB)
    # v7x has 2 TensorCores: keep >= 2 "parallel" batch steps when B allows.
    if Bp // tB < 2 and Bp >= 32 and (Bp // 2) % 16 == 0:
        tB = Bp // 2

    # bf16 activations halve the x DMA bytes; pad on the already-cast array.
    x_bf16 = x.astype(jnp.bfloat16)
    x_p = jnp.pad(x_bf16, ((0, Bp - B), (0, 0))) if Bp != B else x_bf16

    grid = (Bp // tB,)

    out_padded = pl.pallas_call(
        regressor_kernel,
        out_shape=jax.ShapeDtypeStruct((Bp, Ap), jnp.float32),
        grid_spec=pltpu.PrefetchScalarGridSpec(
            num_scalar_prefetch=0,
            grid=grid,
            in_specs=[
                pl.BlockSpec((tB, R), lambda b: (b, 0)),   # x batch tile
                pl.BlockSpec((R, H), lambda b: (0, 0)),    # W_shared (resident)
                pl.BlockSpec((1, H), lambda b: (0, 0)),    # b_shared
                pl.BlockSpec((H, Ap), lambda b: (0, 0)),   # W_fc1 (resident)
                pl.BlockSpec((1, Ap), lambda b: (0, 0)),   # b_fc1
            ],
            out_specs=pl.BlockSpec((tB, Ap), lambda b: (b, 0)),
        ),
        compiler_params=pltpu.CompilerParams(
            dimension_semantics=("parallel",),
            # Fits all generations: <= 48 MiB stays inside v7x's 64 MiB
            # physical VMEM while lifting v5e's 16 MiB scoped default.
            vmem_limit_bytes=48 << 20,
        ),
    )(x_p, w1, b1, w2, b2)

    return out_padded[:B, :att_size]


def reference_forward(x, w_shared, b_shared, w_fc1, b_fc1):
    h = x @ w_shared + b_shared.reshape(1, -1)
    h = jnp.where(h > 0, h, 0.2 * h)
    y = h @ w_fc1 + b_fc1.reshape(1, -1)
    return jnp.maximum(y, 0.0)


if __name__ == "__main__":
    # Shapes consistent with the module: hidden = 1024 is hardcoded in
    # Regressor, attSize = 312 (real value, exercises the pad-to-384 path),
    # resSize = 512 as a small stand-in for 2048, batch = 512 (opt.batch_size)
    # so the default 256-wide batch tile gives 2 parallel grid steps.
    B = 512        # batch
    R = 512        # resSize (small stand-in for 2048)
    H = 1024       # Sharedfc output width (hardcoded in the module)
    A = 312        # attSize

    key = jax.random.PRNGKey(0)
    kx, kw1, kb1, kw2, kb2 = jax.random.split(key, 5)

    # Weight scale mirrors weights_init (N(0, 0.02)); nonzero biases are used
    # here purely to exercise the bias path in the kernel.
    x = jax.random.normal(kx, (B, R), dtype=jnp.float32)
    w_shared = 0.02 * jax.random.normal(kw1, (R, H), dtype=jnp.float32)
    b_shared = 0.02 * jax.random.normal(kb1, (H,), dtype=jnp.float32)
    w_fc1 = 0.02 * jax.random.normal(kw2, (H, A), dtype=jnp.float32)
    b_fc1 = 0.02 * jax.random.normal(kb2, (A,), dtype=jnp.float32)

    # One-time parameter preparation (hoisted out of the hot path).
    params, att_size = prepare_regressor_params(w_shared, b_shared, w_fc1, b_fc1)

    out = regressor_forward(x, params, att_size)
    out = jax.block_until_ready(out)

    ref = reference_forward(x, w_shared, b_shared, w_fc1, b_fc1)
    assert out.shape == (B, A)
    # bf16 weights/activations with f32 accumulation: tolerance loosened vs the
    # all-f32 reference.
    max_diff = float(jnp.max(jnp.abs(out - ref)))
    assert jnp.allclose(out, ref, atol=3e-2, rtol=3e-2), (
        f"mismatch vs reference; max abs diff {max_diff}")

    print("KERNEL_OK")
</pallas_src>

<mosaic_0001>
module attributes {stable_mosaic.version = 11 : i64} {
  func.func @regressor_kernel(%arg0: i32, %arg1: memref<256x512xbf16, #tpu.memory_space<vmem>>, %arg2: memref<512x1024xbf16, #tpu.memory_space<vmem>>, %arg3: memref<1x1024xf32, #tpu.memory_space<vmem>>, %arg4: memref<1024x384xbf16, #tpu.memory_space<vmem>>, %arg5: memref<1x384xf32, #tpu.memory_space<vmem>>, %arg6: memref<256x384xf32, #tpu.memory_space<vmem>>) attributes {dimension_semantics = [#tpu.dimension_semantics<parallel>], iteration_bounds = array<i64: 2>, scalar_prefetch = 0 : i64, scratch_operands = 0 : i64, tpu.core_type = #tpu.core_type<tc>, window_params = [{transform_indices = @transform_0, window_bounds = array<i64: 256, 512>}, {pipeline_mode = #tpu.pipeline_mode<synchronous>, transform_indices = @transform_1, window_bounds = array<i64: 512, 1024>}, {pipeline_mode = #tpu.pipeline_mode<synchronous>, transform_indices = @transform_2, window_bounds = array<i64: 1, 1024>}, {pipeline_mode = #tpu.pipeline_mode<synchronous>, transform_indices = @transform_3, window_bounds = array<i64: 1024, 384>}, {pipeline_mode = #tpu.pipeline_mode<synchronous>, transform_indices = @transform_4, window_bounds = array<i64: 1, 384>}, {transform_indices = @transform_5, window_bounds = array<i64: 256, 384>}]} {
    %c0 = arith.constant 0 : index
    %c0_0 = arith.constant 0 : index
    %0 = vector.load %arg1[%c0, %c0_0] : memref<256x512xbf16, #tpu.memory_space<vmem>>, vector<256x512xbf16>
    %c0_1 = arith.constant 0 : index
    %c0_2 = arith.constant 0 : index
    %1 = vector.load %arg2[%c0_1, %c0_2] : memref<512x1024xbf16, #tpu.memory_space<vmem>>, vector<512x1024xbf16>
    %cst = arith.constant dense<0.000000e+00> : vector<256x1024xf32>
    %2 = tpu.matmul %0, %1, %cst {dimension_numbers = #tpu.dot_dimension_numbers<[1], [0], [0], [1], [0, 0, 1, 1], [], []>} : vector<256x512xbf16>, vector<512x1024xbf16>, vector<256x1024xf32> -> vector<256x1024xf32>
    %c0_3 = arith.constant 0 : index
    %c0_4 = arith.constant 0 : index
    %3 = vector.load %arg3[%c0_3, %c0_4] : memref<1x1024xf32, #tpu.memory_space<vmem>>, vector<1x1024xf32>
    %4 = vector.broadcast %3 : vector<1x1024xf32> to vector<256x1024xf32>
    %5 = arith.addf %2, %4 : vector<256x1024xf32>
    %cst_5 = arith.constant 2.000000e-01 : f32
    %6 = vector.broadcast %cst_5 : f32 to vector<256x1024xf32>
    %7 = arith.mulf %6, %5 : vector<256x1024xf32>
    %8 = arith.maximumf %5, %7 : vector<256x1024xf32>
    %9 = arith.truncf %8 : vector<256x1024xf32> to vector<256x1024xbf16>
    %c0_6 = arith.constant 0 : index
    %c0_7 = arith.constant 0 : index
    %10 = vector.load %arg4[%c0_6, %c0_7] : memref<1024x384xbf16, #tpu.memory_space<vmem>>, vector<1024x384xbf16>
    %cst_8 = arith.constant dense<0.000000e+00> : vector<256x384xf32>
    %11 = tpu.matmul %9, %10, %cst_8 {dimension_numbers = #tpu.dot_dimension_numbers<[1], [0], [0], [1], [0, 0, 1, 1], [], []>} : vector<256x1024xbf16>, vector<1024x384xbf16>, vector<256x384xf32> -> vector<256x384xf32>
    %c0_9 = arith.constant 0 : index
    %c0_10 = arith.constant 0 : index
    %12 = vector.load %arg5[%c0_9, %c0_10] : memref<1x384xf32, #tpu.memory_space<vmem>>, vector<1x384xf32>
    %13 = vector.broadcast %12 : vector<1x384xf32> to vector<256x384xf32>
    %14 = arith.addf %11, %13 : vector<256x384xf32>
    %cst_11 = arith.constant 0.000000e+00 : f32
    %15 = vector.broadcast %cst_11 : f32 to vector<256x384xf32>
    %16 = arith.maximumf %14, %15 : vector<256x384xf32>
    %c0_12 = arith.constant 0 : index
    %c0_13 = arith.constant 0 : index
    %17 = vector.load %arg6[%c0_12, %c0_13] : memref<256x384xf32, #tpu.memory_space<vmem>>, vector<256x384xf32>
    tpu.vector_store %arg6[%c0_12, %c0_13], %16 {strides = array<i32>} : memref<256x384xf32, #tpu.memory_space<vmem>>, vector<256x384xf32>,
    return
  }
  func.func @transform_0(%arg0: i32) -> (i32, i32) {
    %c0_i32 = arith.constant 0 : i32
    %c0_i32_0 = arith.constant 0 : i32
    return %arg0, %c0_i32 : i32, i32
  }
  func.func @transform_1(%arg0: i32) -> (i32, i32) {
    %c0_i32 = arith.constant 0 : i32
    %c0_i32_0 = arith.constant 0 : i32
    %c0_i32_1 = arith.constant 0 : i32
    return %c0_i32, %c0_i32_0 : i32, i32
  }
  func.func @transform_2(%arg0: i32) -> (i32, i32) {
    %c0_i32 = arith.constant 0 : i32
    %c0_i32_0 = arith.constant 0 : i32
    %c0_i32_1 = arith.constant 0 : i32
    return %c0_i32, %c0_i32_0 : i32, i32
  }
  func.func @transform_3(%arg0: i32) -> (i32, i32) {
    %c0_i32 = arith.constant 0 : i32
    %c0_i32_0 = arith.constant 0 : i32
    %c0_i32_1 = arith.constant 0 : i32
    return %c0_i32, %c0_i32_0 : i32, i32
  }
  func.func @transform_4(%arg0: i32) -> (i32, i32) {
    %c0_i32 = arith.constant 0 : i32
    %c0_i32_0 = arith.constant 0 : i32
    %c0_i32_1 = arith.constant 0 : i32
    return %c0_i32, %c0_i32_0 : i32, i32
  }
  func.func @transform_5(%arg0: i32) -> (i32, i32) {
    %c0_i32 = arith.constant 0 : i32
    %c0_i32_0 = arith.constant 0 : i32
    return %arg0, %c0_i32 : i32, i32
  }
}

</mosaic_0001>

<bundles_post_ra>
// kernel: tpu_custom_call.1
= control target key start
LH: loop header
LB: loop body
LE: loop exit
PB: predicated region body
PF: predicated region fallthrough
CT: control target
= control target key end

     0   :  { %10 = vsyncpa [#allocation3], 0  ;;  %s14713_s0 = inlined_call_operand.hbm [shape: bf16[512,512], index: 0, kind: input, shape index: {}]   ;;  %s14714_s1 = inlined_call_operand.hbm [shape: bf16[512,1024], index: 1, kind: input, shape index: {}]   ;;  %s14715_s2 = inlined_call_operand.hbm [shape: f32[1,1024], index: 2, kind: input, shape index: {}]   ;;  %s14716_s3 = inlined_call_operand.hbm [shape: bf16[1024,384], index: 3, kind: input, shape index: {}]   ;;  %s14717_s4 = inlined_call_operand.vmem [shape: f32[1,384], index: 4, kind: input, shape index: {}]   ;;  %s14718_s5 = inlined_call_operand.hbm [shape: f32[512,384], index: 5, kind: output, shape index: {}]  }
   0x1   :  { %12 = vsyncpa [#allocation3 + $0x1], 0 }
   0x2   :  { %13 = vsyncpa [#allocation6], 0 }
   0x3   :  { %14 = vsyncpa [#allocation9], 0 }
   0x4   :  { %15 = vsyncpa [#allocation4], 0 }
   0x5   :  { %17 = vsyncpa [#allocation4 + $0x1], 0  ;;  %s12372_s18 = smov 0   ;;  %s12374_s19 = smov 0  }
   0x6   :  { %s12376_s20 = smov 0   ;;  %s12378_s21 = smov 0  }
   0x7 LB: > { %s12393_s22 = sadd.s32 4294967295, %s12329_s21   ;;  %s9457_s23 = sadd.s32 4294967294, %s12329_s21   ;;  %s12329_s21 = sphi %s12378_s21, %s15591_s21   ;;  %s12325_s20 = sphi %s12376_s20, %s15590_s20   ;;  %s12321_s19 = sphi %s12374_s19, %s15589_s19   ;;  %s12317_s18 = sphi %s12372_s18, %s15588_s18  }
   0x8   : > { %p43_p0 = scmp.ne.s32.totalorder %s12321_s19, %s12317_s18  ;;  %p44_p1 = scmp.eq.s32.totalorder %s12393_s22, 0 }
   0x9   : > { %p151_p2 = scmp.eq.s32.totalorder %s12393_s22, 1  ;;  %p157_p3 = scmp.eq.s32.totalorder %s9457_s23, 1 }
   0xa   : > { %p12402_p4 = por %p44_p1, %p43_p0  ;;  %p9458_p5 = scmp.ge.s32.totalorder %s12329_s21, 1 }
   0xb   : > { %p12407_p6 = por %p157_p3, %p43_p0  ;;  %p164_p7 = scmp.lt.s32.totalorder %s12329_s21, 3 }
   0xc   : > { %s175_s28 = sshll.u32 %s14714_s1, 4  ;;  %s12331_s30 = smov [#allocation5]   ;;  %s176_s28 = int_to_ptr.hbm [resolvable:$true] %s175_s28 }
   0xd   : > { %p12415_p8 = pnand %p9458_p5, %p164_p7  ;;  %s177_s6 = sshll.u32 %s12331_s30, 4  ;;  %s178_s6 = int_to_ptr.vmem [resolvable:$true] %s177_s6 }
   0xe   : > { %s190_s10 = sshll.u32 %s14715_s2, 4  ;;  %s12332_s11 = smov 512   ;;  %s191_s10 = int_to_ptr.hbm [resolvable:$true] %s190_s10 }
   0xf   : > { %p12057_p9 = pneg %p12415_p8  ;;  %s12333_s12 = smov 32  }
  0x10   : > { %s12334_s13 = smov [#allocation7]   ;;  %s201_s17 = sshll.u32 %s14716_s3, 4  ;;  %s202_s17 = int_to_ptr.hbm [resolvable:$true] %s201_s17 }
  0x11   : > { %p12423_p10 = pnand %p12057_p9, %p44_p1  ;;  %s192_s14 = sshll.u32 %s12334_s13, 4  ;;  %s193_s14 = int_to_ptr.vmem [resolvable:$true] %s192_s14 }
  0x12   : > { %s12335_s23 = smov [#allocation8]   ;;  %s12336_s27 = smov 192  }
  0x13   : > { %12060 = dma.hbm_to_vmem [thread:$0]  (!%p12423_p10), %s176_s28, 32768, %s178_s6, [#allocation6], %s12332_s11, %s12332_s11, %s12333_s12  }
  0x14   : > { %12063 = dma.hbm_to_vmem [thread:$0]  (!%p12423_p10), %s191_s10, 128, %s193_s14, [#allocation6]  }
  0x15   : > { %s203_s26 = sshll.u32 %s12335_s23, 4  ;;  %s12337_s28 = smov 12   ;;  %s204_s26 = int_to_ptr.vmem [resolvable:$true] %s203_s26 }
  0x16   : > { %12066 = dma.hbm_to_vmem [thread:$0]  (!%p12423_p10), %s202_s17, 24576, %s204_s26, [#allocation9], %s12336_s27, %s12336_s27, %s12337_s28  }
  0x17   : > { %s12441_s30 = sadd.s32 1, %s12329_s21   ;;  %s30_s8 = sadd.s32 1, %s12325_s20 }
  0x18   : > { %s27_s6 = ssub.s32 %s12329_s21, %s12441_s30  ;;  %p37_p13 = scmp.ne.s32.totalorder %s12325_s20, %s12321_s19 }
  0x19   : > { %p28_p12 = scmp.eq.s32.totalorder %s27_s6, 0  ;;  %p38_p0 = scmp.eq.s32.totalorder %s12329_s21, 0 }
  0x1a   : > { %p12078_p3 = scmp.lt.s32.totalorder %s12329_s21, 2  ;;  %p12455_p7 = por %p151_p2, %p37_p13 }
  0x1b   : > { %s12451_s9 = scalar_select %p28_p12, %s12325_s20, %s30_s8  }
  0x1c   : > { %p39_p5 = por %p38_p0, %p37_p13  ;;  %s220_s7 = sand.u32 1, %s12325_s20  }
  0x1d   : > { %s11526_s11 = sshll.u32 %s12329_s21, 9  ;;  %s9463_s12 = sshll.u32 %s220_s7, 9 }
  0x1e   : > { %s230_s15 = scalar_lea.hbm %s14713_s0, %s11526_s11  ;;  %s224_s17 = scalar_lea.vmem [#allocation2], %s9463_s12 }
  0x1f   : > { %s231_s16 = sshll.u32 %s230_s15, 4  ;;  %s233_s23 = sshll.u32 %s224_s17, 4  ;;  %s232_s16 = int_to_ptr.hbm [resolvable:$true] %s231_s16  ;;  %s234_s23 = int_to_ptr.vmem [resolvable:$true] %s233_s23 }
  0x20   : > { %p12466_p9 = pnand %p12078_p3, %p39_p5  ;;  %s221_s27 = scalar_lea.sflag [#allocation3], %s220_s7 }
  0x21   : > { %s12225_s28 = sshra.s32 %s232_s16, 4  ;;  %s12232_s12 = scalar_lea.hbm %s14713_s0, 1024  ;;  %s12226_s28 = int_to_ptr.hbm [resolvable:$true] %s12225_s28 }
  0x22   : > { %s12227_s6 = scalar_lea.hbm %s12226_s28, 512  ;;  %p12229_p10 = pneg %p12466_p9 }
  0x23   : > { %p12228_p2 = scmp.ne.s32.totalorder %s12226_s28, %s12227_s6  ;;  %p12233_p0 = scmp.lt.s32.totalorder %s12226_s28, %s14713_s0 }
  0x24   : > { %p12234_p3 = scmp.lt.s32.totalorder %s12232_s12, %s12227_s6 }
  0x25   : > { %p12230_p12 = pnand %p12229_p10, %p12228_p2 }
  0x26   : > { %p12235_p5 = por %p12234_p3, %p12233_p0 }
  0x27   : > { %p12231_p13 = pneg %p12230_p12 }
  0x29   : > { %p12236_p11 = pnand %p12235_p5, %p12231_p13 }
  0x2b   : > { %12239 = shalt.err (!%p12236_p11)
}
  0x2c   : > { %s12338_s7 = smov 256   ;;  %s12339_s15 = smov 16  }
  0x2d   : > { %12070 = dma.hbm_to_vmem [thread:$0]  (!%p12466_p9), %s232_s16, 8192, %s234_s23, %s221_s27, %s12338_s7, %s12338_s7, %s12339_s15  }
  0x2e   : > { %245 = sbr.rel (%p12415_p8) target bundleno = 3844 (0xf04), region = 40 }
  0x33   : > { %s12483_s17 = sand.u32 1, %s12321_s19  }
  0x34   : > { %s9468_s8 = sshll.u32 %s12483_s17, 9  ;;  %s248_s28 = scalar_lea.sflag [#allocation3], %s12483_s17 }
  0x35   : > { %s12487_s6 = scalar_lea.vmem [#allocation2], %s9468_s8 }
  0x36   : > { %12300 = dma.done.wait (%p12402_p4), %s248_s28, 8192  }
  0x37   : > { %12302 = vsyncadd (%p12402_p4), %s248_s28, 4294959104 }
  0x38   : > { %12304 = dma.done.wait (%p44_p1), [#allocation6], 32896  }
  0x39   : > { %12306 = vsyncadd (%p44_p1), [#allocation6], 4294934400 }
  0x3a   : > { %12308 = dma.done.wait (%p44_p1), [#allocation9], 24576  }
  0x3b   : > { %12310 = vsyncadd (%p44_p1), [#allocation9], 4294942720  ;;  %v9954_v0 = vld [vmem:[#allocation5 + $0x1c0] sm:$0xf]  ;;  %s12039_s16 = smul.u32 768, %s12483_s17  ;;  %s12275_s26 = scalar_lea.hbm %s14718_s5, 1536 }
  0x3c   : > { %v11651_v1 = vld [vmem:[#allocation5 + $0x1dc] sm:$0xf0]  ;;  %s12040_s13 = smul.u32 768, %s12393_s22  ;;  %s9339_s22 = scalar_lea.sflag [#allocation4], %s12483_s17 }
  0x3d   : > { %v10210_v2 = vld [vmem:[#allocation5 + $0x3c0] sm:$0xf]  ;;  %v9955_v3 = vor.u32 %v11651_v1, %v9954_v0  ;;  %s14001_s23 = scalar_lea.vmem [#allocation10], %s12039_s16 }
  0x3e   : > { %v11715_v4 = vld [vmem:[#allocation5 + $0x3dc] sm:$0xf0]  ;;  %s9351_s15 = scalar_lea.hbm %s14718_s5, %s12040_s13  ;;  %s9352_s8 = sshll.u32 %s14001_s23, 4  ;;  %s9353_s8 = int_to_ptr.vmem [resolvable:$true] %s9352_s8 }
  0x3f   : > { %v10466_v5 = vld [vmem:[#allocation5 + $0x5c0] sm:$0xf]  ;;  %v10211_v7 = vor.u32 %v11715_v4, %v10210_v2  ;;  %2234 = vmatpush.bf16.msra.mxu0 %v9955_v3  ;;  %s9354_s28 = sshll.u32 %s9351_s15, 4  ;;  %s9355_s28 = int_to_ptr.hbm [resolvable:$true] %s9354_s28 }
  0x40   : > { %v11779_v6 = vld [vmem:[#allocation5 + $0x5dc] sm:$0xf0] }
  0x41   : > { %v10467_v8 = vor.u32 %v11779_v6, %v10466_v5  ;;  %v10722_v9 = vld [vmem:[#allocation5 + $0x7c0] sm:$0xf]  ;;  %2323 = vmatpush.bf16.msra.mxu1 %v10211_v7 }
  0x42   : > { %v11843_v10 = vld [vmem:[#allocation5 + $0x7dc] sm:$0xf0] }
  0x43   : > { %v9922_v11 = vld [vmem:[#allocation5 + $0x180] sm:$0xf]  ;;  %v10723_v12 = vor.u32 %v11843_v10, %v10722_v9  ;;  %2412 = vmatpush.bf16.msra.mxu2 %v10467_v8 }
  0x44   : > { %v11643_v13 = vld [vmem:[#allocation5 + $0x19c] sm:$0xf0] }
  0x45   : > { %v10178_v14 = vld [vmem:[#allocation5 + $0x380] sm:$0xf]  ;;  %v9923_v16 = vor.u32 %v11643_v13, %v9922_v11  ;;  %2501 = vmatpush.bf16.msra.mxu3 %v10723_v12 }
  0x46   : > { %v11707_v15 = vld [vmem:[#allocation5 + $0x39c] sm:$0xf0] }
  0x47   : > { %v10179_v17 = vor.u32 %v11707_v15, %v10178_v14  ;;  %v10434_v18 = vld [vmem:[#allocation5 + $0x580] sm:$0xf]  ;;  %2235 = vmatpush.bf16.msra.mxu0 %v9923_v16 }
  0x48   : > { %v11771_v19 = vld [vmem:[#allocation5 + $0x59c] sm:$0xf0] }
  0x49   : > { %v10690_v20 = vld [vmem:[#allocation5 + $0x780] sm:$0xf]  ;;  %v10435_v21 = vor.u32 %v11771_v19, %v10434_v18  ;;  %2324 = vmatpush.bf16.msra.mxu1 %v10179_v17 }
  0x4a   : > { %v11835_v22 = vld [vmem:[#allocation5 + $0x79c] sm:$0xf0] }
  0x4b   : > { %v9890_v23 = vld [vmem:[#allocation5 + $0x140] sm:$0xf]  ;;  %v10691_v25 = vor.u32 %v11835_v22, %v10690_v20  ;;  %2413 = vmatpush.bf16.msra.mxu2 %v10435_v21 }
  0x4c   : > { %v11635_v24 = vld [vmem:[#allocation5 + $0x15c] sm:$0xf0] }
  0x4d   : > { %v10146_v26 = vld [vmem:[#allocation5 + $0x340] sm:$0xf]  ;;  %v9891_v29 = vor.u32 %v11635_v24, %v9890_v23  ;;  %2502 = vmatpush.bf16.msra.mxu3 %v10691_v25 }
  0x4e   : > { %v11699_v27 = vld [vmem:[#allocation5 + $0x35c] sm:$0xf0] }
  0x4f   : > { %v10402_v28 = vld [vmem:[#allocation5 + $0x540] sm:$0xf]  ;;  %v10147_v33 = vor.u32 %v11699_v27, %v10146_v26  ;;  %2236 = vmatpush.bf16.msra.mxu0 %v9891_v29  ;;  %v11529_v29 = vld [vmem:[%s12487_s6 + $0xc] sm:$0xf0] }
  0x50   : > { %v11763_v30 = vld [vmem:[#allocation5 + $0x55c] sm:$0xf0] }
  0x51   : > { %v10658_v31 = vld [vmem:[#allocation5 + $0x740] sm:$0xf]  ;;  %v10403_v34 = vor.u32 %v11763_v30, %v10402_v28  ;;  %2325 = vmatpush.bf16.msra.mxu1 %v10147_v33  ;;  %v11527_v30 = vld [vmem:[%s12487_s6 + $0x4] sm:$0xf] }
  0x52   : > { %v11827_v32 = vld [vmem:[#allocation5 + $0x75c] sm:$0xf0] }
  0x53   : > { %v9858_v35 = vld [vmem:[#allocation5 + $0x100] sm:$0xf]  ;;  %v10659_v38 = vor.u32 %v11827_v32, %v10658_v31  ;;  %2414 = vmatpush.bf16.msra.mxu2 %v10403_v34  ;;  %v11775_v31 = vld [vmem:[#allocation5 + $0x5c4] sm:$0xf]  ;;  %v9476_v34 = vld [vmem:[%s12487_s6 + $0x10] sm:$0xf0] }
  0x54   : > { %v11627_v36 = vld [vmem:[#allocation5 + $0x11c] sm:$0xf0]  ;;  %v10468_v32 = vld [vmem:[#allocation5 + $0x5e0] sm:$0xf0] }
  0x55   : > { %v10114_v37 = vld [vmem:[#allocation5 + $0x300] sm:$0xf]  ;;  %v9859_v44 = vor.u32 %v11627_v36, %v9858_v35  ;;  %2503 = vmatpush.bf16.msra.mxu3 %v10659_v38  ;;  %v11839_v35 = vld [vmem:[#allocation5 + $0x7c4] sm:$0xf] }
  0x56   : > { %v11691_v39 = vld [vmem:[#allocation5 + $0x31c] sm:$0xf0]  ;;  %v10724_v36 = vld [vmem:[#allocation5 + $0x7e0] sm:$0xf0] }
  0x57   : > { %v10370_v40 = vld [vmem:[#allocation5 + $0x500] sm:$0xf]  ;;  %v10115_v45 = vor.u32 %v11691_v39, %v10114_v37  ;;  %2237 = vmatpush.bf16.msra.mxu0 %v9859_v44  ;;  %v9482_v39 = vld [vmem:[%s12487_s6 + $0x8] sm:$0xf]  ;;  %v10471_v44 = vor.u32 %v11775_v31, %v10468_v32  ;;  %v9892_v32 = vld [vmem:[#allocation5 + $0x160] sm:$0xf0] }
  0x58   : > { %v11755_v41 = vld [vmem:[#allocation5 + $0x51c] sm:$0xf0] }
  0x59   : > { %v10626_v42 = vld [vmem:[#allocation5 + $0x700] sm:$0xf]  ;;  %v10371_v46 = vor.u32 %v11755_v41, %v10370_v40  ;;  %2326 = vmatpush.bf16.msra.mxu1 %v10115_v45  ;;  %v11530_v40 = vld [vmem:[%s12487_s6 + $0x14] sm:$0xf0]  ;;  %v11528_v41 = vld [vmem:[%s12487_s6 + $0xc] sm:$0xf] }
  0x5a   : > { %v11819_v43 = vld [vmem:[#allocation5 + $0x71c] sm:$0xf0]  ;;  %v11647_v45 = vld [vmem:[#allocation5 + $0x1c4] sm:$0xf] }
  0x5b   : > { %v9826_v47 = vld [vmem:[#allocation5 + $0xc0] sm:$0xf]  ;;  %v10627_v50 = vor.u32 %v11819_v43, %v10626_v42  ;;  %2415 = vmatpush.bf16.msra.mxu2 %v10371_v46  ;;  %v9484_v43 = vld [vmem:[%s12487_s6 + $0x18] sm:$0xf0]  ;;  %v9956_v46 = vld [vmem:[#allocation5 + $0x1e0] sm:$0xf0] }
  0x5c   : > { %v11619_v48 = vld [vmem:[#allocation5 + $0xdc] sm:$0xf0] }
  0x5d   : > { %v10082_v49 = vld [vmem:[#allocation5 + $0x2c0] sm:$0xf]  ;;  %v9827_v56 = vor.u32 %v11619_v48, %v9826_v47  ;;  %2504 = vmatpush.bf16.msra.mxu3 %v10627_v50  ;;  %v10727_v48 = vor.u32 %v11839_v35, %v10724_v36  ;;  %v10212_v50 = vld [vmem:[#allocation5 + $0x3e0] sm:$0xf0] }
  0x5e   : > { %v11683_v51 = vld [vmem:[#allocation5 + $0x2dc] sm:$0xf0] }
  0x5f   : > { %v10338_v52 = vld [vmem:[#allocation5 + $0x4c0] sm:$0xf]  ;;  %v10083_v57 = vor.u32 %v11683_v51, %v10082_v49  ;;  %2238 = vmatpush.bf16.msra.mxu0 %v9827_v56  ;;  %v11711_v49 = vld [vmem:[#allocation5 + $0x3c4] sm:$0xf]  ;;  %v12511_v51 = vor.u32 %v11527_v30, %v9476_v34 }
  0x60   : > { %v11747_v53 = vld [vmem:[#allocation5 + $0x4dc] sm:$0xf0]  ;;  %v11767_v56 = vld [vmem:[#allocation5 + $0x584] sm:$0xf] }
  0x61   : > { %v10594_v54 = vld [vmem:[#allocation5 + $0x6c0] sm:$0xf]  ;;  %v10339_v58 = vor.u32 %v11747_v53, %v10338_v52  ;;  %2327 = vmatpush.bf16.msra.mxu1 %v10083_v57  ;;  %v12513_v52 = vor.u32 %v11530_v40, %v9482_v39  ;;  %v12515_v53 = vor.u32 %v11528_v41, %v9484_v43  ;;  %v10436_v57 = vld [vmem:[#allocation5 + $0x5a0] sm:$0xf0]  ;;  %v11541_v41 = vld [vmem:[%s12487_s6 + $0x6c] sm:$0xf0] }
  0x62   : > { %v11811_v55 = vld [vmem:[#allocation5 + $0x6dc] sm:$0xf0]  ;;  %v11631_v30 = vld [vmem:[#allocation5 + $0x144] sm:$0xf]  ;;  %v9524_v43 = vld [vmem:[%s12487_s6 + $0x70] sm:$0xf0] }
  0x63   : > { %v9794_v59 = vld [vmem:[#allocation5 + $0x80] sm:$0xf]  ;;  %v10595_v62 = vor.u32 %v11811_v55, %v10594_v54  ;;  %2416 = vmatpush.bf16.msra.mxu2 %v10339_v58  ;;  %14908 = vst [vmem:[#allocation15_spill] sm:$0xff] %v12513_v52  ;;  %v9959_v54 = vor.u32 %v11647_v45, %v9956_v46  ;;  %v10215_v55 = vor.u32 %v11711_v49, %v10212_v50  ;;  %v11639_v58 = vld [vmem:[#allocation5 + $0x184] sm:$0xf] }
  0x64   : > { %v11611_v60 = vld [vmem:[#allocation5 + $0x9c] sm:$0xf0]  ;;  %14909 = vst [vmem:[#allocation16_spill] sm:$0xff] %v12515_v53  ;;  %v10660_v34 = vld [vmem:[#allocation5 + $0x760] sm:$0xf0]  ;;  %v9895_v35 = vor.u32 %v11631_v30, %v9892_v32 }
  0x65   : > { %v10050_v61 = vld [vmem:[#allocation5 + $0x280] sm:$0xf]  ;;  %v9795_v4 = vor.u32 %v11611_v60, %v9794_v59  ;;  %2505 = vmatpush.bf16.msra.mxu3 %v10595_v62  ;;  %v10439_v59 = vor.u32 %v11767_v56, %v10436_v57  ;;  %v9924_v60 = vld [vmem:[#allocation5 + $0x1a0] sm:$0xf0]  ;;  %v11542_v45 = vld [vmem:[%s12487_s6 + $0x74] sm:$0xf0] }
  0x66   : > { %v11675_v63 = vld [vmem:[#allocation5 + $0x29c] sm:$0xf0]  ;;  %v10692_v62 = vld [vmem:[#allocation5 + $0x7a0] sm:$0xf0]  ;;  %v11540_v46 = vld [vmem:[%s12487_s6 + $0x6c] sm:$0xf] }
  0x67   : > { %v10306_v0 = vld [vmem:[#allocation5 + $0x480] sm:$0xf]  ;;  %v10051_v5 = vor.u32 %v11675_v63, %v10050_v61  ;;  %2239 = vmatpush.bf16.msra.mxu0 %v9795_v4  ;;  %v11831_v61 = vld [vmem:[#allocation5 + $0x784] sm:$0xf]  ;;  %v9927_v63 = vor.u32 %v11639_v58, %v9924_v60  ;;  %v11545_v57 = vld [vmem:[%s12487_s6 + $0x8c] sm:$0xf0] }
  0x68   : > { %v11739_v1 = vld [vmem:[#allocation5 + $0x49c] sm:$0xf0]  ;;  %v11543_v58 = vld [vmem:[%s12487_s6 + $0x84] sm:$0xf]  ;;  %v9546_v60 = vld [vmem:[%s12487_s6 + $0x88] sm:$0xf] }
  0x69   : > { %v10562_v2 = vld [vmem:[#allocation5 + $0x680] sm:$0xf]  ;;  %v10307_v6 = vor.u32 %v11739_v1, %v10306_v0  ;;  %2328 = vmatpush.bf16.msra.mxu1 %v10051_v5  ;;  %v10695_v0 = vor.u32 %v11831_v61, %v10692_v62  ;;  %v11703_v1 = vld [vmem:[#allocation5 + $0x384] sm:$0xf]  ;;  %v11533_v5 = vld [vmem:[%s12487_s6 + $0x2c] sm:$0xf0] }
  0x6a   : > { %v11803_v3 = vld [vmem:[#allocation5 + $0x69c] sm:$0xf0]  ;;  %v11546_v61 = vld [vmem:[%s12487_s6 + $0x94] sm:$0xf0]  ;;  %v11544_v62 = vld [vmem:[%s12487_s6 + $0x8c] sm:$0xf] }
  0x6b   : > { %v9762_v7 = vld [vmem:[#allocation5 + $0x40] sm:$0xf]  ;;  %v10563_v10 = vor.u32 %v11803_v3, %v10562_v2  ;;  %2417 = vmatpush.bf16.msra.mxu2 %v10307_v6  ;;  %v10180_v2 = vld [vmem:[#allocation5 + $0x3a0] sm:$0xf0]  ;;  %v11548_v30 = vld [vmem:[%s12487_s6 + $0xac] sm:$0xf] }
  0x6c   : > { %v11603_v8 = vld [vmem:[#allocation5 + $0x5c] sm:$0xf0]  ;;  %v10183_v3 = vor.u32 %v11703_v1, %v10180_v2  ;;  %v11531_v6 = vld [vmem:[%s12487_s6 + $0x24] sm:$0xf]  ;;  %v12593_v2 = vor.u32 %v11546_v61, %v9546_v60 }
  0x6d   : > { %v10018_v9 = vld [vmem:[#allocation5 + $0x240] sm:$0xf]  ;;  %v9763_v17 = vor.u32 %v11603_v8, %v9762_v7  ;;  %2506 = vmatpush.bf16.msra.mxu3 %v10563_v10  ;;  %v9492_v7 = vld [vmem:[%s12487_s6 + $0x30] sm:$0xf0]  ;;  %v9498_v8 = vld [vmem:[%s12487_s6 + $0x28] sm:$0xf] }
  0x6e   : > { %v11667_v11 = vld [vmem:[#allocation5 + $0x25c] sm:$0xf0]  ;;  %v11532_v10 = vld [vmem:[%s12487_s6 + $0x2c] sm:$0xf]  ;;  %v9828_v60 = vld [vmem:[#allocation5 + $0xe0] sm:$0xf0] }
  0x6f   : > { %v10274_v12 = vld [vmem:[#allocation5 + $0x440] sm:$0xf]  ;;  %v10019_v21 = vor.u32 %v11667_v11, %v10018_v9  ;;  %2240 = vmatpush.bf16.msra.mxu0 %v9763_v17  ;;  %v11534_v9 = vld [vmem:[%s12487_s6 + $0x34] sm:$0xf0]  ;;  %v9500_v11 = vld [vmem:[%s12487_s6 + $0x38] sm:$0xf0] }
  0x70   : > { %v11731_v13 = vld [vmem:[#allocation5 + $0x45c] sm:$0xf0]  ;;  %v11537_v17 = vld [vmem:[%s12487_s6 + $0x4c] sm:$0xf0]  ;;  %v11807_v61 = vld [vmem:[#allocation5 + $0x6c4] sm:$0xf] }
  0x71   : > { %v10530_v14 = vld [vmem:[#allocation5 + $0x640] sm:$0xf]  ;;  %v10275_v22 = vor.u32 %v11731_v13, %v10274_v12  ;;  %2329 = vmatpush.bf16.msra.mxu1 %v10019_v21  ;;  %v12531_v13 = vor.u32 %v11531_v6, %v9492_v7  ;;  %v11538_v21 = vld [vmem:[%s12487_s6 + $0x54] sm:$0xf0]  ;;  %v11623_v6 = vld [vmem:[#allocation5 + $0x104] sm:$0xf] }
  0x72   : > { %v11795_v15 = vld [vmem:[#allocation5 + $0x65c] sm:$0xf0] }
  0x73   : > { %v9730_v16 = vld [vmem:[#allocation5] sm:$0xf]  ;;  %v10531_v26 = vor.u32 %v11795_v15, %v10530_v14  ;;  %2418 = vmatpush.bf16.msra.mxu2 %v10275_v22  ;;  %v12533_v14 = vor.u32 %v11534_v9, %v9498_v8  ;;  %v12535_v15 = vor.u32 %v11532_v10, %v9500_v11  ;;  %v11536_v22 = vld [vmem:[%s12487_s6 + $0x4c] sm:$0xf]  ;;  %v9860_v8 = vld [vmem:[#allocation5 + $0x120] sm:$0xf0] }
  0x74   : > { %v11595_v18 = vld [vmem:[#allocation5 + $0x1c] sm:$0xf0]  ;;  %v11815_v9 = vld [vmem:[#allocation5 + $0x704] sm:$0xf]  ;;  %v9863_v11 = vor.u32 %v11623_v6, %v9860_v8  ;;  %v11557_v6 = vld [vmem:[%s12487_s6 + $0xec] sm:$0xf0] }
  0x75   : > { %v9986_v19 = vld [vmem:[#allocation5 + $0x200] sm:$0xf]  ;;  %v9731_v33 = vor.u32 %v11595_v18, %v9730_v16  ;;  %2507 = vmatpush.bf16.msra.mxu3 %v10531_v26  ;;  %v11535_v18 = vld [vmem:[%s12487_s6 + $0x44] sm:$0xf]  ;;  %v9588_v8 = vld [vmem:[%s12487_s6 + $0xf0] sm:$0xf0] }
  0x76   : > { %v11659_v20 = vld [vmem:[#allocation5 + $0x21c] sm:$0xf0]  ;;  %v10628_v10 = vld [vmem:[#allocation5 + $0x720] sm:$0xf0] }
  0x77   : > { %v10242_v23 = vld [vmem:[#allocation5 + $0x400] sm:$0xf]  ;;  %v9987_v37 = vor.u32 %v11659_v20, %v9986_v19  ;;  %2241 = vmatpush.bf16.msra.mxu0 %v9731_v33  ;;  %v9508_v19 = vld [vmem:[%s12487_s6 + $0x50] sm:$0xf0]  ;;  %v9514_v20 = vld [vmem:[%s12487_s6 + $0x48] sm:$0xf] }
  0x78   : > { %v11723_v24 = vld [vmem:[#allocation5 + $0x41c] sm:$0xf0]  ;;  %v12553_v26 = vor.u32 %v11538_v21, %v9514_v20  ;;  %v11823_v33 = vld [vmem:[#allocation5 + $0x744] sm:$0xf]  ;;  %v11549_v21 = vld [vmem:[%s12487_s6 + $0xac] sm:$0xf0] }
  0x79   : > { %v10498_v25 = vld [vmem:[#allocation5 + $0x600] sm:$0xf]  ;;  %v10243_v38 = vor.u32 %v11723_v24, %v10242_v23  ;;  %2330 = vmatpush.bf16.msra.mxu1 %v9987_v37  ;;  %v9516_v23 = vld [vmem:[%s12487_s6 + $0x58] sm:$0xf0]  ;;  %v10663_v36 = vor.u32 %v11823_v33, %v10660_v34  ;;  %v11695_v37 = vld [vmem:[#allocation5 + $0x344] sm:$0xf] }
  0x7a   : > { %v11787_v27 = vld [vmem:[#allocation5 + $0x61c] sm:$0xf0] }
  0x7b   : > { %v9474_v28 = vld [vmem:[%s12487_s6] sm:$0xf]  ;;  %v10499_v42 = vor.u32 %v11787_v27, %v10498_v25  ;;  %2419 = vmatpush.bf16.msra.mxu2 %v10243_v38  ;;  %2590 = vmatpush.bf16.msrb.mxu0 %v9959_v54  ;;  %v12551_v25 = vor.u32 %v11535_v18, %v9508_v19  ;;  %v12555_v27 = vor.u32 %v11536_v22, %v9516_v23  ;;  %v10148_v38 = vld [vmem:[#allocation5 + $0x360] sm:$0xf0]  ;;  %v9556_v23 = vld [vmem:[%s12487_s6 + $0xb0] sm:$0xf0] }
  0x7c   : > { %v12509_v47 = vor.u32 %v11529_v29, %v9474_v28  ;;  %2331 = vmatmul.bf16.vlgmr.msra.gmra.mxu1 %v12511_v51  ;;  %v9490_v4 = vld [vmem:[%s12487_s6 + $0x20] sm:$0xf]  ;;  %v11759_v28 = vld [vmem:[#allocation5 + $0x544] sm:$0xf]  ;;  %v10151_v39 = vor.u32 %v11695_v37, %v10148_v38  ;;  %v11553_v37 = vld [vmem:[%s12487_s6 + $0xcc] sm:$0xf0] }
  0x7d   : > { %2508 = vmatpush.bf16.msra.mxu3 %v10499_v42  ;;  %2679 = vmatpush.bf16.msrb.mxu1 %v10215_v55  ;;  %v12529_v12 = vor.u32 %v11533_v5, %v9490_v4  ;;  %v9506_v16 = vld [vmem:[%s12487_s6 + $0x40] sm:$0xf]  ;;  %v10404_v29 = vld [vmem:[#allocation5 + $0x560] sm:$0xf0] }
  0x7e   : > { %2242 = vmatmul.bf16.vlgmr.msra.gmra.mxu0 %v12509_v47  ;;  %2420 = vmatmul.bf16.vlgmr.msra.gmra.mxu2 %v12513_v52  ;;  %v12549_v24 = vor.u32 %v11537_v17, %v9506_v16  ;;  %v10407_v31 = vor.u32 %v11759_v28, %v10404_v29  ;;  %v9522_v40 = vld [vmem:[%s12487_s6 + $0x60] sm:$0xf]  ;;  %v11539_v42 = vld [vmem:[%s12487_s6 + $0x64] sm:$0xf]  ;;  %v10631_v16 = vor.u32 %v11815_v9, %v10628_v10  ;;  %v9562_v28 = vld [vmem:[%s12487_s6 + $0xa8] sm:$0xf] }
  0x7f   : > { %2768 = vmatpush.bf16.msrb.mxu2 %v10471_v44  ;;  %2591 = vmatpush.bf16.msrb.mxu0 %v9927_v63  ;;  %v9530_v44 = vld [vmem:[%s12487_s6 + $0x68] sm:$0xf]  ;;  %v12569_v49 = vor.u32 %v11541_v41, %v9522_v40  ;;  %v12571_v50 = vor.u32 %v11539_v42, %v9524_v43  ;;  %v9538_v56 = vld [vmem:[%s12487_s6 + $0x80] sm:$0xf]  ;;  %v9548_v63 = vld [vmem:[%s12487_s6 + $0x98] sm:$0xf0] }
  0x80   : > { %2509 = vmatmul.bf16.vlgmr.msra.gmra.mxu3 %v12515_v53  ;;  %v12573_v54 = vor.u32 %v11542_v45, %v9530_v44  ;;  %v11751_v4 = vld [vmem:[#allocation5 + $0x504] sm:$0xf]  ;;  %v9554_v20 = vld [vmem:[%s12487_s6 + $0xa0] sm:$0xf]  ;;  %v11550_v29 = vld [vmem:[%s12487_s6 + $0xb4] sm:$0xf0] }
  0x81   : > { %2857 = vmatpush.bf16.msrb.mxu3 %v10727_v48  ;;  %2680 = vmatpush.bf16.msrb.mxu1 %v10183_v3  ;;  %v9532_v48 = vld [vmem:[%s12487_s6 + $0x78] sm:$0xf0]  ;;  %v12595_v3 = vor.u32 %v11544_v62, %v9548_v63  ;;  %v10372_v5 = vld [vmem:[#allocation5 + $0x520] sm:$0xf0]  ;;  %v12609_v32 = vor.u32 %v11549_v21, %v9554_v20  ;;  %v12613_v34 = vor.u32 %v11550_v29, %v9562_v28  ;;  %v9578_v40 = vld [vmem:[%s12487_s6 + $0xc8] sm:$0xf] }
  0x82   : > { %v12575_v55 = vor.u32 %v11540_v46, %v9532_v48  ;;  %v10375_v7 = vor.u32 %v11751_v4, %v10372_v5  ;;  %v11687_v17 = vld [vmem:[#allocation5 + $0x304] sm:$0xf]  ;;  %v11554_v41 = vld [vmem:[%s12487_s6 + $0xd4] sm:$0xf0]  ;;  %v11552_v42 = vld [vmem:[%s12487_s6 + $0xcc] sm:$0xf] }
  0x83   : > { %2769 = vmatpush.bf16.msrb.mxu2 %v10439_v59  ;;  %2592 = vmatpush.bf16.msrb.mxu0 %v9895_v35  ;;  %v9540_v59 = vld [vmem:[%s12487_s6 + $0x90] sm:$0xf0]  ;;  %v10116_v18 = vld [vmem:[#allocation5 + $0x320] sm:$0xf0]  ;;  %v9580_v43 = vld [vmem:[%s12487_s6 + $0xd8] sm:$0xf0]  ;;  %v12633_v46 = vor.u32 %v11554_v41, %v9578_v40 }
  0x84   : > { %v12591_v1 = vor.u32 %v11543_v58, %v9540_v59  ;;  %v10119_v19 = vor.u32 %v11687_v17, %v10116_v18  ;;  %v11547_v22 = vld [vmem:[%s12487_s6 + $0xa4] sm:$0xf]  ;;  %v12635_v48 = vor.u32 %v11552_v42, %v9580_v43  ;;  %v9586_v5 = vld [vmem:[%s12487_s6 + $0xe0] sm:$0xf]  ;;  %v9594_v9 = vld [vmem:[%s12487_s6 + $0xe8] sm:$0xf] }
  0x85   : > { %2858 = vmatpush.bf16.msrb.mxu3 %v10695_v0  ;;  %2681 = vmatpush.bf16.msrb.mxu1 %v10151_v39  ;;  %v12589_v0 = vor.u32 %v11545_v57, %v9538_v56  ;;  %v12611_v33 = vor.u32 %v11547_v22, %v9556_v23  ;;  %v11551_v38 = vld [vmem:[%s12487_s6 + $0xc4] sm:$0xf]  ;;  %v9572_v39 = vld [vmem:[%s12487_s6 + $0xd0] sm:$0xf0]  ;;  %v11558_v10 = vld [vmem:[%s12487_s6 + $0xf4] sm:$0xf0] }
  0x86   : > { %v12631_v45 = vor.u32 %v11551_v38, %v9572_v39  ;;  %v11743_v56 = vld [vmem:[#allocation5 + $0x4c4] sm:$0xf]  ;;  %v12653_v22 = vor.u32 %v11558_v10, %v9594_v9  ;;  %v9610_v38 = vld [vmem:[%s12487_s6 + $0x108] sm:$0xf]  ;;  %v11562_v39 = vld [vmem:[%s12487_s6 + $0x114] sm:$0xf0] }
  0x87   : > { %2770 = vmatpush.bf16.msrb.mxu2 %v10407_v31  ;;  %2593 = vmatpush.bf16.msrb.mxu0 %v9863_v11  ;;  %v9564_v31 = vld [vmem:[%s12487_s6 + $0xb8] sm:$0xf0]  ;;  %v10340_v57 = vld [vmem:[#allocation5 + $0x4e0] sm:$0xf0]  ;;  %v11556_v11 = vld [vmem:[%s12487_s6 + $0xec] sm:$0xf] }
  0x88   : > { %v12615_v35 = vor.u32 %v11548_v30, %v9564_v31  ;;  %v11615_v58 = vld [vmem:[#allocation5 + $0xc4] sm:$0xf]  ;;  %v10343_v59 = vor.u32 %v11743_v56, %v10340_v57  ;;  %v9602_v30 = vld [vmem:[%s12487_s6 + $0x100] sm:$0xf]  ;;  %v11561_v31 = vld [vmem:[%s12487_s6 + $0x10c] sm:$0xf0]  ;;  %v12675_v57 = vor.u32 %v11562_v39, %v9610_v38 }
  0x89   : > { %2859 = vmatpush.bf16.msrb.mxu3 %v10663_v36  ;;  %2682 = vmatpush.bf16.msrb.mxu1 %v10119_v19  ;;  %v9570_v36 = vld [vmem:[%s12487_s6 + $0xc0] sm:$0xf]  ;;  %v10596_v62 = vld [vmem:[#allocation5 + $0x6e0] sm:$0xf0]  ;;  %v9831_v63 = vor.u32 %v11615_v58, %v9828_v60  ;;  %v12649_v19 = vor.u32 %v11557_v6, %v9586_v5  ;;  %v11560_v40 = vld [vmem:[%s12487_s6 + $0x10c] sm:$0xf]  ;;  %v12671_v42 = vor.u32 %v11561_v31, %v9602_v30 }
  0x8a   : > { %v12629_v44 = vor.u32 %v11553_v37, %v9570_v36  ;;  %v10599_v4 = vor.u32 %v11807_v61, %v10596_v62  ;;  %v11679_v17 = vld [vmem:[#allocation5 + $0x2c4] sm:$0xf]  ;;  %v9604_v37 = vld [vmem:[%s12487_s6 + $0x110] sm:$0xf0]  ;;  %v9612_v41 = vld [vmem:[%s12487_s6 + $0x118] sm:$0xf0] }
  0x8b   : > { %2771 = vmatpush.bf16.msrb.mxu2 %v10375_v7  ;;  %2594 = vmatpush.bf16.msrb.mxu0 %v9831_v63  ;;  %v11555_v7 = vld [vmem:[%s12487_s6 + $0xe4] sm:$0xf]  ;;  %v12678_v60 = vor.u32 %v11560_v40, %v9612_v41  ;;  %v9620_v39 = vld [vmem:[%s12487_s6 + $0x130] sm:$0xf0]  ;;  %v9626_v40 = vld [vmem:[%s12487_s6 + $0x128] sm:$0xf] }
  0x8c   : > { %2336 = vmatmul.bf16.gmra.mxu1 %v12531_v13  ;;  %v10084_v18 = vld [vmem:[#allocation5 + $0x2e0] sm:$0xf0]  ;;  %v12651_v21 = vor.u32 %v11555_v7, %v9588_v8  ;;  %v11566_v41 = vld [vmem:[%s12487_s6 + $0x134] sm:$0xf0] }
  0x8d   : > { %2860 = vmatpush.bf16.msrb.mxu3 %v10631_v16  ;;  %v9596_v16 = vld [vmem:[%s12487_s6 + $0xf8] sm:$0xf0]  ;;  %v10087_v20 = vor.u32 %v11679_v17, %v10084_v18  ;;  %v616_v28 = vld [vmem:[#allocation7] sm:$0xff] }
  0x8e   : > { %2247 = vmatmul.bf16.gmra.mxu0 %v12529_v12  ;;  %2425 = vmatmul.bf16.gmra.mxu2 %v12533_v14  ;;  %v12655_v23 = vor.u32 %v11556_v11, %v9596_v16  ;;  %v12661_v29 = vperm.slane %v616_v28, 0  ;;  %v11559_v36 = vld [vmem:[%s12487_s6 + $0x104] sm:$0xf] }
  0x8f   : > { %2772 = vmatpush.bf16.msrb.mxu2 %v10343_v59  ;;  %2683 = vmatpush.bf16.msrb.mxu1 %v10087_v20  ;;  %v12673_v56 = vor.u32 %v11559_v36, %v9604_v37  ;;  %v11735_v62 = vld [vmem:[#allocation5 + $0x484] sm:$0xf]  ;;  %v9618_v36 = vld [vmem:[%s12487_s6 + $0x120] sm:$0xf]  ;;  %v11565_v37 = vld [vmem:[%s12487_s6 + $0x12c] sm:$0xf0] }
  0x90   : > { %2514 = vmatmul.bf16.gmra.mxu3 %v12535_v15  ;;  %v10308_v63 = vld [vmem:[#allocation5 + $0x4a0] sm:$0xf0] }
  0x91   : > { %2861 = vmatpush.bf16.msrb.mxu3 %v10599_v4  ;;  %v11607_v4 = vld [vmem:[#allocation5 + $0x84] sm:$0xf]  ;;  %v10311_v6 = vor.u32 %v11735_v62, %v10308_v63  ;;  %v12693_v63 = vor.u32 %v11565_v37, %v9618_v36 }
  0x92   : > { %v9796_v7 = vld [vmem:[#allocation5 + $0xa0] sm:$0xf0] }
  0x93   : > { %v11799_v8 = vld [vmem:[#allocation5 + $0x684] sm:$0xf]  ;;  %v9799_v17 = vor.u32 %v11607_v4, %v9796_v7  ;;  %2773 = vmatpush.bf16.msrb.mxu2 %v10311_v6 }
  0x94   : > { %v10564_v9 = vld [vmem:[#allocation5 + $0x6a0] sm:$0xf0] }
  0x95   : > { %v10567_v18 = vor.u32 %v11799_v8, %v10564_v9  ;;  %2595 = vmatpush.bf16.msrb.mxu0 %v9799_v17  ;;  %v11563_v38 = vld [vmem:[%s12487_s6 + $0x124] sm:$0xf]  ;;  %v12697_v9 = vor.u32 %v11566_v41, %v9626_v40 }
  0x96   : > { %v12695_v8 = vor.u32 %v11563_v38, %v9620_v39 }
  0x97   : > { %2862 = vmatpush.bf16.msrb.mxu3 %v10567_v18  ;;  %14911 = vst [vmem:[#allocation18_spill] sm:$0xff] %v12697_v9 }
  0x98   : > { %14910 = vst [vmem:[#allocation17_spill] sm:$0xff] %v12695_v8 }
  0x9c   : > { %2341 = vmatmul.bf16.gmra.mxu1 %v12551_v25 }
  0x9e   : > { %2252 = vmatmul.bf16.gmra.mxu0 %v12549_v24  ;;  %2430 = vmatmul.bf16.gmra.mxu2 %v12553_v26 }
  0xa0   : > { %2519 = vmatmul.bf16.gmra.mxu3 %v12555_v27 }
  0xac   : > { %2346 = vmatmul.bf16.gmra.mxu1 %v12571_v50 }
  0xae   : > { %2257 = vmatmul.bf16.gmra.mxu0 %v12569_v49  ;;  %2435 = vmatmul.bf16.gmra.mxu2 %v12573_v54 }
  0xb0   : > { %2524 = vmatmul.bf16.gmra.mxu3 %v12575_v55 }
  0xbc   : > { %2351 = vmatmul.bf16.gmra.mxu1 %v12591_v1 }
  0xbe   : > { %2262 = vmatmul.bf16.gmra.mxu0 %v12589_v0  ;;  %2440 = vmatmul.bf16.gmra.mxu2 %v12593_v2 }
  0xc0   : > { %2529 = vmatmul.bf16.gmra.mxu3 %v12595_v3 }
  0xcc   : > { %2356 = vmatmul.bf16.gmra.mxu1 %v12611_v33 }
  0xce   : > { %2267 = vmatmul.bf16.gmra.mxu0 %v12609_v32  ;;  %2445 = vmatmul.bf16.gmra.mxu2 %v12613_v34 }
  0xd0   : > { %2534 = vmatmul.bf16.gmra.mxu3 %v12615_v35 }
  0xdc   : > { %2361 = vmatmul.bf16.gmra.mxu1 %v12631_v45 }
  0xde   : > { %2272 = vmatmul.bf16.gmra.mxu0 %v12629_v44  ;;  %2450 = vmatmul.bf16.gmra.mxu2 %v12633_v46 }
  0xe0   : > { %2539 = vmatmul.bf16.gmra.mxu3 %v12635_v48 }
  0xec   : > { %2366 = vmatmul.bf16.gmra.mxu1 %v12651_v21 }
  0xee   : > { %2277 = vmatmul.bf16.gmra.mxu0 %v12649_v19  ;;  %2455 = vmatmul.bf16.gmra.mxu2 %v12653_v22 }
  0xf0   : > { %2544 = vmatmul.bf16.gmra.mxu3 %v12655_v23 }
  0xf9   : > { %v2332_v59 = vpop.f32.mrf.mxu1 }
  0xfb   : > { %v2243_v43 = vpop.f32.mrf.mxu0 }
  0xfc   : > { %v2244_v58 = vadd.f32 %v2243_v43, %v12661_v29  ;;  %2371 = vmatmul.bf16.gmra.mxu1 %v12673_v56  ;;  %v11564_v43 = vld [vmem:[%s12487_s6 + $0x12c] sm:$0xf] }
  0xfe   : > { %v2333_v61 = vadd.f32 %v2332_v59, %v2244_v58  ;;  %2282 = vmatmul.bf16.gmra.mxu0 %v12671_v42  ;;  %2460 = vmatmul.bf16.gmra.mxu2 %v12675_v57  ;;  %v9628_v58 = vld [vmem:[%s12487_s6 + $0x138] sm:$0xf0]  ;;  %v11671_v59 = vld [vmem:[#allocation5 + $0x284] sm:$0xf] }
 0x100   : > { %2549 = vmatmul.bf16.gmra.mxu3 %v12678_v60 }
 0x101   : > { %v2421_v5 = vpop.f32.mrf.mxu2  ;;  %v2334_v28 = vpop.f32.mrf.mxu1 }
 0x102   : > { %v2422_v10 = vadd.f32 %v2421_v5, %v2333_v61  ;;  %v10052_v61 = vld [vmem:[#allocation5 + $0x2a0] sm:$0xf0] }
 0x103   : > { %v2510_v11 = vpop.f32.mrf.mxu3  ;;  %v2245_v16 = vpop.f32.mrf.mxu0  ;;  %v10055_v4 = vor.u32 %v11671_v59, %v10052_v61 }
 0x104   : > { %v2246_v20 = vadd.f32 %v2245_v16, %v12661_v29  ;;  %v2511_v30 = vadd.f32 %v2510_v11, %v2422_v10  ;;  %v12700_v16 = vor.u32 %v11564_v43, %v9628_v58 }
 0x105   : > { %2684 = vmatpush.bf16.msrb.mxu1 %v10055_v4  ;;  %v11569_v4 = vld [vmem:[%s12487_s6 + $0x14c] sm:$0xf0] }
 0x106   : > { %v2335_v31 = vadd.f32 %v2334_v28, %v2246_v20  ;;  %14912 = vst [vmem:[#allocation19_spill] sm:$0xff] %v12700_v16  ;;  %v5082_v17 = vmul.f32 0.2, %v2511_v30 }
 0x109   : > { %v2423_v62 = vpop.f32.mrf.mxu2  ;;  %v2337_v11 = vpop.f32.mrf.mxu1 }
 0x10a   : > { %v2424_v5 = vadd.f32 %v2423_v62, %v2335_v31  ;;  %v5338_v31 = vmax.f32 %v2511_v30, %v5082_v17  ;;  %v9634_v62 = vld [vmem:[%s12487_s6 + $0x140] sm:$0xf]  ;;  %v9642_v30 = vld [vmem:[%s12487_s6 + $0x148] sm:$0xf] }
 0x10b   : > { %v2512_v6 = vpop.f32.mrf.mxu3  ;;  %v2248_v7 = vpop.f32.mrf.mxu0 }
 0x10c   : > { %v2249_v10 = vadd.f32 %v2248_v7, %v12661_v29  ;;  %v2513_v18 = vadd.f32 %v2512_v6, %v2424_v5  ;;  %2376 = vmatmul.bf16.gmra.mxu1 %v12695_v8  ;;  %v11567_v5 = vld [vmem:[%s12487_s6 + $0x144] sm:$0xf]  ;;  %v9636_v6 = vld [vmem:[%s12487_s6 + $0x150] sm:$0xf0]  ;;  %v11570_v7 = vld [vmem:[%s12487_s6 + $0x154] sm:$0xf0] }
 0x10e   : > { %v2338_v20 = vadd.f32 %v2337_v11, %v2249_v10  ;;  %2287 = vmatmul.bf16.gmra.mxu0 %v12693_v63  ;;  %v5090_v28 = vmul.f32 0.2, %v2513_v18  ;;  %2465 = vmatmul.bf16.gmra.mxu2 %v12697_v9  ;;  %v11568_v10 = vld [vmem:[%s12487_s6 + $0x14c] sm:$0xf]  ;;  %v9644_v11 = vld [vmem:[%s12487_s6 + $0x158] sm:$0xf0] }
 0x110   : > { %2554 = vmatmul.bf16.gmra.mxu3 %v12700_v16  ;;  %v5346_v36 = vmax.f32 %v2513_v18, %v5090_v28  ;;  %v12717_v18 = vor.u32 %v11569_v4, %v9634_v62  ;;  %v11727_v4 = vld [vmem:[#allocation5 + $0x444] sm:$0xf] }
 0x111   : > { %v2426_v37 = vpop.f32.mrf.mxu2  ;;  %v2339_v58 = vpop.f32.mrf.mxu1 }
 0x112   : > { %v12706_v38 = vpack.c.bf16 %v5346_v36, %v5338_v31  ;;  %v2427_v39 = vadd.f32 %v2426_v37, %v2338_v20  ;;  %14914 = vst [vmem:[#allocation21_spill] sm:$0xff] %v12717_v18  ;;  %v12719_v36 = vor.u32 %v11567_v5, %v9636_v6  ;;  %v12721_v37 = vor.u32 %v11570_v7, %v9642_v30  ;;  %v10276_v5 = vld [vmem:[#allocation5 + $0x460] sm:$0xf0] }
 0x113   : > { %v2515_v40 = vpop.f32.mrf.mxu3  ;;  %v2250_v41 = vpop.f32.mrf.mxu0  ;;  %v11599_v6 = vld [vmem:[#allocation5 + $0x44] sm:$0xf]  ;;  %v10279_v7 = vor.u32 %v11727_v4, %v10276_v5  ;;  %v11573_v5 = vld [vmem:[%s12487_s6 + $0x16c] sm:$0xf0] }
 0x114   : > { %14913 = vst [vmem:[#allocation20_spill] sm:$0xff] %v12706_v38  ;;  %v2251_v43 = vadd.f32 %v2250_v41, %v12661_v29  ;;  %v2516_v59 = vadd.f32 %v2515_v40, %v2427_v39  ;;  %v12724_v41 = vor.u32 %v11568_v10, %v9644_v11  ;;  %v9764_v10 = vld [vmem:[#allocation5 + $0x60] sm:$0xf0] }
 0x115   : > { %14915 = vst [vmem:[#allocation22_spill] sm:$0xff] %v12719_v36  ;;  %v11791_v11 = vld [vmem:[#allocation5 + $0x644] sm:$0xf]  ;;  %2774 = vmatpush.bf16.msrb.mxu2 %v10279_v7 }
 0x116   : > { %v2340_v61 = vadd.f32 %v2339_v58, %v2251_v43  ;;  %14916 = vst [vmem:[#allocation23_spill] sm:$0xff] %v12721_v37  ;;  %v5098_v43 = vmul.f32 0.2, %v2516_v59 }
 0x117   : > { %14917 = vst [vmem:[#allocation24_spill] sm:$0xff] %v12724_v41 }
 0x119   : > { %v2428_v17 = vpop.f32.mrf.mxu2  ;;  %v2342_v40 = vpop.f32.mrf.mxu1 }
 0x11a   : > { %v2429_v28 = vadd.f32 %v2428_v17, %v2340_v61  ;;  %v5354_v61 = vmax.f32 %v2516_v59, %v5098_v43  ;;  %v10532_v17 = vld [vmem:[#allocation5 + $0x660] sm:$0xf0] }
 0x11b   : > { %v2517_v20 = vpop.f32.mrf.mxu3  ;;  %v2253_v31 = vpop.f32.mrf.mxu0 }
 0x11c   : > { %v2254_v39 = vadd.f32 %v2253_v31, %v12661_v29  ;;  %v2518_v58 = vadd.f32 %v2517_v20, %v2429_v28  ;;  %2381 = vmatmul.bf16.gmra.mxu1 %v12719_v36  ;;  %v11574_v36 = vld [vmem:[%s12487_s6 + $0x174] sm:$0xf0] }
 0x11e   : > { %v2343_v38 = vadd.f32 %v2342_v40, %v2254_v39  ;;  %2292 = vmatmul.bf16.gmra.mxu0 %v12717_v18  ;;  %v5106_v16 = vmul.f32 0.2, %v2518_v58  ;;  %2470 = vmatmul.bf16.gmra.mxu2 %v12721_v37  ;;  %v9767_v39 = vor.u32 %v11599_v6, %v9764_v10  ;;  %v9658_v37 = vld [vmem:[%s12487_s6 + $0x168] sm:$0xf]  ;;  %v11572_v6 = vld [vmem:[%s12487_s6 + $0x16c] sm:$0xf] }
 0x11f   : > { %v9660_v10 = vld [vmem:[%s12487_s6 + $0x178] sm:$0xf0] }
 0x120   : > { %2559 = vmatmul.bf16.gmra.mxu3 %v12724_v41  ;;  %v5362_v62 = vmax.f32 %v2518_v58, %v5106_v16  ;;  %v10535_v16 = vor.u32 %v11791_v11, %v10532_v17  ;;  %2596 = vmatpush.bf16.msrb.mxu0 %v9767_v39  ;;  %v9652_v41 = vld [vmem:[%s12487_s6 + $0x170] sm:$0xf0]  ;;  %v11663_v11 = vld [vmem:[#allocation5 + $0x244] sm:$0xf]  ;;  %v12745_v39 = vor.u32 %v11574_v36, %v9658_v37 }
 0x121   : > { %v2431_v30 = vpop.f32.mrf.mxu2  ;;  %v2344_v43 = vpop.f32.mrf.mxu1  ;;  %v10020_v17 = vld [vmem:[#allocation5 + $0x260] sm:$0xf0] }
 0x122   : > { %v2432_v28 = vadd.f32 %v2431_v30, %v2343_v38  ;;  %v12730_v59 = vpack.c.bf16 %v5362_v62, %v5354_v61  ;;  %2863 = vmatpush.bf16.msrb.mxu3 %v10535_v16  ;;  %v9650_v38 = vld [vmem:[%s12487_s6 + $0x160] sm:$0xf]  ;;  %v11571_v30 = vld [vmem:[%s12487_s6 + $0x164] sm:$0xf]  ;;  %14921 = vst [vmem:[#allocation28_spill] sm:$0xff] %v12745_v39 }
 0x123   : > { %v2520_v20 = vpop.f32.mrf.mxu3  ;;  %v2255_v31 = vpop.f32.mrf.mxu0  ;;  %v12741_v62 = vor.u32 %v11573_v5, %v9650_v38 }
 0x124   : > { %14918 = vst [vmem:[#allocation25_spill] sm:$0xff] %v12730_v59  ;;  %v2256_v40 = vadd.f32 %v2255_v31, %v12661_v29  ;;  %v2521_v58 = vadd.f32 %v2520_v20, %v2432_v28  ;;  %v10023_v31 = vor.u32 %v11663_v11, %v10020_v17  ;;  %v12743_v20 = vor.u32 %v11571_v30, %v9652_v41 }
 0x125   : > { %14919 = vst [vmem:[#allocation26_spill] sm:$0xff] %v12741_v62 }
 0x126   : > { %v2345_v4 = vadd.f32 %v2344_v43, %v2256_v40  ;;  %14920 = vst [vmem:[#allocation27_spill] sm:$0xff] %v12743_v20  ;;  %v12748_v43 = vor.u32 %v11572_v6, %v9660_v10  ;;  %2685 = vmatpush.bf16.msrb.mxu1 %v10023_v31  ;;  %v5114_v18 = vmul.f32 0.2, %v2521_v58  ;;  %v11577_v31 = vld [vmem:[%s12487_s6 + $0x18c] sm:$0xf0] }
 0x128   : > { %14922 = vst [vmem:[#allocation29_spill] sm:$0xff] %v12748_v43  ;;  %v5370_v36 = vmax.f32 %v2521_v58, %v5114_v18  ;;  %v9674_v18 = vld [vmem:[%s12487_s6 + $0x188] sm:$0xf]  ;;  %v11578_v58 = vld [vmem:[%s12487_s6 + $0x194] sm:$0xf0] }
 0x129   : > { %v2433_v61 = vpop.f32.mrf.mxu2  ;;  %v2347_v40 = vpop.f32.mrf.mxu1 }
 0x12a   : > { %v2434_v59 = vadd.f32 %v2433_v61, %v2345_v4  ;;  %v9666_v61 = vld [vmem:[%s12487_s6 + $0x180] sm:$0xf] }
 0x12b   : > { %v2522_v7 = vpop.f32.mrf.mxu3  ;;  %v2258_v28 = vpop.f32.mrf.mxu0 }
 0x12c   : > { %v2259_v16 = vadd.f32 %v2258_v28, %v12661_v29  ;;  %v2523_v9 = vadd.f32 %v2522_v7, %v2434_v59  ;;  %2386 = vmatmul.bf16.gmra.mxu1 %v12743_v20  ;;  %v11575_v7 = vld [vmem:[%s12487_s6 + $0x184] sm:$0xf]  ;;  %v9668_v28 = vld [vmem:[%s12487_s6 + $0x190] sm:$0xf0] }
 0x12e   : > { %v2348_v8 = vadd.f32 %v2347_v40, %v2259_v16  ;;  %2297 = vmatmul.bf16.gmra.mxu0 %v12741_v62  ;;  %v5122_v38 = vmul.f32 0.2, %v2523_v9  ;;  %2475 = vmatmul.bf16.gmra.mxu2 %v12745_v39  ;;  %v9676_v16 = vld [vmem:[%s12487_s6 + $0x198] sm:$0xf0] }
 0x130   : > { %2564 = vmatmul.bf16.gmra.mxu3 %v12748_v43  ;;  %v5378_v37 = vmax.f32 %v2523_v9, %v5122_v38  ;;  %v11576_v9 = vld [vmem:[%s12487_s6 + $0x18c] sm:$0xf]  ;;  %v12765_v38 = vor.u32 %v11577_v31, %v9666_v61  ;;  %v11719_v31 = vld [vmem:[#allocation5 + $0x404] sm:$0xf] }
 0x131   : > { %v2436_v41 = vpop.f32.mrf.mxu2  ;;  %v2349_v10 = vpop.f32.mrf.mxu1 }
 0x132   : > { %v2437_v59 = vadd.f32 %v2436_v41, %v2348_v8  ;;  %v12754_v30 = vpack.c.bf16 %v5378_v37, %v5370_v36  ;;  %14924 = vst [vmem:[#allocation31_spill] sm:$0xff] %v12765_v38  ;;  %v12767_v37 = vor.u32 %v11575_v7, %v9668_v28  ;;  %v10244_v7 = vld [vmem:[#allocation5 + $0x420] sm:$0xf0] }
 0x133   : > { %v2525_v4 = vpop.f32.mrf.mxu3  ;;  %v2260_v5 = vpop.f32.mrf.mxu0  ;;  %v11591_v28 = vld [vmem:[#allocation5 + $0x4] sm:$0xf] }
 0x134   : > { %14923 = vst [vmem:[#allocation30_spill] sm:$0xff] %v12754_v30  ;;  %v2261_v6 = vadd.f32 %v2260_v5, %v12661_v29  ;;  %v2526_v11 = vadd.f32 %v2525_v4, %v2437_v59  ;;  %v12769_v5 = vor.u32 %v11578_v58, %v9674_v18  ;;  %v10247_v58 = vor.u32 %v11719_v31, %v10244_v7  ;;  %v11581_v7 = vld [vmem:[%s12487_s6 + $0x1ac] sm:$0xf0] }
 0x135   : > { %14925 = vst [vmem:[#allocation32_spill] sm:$0xff] %v12767_v37 }
 0x136   : > { %v2350_v17 = vadd.f32 %v2349_v10, %v2261_v6  ;;  %14926 = vst [vmem:[#allocation33_spill] sm:$0xff] %v12769_v5  ;;  %v12772_v6 = vor.u32 %v11576_v9, %v9676_v16  ;;  %v5130_v10 = vmul.f32 0.2, %v2526_v11  ;;  %v9732_v9 = vld [vmem:[#allocation5 + $0x20] sm:$0xf0]  ;;  %2775 = vmatpush.bf16.msrb.mxu2 %v10247_v58 }
 0x137   : > { %v11783_v16 = vld [vmem:[#allocation5 + $0x604] sm:$0xf] }
 0x138   : > { %14927 = vst [vmem:[#allocation34_spill] sm:$0xff] %v12772_v6 }
 0x139   : > { %v2438_v40 = vpop.f32.mrf.mxu2  ;;  %v2352_v4 = vpop.f32.mrf.mxu1 }
 0x13a   : > { %v2439_v8 = vadd.f32 %v2438_v40, %v2350_v17  ;;  %v5386_v17 = vmax.f32 %v2526_v11, %v5130_v10  ;;  %v10500_v40 = vld [vmem:[#allocation5 + $0x620] sm:$0xf0] }
 0x13b   : > { %v2527_v41 = vpop.f32.mrf.mxu3  ;;  %v2263_v36 = vpop.f32.mrf.mxu0 }
 0x13c   : > { %v2264_v59 = vadd.f32 %v2263_v36, %v12661_v29  ;;  %v2528_v30 = vadd.f32 %v2527_v41, %v2439_v8  ;;  %2391 = vmatmul.bf16.gmra.mxu1 %v12767_v37  ;;  %v11582_v37 = vld [vmem:[%s12487_s6 + $0x1b4] sm:$0xf0] }
 0x13e   : > { %v2353_v43 = vadd.f32 %v2352_v4, %v2264_v59  ;;  %2302 = vmatmul.bf16.gmra.mxu0 %v12765_v38  ;;  %v5138_v39 = vmul.f32 0.2, %v2528_v30  ;;  %2480 = vmatmul.bf16.gmra.mxu2 %v12769_v5  ;;  %v9735_v59 = vor.u32 %v11591_v28, %v9732_v9  ;;  %v9690_v5 = vld [vmem:[%s12487_s6 + $0x1a8] sm:$0xf]  ;;  %v11580_v28 = vld [vmem:[%s12487_s6 + $0x1ac] sm:$0xf] }
 0x13f   : > { %v9692_v9 = vld [vmem:[%s12487_s6 + $0x1b8] sm:$0xf0] }
 0x140   : > { %2569 = vmatmul.bf16.gmra.mxu3 %v12772_v6  ;;  %v5394_v61 = vmax.f32 %v2528_v30, %v5138_v39  ;;  %v10503_v39 = vor.u32 %v11783_v16, %v10500_v40  ;;  %2597 = vmatpush.bf16.msrb.mxu0 %v9735_v59  ;;  %v9684_v6 = vld [vmem:[%s12487_s6 + $0x1b0] sm:$0xf0]  ;;  %v11655_v16 = vld [vmem:[#allocation5 + $0x204] sm:$0xf]  ;;  %v12793_v59 = vor.u32 %v11582_v37, %v9690_v5 }
 0x141   : > { %v2441_v18 = vpop.f32.mrf.mxu2  ;;  %v2354_v4 = vpop.f32.mrf.mxu1  ;;  %v9988_v40 = vld [vmem:[#allocation5 + $0x220] sm:$0xf0] }
 0x142   : > { %v2442_v8 = vadd.f32 %v2441_v18, %v2353_v43  ;;  %v12778_v30 = vpack.c.bf16 %v5394_v61, %v5386_v17  ;;  %2864 = vmatpush.bf16.msrb.mxu3 %v10503_v39  ;;  %v9682_v43 = vld [vmem:[%s12487_s6 + $0x1a0] sm:$0xf]  ;;  %v11579_v18 = vld [vmem:[%s12487_s6 + $0x1a4] sm:$0xf]  ;;  %14931 = vst [vmem:[#allocation38_spill] sm:$0xff] %v12793_v59 }
 0x143   : > { %v2530_v41 = vpop.f32.mrf.mxu3  ;;  %v2265_v36 = vpop.f32.mrf.mxu0  ;;  %v12789_v61 = vor.u32 %v11581_v7, %v9682_v43 }
 0x144   : > { %14928 = vst [vmem:[#allocation35_spill] sm:$0xff] %v12778_v30  ;;  %v2266_v11 = vadd.f32 %v2265_v36, %v12661_v29  ;;  %v2531_v10 = vadd.f32 %v2530_v41, %v2442_v8  ;;  %v9991_v36 = vor.u32 %v11655_v16, %v9988_v40  ;;  %v12791_v41 = vor.u32 %v11579_v18, %v9684_v6 }
 0x145   : > { %14929 = vst [vmem:[#allocation36_spill] sm:$0xff] %v12789_v61 }
 0x146   : > { %v2355_v31 = vadd.f32 %v2354_v4, %v2266_v11  ;;  %14930 = vst [vmem:[#allocation37_spill] sm:$0xff] %v12791_v41  ;;  %v12796_v4 = vor.u32 %v11580_v28, %v9692_v9  ;;  %2686 = vmatpush.bf16.msrb.mxu1 %v9991_v36  ;;  %v5146_v38 = vmul.f32 0.2, %v2531_v10  ;;  %v11585_v36 = vld [vmem:[%s12487_s6 + $0x1cc] sm:$0xf0] }
 0x148   : > { %14932 = vst [vmem:[#allocation39_spill] sm:$0xff] %v12796_v4  ;;  %v5402_v37 = vmax.f32 %v2531_v10, %v5146_v38  ;;  %v9706_v38 = vld [vmem:[%s12487_s6 + $0x1c8] sm:$0xf]  ;;  %v11586_v10 = vld [vmem:[%s12487_s6 + $0x1d4] sm:$0xf0] }
 0x149   : > { %v2443_v17 = vpop.f32.mrf.mxu2  ;;  %v2357_v11 = vpop.f32.mrf.mxu1 }
 0x14a   : > { %v2444_v30 = vadd.f32 %v2443_v17, %v2355_v31  ;;  %v9698_v17 = vld [vmem:[%s12487_s6 + $0x1c0] sm:$0xf] }
 0x14b   : > { %v2532_v58 = vpop.f32.mrf.mxu3  ;;  %v2268_v8 = vpop.f32.mrf.mxu0 }
 0x14c   : > { %v2269_v39 = vadd.f32 %v2268_v8, %v12661_v29  ;;  %v2533_v20 = vadd.f32 %v2532_v58, %v2444_v30  ;;  %2396 = vmatmul.bf16.gmra.mxu1 %v12791_v41  ;;  %v11583_v58 = vld [vmem:[%s12487_s6 + $0x1c4] sm:$0xf]  ;;  %v9700_v8 = vld [vmem:[%s12487_s6 + $0x1d0] sm:$0xf0] }
 0x14e   : > { %v2358_v62 = vadd.f32 %v2357_v11, %v2269_v39  ;;  %2307 = vmatmul.bf16.gmra.mxu0 %v12789_v61  ;;  %v5154_v43 = vmul.f32 0.2, %v2533_v20  ;;  %2485 = vmatmul.bf16.gmra.mxu2 %v12793_v59  ;;  %v9708_v39 = vld [vmem:[%s12487_s6 + $0x1d8] sm:$0xf0] }
 0x150   : > { %2574 = vmatmul.bf16.gmra.mxu3 %v12796_v4  ;;  %v5410_v5 = vmax.f32 %v2533_v20, %v5154_v43  ;;  %v11584_v20 = vld [vmem:[%s12487_s6 + $0x1cc] sm:$0xf]  ;;  %v12813_v43 = vor.u32 %v11585_v36, %v9698_v17  ;;  %v10474_v36 = vld [vmem:[#allocation5 + $0x5c8] sm:$0xf] }
 0x151   : > { %v2446_v6 = vpop.f32.mrf.mxu2  ;;  %v2359_v9 = vpop.f32.mrf.mxu1 }
 0x152   : > { %v2447_v30 = vadd.f32 %v2446_v6, %v2358_v62  ;;  %v12802_v18 = vpack.c.bf16 %v5410_v5, %v5402_v37  ;;  %14934 = vst [vmem:[#allocation41_spill] sm:$0xff] %v12813_v43  ;;  %v12815_v5 = vor.u32 %v11583_v58, %v9700_v8  ;;  %v11780_v58 = vld [vmem:[#allocation5 + $0x5e4] sm:$0xf0] }
 0x153   : > { %v2535_v31 = vpop.f32.mrf.mxu3  ;;  %v2270_v7 = vpop.f32.mrf.mxu0  ;;  %v9962_v8 = vld [vmem:[#allocation5 + $0x1c8] sm:$0xf] }
 0x154   : > { %14933 = vst [vmem:[#allocation40_spill] sm:$0xff] %v12802_v18  ;;  %v2271_v28 = vadd.f32 %v2270_v7, %v12661_v29  ;;  %v2536_v16 = vadd.f32 %v2535_v31, %v2447_v30  ;;  %v12817_v7 = vor.u32 %v11586_v10, %v9706_v38  ;;  %v10475_v10 = vor.u32 %v11780_v58, %v10474_v36  ;;  %v11589_v58 = vld [vmem:[%s12487_s6 + $0x1ec] sm:$0xf0] }
 0x155   : > { %14935 = vst [vmem:[#allocation42_spill] sm:$0xff] %v12815_v5 }
 0x156   : > { %v2360_v40 = vadd.f32 %v2359_v9, %v2271_v28  ;;  %14936 = vst [vmem:[#allocation43_spill] sm:$0xff] %v12817_v7  ;;  %v12820_v28 = vor.u32 %v11584_v20, %v9708_v39  ;;  %v5162_v9 = vmul.f32 0.2, %v2536_v16  ;;  %v11652_v20 = vld [vmem:[#allocation5 + $0x1e4] sm:$0xf0]  ;;  %3124 = vmatpush.bf16.msra.mxu2 %v10475_v10 }
 0x157   : > { %v10730_v39 = vld [vmem:[#allocation5 + $0x7c8] sm:$0xf] }
 0x158   : > { %14937 = vst [vmem:[#allocation44_spill] sm:$0xff] %v12820_v28 }
 0x159   : > { %v2448_v11 = vpop.f32.mrf.mxu2  ;;  %v2362_v31 = vpop.f32.mrf.mxu1 }
 0x15a   : > { %v2449_v62 = vadd.f32 %v2448_v11, %v2360_v40  ;;  %v5418_v40 = vmax.f32 %v2536_v16, %v5162_v9  ;;  %v11844_v11 = vld [vmem:[#allocation5 + $0x7e4] sm:$0xf0] }
 0x15b   : > { %v2537_v6 = vpop.f32.mrf.mxu3  ;;  %v2273_v37 = vpop.f32.mrf.mxu0 }
 0x15c   : > { %v2274_v30 = vadd.f32 %v2273_v37, %v12661_v29  ;;  %v2538_v18 = vadd.f32 %v2537_v6, %v2449_v62  ;;  %2401 = vmatmul.bf16.gmra.mxu1 %v12815_v5  ;;  %v11590_v5 = vld [vmem:[%s12487_s6 + $0x1f4] sm:$0xf0] }
 0x15e   : > { %v2363_v4 = vadd.f32 %v2362_v31, %v2274_v30  ;;  %2312 = vmatmul.bf16.gmra.mxu0 %v12813_v43  ;;  %v5170_v59 = vmul.f32 0.2, %v2538_v18  ;;  %2490 = vmatmul.bf16.gmra.mxu2 %v12817_v7  ;;  %v9963_v30 = vor.u32 %v11652_v20, %v9962_v8  ;;  %v9722_v7 = vld [vmem:[%s12487_s6 + $0x1e8] sm:$0xf]  ;;  %v11588_v8 = vld [vmem:[%s12487_s6 + $0x1ec] sm:$0xf] }
 0x15f   : > { %v9724_v20 = vld [vmem:[%s12487_s6 + $0x1f8] sm:$0xf0] }
 0x160   : > { %2579 = vmatmul.bf16.gmra.mxu3 %v12820_v28  ;;  %v5426_v17 = vmax.f32 %v2538_v18, %v5170_v59  ;;  %v10731_v59 = vor.u32 %v11844_v11, %v10730_v39  ;;  %2946 = vmatpush.bf16.msra.mxu0 %v9963_v30  ;;  %v9716_v28 = vld [vmem:[%s12487_s6 + $0x1f0] sm:$0xf0]  ;;  %v10218_v39 = vld [vmem:[#allocation5 + $0x3c8] sm:$0xf]  ;;  %v12841_v30 = vor.u32 %v11590_v5, %v9722_v7 }
 0x161   : > { %v2451_v38 = vpop.f32.mrf.mxu2  ;;  %v2364_v31 = vpop.f32.mrf.mxu1  ;;  %v11716_v11 = vld [vmem:[#allocation5 + $0x3e4] sm:$0xf0] }
 0x162   : > { %v2452_v62 = vadd.f32 %v2451_v38, %v2363_v4  ;;  %v12826_v18 = vpack.c.bf16 %v5426_v17, %v5418_v40  ;;  %3213 = vmatpush.bf16.msra.mxu3 %v10731_v59  ;;  %v9714_v4 = vld [vmem:[%s12487_s6 + $0x1e0] sm:$0xf]  ;;  %v11587_v38 = vld [vmem:[%s12487_s6 + $0x1e4] sm:$0xf]  ;;  %s12269_s6 = sshra.s32 %s9355_s28, 4  ;;  %s12270_s6 = int_to_ptr.hbm [resolvable:$true] %s12269_s6 }
 0x163   : > { %v2540_v6 = vpop.f32.mrf.mxu3  ;;  %v2275_v37 = vpop.f32.mrf.mxu0  ;;  %v12837_v17 = vor.u32 %v11589_v58, %v9714_v4  ;;  %s12271_s24 = scalar_lea.hbm %s12270_s6, 768  ;;  %p12276_p11 = scmp.lt.s32.totalorder %s12270_s6, %s14718_s5 }
 0x164   : > { %14938 = vst [vmem:[#allocation45_spill] sm:$0xff] %v12826_v18  ;;  %v2276_v16 = vadd.f32 %v2275_v37, %v12661_v29  ;;  %v2541_v9 = vadd.f32 %v2540_v6, %v2452_v62  ;;  %v10219_v37 = vor.u32 %v11716_v11, %v10218_v39  ;;  %v12839_v6 = vor.u32 %v11587_v38, %v9716_v28  ;;  %p12272_p1 = scmp.ne.s32.totalorder %s12270_s6, %s12271_s24  ;;  %p12277_p9 = scmp.lt.s32.totalorder %s12275_s26, %s12271_s24 }
 0x166   : > { %v2365_v36 = vadd.f32 %v2364_v31, %v2276_v16  ;;  %v12844_v31 = vor.u32 %v11588_v8, %v9724_v20  ;;  %3035 = vmatpush.bf16.msra.mxu1 %v10219_v37  ;;  %v5178_v43 = vmul.f32 0.2, %v2541_v9  ;;  %p12273_p4 = pnand %p12272_p1, %p12455_p7  ;;  %p12278_p2 = por %p12277_p9, %p12276_p11 }
 0x168   : > { %v5434_v5 = vmax.f32 %v2541_v9, %v5178_v43  ;;  %p12274_p8 = pneg %p12273_p4 }
 0x169   : > { %v2453_v40 = vpop.f32.mrf.mxu2  ;;  %v2367_v16 = vpop.f32.mrf.mxu1 }
 0x16a   : > { %v2454_v18 = vadd.f32 %v2453_v40, %v2365_v36  ;;  %p12279_p10 = pnand %p12278_p2, %p12274_p8 }
 0x16b   : > { %v2542_v10 = vpop.f32.mrf.mxu3  ;;  %v2278_v62 = vpop.f32.mrf.mxu0 }
 0x16c   : > { %v2279_v59 = vadd.f32 %v2278_v62, %v12661_v29  ;;  %v2543_v41 = vadd.f32 %v2542_v10, %v2454_v18  ;;  %2406 = vmatmul.bf16.gmra.mxu1 %v12839_v6 }
 0x16e   : > { %v2368_v61 = vadd.f32 %v2367_v16, %v2279_v59  ;;  %2317 = vmatmul.bf16.gmra.mxu0 %v12837_v17  ;;  %v5186_v4 = vmul.f32 0.2, %v2543_v41  ;;  %2495 = vmatmul.bf16.gmra.mxu2 %v12841_v30 }
 0x170   : > { %2584 = vmatmul.bf16.gmra.mxu3 %v12844_v31  ;;  %v5442_v7 = vmax.f32 %v2543_v41, %v5186_v4 }
 0x171   : > { %v2456_v28 = vpop.f32.mrf.mxu2  ;;  %v2369_v20 = vpop.f32.mrf.mxu1 }
 0x172   : > { %v2457_v36 = vadd.f32 %v2456_v28, %v2368_v61  ;;  %v12850_v8 = vpack.c.bf16 %v5442_v7, %v5434_v5  ;;  %v10442_v7 = vld [vmem:[#allocation5 + $0x588] sm:$0xf] }
 0x173   : > { %v2545_v58 = vpop.f32.mrf.mxu3  ;;  %v2280_v38 = vpop.f32.mrf.mxu0  ;;  %v11772_v28 = vld [vmem:[#allocation5 + $0x5a4] sm:$0xf0] }
 0x174   : > { %14939 = vst [vmem:[#allocation46_spill] sm:$0xff] %v12850_v8  ;;  %v2281_v18 = vadd.f32 %v2280_v38, %v12661_v29  ;;  %v2546_v39 = vadd.f32 %v2545_v58, %v2457_v36  ;;  %v9930_v36 = vld [vmem:[#allocation5 + $0x188] sm:$0xf]  ;;  %v10443_v38 = vor.u32 %v11772_v28, %v10442_v7 }
 0x176   : > { %v2370_v11 = vadd.f32 %v2369_v20, %v2281_v18  ;;  %v5194_v43 = vmul.f32 0.2, %v2546_v39  ;;  %v11644_v18 = vld [vmem:[#allocation5 + $0x1a4] sm:$0xf0]  ;;  %3125 = vmatpush.bf16.msra.mxu2 %v10443_v38 }
 0x177   : > { %v10698_v20 = vld [vmem:[#allocation5 + $0x788] sm:$0xf] }
 0x178   : > { %v5450_v4 = vmax.f32 %v2546_v39, %v5194_v43 }
 0x179   : > { %v2458_v40 = vpop.f32.mrf.mxu2  ;;  %v2372_v16 = vpop.f32.mrf.mxu1 }
 0x17a   : > { %v2459_v37 = vadd.f32 %v2458_v40, %v2370_v11  ;;  %v11836_v11 = vld [vmem:[#allocation5 + $0x7a4] sm:$0xf0] }
 0x17b   : > { %v2547_v10 = vpop.f32.mrf.mxu3  ;;  %v2283_v62 = vpop.f32.mrf.mxu0 }
 0x17c   : > { %v2284_v59 = vadd.f32 %v2283_v62, %v12661_v29  ;;  %v2548_v41 = vadd.f32 %v2547_v10, %v2459_v37  ;;  %2687 = vmatmul.bf16.vlgmr.msrb.gmra.mxu1 %v12511_v51  ;;  %v9931_v62 = vor.u32 %v11644_v18, %v9930_v36 }
 0x17e   : > { %v2373_v9 = vadd.f32 %v2372_v16, %v2284_v59  ;;  %2598 = vmatmul.bf16.vlgmr.msrb.gmra.mxu0 %v12509_v47  ;;  %v5202_v61 = vmul.f32 0.2, %v2548_v41  ;;  %2776 = vmatmul.bf16.vlgmr.msrb.gmra.mxu2 %v12513_v52  ;;  %v10699_v59 = vor.u32 %v11836_v11, %v10698_v20 }
 0x17f   : > { %2947 = vmatpush.bf16.msra.mxu0 %v9931_v62 }
 0x180   : > { %2865 = vmatmul.bf16.vlgmr.msrb.gmra.mxu3 %v12515_v53  ;;  %v5458_v5 = vmax.f32 %v2548_v41, %v5202_v61  ;;  %v10186_v41 = vld [vmem:[#allocation5 + $0x388] sm:$0xf] }
 0x181   : > { %v2461_v58 = vpop.f32.mrf.mxu2  ;;  %v2374_v53 = vpop.f32.mrf.mxu1  ;;  %3214 = vmatpush.bf16.msra.mxu3 %v10699_v59  ;;  %v11708_v61 = vld [vmem:[#allocation5 + $0x3a4] sm:$0xf0] }
 0x182   : > { %v2462_v40 = vadd.f32 %v2461_v58, %v2373_v9  ;;  %v12858_v16 = vpack.c.bf16 %v5458_v5, %v5450_v4  ;;  %v10187_v28 = vor.u32 %v11708_v61, %v10186_v41 }
 0x183   : > { %v2550_v37 = vpop.f32.mrf.mxu3  ;;  %v2285_v10 = vpop.f32.mrf.mxu0 }
 0x184   : > { %14940 = vst [vmem:[#allocation47_spill] sm:$0xff] %v12858_v16  ;;  %v2286_v8 = vadd.f32 %v2285_v10, %v12661_v29  ;;  %v2551_v39 = vadd.f32 %v2550_v37, %v2462_v40  ;;  %3036 = vmatpush.bf16.msra.mxu1 %v10187_v28 }
 0x186   : > { %v2375_v43 = vadd.f32 %v2374_v53, %v2286_v8  ;;  %v5210_v4 = vmul.f32 0.2, %v2551_v39 }
 0x188   : > { %v5466_v53 = vmax.f32 %v2551_v39, %v5210_v4 }
 0x189   : > { %v2463_v7 = vpop.f32.mrf.mxu2  ;;  %v2377_v18 = vpop.f32.mrf.mxu1 }
 0x18a   : > { %v2464_v52 = vadd.f32 %v2463_v7, %v2375_v43 }
 0x18b   : > { %v2552_v9 = vpop.f32.mrf.mxu3  ;;  %v2288_v58 = vpop.f32.mrf.mxu0 }
 0x18c   : > { %v2289_v36 = vadd.f32 %v2288_v58, %v12661_v29  ;;  %v2553_v5 = vadd.f32 %v2552_v9, %v2464_v52  ;;  %2692 = vmatmul.bf16.gmra.mxu1 %v12531_v13 }
 0x18e   : > { %v2378_v20 = vadd.f32 %v2377_v18, %v2289_v36  ;;  %2603 = vmatmul.bf16.gmra.mxu0 %v12529_v12  ;;  %v5218_v38 = vmul.f32 0.2, %v2553_v5  ;;  %2781 = vmatmul.bf16.gmra.mxu2 %v12533_v14 }
 0x190   : > { %2870 = vmatmul.bf16.gmra.mxu3 %v12535_v15  ;;  %v5474_v8 = vmax.f32 %v2553_v5, %v5218_v38 }
 0x191   : > { %v2466_v11 = vpop.f32.mrf.mxu2  ;;  %v2379_v59 = vpop.f32.mrf.mxu1 }
 0x192   : > { %v2467_v40 = vadd.f32 %v2466_v11, %v2378_v20  ;;  %v12866_v62 = vpack.c.bf16 %v5474_v8, %v5466_v53  ;;  %v10410_v53 = vld [vmem:[#allocation5 + $0x548] sm:$0xf] }
 0x193   : > { %v2555_v37 = vpop.f32.mrf.mxu3  ;;  %v2290_v10 = vpop.f32.mrf.mxu0  ;;  %v11764_v8 = vld [vmem:[#allocation5 + $0x564] sm:$0xf0] }
 0x194   : > { %14941 = vst [vmem:[#allocation48_spill] sm:$0xff] %v12866_v62  ;;  %v2291_v52 = vadd.f32 %v2290_v10, %v12661_v29  ;;  %v2556_v43 = vadd.f32 %v2555_v37, %v2467_v40  ;;  %v9898_v11 = vld [vmem:[#allocation5 + $0x148] sm:$0xf]  ;;  %v10411_v37 = vor.u32 %v11764_v8, %v10410_v53 }
 0x195   : > { %v11636_v10 = vld [vmem:[#allocation5 + $0x164] sm:$0xf0] }
 0x196   : > { %v2380_v41 = vadd.f32 %v2379_v59, %v2291_v52  ;;  %v5226_v39 = vmul.f32 0.2, %v2556_v43  ;;  %v10666_v52 = vld [vmem:[#allocation5 + $0x748] sm:$0xf]  ;;  %3126 = vmatpush.bf16.msra.mxu2 %v10411_v37 }
 0x197   : > { %v11828_v59 = vld [vmem:[#allocation5 + $0x764] sm:$0xf0] }
 0x198   : > { %v5482_v20 = vmax.f32 %v2556_v43, %v5226_v39 }
 0x199   : > { %v2468_v61 = vpop.f32.mrf.mxu2  ;;  %v2382_v36 = vpop.f32.mrf.mxu1 }
 0x19a   : > { %v2469_v7 = vadd.f32 %v2468_v61, %v2380_v41 }
 0x19b   : > { %v2557_v28 = vpop.f32.mrf.mxu3  ;;  %v2293_v9 = vpop.f32.mrf.mxu0 }
 0x19c   : > { %v2294_v58 = vadd.f32 %v2293_v9, %v12661_v29  ;;  %v2558_v18 = vadd.f32 %v2557_v28, %v2469_v7  ;;  %2697 = vmatmul.bf16.gmra.mxu1 %v12551_v25  ;;  %v9899_v28 = vor.u32 %v11636_v10, %v9898_v11  ;;  %v10667_v9 = vor.u32 %v11828_v59, %v10666_v52 }
 0x19e   : > { %v2383_v4 = vadd.f32 %v2382_v36, %v2294_v58  ;;  %2608 = vmatmul.bf16.gmra.mxu0 %v12549_v24  ;;  %v5234_v5 = vmul.f32 0.2, %v2558_v18  ;;  %2786 = vmatmul.bf16.gmra.mxu2 %v12553_v26 }
 0x19f   : > { %2948 = vmatpush.bf16.msra.mxu0 %v9899_v28  ;;  %3215 = vmatpush.bf16.msra.mxu3 %v10667_v9 }
 0x1a0   : > { %2875 = vmatmul.bf16.gmra.mxu3 %v12555_v27  ;;  %v5490_v38 = vmax.f32 %v2558_v18, %v5234_v5  ;;  %v10154_v18 = vld [vmem:[#allocation5 + $0x348] sm:$0xf] }
 0x1a1   : > { %v2471_v40 = vpop.f32.mrf.mxu2  ;;  %v2384_v62 = vpop.f32.mrf.mxu1  ;;  %v11700_v5 = vld [vmem:[#allocation5 + $0x364] sm:$0xf0] }
 0x1a2   : > { %v2472_v41 = vadd.f32 %v2471_v40, %v2383_v4  ;;  %v12874_v58 = vpack.c.bf16 %v5490_v38, %v5482_v20  ;;  %v10155_v8 = vor.u32 %v11700_v5, %v10154_v18 }
 0x1a3   : > { %v2560_v61 = vpop.f32.mrf.mxu3  ;;  %v2295_v7 = vpop.f32.mrf.mxu0 }
 0x1a4   : > { %14942 = vst [vmem:[#allocation49_spill] sm:$0xff] %v12874_v58  ;;  %v2296_v36 = vadd.f32 %v2295_v7, %v12661_v29  ;;  %v2561_v43 = vadd.f32 %v2560_v61, %v2472_v41  ;;  %3037 = vmatpush.bf16.msra.mxu1 %v10155_v8 }
 0x1a6   : > { %v2385_v39 = vadd.f32 %v2384_v62, %v2296_v36  ;;  %v5242_v20 = vmul.f32 0.2, %v2561_v43 }
 0x1a8   : > { %v5498_v62 = vmax.f32 %v2561_v43, %v5242_v20 }
 0x1a9   : > { %v2473_v53 = vpop.f32.mrf.mxu2  ;;  %v2387_v10 = vpop.f32.mrf.mxu1 }
 0x1aa   : > { %v2474_v16 = vadd.f32 %v2473_v53, %v2385_v39 }
 0x1ab   : > { %v2562_v4 = vpop.f32.mrf.mxu3  ;;  %v2298_v40 = vpop.f32.mrf.mxu0 }
 0x1ac   : > { %v2299_v11 = vadd.f32 %v2298_v40, %v12661_v29  ;;  %v2563_v38 = vadd.f32 %v2562_v4, %v2474_v16  ;;  %2702 = vmatmul.bf16.gmra.mxu1 %v12571_v50 }
 0x1ae   : > { %v2388_v52 = vadd.f32 %v2387_v10, %v2299_v11  ;;  %2613 = vmatmul.bf16.gmra.mxu0 %v12569_v49  ;;  %v5250_v37 = vmul.f32 0.2, %v2563_v38  ;;  %2791 = vmatmul.bf16.gmra.mxu2 %v12573_v54 }
 0x1b0   : > { %2880 = vmatmul.bf16.gmra.mxu3 %v12575_v55  ;;  %v5506_v59 = vmax.f32 %v2563_v38, %v5250_v37 }
 0x1b1   : > { %v2476_v41 = vpop.f32.mrf.mxu2  ;;  %v2389_v36 = vpop.f32.mrf.mxu1 }
 0x1b2   : > { %v2477_v61 = vadd.f32 %v2476_v41, %v2388_v52  ;;  %v12882_v9 = vpack.c.bf16 %v5506_v59, %v5498_v62  ;;  %v10378_v62 = vld [vmem:[#allocation5 + $0x508] sm:$0xf] }
 0x1b3   : > { %v2565_v7 = vpop.f32.mrf.mxu3  ;;  %v2300_v28 = vpop.f32.mrf.mxu0  ;;  %v11756_v59 = vld [vmem:[#allocation5 + $0x524] sm:$0xf0] }
 0x1b4   : > { %14943 = vst [vmem:[#allocation50_spill] sm:$0xff] %v12882_v9  ;;  %v2301_v16 = vadd.f32 %v2300_v28, %v12661_v29  ;;  %v2566_v39 = vadd.f32 %v2565_v7, %v2477_v61  ;;  %v9866_v41 = vld [vmem:[#allocation5 + $0x108] sm:$0xf]  ;;  %v10379_v7 = vor.u32 %v11756_v59, %v10378_v62 }
 0x1b5   : > { %v11628_v28 = vld [vmem:[#allocation5 + $0x124] sm:$0xf0] }
 0x1b6   : > { %v2390_v18 = vadd.f32 %v2389_v36, %v2301_v16  ;;  %v5258_v43 = vmul.f32 0.2, %v2566_v39  ;;  %v10634_v16 = vld [vmem:[#allocation5 + $0x708] sm:$0xf]  ;;  %3127 = vmatpush.bf16.msra.mxu2 %v10379_v7 }
 0x1b7   : > { %v11820_v36 = vld [vmem:[#allocation5 + $0x724] sm:$0xf0] }
 0x1b8   : > { %v5514_v52 = vmax.f32 %v2566_v39, %v5258_v43 }
 0x1b9   : > { %v2478_v5 = vpop.f32.mrf.mxu2  ;;  %v2392_v11 = vpop.f32.mrf.mxu1 }
 0x1ba   : > { %v2479_v53 = vadd.f32 %v2478_v5, %v2390_v18 }
 0x1bb   : > { %v2567_v8 = vpop.f32.mrf.mxu3  ;;  %v2303_v4 = vpop.f32.mrf.mxu0 }
 0x1bc   : > { %v2304_v40 = vadd.f32 %v2303_v4, %v12661_v29  ;;  %v2568_v10 = vadd.f32 %v2567_v8, %v2479_v53  ;;  %2707 = vmatmul.bf16.gmra.mxu1 %v12591_v1  ;;  %v9867_v8 = vor.u32 %v11628_v28, %v9866_v41  ;;  %v10635_v4 = vor.u32 %v11820_v36, %v10634_v16 }
 0x1be   : > { %v2393_v20 = vadd.f32 %v2392_v11, %v2304_v40  ;;  %2618 = vmatmul.bf16.gmra.mxu0 %v12589_v0  ;;  %v5266_v38 = vmul.f32 0.2, %v2568_v10  ;;  %2796 = vmatmul.bf16.gmra.mxu2 %v12593_v2 }
 0x1bf   : > { %2949 = vmatpush.bf16.msra.mxu0 %v9867_v8  ;;  %3216 = vmatpush.bf16.msra.mxu3 %v10635_v4 }
 0x1c0   : > { %2885 = vmatmul.bf16.gmra.mxu3 %v12595_v3  ;;  %v5522_v37 = vmax.f32 %v2568_v10, %v5266_v38  ;;  %v10122_v10 = vld [vmem:[#allocation5 + $0x308] sm:$0xf] }
 0x1c1   : > { %v2481_v61 = vpop.f32.mrf.mxu2  ;;  %v2394_v9 = vpop.f32.mrf.mxu1  ;;  %v11692_v38 = vld [vmem:[#allocation5 + $0x324] sm:$0xf0] }
 0x1c2   : > { %v2482_v18 = vadd.f32 %v2481_v61, %v2393_v20  ;;  %v12890_v40 = vpack.c.bf16 %v5522_v37, %v5514_v52  ;;  %v10123_v59 = vor.u32 %v11692_v38, %v10122_v10 }
 0x1c3   : > { %v2570_v5 = vpop.f32.mrf.mxu3  ;;  %v2305_v53 = vpop.f32.mrf.mxu0 }
 0x1c4   : > { %14944 = vst [vmem:[#allocation51_spill] sm:$0xff] %v12890_v40  ;;  %v2306_v11 = vadd.f32 %v2305_v53, %v12661_v29  ;;  %v2571_v39 = vadd.f32 %v2570_v5, %v2482_v18  ;;  %3038 = vmatpush.bf16.msra.mxu1 %v10123_v59 }
 0x1c6   : > { %v2395_v43 = vadd.f32 %v2394_v9, %v2306_v11  ;;  %v5274_v52 = vmul.f32 0.2, %v2571_v39 }
 0x1c8   : > { %v5530_v9 = vmax.f32 %v2571_v39, %v5274_v52 }
 0x1c9   : > { %v2483_v62 = vpop.f32.mrf.mxu2  ;;  %v2397_v28 = vpop.f32.mrf.mxu1 }
 0x1ca   : > { %v2484_v58 = vadd.f32 %v2483_v62, %v2395_v43 }
 0x1cb   : > { %v2572_v20 = vpop.f32.mrf.mxu3  ;;  %v2308_v61 = vpop.f32.mrf.mxu0 }
 0x1cc   : > { %v2309_v41 = vadd.f32 %v2308_v61, %v12661_v29  ;;  %v2573_v37 = vadd.f32 %v2572_v20, %v2484_v58  ;;  %2712 = vmatmul.bf16.gmra.mxu1 %v12611_v33 }
 0x1ce   : > { %v2398_v16 = vadd.f32 %v2397_v28, %v2309_v41  ;;  %2623 = vmatmul.bf16.gmra.mxu0 %v12609_v32  ;;  %v5282_v7 = vmul.f32 0.2, %v2573_v37  ;;  %2801 = vmatmul.bf16.gmra.mxu2 %v12613_v34 }
 0x1d0   : > { %2890 = vmatmul.bf16.gmra.mxu3 %v12615_v35  ;;  %v5538_v36 = vmax.f32 %v2573_v37, %v5282_v7 }
 0x1d1   : > { %v2486_v18 = vpop.f32.mrf.mxu2  ;;  %v2399_v11 = vpop.f32.mrf.mxu1 }
 0x1d2   : > { %v2487_v5 = vadd.f32 %v2486_v18, %v2398_v16  ;;  %v12898_v4 = vpack.c.bf16 %v5538_v36, %v5530_v9  ;;  %v10346_v9 = vld [vmem:[#allocation5 + $0x4c8] sm:$0xf] }
 0x1d3   : > { %v2575_v53 = vpop.f32.mrf.mxu3  ;;  %v2310_v8 = vpop.f32.mrf.mxu0  ;;  %v11748_v36 = vld [vmem:[#allocation5 + $0x4e4] sm:$0xf0] }
 0x1d4   : > { %14945 = vst [vmem:[#allocation52_spill] sm:$0xff] %v12898_v4  ;;  %v2311_v58 = vadd.f32 %v2310_v8, %v12661_v29  ;;  %v2576_v43 = vadd.f32 %v2575_v53, %v2487_v5  ;;  %v9834_v18 = vld [vmem:[#allocation5 + $0xc8] sm:$0xf]  ;;  %v10347_v53 = vor.u32 %v11748_v36, %v10346_v9 }
 0x1d5   : > { %v11620_v8 = vld [vmem:[#allocation5 + $0xe4] sm:$0xf0] }
 0x1d6   : > { %v2400_v10 = vadd.f32 %v2399_v11, %v2311_v58  ;;  %v5290_v39 = vmul.f32 0.2, %v2576_v43  ;;  %v10602_v58 = vld [vmem:[#allocation5 + $0x6c8] sm:$0xf]  ;;  %3128 = vmatpush.bf16.msra.mxu2 %v10347_v53 }
 0x1d7   : > { %v11812_v11 = vld [vmem:[#allocation5 + $0x6e4] sm:$0xf0] }
 0x1d8   : > { %v5546_v16 = vmax.f32 %v2576_v43, %v5290_v39 }
 0x1d9   : > { %v2488_v38 = vpop.f32.mrf.mxu2  ;;  %v2402_v41 = vpop.f32.mrf.mxu1 }
 0x1da   : > { %v2489_v62 = vadd.f32 %v2488_v38, %v2400_v10 }
 0x1db   : > { %v2577_v59 = vpop.f32.mrf.mxu3  ;;  %v2313_v20 = vpop.f32.mrf.mxu0 }
 0x1dc   : > { %v2314_v61 = vadd.f32 %v2313_v20, %v12661_v29  ;;  %v2578_v28 = vadd.f32 %v2577_v59, %v2489_v62  ;;  %2717 = vmatmul.bf16.gmra.mxu1 %v12631_v45  ;;  %v9835_v59 = vor.u32 %v11620_v8, %v9834_v18  ;;  %v10603_v20 = vor.u32 %v11812_v11, %v10602_v58 }
 0x1de   : > { %v2403_v52 = vadd.f32 %v2402_v41, %v2314_v61  ;;  %2628 = vmatmul.bf16.gmra.mxu0 %v12629_v44  ;;  %v5298_v37 = vmul.f32 0.2, %v2578_v28  ;;  %2806 = vmatmul.bf16.gmra.mxu2 %v12633_v46 }
 0x1df   : > { %2950 = vmatpush.bf16.msra.mxu0 %v9835_v59  ;;  %3217 = vmatpush.bf16.msra.mxu3 %v10603_v20 }
 0x1e0   : > { %2895 = vmatmul.bf16.gmra.mxu3 %v12635_v48  ;;  %v5554_v7 = vmax.f32 %v2578_v28, %v5298_v37  ;;  %v10090_v28 = vld [vmem:[#allocation5 + $0x2c8] sm:$0xf] }
 0x1e1   : > { %v2491_v5 = vpop.f32.mrf.mxu2  ;;  %v2404_v4 = vpop.f32.mrf.mxu1  ;;  %v11684_v37 = vld [vmem:[#allocation5 + $0x2e4] sm:$0xf0] }
 0x1e2   : > { %v2492_v10 = vadd.f32 %v2491_v5, %v2403_v52  ;;  %v12906_v61 = vpack.c.bf16 %v5554_v7, %v5546_v16  ;;  %v10091_v36 = vor.u32 %v11684_v37, %v10090_v28  ;;  %v12126_v37 = vld [vmem:[#allocation7] sm:$0xff] }
 0x1e3   : > { %v2580_v38 = vpop.f32.mrf.mxu3  ;;  %v2315_v62 = vpop.f32.mrf.mxu0 }
 0x1e4   : > { %14946 = vst [vmem:[#allocation53_spill] sm:$0xff] %v12906_v61  ;;  %v2316_v41 = vadd.f32 %v2315_v62, %v12661_v29  ;;  %v2581_v43 = vadd.f32 %v2580_v38, %v2492_v10  ;;  %3039 = vmatpush.bf16.msra.mxu1 %v10091_v36 }
 0x1e6   : > { %v2405_v39 = vadd.f32 %v2404_v4, %v2316_v41  ;;  %v5306_v16 = vmul.f32 0.2, %v2581_v43 }
 0x1e8   : > { %v5562_v4 = vmax.f32 %v2581_v43, %v5306_v16 }
 0x1e9   : > { %v2493_v9 = vpop.f32.mrf.mxu2  ;;  %v2407_v8 = vpop.f32.mrf.mxu1 }
 0x1ea   : > { %v2494_v40 = vadd.f32 %v2493_v9, %v2405_v39  ;;  %v12917_v9 = vperm.slane %v12126_v37, 1 }
 0x1eb   : > { %v2582_v52 = vpop.f32.mrf.mxu3  ;;  %v2318_v5 = vpop.f32.mrf.mxu0 }
 0x1ec   : > { %v2319_v18 = vadd.f32 %v2318_v5, %v12661_v29  ;;  %v2583_v7 = vadd.f32 %v2582_v52, %v2494_v40  ;;  %2722 = vmatmul.bf16.gmra.mxu1 %v12651_v21 }
 0x1ee   : > { %v2408_v58 = vadd.f32 %v2407_v8, %v2319_v18  ;;  %2633 = vmatmul.bf16.gmra.mxu0 %v12649_v19  ;;  %v5314_v53 = vmul.f32 0.2, %v2583_v7  ;;  %2811 = vmatmul.bf16.gmra.mxu2 %v12653_v22 }
 0x1f0   : > { %2900 = vmatmul.bf16.gmra.mxu3 %v12655_v23  ;;  %v5570_v11 = vmax.f32 %v2583_v7, %v5314_v53 }
 0x1f1   : > { %v2496_v10 = vpop.f32.mrf.mxu2  ;;  %v2409_v41 = vpop.f32.mrf.mxu1 }
 0x1f2   : > { %v2497_v38 = vadd.f32 %v2496_v10, %v2408_v58  ;;  %v12914_v20 = vpack.c.bf16 %v5570_v11, %v5562_v4  ;;  %v10314_v11 = vld [vmem:[#allocation5 + $0x488] sm:$0xf] }
 0x1f3   : > { %v2585_v62 = vpop.f32.mrf.mxu3  ;;  %v2320_v59 = vpop.f32.mrf.mxu0  ;;  %v11740_v10 = vld [vmem:[#allocation5 + $0x4a4] sm:$0xf0] }
 0x1f4   : > { %14947 = vst [vmem:[#allocation54_spill] sm:$0xff] %v12914_v20  ;;  %v2321_v40 = vadd.f32 %v2320_v59, %v12661_v29  ;;  %v2586_v39 = vadd.f32 %v2585_v62, %v2497_v38  ;;  %v9802_v38 = vld [vmem:[#allocation5 + $0x88] sm:$0xf]  ;;  %v10315_v59 = vor.u32 %v11740_v10, %v10314_v11 }
 0x1f6   : > { %v2410_v28 = vadd.f32 %v2409_v41, %v2321_v40  ;;  %v5322_v16 = vmul.f32 0.2, %v2586_v39  ;;  %v11612_v40 = vld [vmem:[#allocation5 + $0xa4] sm:$0xf0]  ;;  %3129 = vmatpush.bf16.msra.mxu2 %v10315_v59 }
 0x1f7   : > { %v10570_v41 = vld [vmem:[#allocation5 + $0x688] sm:$0xf] }
 0x1f8   : > { %v5578_v29 = vmax.f32 %v2586_v39, %v5322_v16 }
 0x1f9   : > { %v2498_v36 = vpop.f32.mrf.mxu2  ;;  %v2688_v8 = vpop.f32.mrf.mxu1 }
 0x1fa   : > { %v2499_v52 = vadd.f32 %v2498_v36, %v2410_v28  ;;  %v11804_v28 = vld [vmem:[#allocation5 + $0x6a4] sm:$0xf0] }
 0x1fb   : > { %v2587_v5 = vpop.f32.mrf.mxu3  ;;  %v2599_v18 = vpop.f32.mrf.mxu0 }
 0x1fc   : > { %v2600_v43 = vadd.f32 %v2599_v18, %v12917_v9  ;;  %v2588_v7 = vadd.f32 %v2587_v5, %v2499_v52  ;;  %2727 = vmatmul.bf16.gmra.mxu1 %v12673_v56  ;;  %v9803_v5 = vor.u32 %v11612_v40, %v9802_v38  ;;  %v10571_v18 = vor.u32 %v11804_v28, %v10570_v41  ;;  %v14949_v28 = vld [vmem:[#allocation17_spill] sm:$0xff] }
 0x1fe   : > { %v2689_v58 = vadd.f32 %v2688_v8, %v2600_v43  ;;  %2638 = vmatmul.bf16.gmra.mxu0 %v12671_v42  ;;  %v5330_v53 = vmul.f32 0.2, %v2588_v7  ;;  %2816 = vmatmul.bf16.gmra.mxu2 %v12675_v57 }
 0x1ff   : > { %2951 = vmatpush.bf16.msra.mxu0 %v9803_v5  ;;  %3218 = vmatpush.bf16.msra.mxu3 %v10571_v18 }
 0x200   : > { %2905 = vmatmul.bf16.gmra.mxu3 %v12678_v60  ;;  %v5586_v4 = vmax.f32 %v2588_v7, %v5330_v53  ;;  %v10058_v7 = vld [vmem:[#allocation5 + $0x288] sm:$0xf] }
 0x201   : > { %v2777_v62 = vpop.f32.mrf.mxu2  ;;  %v2690_v20 = vpop.f32.mrf.mxu1  ;;  %v11676_v53 = vld [vmem:[#allocation5 + $0x2a4] sm:$0xf0] }
 0x202   : > { %v2778_v37 = vadd.f32 %v2777_v62, %v2689_v58  ;;  %v12924_v43 = vpack.c.bf16 %v5586_v4, %v5578_v29  ;;  %v10059_v10 = vor.u32 %v11676_v53, %v10058_v7 }
 0x203   : > { %v2866_v36 = vpop.f32.mrf.mxu3  ;;  %v2601_v52 = vpop.f32.mrf.mxu0 }
 0x204   : > { %14948 = vst [vmem:[#allocation55_spill] sm:$0xff] %v12924_v43  ;;  %v2602_v8 = vadd.f32 %v2601_v52, %v12917_v9  ;;  %v2867_v39 = vadd.f32 %v2866_v36, %v2778_v37  ;;  %3040 = vmatpush.bf16.msra.mxu1 %v10059_v10  ;;  %v14951_v37 = vld [vmem:[#allocation19_spill] sm:$0xff] }
 0x206   : > { %v2691_v16 = vadd.f32 %v2690_v20, %v2602_v8  ;;  %v5083_v29 = vmul.f32 0.2, %v2867_v39  ;;  %v14950_v20 = vld [vmem:[#allocation18_spill] sm:$0xff] }
 0x208   : > { %v5339_v36 = vmax.f32 %v2867_v39, %v5083_v29 }
 0x209   : > { %v2779_v11 = vpop.f32.mrf.mxu2  ;;  %v2693_v40 = vpop.f32.mrf.mxu1 }
 0x20a   : > { %v2780_v61 = vadd.f32 %v2779_v11, %v2691_v16 }
 0x20b   : > { %v2868_v58 = vpop.f32.mrf.mxu3  ;;  %v2604_v62 = vpop.f32.mrf.mxu0 }
 0x20c   : > { %v2605_v38 = vadd.f32 %v2604_v62, %v12917_v9  ;;  %v2869_v4 = vadd.f32 %v2868_v58, %v2780_v61  ;;  %2732 = vmatmul.bf16.gmra.mxu1 %v14949_v28 }
 0x20e   : > { %v2694_v41 = vadd.f32 %v2693_v40, %v2605_v38  ;;  %2643 = vmatmul.bf16.gmra.mxu0 %v12693_v63  ;;  %v5091_v59 = vmul.f32 0.2, %v2869_v4  ;;  %2821 = vmatmul.bf16.gmra.mxu2 %v14950_v20 }
 0x210   : > { %2910 = vmatmul.bf16.gmra.mxu3 %v14951_v37  ;;  %v5347_v52 = vmax.f32 %v2869_v4, %v5091_v59  ;;  %v14953_v59 = vld [vmem:[#allocation21_spill] sm:$0xff] }
 0x211   : > { %v2782_v5 = vpop.f32.mrf.mxu2  ;;  %v2695_v53 = vpop.f32.mrf.mxu1 }
 0x212   : > { %v12932_v18 = vpack.c.bf16 %v5347_v52, %v5339_v36  ;;  %v2783_v8 = vadd.f32 %v2782_v5, %v2694_v41  ;;  %v14954_v36 = vld [vmem:[#allocation22_spill] sm:$0xff]  ;;  %v14955_v52 = vld [vmem:[#allocation23_spill] sm:$0xff]  ;;  %v14956_v5 = vld [vmem:[#allocation24_spill] sm:$0xff] }
 0x213   : > { %v2871_v16 = vpop.f32.mrf.mxu3  ;;  %v2606_v7 = vpop.f32.mrf.mxu0 }
 0x214   : > { %14952 = vst [vmem:[#allocation56_spill] sm:$0xff] %v12932_v18  ;;  %v2607_v61 = vadd.f32 %v2606_v7, %v12917_v9  ;;  %v2872_v11 = vadd.f32 %v2871_v16, %v2783_v8  ;;  %v10282_v7 = vld [vmem:[#allocation5 + $0x448] sm:$0xf] }
 0x215   : > { %v10538_v18 = vld [vmem:[#allocation5 + $0x648] sm:$0xf] }
 0x216   : > { %v2696_v10 = vadd.f32 %v2695_v53, %v2607_v61  ;;  %v5099_v39 = vmul.f32 0.2, %v2872_v11  ;;  %v11732_v61 = vld [vmem:[#allocation5 + $0x464] sm:$0xf0] }
 0x217   : > { %v9770_v53 = vld [vmem:[#allocation5 + $0x48] sm:$0xf] }
 0x218   : > { %v5355_v8 = vmax.f32 %v2872_v11, %v5099_v39 }
 0x219   : > { %v2784_v58 = vpop.f32.mrf.mxu2  ;;  %v2698_v37 = vpop.f32.mrf.mxu1 }
 0x21a   : > { %v2785_v62 = vadd.f32 %v2784_v58, %v2696_v10  ;;  %v10283_v58 = vor.u32 %v11732_v61, %v10282_v7 }
 0x21b   : > { %v2873_v38 = vpop.f32.mrf.mxu3  ;;  %v2609_v40 = vpop.f32.mrf.mxu0 }
 0x21c   : > { %v2610_v43 = vadd.f32 %v2609_v40, %v12917_v9  ;;  %v2874_v29 = vadd.f32 %v2873_v38, %v2785_v62  ;;  %2737 = vmatmul.bf16.gmra.mxu1 %v14954_v36  ;;  %v11604_v40 = vld [vmem:[#allocation5 + $0x64] sm:$0xf0]  ;;  %3130 = vmatpush.bf16.msra.mxu2 %v10283_v58 }
 0x21d   : > { %v11796_v62 = vld [vmem:[#allocation5 + $0x664] sm:$0xf0] }
 0x21e   : > { %v2699_v4 = vadd.f32 %v2698_v37, %v2610_v43  ;;  %2648 = vmatmul.bf16.gmra.mxu0 %v14953_v59  ;;  %v5107_v41 = vmul.f32 0.2, %v2874_v29  ;;  %2826 = vmatmul.bf16.gmra.mxu2 %v14955_v52  ;;  %v9771_v59 = vor.u32 %v11604_v40, %v9770_v53  ;;  %v10539_v20 = vor.u32 %v11796_v62, %v10538_v18  ;;  %v14958_v62 = vld [vmem:[#allocation26_spill] sm:$0xff] }
 0x220   : > { %2915 = vmatmul.bf16.gmra.mxu3 %v14956_v5  ;;  %v5363_v16 = vmax.f32 %v2874_v29, %v5107_v41  ;;  %2952 = vmatpush.bf16.msra.mxu0 %v9771_v59  ;;  %v10026_v29 = vld [vmem:[#allocation5 + $0x248] sm:$0xf] }
 0x221   : > { %v2787_v10 = vpop.f32.mrf.mxu2  ;;  %v2700_v5 = vpop.f32.mrf.mxu1  ;;  %3219 = vmatpush.bf16.msra.mxu3 %v10539_v20  ;;  %v11668_v41 = vld [vmem:[#allocation5 + $0x264] sm:$0xf0]  ;;  %v14960_v20 = vld [vmem:[#allocation28_spill] sm:$0xff] }
 0x222   : > { %v2788_v43 = vadd.f32 %v2787_v10, %v2699_v4  ;;  %v12940_v36 = vpack.c.bf16 %v5363_v16, %v5355_v8  ;;  %v10027_v61 = vor.u32 %v11668_v41, %v10026_v29  ;;  %v14959_v59 = vld [vmem:[#allocation27_spill] sm:$0xff] }
 0x223   : > { %v2876_v37 = vpop.f32.mrf.mxu3  ;;  %v2611_v38 = vpop.f32.mrf.mxu0 }
 0x224   : > { %14957 = vst [vmem:[#allocation57_spill] sm:$0xff] %v12940_v36  ;;  %v2612_v52 = vadd.f32 %v2611_v38, %v12917_v9  ;;  %v2877_v11 = vadd.f32 %v2876_v37, %v2788_v43  ;;  %3041 = vmatpush.bf16.msra.mxu1 %v10027_v61 }
 0x226   : > { %v2701_v39 = vadd.f32 %v2700_v5, %v2612_v52  ;;  %v5115_v8 = vmul.f32 0.2, %v2877_v11  ;;  %v14961_v52 = vld [vmem:[#allocation29_spill] sm:$0xff] }
 0x228   : > { %v5371_v5 = vmax.f32 %v2877_v11, %v5115_v8 }
 0x229   : > { %v2789_v7 = vpop.f32.mrf.mxu2  ;;  %v2703_v18 = vpop.f32.mrf.mxu1 }
 0x22a   : > { %v2790_v28 = vadd.f32 %v2789_v7, %v2701_v39 }
 0x22b   : > { %v2878_v4 = vpop.f32.mrf.mxu3  ;;  %v2614_v10 = vpop.f32.mrf.mxu0 }
 0x22c   : > { %v2615_v53 = vadd.f32 %v2614_v10, %v12917_v9  ;;  %v2879_v16 = vadd.f32 %v2878_v4, %v2790_v28  ;;  %2742 = vmatmul.bf16.gmra.mxu1 %v14959_v59 }
 0x22e   : > { %v2704_v40 = vadd.f32 %v2703_v18, %v2615_v53  ;;  %2653 = vmatmul.bf16.gmra.mxu0 %v14958_v62  ;;  %v5123_v58 = vmul.f32 0.2, %v2879_v16  ;;  %2831 = vmatmul.bf16.gmra.mxu2 %v14960_v20 }
 0x230   : > { %2920 = vmatmul.bf16.gmra.mxu3 %v14961_v52  ;;  %v5379_v43 = vmax.f32 %v2879_v16, %v5123_v58 }
 0x231   : > { %v2792_v37 = vpop.f32.mrf.mxu2  ;;  %v2705_v7 = vpop.f32.mrf.mxu1 }
 0x232   : > { %v2793_v38 = vadd.f32 %v2792_v37, %v2704_v40  ;;  %v12948_v41 = vpack.c.bf16 %v5379_v43, %v5371_v5  ;;  %v14963_v40 = vld [vmem:[#allocation31_spill] sm:$0xff]  ;;  %v14964_v5 = vld [vmem:[#allocation32_spill] sm:$0xff]  ;;  %v14965_v43 = vld [vmem:[#allocation33_spill] sm:$0xff] }
 0x233   : > { %v2881_v39 = vpop.f32.mrf.mxu3  ;;  %v2616_v29 = vpop.f32.mrf.mxu0  ;;  %v14966_v37 = vld [vmem:[#allocation34_spill] sm:$0xff] }
 0x234   : > { %14962 = vst [vmem:[#allocation58_spill] sm:$0xff] %v12948_v41  ;;  %v2617_v28 = vadd.f32 %v2616_v29, %v12917_v9  ;;  %v2882_v61 = vadd.f32 %v2881_v39, %v2793_v38  ;;  %v10250_v29 = vld [vmem:[#allocation5 + $0x408] sm:$0xf] }
 0x235   : > { %v10506_v41 = vld [vmem:[#allocation5 + $0x608] sm:$0xf] }
 0x236   : > { %v2706_v4 = vadd.f32 %v2705_v7, %v2617_v28  ;;  %v5131_v11 = vmul.f32 0.2, %v2882_v61  ;;  %v11724_v28 = vld [vmem:[#allocation5 + $0x424] sm:$0xf0] }
 0x237   : > { %v9738_v7 = vld [vmem:[#allocation5 + $0x8] sm:$0xf] }
 0x238   : > { %v5387_v38 = vmax.f32 %v2882_v61, %v5131_v11 }
 0x239   : > { %v2794_v10 = vpop.f32.mrf.mxu2  ;;  %v2708_v52 = vpop.f32.mrf.mxu1 }
 0x23a   : > { %v2795_v53 = vadd.f32 %v2794_v10, %v2706_v4  ;;  %v11596_v10 = vld [vmem:[#allocation5 + $0x24] sm:$0xf0] }
 0x23b   : > { %v2883_v18 = vpop.f32.mrf.mxu3  ;;  %v2619_v36 = vpop.f32.mrf.mxu0 }
 0x23c   : > { %v2620_v20 = vadd.f32 %v2619_v36, %v12917_v9  ;;  %v2884_v8 = vadd.f32 %v2883_v18, %v2795_v53  ;;  %2747 = vmatmul.bf16.gmra.mxu1 %v14964_v5  ;;  %v10251_v36 = vor.u32 %v11724_v28, %v10250_v29  ;;  %v11788_v53 = vld [vmem:[#allocation5 + $0x624] sm:$0xf0] }
 0x23d   : > { %v10507_v59 = vor.u32 %v11788_v53, %v10506_v41  ;;  %v14968_v53 = vld [vmem:[#allocation36_spill] sm:$0xff] }
 0x23e   : > { %v2709_v16 = vadd.f32 %v2708_v52, %v2620_v20  ;;  %2658 = vmatmul.bf16.gmra.mxu0 %v14963_v40  ;;  %v5139_v58 = vmul.f32 0.2, %v2884_v8  ;;  %2836 = vmatmul.bf16.gmra.mxu2 %v14965_v43  ;;  %v9739_v40 = vor.u32 %v11596_v10, %v9738_v7 }
 0x23f   : > { %3131 = vmatpush.bf16.msra.mxu2 %v10251_v36  ;;  %3220 = vmatpush.bf16.msra.mxu3 %v10507_v59  ;;  %v14970_v59 = vld [vmem:[#allocation38_spill] sm:$0xff] }
 0x240   : > { %2925 = vmatmul.bf16.gmra.mxu3 %v14966_v37  ;;  %v5395_v39 = vmax.f32 %v2884_v8, %v5139_v58  ;;  %2953 = vmatpush.bf16.msra.mxu0 %v9739_v40  ;;  %v9994_v8 = vld [vmem:[#allocation5 + $0x208] sm:$0xf]  ;;  %v14969_v40 = vld [vmem:[#allocation37_spill] sm:$0xff] }
 0x241   : > { %v2797_v4 = vpop.f32.mrf.mxu2  ;;  %v2710_v37 = vpop.f32.mrf.mxu1  ;;  %v11660_v58 = vld [vmem:[#allocation5 + $0x224] sm:$0xf0] }
 0x242   : > { %v2798_v20 = vadd.f32 %v2797_v4, %v2709_v16  ;;  %v12956_v5 = vpack.c.bf16 %v5395_v39, %v5387_v38  ;;  %v9995_v28 = vor.u32 %v11660_v58, %v9994_v8 }
 0x243   : > { %v2886_v52 = vpop.f32.mrf.mxu3  ;;  %v2621_v18 = vpop.f32.mrf.mxu0 }
 0x244   : > { %14967 = vst [vmem:[#allocation59_spill] sm:$0xff] %v12956_v5  ;;  %v2622_v43 = vadd.f32 %v2621_v18, %v12917_v9  ;;  %v2887_v61 = vadd.f32 %v2886_v52, %v2798_v20  ;;  %3042 = vmatpush.bf16.msra.mxu1 %v9995_v28 }
 0x246   : > { %v2711_v11 = vadd.f32 %v2710_v37, %v2622_v43  ;;  %v5147_v38 = vmul.f32 0.2, %v2887_v61  ;;  %v14971_v43 = vld [vmem:[#allocation39_spill] sm:$0xff] }
 0x248   : > { %v5403_v37 = vmax.f32 %v2887_v61, %v5147_v38 }
 0x249   : > { %v2799_v29 = vpop.f32.mrf.mxu2  ;;  %v2713_v41 = vpop.f32.mrf.mxu1 }
 0x24a   : > { %v2800_v62 = vadd.f32 %v2799_v29, %v2711_v11 }
 0x24b   : > { %v2888_v16 = vpop.f32.mrf.mxu3  ;;  %v2624_v4 = vpop.f32.mrf.mxu0 }
 0x24c   : > { %v2625_v7 = vadd.f32 %v2624_v4, %v12917_v9  ;;  %v2889_v39 = vadd.f32 %v2888_v16, %v2800_v62  ;;  %2752 = vmatmul.bf16.gmra.mxu1 %v14969_v40 }
 0x24e   : > { %v2714_v10 = vadd.f32 %v2713_v41, %v2625_v7  ;;  %2663 = vmatmul.bf16.gmra.mxu0 %v14968_v53  ;;  %v5155_v36 = vmul.f32 0.2, %v2889_v39  ;;  %2841 = vmatmul.bf16.gmra.mxu2 %v14970_v59 }
 0x250   : > { %2930 = vmatmul.bf16.gmra.mxu3 %v14971_v43  ;;  %v5411_v20 = vmax.f32 %v2889_v39, %v5155_v36 }
 0x251   : > { %v2802_v52 = vpop.f32.mrf.mxu2  ;;  %v2715_v29 = vpop.f32.mrf.mxu1 }
 0x252   : > { %v2803_v18 = vadd.f32 %v2802_v52, %v2714_v10  ;;  %v12964_v58 = vpack.c.bf16 %v5411_v20, %v5403_v37  ;;  %v14973_v10 = vld [vmem:[#allocation41_spill] sm:$0xff]  ;;  %v14974_v37 = vld [vmem:[#allocation42_spill] sm:$0xff]  ;;  %v14975_v20 = vld [vmem:[#allocation43_spill] sm:$0xff] }
 0x253   : > { %v2891_v11 = vpop.f32.mrf.mxu3  ;;  %v2626_v8 = vpop.f32.mrf.mxu0  ;;  %v14976_v52 = vld [vmem:[#allocation44_spill] sm:$0xff] }
 0x254   : > { %14972 = vst [vmem:[#allocation60_spill] sm:$0xff] %v12964_v58  ;;  %v2627_v62 = vadd.f32 %v2626_v8, %v12917_v9  ;;  %v2892_v28 = vadd.f32 %v2891_v11, %v2803_v18  ;;  %v11776_v8 = vld [vmem:[#allocation5 + $0x5cc] sm:$0xf] }
 0x255   : > { %v11840_v58 = vld [vmem:[#allocation5 + $0x7cc] sm:$0xf] }
 0x256   : > { %v2716_v16 = vadd.f32 %v2715_v29, %v2627_v62  ;;  %v5163_v61 = vmul.f32 0.2, %v2892_v28  ;;  %v10476_v62 = vld [vmem:[#allocation5 + $0x5e8] sm:$0xf0] }
 0x257   : > { %v11648_v29 = vld [vmem:[#allocation5 + $0x1cc] sm:$0xf] }
 0x258   : > { %v5419_v18 = vmax.f32 %v2892_v28, %v5163_v61 }
 0x259   : > { %v2804_v4 = vpop.f32.mrf.mxu2  ;;  %v2718_v43 = vpop.f32.mrf.mxu1 }
 0x25a   : > { %v2805_v7 = vadd.f32 %v2804_v4, %v2716_v16  ;;  %v9964_v4 = vld [vmem:[#allocation5 + $0x1e8] sm:$0xf0] }
 0x25b   : > { %v2893_v41 = vpop.f32.mrf.mxu3  ;;  %v2629_v5 = vpop.f32.mrf.mxu0 }
 0x25c   : > { %v2630_v59 = vadd.f32 %v2629_v5, %v12917_v9  ;;  %v2894_v38 = vadd.f32 %v2893_v41, %v2805_v7  ;;  %2757 = vmatmul.bf16.gmra.mxu1 %v14974_v37  ;;  %v10479_v5 = vor.u32 %v11776_v8, %v10476_v62  ;;  %v10732_v7 = vld [vmem:[#allocation5 + $0x7e8] sm:$0xf0] }
 0x25d   : > { %v10735_v40 = vor.u32 %v11840_v58, %v10732_v7 }
 0x25e   : > { %v2719_v39 = vadd.f32 %v2718_v43, %v2630_v59  ;;  %2668 = vmatmul.bf16.gmra.mxu0 %v14973_v10  ;;  %v5171_v36 = vmul.f32 0.2, %v2894_v38  ;;  %2846 = vmatmul.bf16.gmra.mxu2 %v14975_v20  ;;  %v9967_v10 = vor.u32 %v11648_v29, %v9964_v4 }
 0x25f   : > { %3480 = vmatpush.bf16.msrb.mxu2 %v10479_v5  ;;  %3569 = vmatpush.bf16.msrb.mxu3 %v10735_v40 }
 0x260   : > { %2935 = vmatmul.bf16.gmra.mxu3 %v14976_v52  ;;  %v5427_v11 = vmax.f32 %v2894_v38, %v5171_v36  ;;  %3302 = vmatpush.bf16.msrb.mxu0 %v9967_v10  ;;  %v11712_v38 = vld [vmem:[#allocation5 + $0x3cc] sm:$0xf] }
 0x261   : > { %v2807_v16 = vpop.f32.mrf.mxu2  ;;  %v2720_v52 = vpop.f32.mrf.mxu1  ;;  %v10220_v36 = vld [vmem:[#allocation5 + $0x3e8] sm:$0xf0] }
 0x262   : > { %v2808_v59 = vadd.f32 %v2807_v16, %v2719_v39  ;;  %v12972_v37 = vpack.c.bf16 %v5427_v11, %v5419_v18  ;;  %v10223_v62 = vor.u32 %v11712_v38, %v10220_v36 }
 0x263   : > { %v2896_v43 = vpop.f32.mrf.mxu3  ;;  %v2631_v41 = vpop.f32.mrf.mxu0 }
 0x264   : > { %14977 = vst [vmem:[#allocation61_spill] sm:$0xff] %v12972_v37  ;;  %v2632_v20 = vadd.f32 %v2631_v41, %v12917_v9  ;;  %v2897_v28 = vadd.f32 %v2896_v43, %v2808_v59  ;;  %3391 = vmatpush.bf16.msrb.mxu1 %v10223_v62 }
 0x266   : > { %v2721_v61 = vadd.f32 %v2720_v52, %v2632_v20  ;;  %v5179_v18 = vmul.f32 0.2, %v2897_v28 }
 0x268   : > { %v5435_v40 = vmax.f32 %v2897_v28, %v5179_v18 }
 0x269   : > { %v2809_v8 = vpop.f32.mrf.mxu2  ;;  %v2723_v58 = vpop.f32.mrf.mxu1 }
 0x26a   : > { %v2810_v53 = vadd.f32 %v2809_v8, %v2721_v61 }
 0x26b   : > { %v2898_v39 = vpop.f32.mrf.mxu3  ;;  %v2634_v16 = vpop.f32.mrf.mxu0 }
 0x26c   : > { %v2635_v29 = vadd.f32 %v2634_v16, %v12917_v9  ;;  %v2899_v11 = vadd.f32 %v2898_v39, %v2810_v53  ;;  %2762 = vmatmul.bf16.gmra.mxu1 %v12839_v6 }
 0x26e   : > { %v2724_v4 = vadd.f32 %v2723_v58, %v2635_v29  ;;  %2673 = vmatmul.bf16.gmra.mxu0 %v12837_v17  ;;  %v5187_v5 = vmul.f32 0.2, %v2899_v11  ;;  %2851 = vmatmul.bf16.gmra.mxu2 %v12841_v30 }
 0x270   : > { %2940 = vmatmul.bf16.gmra.mxu3 %v12844_v31  ;;  %v5443_v10 = vmax.f32 %v2899_v11, %v5187_v5  ;;  %v14980_v5 = vld [vmem:[#allocation16_spill] sm:$0xff] }
 0x271   : > { %v2812_v20 = vpop.f32.mrf.mxu2  ;;  %v2725_v41 = vpop.f32.mrf.mxu1 }
 0x272   : > { %v2813_v52 = vadd.f32 %v2812_v20, %v2724_v4  ;;  %v12980_v43 = vpack.c.bf16 %v5443_v10, %v5435_v40  ;;  %v14979_v4 = vld [vmem:[#allocation15_spill] sm:$0xff] }
 0x273   : > { %v2901_v7 = vpop.f32.mrf.mxu3  ;;  %v2636_v59 = vpop.f32.mrf.mxu0  ;;  %v11768_v20 = vld [vmem:[#allocation5 + $0x58c] sm:$0xf] }
 0x274   : > { %14978 = vst [vmem:[#allocation62_spill] sm:$0xff] %v12980_v43  ;;  %v2637_v53 = vadd.f32 %v2636_v59, %v12917_v9  ;;  %v2902_v61 = vadd.f32 %v2901_v7, %v2813_v52  ;;  %v10444_v52 = vld [vmem:[#allocation5 + $0x5a8] sm:$0xf0] }
 0x275   : > { %v11640_v7 = vld [vmem:[#allocation5 + $0x18c] sm:$0xf] }
 0x276   : > { %v2726_v38 = vadd.f32 %v2725_v41, %v2637_v53  ;;  %v5195_v28 = vmul.f32 0.2, %v2902_v61  ;;  %v10447_v53 = vor.u32 %v11768_v20, %v10444_v52  ;;  %v9932_v41 = vld [vmem:[#allocation5 + $0x1a8] sm:$0xf0] }
 0x278   : > { %v5451_v40 = vmax.f32 %v2902_v61, %v5195_v28  ;;  %3481 = vmatpush.bf16.msrb.mxu2 %v10447_v53 }
 0x279   : > { %v2814_v36 = vpop.f32.mrf.mxu2  ;;  %v2728_v29 = vpop.f32.mrf.mxu1 }
 0x27a   : > { %v2815_v8 = vadd.f32 %v2814_v36, %v2726_v38  ;;  %v11832_v38 = vld [vmem:[#allocation5 + $0x78c] sm:$0xf] }
 0x27b   : > { %v2903_v62 = vpop.f32.mrf.mxu3  ;;  %v2639_v39 = vpop.f32.mrf.mxu0  ;;  %v10700_v36 = vld [vmem:[#allocation5 + $0x7a8] sm:$0xf0] }
 0x27c   : > { %v2640_v16 = vadd.f32 %v2639_v39, %v12917_v9  ;;  %v2904_v58 = vadd.f32 %v2903_v62, %v2815_v8  ;;  %3043 = vmatmul.bf16.vlgmr.msra.gmra.mxu1 %v12511_v51 }
 0x27e   : > { %v2729_v18 = vadd.f32 %v2728_v29, %v2640_v16  ;;  %2954 = vmatmul.bf16.vlgmr.msra.gmra.mxu0 %v12509_v47  ;;  %v5203_v11 = vmul.f32 0.2, %v2904_v58  ;;  %3132 = vmatmul.bf16.vlgmr.msra.gmra.mxu2 %v14979_v4  ;;  %v9935_v16 = vor.u32 %v11640_v7, %v9932_v41  ;;  %v10703_v29 = vor.u32 %v11832_v38, %v10700_v36 }
 0x280   : > { %3221 = vmatmul.bf16.vlgmr.msra.gmra.mxu3 %v14980_v5  ;;  %v5459_v10 = vmax.f32 %v2904_v58, %v5203_v11  ;;  %3303 = vmatpush.bf16.msrb.mxu0 %v9935_v16  ;;  %v11704_v58 = vld [vmem:[#allocation5 + $0x38c] sm:$0xf] }
 0x281   : > { %v2817_v59 = vpop.f32.mrf.mxu2  ;;  %v2730_v5 = vpop.f32.mrf.mxu1  ;;  %3570 = vmatpush.bf16.msrb.mxu3 %v10703_v29  ;;  %v10188_v11 = vld [vmem:[#allocation5 + $0x3a8] sm:$0xf0] }
 0x282   : > { %v2818_v8 = vadd.f32 %v2817_v59, %v2729_v18  ;;  %v12988_v43 = vpack.c.bf16 %v5459_v10, %v5451_v40  ;;  %v10191_v52 = vor.u32 %v11704_v58, %v10188_v11 }
 0x283   : > { %v2906_v62 = vpop.f32.mrf.mxu3  ;;  %v2641_v39 = vpop.f32.mrf.mxu0 }
 0x284   : > { %14981 = vst [vmem:[#allocation63_spill] sm:$0xff] %v12988_v43  ;;  %v2642_v37 = vadd.f32 %v2641_v39, %v12917_v9  ;;  %v2907_v61 = vadd.f32 %v2906_v62, %v2818_v8  ;;  %3392 = vmatpush.bf16.msrb.mxu1 %v10191_v52 }
 0x286   : > { %v2731_v28 = vadd.f32 %v2730_v5, %v2642_v37  ;;  %v5211_v40 = vmul.f32 0.2, %v2907_v61 }
 0x288   : > { %v5467_v37 = vmax.f32 %v2907_v61, %v5211_v40 }
 0x289   : > { %v2819_v20 = vpop.f32.mrf.mxu2  ;;  %v2733_v41 = vpop.f32.mrf.mxu1 }
 0x28a   : > { %v2820_v4 = vadd.f32 %v2819_v20, %v2731_v28 }
 0x28b   : > { %v2908_v18 = vpop.f32.mrf.mxu3  ;;  %v2644_v59 = vpop.f32.mrf.mxu0 }
 0x28c   : > { %v2645_v7 = vadd.f32 %v2644_v59, %v12917_v9  ;;  %v2909_v10 = vadd.f32 %v2908_v18, %v2820_v4  ;;  %3048 = vmatmul.bf16.gmra.mxu1 %v12531_v13 }
 0x28e   : > { %v2734_v38 = vadd.f32 %v2733_v41, %v2645_v7  ;;  %2959 = vmatmul.bf16.gmra.mxu0 %v12529_v12  ;;  %v5219_v53 = vmul.f32 0.2, %v2909_v10  ;;  %3137 = vmatmul.bf16.gmra.mxu2 %v12533_v14 }
 0x290   : > { %3226 = vmatmul.bf16.gmra.mxu3 %v12535_v15  ;;  %v5475_v5 = vmax.f32 %v2909_v10, %v5219_v53 }
 0x291   : > { %v2822_v36 = vpop.f32.mrf.mxu2  ;;  %v2735_v29 = vpop.f32.mrf.mxu1 }
 0x292   : > { %v2823_v8 = vadd.f32 %v2822_v36, %v2734_v38  ;;  %v12996_v16 = vpack.c.bf16 %v5475_v5, %v5467_v37  ;;  %v11760_v37 = vld [vmem:[#allocation5 + $0x54c] sm:$0xf] }
 0x293   : > { %v2911_v62 = vpop.f32.mrf.mxu3  ;;  %v2646_v39 = vpop.f32.mrf.mxu0  ;;  %v10412_v5 = vld [vmem:[#allocation5 + $0x568] sm:$0xf0] }
 0x294   : > { %14982 = vst [vmem:[#allocation64_spill] sm:$0xff] %v12996_v16  ;;  %v2647_v4 = vadd.f32 %v2646_v39, %v12917_v9  ;;  %v2912_v28 = vadd.f32 %v2911_v62, %v2823_v8  ;;  %v11632_v36 = vld [vmem:[#allocation5 + $0x14c] sm:$0xf]  ;;  %v10415_v62 = vor.u32 %v11760_v37, %v10412_v5 }
 0x295   : > { %v9900_v39 = vld [vmem:[#allocation5 + $0x168] sm:$0xf0] }
 0x296   : > { %v2736_v58 = vadd.f32 %v2735_v29, %v2647_v4  ;;  %v5227_v61 = vmul.f32 0.2, %v2912_v28  ;;  %v11824_v4 = vld [vmem:[#allocation5 + $0x74c] sm:$0xf]  ;;  %3482 = vmatpush.bf16.msrb.mxu2 %v10415_v62 }
 0x297   : > { %v10668_v29 = vld [vmem:[#allocation5 + $0x768] sm:$0xf0] }
 0x298   : > { %v5483_v38 = vmax.f32 %v2912_v28, %v5227_v61 }
 0x299   : > { %v2824_v11 = vpop.f32.mrf.mxu2  ;;  %v2738_v7 = vpop.f32.mrf.mxu1 }
 0x29a   : > { %v2825_v20 = vadd.f32 %v2824_v11, %v2736_v58 }
 0x29b   : > { %v2913_v52 = vpop.f32.mrf.mxu3  ;;  %v2649_v18 = vpop.f32.mrf.mxu0 }
 0x29c   : > { %v2650_v59 = vadd.f32 %v2649_v18, %v12917_v9  ;;  %v2914_v41 = vadd.f32 %v2913_v52, %v2825_v20  ;;  %3053 = vmatmul.bf16.gmra.mxu1 %v12551_v25  ;;  %v9903_v52 = vor.u32 %v11632_v36, %v9900_v39  ;;  %v10671_v18 = vor.u32 %v11824_v4, %v10668_v29 }
 0x29e   : > { %v2739_v40 = vadd.f32 %v2738_v7, %v2650_v59  ;;  %2964 = vmatmul.bf16.gmra.mxu0 %v12549_v24  ;;  %v5235_v10 = vmul.f32 0.2, %v2914_v41  ;;  %3142 = vmatmul.bf16.gmra.mxu2 %v12553_v26 }
 0x29f   : > { %3304 = vmatpush.bf16.msrb.mxu0 %v9903_v52  ;;  %3571 = vmatpush.bf16.msrb.mxu3 %v10671_v18 }
 0x2a0   : > { %3231 = vmatmul.bf16.gmra.mxu3 %v12555_v27  ;;  %v5491_v53 = vmax.f32 %v2914_v41, %v5235_v10  ;;  %v11696_v41 = vld [vmem:[#allocation5 + $0x34c] sm:$0xf] }
 0x2a1   : > { %v2827_v8 = vpop.f32.mrf.mxu2  ;;  %v2740_v16 = vpop.f32.mrf.mxu1  ;;  %v10156_v10 = vld [vmem:[#allocation5 + $0x368] sm:$0xf0] }
 0x2a2   : > { %v2828_v58 = vadd.f32 %v2827_v8, %v2739_v40  ;;  %v13004_v59 = vpack.c.bf16 %v5491_v53, %v5483_v38  ;;  %v10159_v5 = vor.u32 %v11696_v41, %v10156_v10 }
 0x2a3   : > { %v2916_v11 = vpop.f32.mrf.mxu3  ;;  %v2651_v20 = vpop.f32.mrf.mxu0 }
 0x2a4   : > { %14983 = vst [vmem:[#allocation65_spill] sm:$0xff] %v13004_v59  ;;  %v2652_v7 = vadd.f32 %v2651_v20, %v12917_v9  ;;  %v2917_v28 = vadd.f32 %v2916_v11, %v2828_v58  ;;  %3393 = vmatpush.bf16.msrb.mxu1 %v10159_v5 }
 0x2a6   : > { %v2741_v61 = vadd.f32 %v2740_v16, %v2652_v7  ;;  %v5243_v38 = vmul.f32 0.2, %v2917_v28 }
 0x2a8   : > { %v5499_v16 = vmax.f32 %v2917_v28, %v5243_v38 }
 0x2a9   : > { %v2829_v37 = vpop.f32.mrf.mxu2  ;;  %v2743_v39 = vpop.f32.mrf.mxu1 }
 0x2aa   : > { %v2830_v43 = vadd.f32 %v2829_v37, %v2741_v61 }
 0x2ab   : > { %v2918_v40 = vpop.f32.mrf.mxu3  ;;  %v2654_v8 = vpop.f32.mrf.mxu0 }
 0x2ac   : > { %v2655_v36 = vadd.f32 %v2654_v8, %v12917_v9  ;;  %v2919_v53 = vadd.f32 %v2918_v40, %v2830_v43  ;;  %3058 = vmatmul.bf16.gmra.mxu1 %v12571_v50 }
 0x2ae   : > { %v2744_v4 = vadd.f32 %v2743_v39, %v2655_v36  ;;  %2969 = vmatmul.bf16.gmra.mxu0 %v12569_v49  ;;  %v5251_v62 = vmul.f32 0.2, %v2919_v53  ;;  %3147 = vmatmul.bf16.gmra.mxu2 %v12573_v54 }
 0x2b0   : > { %3236 = vmatmul.bf16.gmra.mxu3 %v12575_v55  ;;  %v5507_v29 = vmax.f32 %v2919_v53, %v5251_v62 }
 0x2b1   : > { %v2832_v58 = vpop.f32.mrf.mxu2  ;;  %v2745_v7 = vpop.f32.mrf.mxu1 }
 0x2b2   : > { %v2833_v11 = vadd.f32 %v2832_v58, %v2744_v4  ;;  %v13012_v18 = vpack.c.bf16 %v5507_v29, %v5499_v16  ;;  %v11752_v16 = vld [vmem:[#allocation5 + $0x50c] sm:$0xf] }
 0x2b3   : > { %v2921_v20 = vpop.f32.mrf.mxu3  ;;  %v2656_v52 = vpop.f32.mrf.mxu0  ;;  %v10380_v29 = vld [vmem:[#allocation5 + $0x528] sm:$0xf0] }
 0x2b4   : > { %14984 = vst [vmem:[#allocation66_spill] sm:$0xff] %v13012_v18  ;;  %v2657_v43 = vadd.f32 %v2656_v52, %v12917_v9  ;;  %v2922_v61 = vadd.f32 %v2921_v20, %v2833_v11  ;;  %v11624_v58 = vld [vmem:[#allocation5 + $0x10c] sm:$0xf]  ;;  %v10383_v20 = vor.u32 %v11752_v16, %v10380_v29 }
 0x2b5   : > { %v9868_v52 = vld [vmem:[#allocation5 + $0x128] sm:$0xf0] }
 0x2b6   : > { %v2746_v41 = vadd.f32 %v2745_v7, %v2657_v43  ;;  %v5259_v28 = vmul.f32 0.2, %v2922_v61  ;;  %v11816_v43 = vld [vmem:[#allocation5 + $0x70c] sm:$0xf]  ;;  %3483 = vmatpush.bf16.msrb.mxu2 %v10383_v20 }
 0x2b7   : > { %v10636_v7 = vld [vmem:[#allocation5 + $0x728] sm:$0xf0] }
 0x2b8   : > { %v5515_v4 = vmax.f32 %v2922_v61, %v5259_v28 }
 0x2b9   : > { %v2834_v10 = vpop.f32.mrf.mxu2  ;;  %v2748_v36 = vpop.f32.mrf.mxu1 }
 0x2ba   : > { %v2835_v37 = vadd.f32 %v2834_v10, %v2746_v41 }
 0x2bb   : > { %v2923_v5 = vpop.f32.mrf.mxu3  ;;  %v2659_v40 = vpop.f32.mrf.mxu0 }
 0x2bc   : > { %v2660_v8 = vadd.f32 %v2659_v40, %v12917_v9  ;;  %v2924_v39 = vadd.f32 %v2923_v5, %v2835_v37  ;;  %3063 = vmatmul.bf16.gmra.mxu1 %v12591_v1  ;;  %v9871_v5 = vor.u32 %v11624_v58, %v9868_v52  ;;  %v10639_v40 = vor.u32 %v11816_v43, %v10636_v7 }
 0x2be   : > { %v2749_v38 = vadd.f32 %v2748_v36, %v2660_v8  ;;  %2974 = vmatmul.bf16.gmra.mxu0 %v12589_v0  ;;  %v5267_v53 = vmul.f32 0.2, %v2924_v39  ;;  %3152 = vmatmul.bf16.gmra.mxu2 %v12593_v2 }
 0x2bf   : > { %3305 = vmatpush.bf16.msrb.mxu0 %v9871_v5  ;;  %3572 = vmatpush.bf16.msrb.mxu3 %v10639_v40 }
 0x2c0   : > { %3241 = vmatmul.bf16.gmra.mxu3 %v12595_v3  ;;  %v5523_v62 = vmax.f32 %v2924_v39, %v5267_v53  ;;  %v11688_v39 = vld [vmem:[#allocation5 + $0x30c] sm:$0xf] }
 0x2c1   : > { %v2837_v11 = vpop.f32.mrf.mxu2  ;;  %v2750_v18 = vpop.f32.mrf.mxu1  ;;  %v10124_v53 = vld [vmem:[#allocation5 + $0x328] sm:$0xf0] }
 0x2c2   : > { %v2838_v41 = vadd.f32 %v2837_v11, %v2749_v38  ;;  %v13020_v8 = vpack.c.bf16 %v5523_v62, %v5515_v4  ;;  %v10127_v29 = vor.u32 %v11688_v39, %v10124_v53 }
 0x2c3   : > { %v2926_v10 = vpop.f32.mrf.mxu3  ;;  %v2661_v37 = vpop.f32.mrf.mxu0 }
 0x2c4   : > { %14985 = vst [vmem:[#allocation67_spill] sm:$0xff] %v13020_v8  ;;  %v2662_v36 = vadd.f32 %v2661_v37, %v12917_v9  ;;  %v2927_v61 = vadd.f32 %v2926_v10, %v2838_v41  ;;  %3394 = vmatpush.bf16.msrb.mxu1 %v10127_v29 }
 0x2c6   : > { %v2751_v28 = vadd.f32 %v2750_v18, %v2662_v36  ;;  %v5275_v4 = vmul.f32 0.2, %v2927_v61 }
 0x2c8   : > { %v5531_v18 = vmax.f32 %v2927_v61, %v5275_v4 }
 0x2c9   : > { %v2839_v16 = vpop.f32.mrf.mxu2  ;;  %v2753_v52 = vpop.f32.mrf.mxu1 }
 0x2ca   : > { %v2840_v59 = vadd.f32 %v2839_v16, %v2751_v28 }
 0x2cb   : > { %v2928_v38 = vpop.f32.mrf.mxu3  ;;  %v2664_v11 = vpop.f32.mrf.mxu0 }
 0x2cc   : > { %v2665_v58 = vadd.f32 %v2664_v11, %v12917_v9  ;;  %v2929_v62 = vadd.f32 %v2928_v38, %v2840_v59  ;;  %3068 = vmatmul.bf16.gmra.mxu1 %v12611_v33 }
 0x2ce   : > { %v2754_v43 = vadd.f32 %v2753_v52, %v2665_v58  ;;  %2979 = vmatmul.bf16.gmra.mxu0 %v12609_v32  ;;  %v5283_v20 = vmul.f32 0.2, %v2929_v62  ;;  %3157 = vmatmul.bf16.gmra.mxu2 %v12613_v34 }
 0x2d0   : > { %3246 = vmatmul.bf16.gmra.mxu3 %v12615_v35  ;;  %v5539_v7 = vmax.f32 %v2929_v62, %v5283_v20 }
 0x2d1   : > { %v2842_v41 = vpop.f32.mrf.mxu2  ;;  %v2755_v36 = vpop.f32.mrf.mxu1 }
 0x2d2   : > { %v2843_v10 = vadd.f32 %v2842_v41, %v2754_v43  ;;  %v13028_v40 = vpack.c.bf16 %v5539_v7, %v5531_v18  ;;  %v11744_v18 = vld [vmem:[#allocation5 + $0x4cc] sm:$0xf] }
 0x2d3   : > { %v2931_v37 = vpop.f32.mrf.mxu3  ;;  %v2666_v5 = vpop.f32.mrf.mxu0  ;;  %v10348_v7 = vld [vmem:[#allocation5 + $0x4e8] sm:$0xf0] }
 0x2d4   : > { %14986 = vst [vmem:[#allocation68_spill] sm:$0xff] %v13028_v40  ;;  %v2667_v59 = vadd.f32 %v2666_v5, %v12917_v9  ;;  %v2932_v28 = vadd.f32 %v2931_v37, %v2843_v10  ;;  %v11616_v41 = vld [vmem:[#allocation5 + $0xcc] sm:$0xf]  ;;  %v10351_v37 = vor.u32 %v11744_v18, %v10348_v7 }
 0x2d5   : > { %v9836_v5 = vld [vmem:[#allocation5 + $0xe8] sm:$0xf0] }
 0x2d6   : > { %v2756_v39 = vadd.f32 %v2755_v36, %v2667_v59  ;;  %v5291_v61 = vmul.f32 0.2, %v2932_v28  ;;  %v11808_v59 = vld [vmem:[#allocation5 + $0x6cc] sm:$0xf]  ;;  %3484 = vmatpush.bf16.msrb.mxu2 %v10351_v37 }
 0x2d7   : > { %v10604_v36 = vld [vmem:[#allocation5 + $0x6e8] sm:$0xf0] }
 0x2d8   : > { %v5547_v43 = vmax.f32 %v2932_v28, %v5291_v61 }
 0x2d9   : > { %v2844_v53 = vpop.f32.mrf.mxu2  ;;  %v2758_v58 = vpop.f32.mrf.mxu1 }
 0x2da   : > { %v2845_v16 = vadd.f32 %v2844_v53, %v2756_v39 }
 0x2db   : > { %v2933_v29 = vpop.f32.mrf.mxu3  ;;  %v2669_v38 = vpop.f32.mrf.mxu0 }
 0x2dc   : > { %v2670_v11 = vadd.f32 %v2669_v38, %v12917_v9  ;;  %v2934_v52 = vadd.f32 %v2933_v29, %v2845_v16  ;;  %3073 = vmatmul.bf16.gmra.mxu1 %v12631_v45  ;;  %v9839_v29 = vor.u32 %v11616_v41, %v9836_v5  ;;  %v10607_v38 = vor.u32 %v11808_v59, %v10604_v36 }
 0x2de   : > { %v2759_v4 = vadd.f32 %v2758_v58, %v2670_v11  ;;  %2984 = vmatmul.bf16.gmra.mxu0 %v12629_v44  ;;  %v5299_v62 = vmul.f32 0.2, %v2934_v52  ;;  %3162 = vmatmul.bf16.gmra.mxu2 %v12633_v46 }
 0x2df   : > { %3306 = vmatpush.bf16.msrb.mxu0 %v9839_v29  ;;  %3573 = vmatpush.bf16.msrb.mxu3 %v10607_v38 }
 0x2e0   : > { %3251 = vmatmul.bf16.gmra.mxu3 %v12635_v48  ;;  %v5555_v20 = vmax.f32 %v2934_v52, %v5299_v62  ;;  %v11680_v52 = vld [vmem:[#allocation5 + $0x2cc] sm:$0xf] }
 0x2e1   : > { %v2847_v10 = vpop.f32.mrf.mxu2  ;;  %v2760_v40 = vpop.f32.mrf.mxu1  ;;  %v10092_v62 = vld [vmem:[#allocation5 + $0x2e8] sm:$0xf0] }
 0x2e2   : > { %v2848_v39 = vadd.f32 %v2847_v10, %v2759_v4  ;;  %v13036_v11 = vpack.c.bf16 %v5555_v20, %v5547_v43  ;;  %v10095_v7 = vor.u32 %v11680_v52, %v10092_v62  ;;  %v12127_v62 = vld [vmem:[#allocation7] sm:$0xff] }
 0x2e3   : > { %v2936_v53 = vpop.f32.mrf.mxu3  ;;  %v2671_v16 = vpop.f32.mrf.mxu0 }
 0x2e4   : > { %14987 = vst [vmem:[#allocation69_spill] sm:$0xff] %v13036_v11  ;;  %v2672_v58 = vadd.f32 %v2671_v16, %v12917_v9  ;;  %v2937_v28 = vadd.f32 %v2936_v53, %v2848_v39  ;;  %3395 = vmatpush.bf16.msrb.mxu1 %v10095_v7 }
 0x2e6   : > { %v2761_v61 = vadd.f32 %v2760_v40, %v2672_v58  ;;  %v5307_v43 = vmul.f32 0.2, %v2937_v28 }
 0x2e8   : > { %v5563_v40 = vmax.f32 %v2937_v28, %v5307_v43 }
 0x2e9   : > { %v2849_v18 = vpop.f32.mrf.mxu2  ;;  %v2763_v5 = vpop.f32.mrf.mxu1 }
 0x2ea   : > { %v2850_v8 = vadd.f32 %v2849_v18, %v2761_v61  ;;  %v13047_v18 = vperm.slane %v12127_v62, 2 }
 0x2eb   : > { %v2938_v4 = vpop.f32.mrf.mxu3  ;;  %v2674_v10 = vpop.f32.mrf.mxu0 }
 0x2ec   : > { %v2675_v41 = vadd.f32 %v2674_v10, %v12917_v9  ;;  %v2939_v20 = vadd.f32 %v2938_v4, %v2850_v8  ;;  %3078 = vmatmul.bf16.gmra.mxu1 %v12651_v21 }
 0x2ee   : > { %v2764_v59 = vadd.f32 %v2763_v5, %v2675_v41  ;;  %2989 = vmatmul.bf16.gmra.mxu0 %v12649_v19  ;;  %v5315_v37 = vmul.f32 0.2, %v2939_v20  ;;  %3167 = vmatmul.bf16.gmra.mxu2 %v12653_v22 }
 0x2f0   : > { %3256 = vmatmul.bf16.gmra.mxu3 %v12655_v23  ;;  %v5571_v36 = vmax.f32 %v2939_v20, %v5315_v37 }
 0x2f1   : > { %v2852_v39 = vpop.f32.mrf.mxu2  ;;  %v2765_v58 = vpop.f32.mrf.mxu1 }
 0x2f2   : > { %v2853_v53 = vadd.f32 %v2852_v39, %v2764_v59  ;;  %v13044_v38 = vpack.c.bf16 %v5571_v36, %v5563_v40  ;;  %v11736_v36 = vld [vmem:[#allocation5 + $0x48c] sm:$0xf] }
 0x2f3   : > { %v2941_v16 = vpop.f32.mrf.mxu3  ;;  %v2676_v29 = vpop.f32.mrf.mxu0  ;;  %v10316_v39 = vld [vmem:[#allocation5 + $0x4a8] sm:$0xf0] }
 0x2f4   : > { %14988 = vst [vmem:[#allocation70_spill] sm:$0xff] %v13044_v38  ;;  %v2677_v8 = vadd.f32 %v2676_v29, %v12917_v9  ;;  %v2942_v61 = vadd.f32 %v2941_v16, %v2853_v53  ;;  %v11608_v53 = vld [vmem:[#allocation5 + $0x8c] sm:$0xf]  ;;  %v10319_v29 = vor.u32 %v11736_v36, %v10316_v39 }
 0x2f6   : > { %v2766_v52 = vadd.f32 %v2765_v58, %v2677_v8  ;;  %v5323_v43 = vmul.f32 0.2, %v2942_v61  ;;  %v9804_v8 = vld [vmem:[#allocation5 + $0xa8] sm:$0xf0]  ;;  %3485 = vmatpush.bf16.msrb.mxu2 %v10319_v29 }
 0x2f7   : > { %v11800_v58 = vld [vmem:[#allocation5 + $0x68c] sm:$0xf] }
 0x2f8   : > { %v5579_v9 = vmax.f32 %v2942_v61, %v5323_v43 }
 0x2f9   : > { %v2854_v7 = vpop.f32.mrf.mxu2  ;;  %v3044_v5 = vpop.f32.mrf.mxu1 }
 0x2fa   : > { %v2855_v4 = vadd.f32 %v2854_v7, %v2766_v52  ;;  %v10572_v52 = vld [vmem:[#allocation5 + $0x6a8] sm:$0xf0] }
 0x2fb   : > { %v2943_v10 = vpop.f32.mrf.mxu3  ;;  %v2955_v41 = vpop.f32.mrf.mxu0 }
 0x2fc   : > { %v2956_v28 = vadd.f32 %v2955_v41, %v13047_v18  ;;  %v2944_v20 = vadd.f32 %v2943_v10, %v2855_v4  ;;  %3083 = vmatmul.bf16.gmra.mxu1 %v12673_v56  ;;  %v9807_v10 = vor.u32 %v11608_v53, %v9804_v8  ;;  %v10575_v41 = vor.u32 %v11800_v58, %v10572_v52  ;;  %v14990_v52 = vld [vmem:[#allocation17_spill] sm:$0xff] }
 0x2fe   : > { %v3045_v59 = vadd.f32 %v3044_v5, %v2956_v28  ;;  %2994 = vmatmul.bf16.gmra.mxu0 %v12671_v42  ;;  %v5331_v37 = vmul.f32 0.2, %v2944_v20  ;;  %3172 = vmatmul.bf16.gmra.mxu2 %v12675_v57 }
 0x2ff   : > { %3307 = vmatpush.bf16.msrb.mxu0 %v9807_v10  ;;  %3574 = vmatpush.bf16.msrb.mxu3 %v10575_v41 }
 0x300   : > { %3261 = vmatmul.bf16.gmra.mxu3 %v12678_v60  ;;  %v5587_v40 = vmax.f32 %v2944_v20, %v5331_v37  ;;  %v11672_v20 = vld [vmem:[#allocation5 + $0x28c] sm:$0xf] }
 0x301   : > { %v3133_v16 = vpop.f32.mrf.mxu2  ;;  %v3046_v38 = vpop.f32.mrf.mxu1  ;;  %v10060_v37 = vld [vmem:[#allocation5 + $0x2a8] sm:$0xf0] }
 0x302   : > { %v3134_v62 = vadd.f32 %v3133_v16, %v3045_v59  ;;  %v13054_v28 = vpack.c.bf16 %v5587_v40, %v5579_v9  ;;  %v10063_v39 = vor.u32 %v11672_v20, %v10060_v37 }
 0x303   : > { %v3222_v7 = vpop.f32.mrf.mxu3  ;;  %v2957_v4 = vpop.f32.mrf.mxu0 }
 0x304   : > { %14989 = vst [vmem:[#allocation71_spill] sm:$0xff] %v13054_v28  ;;  %v2958_v5 = vadd.f32 %v2957_v4, %v13047_v18  ;;  %v3223_v61 = vadd.f32 %v3222_v7, %v3134_v62  ;;  %3396 = vmatpush.bf16.msrb.mxu1 %v10063_v39  ;;  %v14992_v62 = vld [vmem:[#allocation19_spill] sm:$0xff] }
 0x306   : > { %v3047_v43 = vadd.f32 %v3046_v38, %v2958_v5  ;;  %v5084_v9 = vmul.f32 0.2, %v3223_v61  ;;  %v14991_v38 = vld [vmem:[#allocation18_spill] sm:$0xff] }
 0x308   : > { %v5340_v7 = vmax.f32 %v3223_v61, %v5084_v9 }
 0x309   : > { %v3135_v36 = vpop.f32.mrf.mxu2  ;;  %v3049_v8 = vpop.f32.mrf.mxu1 }
 0x30a   : > { %v3136_v11 = vadd.f32 %v3135_v36, %v3047_v43 }
 0x30b   : > { %v3224_v59 = vpop.f32.mrf.mxu3  ;;  %v2960_v16 = vpop.f32.mrf.mxu0 }
 0x30c   : > { %v2961_v53 = vadd.f32 %v2960_v16, %v13047_v18  ;;  %v3225_v40 = vadd.f32 %v3224_v59, %v3136_v11  ;;  %3088 = vmatmul.bf16.gmra.mxu1 %v14990_v52 }
 0x30e   : > { %v3050_v58 = vadd.f32 %v3049_v8, %v2961_v53  ;;  %2999 = vmatmul.bf16.gmra.mxu0 %v12693_v63  ;;  %v5092_v29 = vmul.f32 0.2, %v3225_v40  ;;  %3177 = vmatmul.bf16.gmra.mxu2 %v14991_v38 }
 0x310   : > { %3266 = vmatmul.bf16.gmra.mxu3 %v14992_v62  ;;  %v5348_v4 = vmax.f32 %v3225_v40, %v5092_v29  ;;  %v14994_v29 = vld [vmem:[#allocation21_spill] sm:$0xff] }
 0x311   : > { %v3138_v10 = vpop.f32.mrf.mxu2  ;;  %v3051_v37 = vpop.f32.mrf.mxu1 }
 0x312   : > { %v13062_v41 = vpack.c.bf16 %v5348_v4, %v5340_v7  ;;  %v3139_v5 = vadd.f32 %v3138_v10, %v3050_v58  ;;  %v14995_v7 = vld [vmem:[#allocation22_spill] sm:$0xff]  ;;  %v14996_v4 = vld [vmem:[#allocation23_spill] sm:$0xff]  ;;  %v14997_v10 = vld [vmem:[#allocation24_spill] sm:$0xff] }
 0x313   : > { %v3227_v43 = vpop.f32.mrf.mxu3  ;;  %v2962_v20 = vpop.f32.mrf.mxu0 }
 0x314   : > { %14993 = vst [vmem:[#allocation72_spill] sm:$0xff] %v13062_v41  ;;  %v2963_v11 = vadd.f32 %v2962_v20, %v13047_v18  ;;  %v3228_v36 = vadd.f32 %v3227_v43, %v3139_v5  ;;  %v11728_v20 = vld [vmem:[#allocation5 + $0x44c] sm:$0xf] }
 0x315   : > { %v11792_v41 = vld [vmem:[#allocation5 + $0x64c] sm:$0xf] }
 0x316   : > { %v3052_v39 = vadd.f32 %v3051_v37, %v2963_v11  ;;  %v5100_v61 = vmul.f32 0.2, %v3228_v36  ;;  %v10284_v11 = vld [vmem:[#allocation5 + $0x468] sm:$0xf0] }
 0x317   : > { %v11600_v37 = vld [vmem:[#allocation5 + $0x4c] sm:$0xf] }
 0x318   : > { %v5356_v5 = vmax.f32 %v3228_v36, %v5100_v61 }
 0x319   : > { %v3140_v59 = vpop.f32.mrf.mxu2  ;;  %v3054_v62 = vpop.f32.mrf.mxu1 }
 0x31a   : > { %v3141_v16 = vadd.f32 %v3140_v59, %v3052_v39  ;;  %v10287_v59 = vor.u32 %v11728_v20, %v10284_v11 }
 0x31b   : > { %v3229_v53 = vpop.f32.mrf.mxu3  ;;  %v2965_v8 = vpop.f32.mrf.mxu0 }
 0x31c   : > { %v2966_v28 = vadd.f32 %v2965_v8, %v13047_v18  ;;  %v3230_v9 = vadd.f32 %v3229_v53, %v3141_v16  ;;  %3093 = vmatmul.bf16.gmra.mxu1 %v14995_v7  ;;  %v9772_v8 = vld [vmem:[#allocation5 + $0x68] sm:$0xf0]  ;;  %3486 = vmatpush.bf16.msrb.mxu2 %v10287_v59 }
 0x31d   : > { %v10540_v16 = vld [vmem:[#allocation5 + $0x668] sm:$0xf0] }
 0x31e   : > { %v3055_v40 = vadd.f32 %v3054_v62, %v2966_v28  ;;  %3004 = vmatmul.bf16.gmra.mxu0 %v14994_v29  ;;  %v5108_v58 = vmul.f32 0.2, %v3230_v9  ;;  %3182 = vmatmul.bf16.gmra.mxu2 %v14996_v4  ;;  %v9775_v29 = vor.u32 %v11600_v37, %v9772_v8  ;;  %v10543_v38 = vor.u32 %v11792_v41, %v10540_v16  ;;  %v14999_v16 = vld [vmem:[#allocation26_spill] sm:$0xff] }
 0x320   : > { %3271 = vmatmul.bf16.gmra.mxu3 %v14997_v10  ;;  %v5364_v43 = vmax.f32 %v3230_v9, %v5108_v58  ;;  %3308 = vmatpush.bf16.msrb.mxu0 %v9775_v29  ;;  %v11664_v9 = vld [vmem:[#allocation5 + $0x24c] sm:$0xf] }
 0x321   : > { %v3143_v39 = vpop.f32.mrf.mxu2  ;;  %v3056_v10 = vpop.f32.mrf.mxu1  ;;  %3575 = vmatpush.bf16.msrb.mxu3 %v10543_v38  ;;  %v10028_v58 = vld [vmem:[#allocation5 + $0x268] sm:$0xf0]  ;;  %v15001_v38 = vld [vmem:[#allocation28_spill] sm:$0xff] }
 0x322   : > { %v3144_v28 = vadd.f32 %v3143_v39, %v3055_v40  ;;  %v13070_v7 = vpack.c.bf16 %v5364_v43, %v5356_v5  ;;  %v10031_v11 = vor.u32 %v11664_v9, %v10028_v58  ;;  %v15000_v29 = vld [vmem:[#allocation27_spill] sm:$0xff] }
 0x323   : > { %v3232_v62 = vpop.f32.mrf.mxu3  ;;  %v2967_v53 = vpop.f32.mrf.mxu0 }
 0x324   : > { %14998 = vst [vmem:[#allocation73_spill] sm:$0xff] %v13070_v7  ;;  %v2968_v4 = vadd.f32 %v2967_v53, %v13047_v18  ;;  %v3233_v36 = vadd.f32 %v3232_v62, %v3144_v28  ;;  %3397 = vmatpush.bf16.msrb.mxu1 %v10031_v11 }
 0x326   : > { %v3057_v61 = vadd.f32 %v3056_v10, %v2968_v4  ;;  %v5116_v5 = vmul.f32 0.2, %v3233_v36  ;;  %v15002_v4 = vld [vmem:[#allocation29_spill] sm:$0xff] }
 0x328   : > { %v5372_v10 = vmax.f32 %v3233_v36, %v5116_v5 }
 0x329   : > { %v3145_v20 = vpop.f32.mrf.mxu2  ;;  %v3059_v41 = vpop.f32.mrf.mxu1 }
 0x32a   : > { %v3146_v52 = vadd.f32 %v3145_v20, %v3057_v61 }
 0x32b   : > { %v3234_v40 = vpop.f32.mrf.mxu3  ;;  %v2970_v39 = vpop.f32.mrf.mxu0 }
 0x32c   : > { %v2971_v37 = vadd.f32 %v2970_v39, %v13047_v18  ;;  %v3235_v43 = vadd.f32 %v3234_v40, %v3146_v52  ;;  %3098 = vmatmul.bf16.gmra.mxu1 %v15000_v29 }
 0x32e   : > { %v3060_v8 = vadd.f32 %v3059_v41, %v2971_v37  ;;  %3009 = vmatmul.bf16.gmra.mxu0 %v14999_v16  ;;  %v5124_v59 = vmul.f32 0.2, %v3235_v43  ;;  %3187 = vmatmul.bf16.gmra.mxu2 %v15001_v38 }
 0x330   : > { %3276 = vmatmul.bf16.gmra.mxu3 %v15002_v4  ;;  %v5380_v28 = vmax.f32 %v3235_v43, %v5124_v59 }
 0x331   : > { %v3148_v62 = vpop.f32.mrf.mxu2  ;;  %v3061_v20 = vpop.f32.mrf.mxu1 }
 0x332   : > { %v3149_v53 = vadd.f32 %v3148_v62, %v3060_v8  ;;  %v13078_v58 = vpack.c.bf16 %v5380_v28, %v5372_v10  ;;  %v15004_v8 = vld [vmem:[#allocation31_spill] sm:$0xff]  ;;  %v15005_v10 = vld [vmem:[#allocation32_spill] sm:$0xff]  ;;  %v15006_v28 = vld [vmem:[#allocation33_spill] sm:$0xff] }
 0x333   : > { %v3237_v61 = vpop.f32.mrf.mxu3  ;;  %v2972_v9 = vpop.f32.mrf.mxu0  ;;  %v15007_v62 = vld [vmem:[#allocation34_spill] sm:$0xff] }
 0x334   : > { %15003 = vst [vmem:[#allocation74_spill] sm:$0xff] %v13078_v58  ;;  %v2973_v52 = vadd.f32 %v2972_v9, %v13047_v18  ;;  %v3238_v11 = vadd.f32 %v3237_v61, %v3149_v53  ;;  %v11720_v9 = vld [vmem:[#allocation5 + $0x40c] sm:$0xf] }
 0x335   : > { %v11784_v58 = vld [vmem:[#allocation5 + $0x60c] sm:$0xf] }
 0x336   : > { %v3062_v40 = vadd.f32 %v3061_v20, %v2973_v52  ;;  %v5132_v36 = vmul.f32 0.2, %v3238_v11  ;;  %v10252_v52 = vld [vmem:[#allocation5 + $0x428] sm:$0xf0] }
 0x337   : > { %v11592_v20 = vld [vmem:[#allocation5 + $0xc] sm:$0xf] }
 0x338   : > { %v5388_v53 = vmax.f32 %v3238_v11, %v5132_v36 }
 0x339   : > { %v3150_v39 = vpop.f32.mrf.mxu2  ;;  %v3064_v4 = vpop.f32.mrf.mxu1 }
 0x33a   : > { %v3151_v37 = vadd.f32 %v3150_v39, %v3062_v40  ;;  %v9740_v39 = vld [vmem:[#allocation5 + $0x28] sm:$0xf0] }
 0x33b   : > { %v3239_v41 = vpop.f32.mrf.mxu3  ;;  %v2975_v7 = vpop.f32.mrf.mxu0 }
 0x33c   : > { %v2976_v38 = vadd.f32 %v2975_v7, %v13047_v18  ;;  %v3240_v5 = vadd.f32 %v3239_v41, %v3151_v37  ;;  %3103 = vmatmul.bf16.gmra.mxu1 %v15005_v10  ;;  %v10255_v7 = vor.u32 %v11720_v9, %v10252_v52  ;;  %v10508_v37 = vld [vmem:[#allocation5 + $0x628] sm:$0xf0] }
 0x33d   : > { %v10511_v29 = vor.u32 %v11784_v58, %v10508_v37  ;;  %v15009_v37 = vld [vmem:[#allocation36_spill] sm:$0xff] }
 0x33e   : > { %v3065_v43 = vadd.f32 %v3064_v4, %v2976_v38  ;;  %3014 = vmatmul.bf16.gmra.mxu0 %v15004_v8  ;;  %v5140_v59 = vmul.f32 0.2, %v3240_v5  ;;  %3192 = vmatmul.bf16.gmra.mxu2 %v15006_v28  ;;  %v9743_v8 = vor.u32 %v11592_v20, %v9740_v39 }
 0x33f   : > { %3487 = vmatpush.bf16.msrb.mxu2 %v10255_v7  ;;  %3576 = vmatpush.bf16.msrb.mxu3 %v10511_v29  ;;  %v15011_v29 = vld [vmem:[#allocation38_spill] sm:$0xff] }
 0x340   : > { %3281 = vmatmul.bf16.gmra.mxu3 %v15007_v62  ;;  %v5396_v61 = vmax.f32 %v3240_v5, %v5140_v59  ;;  %3309 = vmatpush.bf16.msrb.mxu0 %v9743_v8  ;;  %v11656_v5 = vld [vmem:[#allocation5 + $0x20c] sm:$0xf]  ;;  %v15010_v8 = vld [vmem:[#allocation37_spill] sm:$0xff] }
 0x341   : > { %v3153_v40 = vpop.f32.mrf.mxu2  ;;  %v3066_v62 = vpop.f32.mrf.mxu1  ;;  %v9996_v59 = vld [vmem:[#allocation5 + $0x228] sm:$0xf0] }
 0x342   : > { %v3154_v38 = vadd.f32 %v3153_v40, %v3065_v43  ;;  %v13086_v10 = vpack.c.bf16 %v5396_v61, %v5388_v53  ;;  %v9999_v52 = vor.u32 %v11656_v5, %v9996_v59 }
 0x343   : > { %v3242_v4 = vpop.f32.mrf.mxu3  ;;  %v2977_v41 = vpop.f32.mrf.mxu0 }
 0x344   : > { %15008 = vst [vmem:[#allocation75_spill] sm:$0xff] %v13086_v10  ;;  %v2978_v28 = vadd.f32 %v2977_v41, %v13047_v18  ;;  %v3243_v11 = vadd.f32 %v3242_v4, %v3154_v38  ;;  %3398 = vmatpush.bf16.msrb.mxu1 %v9999_v52 }
 0x346   : > { %v3067_v36 = vadd.f32 %v3066_v62, %v2978_v28  ;;  %v5148_v53 = vmul.f32 0.2, %v3243_v11  ;;  %v15012_v28 = vld [vmem:[#allocation39_spill] sm:$0xff] }
 0x348   : > { %v5404_v62 = vmax.f32 %v3243_v11, %v5148_v53 }
 0x349   : > { %v3155_v9 = vpop.f32.mrf.mxu2  ;;  %v3069_v58 = vpop.f32.mrf.mxu1 }
 0x34a   : > { %v3156_v16 = vadd.f32 %v3155_v9, %v3067_v36 }
 0x34b   : > { %v3244_v43 = vpop.f32.mrf.mxu3  ;;  %v2980_v40 = vpop.f32.mrf.mxu0 }
 0x34c   : > { %v2981_v20 = vadd.f32 %v2980_v40, %v13047_v18  ;;  %v3245_v61 = vadd.f32 %v3244_v43, %v3156_v16  ;;  %3108 = vmatmul.bf16.gmra.mxu1 %v15010_v8 }
 0x34e   : > { %v3070_v39 = vadd.f32 %v3069_v58, %v2981_v20  ;;  %3019 = vmatmul.bf16.gmra.mxu0 %v15009_v37  ;;  %v5156_v7 = vmul.f32 0.2, %v3245_v61  ;;  %3197 = vmatmul.bf16.gmra.mxu2 %v15011_v29 }
 0x350   : > { %3286 = vmatmul.bf16.gmra.mxu3 %v15012_v28  ;;  %v5412_v38 = vmax.f32 %v3245_v61, %v5156_v7 }
 0x351   : > { %v3158_v4 = vpop.f32.mrf.mxu2  ;;  %v3071_v9 = vpop.f32.mrf.mxu1 }
 0x352   : > { %v3159_v41 = vadd.f32 %v3158_v4, %v3070_v39  ;;  %v13094_v59 = vpack.c.bf16 %v5412_v38, %v5404_v62  ;;  %v15014_v39 = vld [vmem:[#allocation41_spill] sm:$0xff]  ;;  %v15015_v62 = vld [vmem:[#allocation42_spill] sm:$0xff]  ;;  %v15016_v38 = vld [vmem:[#allocation43_spill] sm:$0xff] }
 0x353   : > { %v3247_v36 = vpop.f32.mrf.mxu3  ;;  %v2982_v5 = vpop.f32.mrf.mxu0  ;;  %v15017_v4 = vld [vmem:[#allocation44_spill] sm:$0xff] }
 0x354   : > { %15013 = vst [vmem:[#allocation76_spill] sm:$0xff] %v13094_v59  ;;  %v2983_v16 = vadd.f32 %v2982_v5, %v13047_v18  ;;  %v3248_v52 = vadd.f32 %v3247_v36, %v3159_v41  ;;  %v10482_v5 = vld [vmem:[#allocation5 + $0x5d0] sm:$0xf] }
 0x355   : > { %v10738_v59 = vld [vmem:[#allocation5 + $0x7d0] sm:$0xf] }
 0x356   : > { %v3072_v43 = vadd.f32 %v3071_v9, %v2983_v16  ;;  %v5164_v11 = vmul.f32 0.2, %v3248_v52  ;;  %v11781_v16 = vld [vmem:[#allocation5 + $0x5ec] sm:$0xf0] }
 0x357   : > { %v9970_v9 = vld [vmem:[#allocation5 + $0x1d0] sm:$0xf] }
 0x358   : > { %v5420_v41 = vmax.f32 %v3248_v52, %v5164_v11 }
 0x359   : > { %v3160_v40 = vpop.f32.mrf.mxu2  ;;  %v3074_v28 = vpop.f32.mrf.mxu1 }
 0x35a   : > { %v3161_v20 = vadd.f32 %v3160_v40, %v3072_v43  ;;  %v11653_v40 = vld [vmem:[#allocation5 + $0x1ec] sm:$0xf0] }
 0x35b   : > { %v3249_v58 = vpop.f32.mrf.mxu3  ;;  %v2985_v10 = vpop.f32.mrf.mxu0 }
 0x35c   : > { %v2986_v29 = vadd.f32 %v2985_v10, %v13047_v18  ;;  %v3250_v53 = vadd.f32 %v3249_v58, %v3161_v20  ;;  %3113 = vmatmul.bf16.gmra.mxu1 %v15015_v62  ;;  %v10483_v10 = vor.u32 %v11781_v16, %v10482_v5  ;;  %v11845_v20 = vld [vmem:[#allocation5 + $0x7ec] sm:$0xf0] }
 0x35d   : > { %v10739_v8 = vor.u32 %v11845_v20, %v10738_v59 }
 0x35e   : > { %v3075_v61 = vadd.f32 %v3074_v28, %v2986_v29  ;;  %3024 = vmatmul.bf16.gmra.mxu0 %v15014_v39  ;;  %v5172_v7 = vmul.f32 0.2, %v3250_v53  ;;  %3202 = vmatmul.bf16.gmra.mxu2 %v15016_v38  ;;  %v9971_v39 = vor.u32 %v11653_v40, %v9970_v9 }
 0x35f   : > { %3836 = vmatpush.bf16.msra.mxu2 %v10483_v10  ;;  %3925 = vmatpush.bf16.msra.mxu3 %v10739_v8 }
 0x360   : > { %3291 = vmatmul.bf16.gmra.mxu3 %v15017_v4  ;;  %v5428_v36 = vmax.f32 %v3250_v53, %v5172_v7  ;;  %3658 = vmatpush.bf16.msra.mxu0 %v9971_v39  ;;  %v10226_v53 = vld [vmem:[#allocation5 + $0x3d0] sm:$0xf] }
 0x361   : > { %v3163_v43 = vpop.f32.mrf.mxu2  ;;  %v3076_v4 = vpop.f32.mrf.mxu1  ;;  %v11717_v7 = vld [vmem:[#allocation5 + $0x3ec] sm:$0xf0] }
 0x362   : > { %v3164_v29 = vadd.f32 %v3163_v43, %v3075_v61  ;;  %v13102_v62 = vpack.c.bf16 %v5428_v36, %v5420_v41  ;;  %v10227_v16 = vor.u32 %v11717_v7, %v10226_v53 }
 0x363   : > { %v3252_v28 = vpop.f32.mrf.mxu3  ;;  %v2987_v58 = vpop.f32.mrf.mxu0 }
 0x364   : > { %15018 = vst [vmem:[#allocation77_spill] sm:$0xff] %v13102_v62  ;;  %v2988_v38 = vadd.f32 %v2987_v58, %v13047_v18  ;;  %v3253_v52 = vadd.f32 %v3252_v28, %v3164_v29  ;;  %3747 = vmatpush.bf16.msra.mxu1 %v10227_v16 }
 0x366   : > { %v3077_v11 = vadd.f32 %v3076_v4, %v2988_v38  ;;  %v5180_v41 = vmul.f32 0.2, %v3253_v52 }
 0x368   : > { %v5436_v8 = vmax.f32 %v3253_v52, %v5180_v41 }
 0x369   : > { %v3165_v5 = vpop.f32.mrf.mxu2  ;;  %v3079_v59 = vpop.f32.mrf.mxu1 }
 0x36a   : > { %v3166_v37 = vadd.f32 %v3165_v5, %v3077_v11 }
 0x36b   : > { %v3254_v61 = vpop.f32.mrf.mxu3  ;;  %v2990_v43 = vpop.f32.mrf.mxu0 }
 0x36c   : > { %v2991_v9 = vadd.f32 %v2990_v43, %v13047_v18  ;;  %v3255_v36 = vadd.f32 %v3254_v61, %v3166_v37  ;;  %3118 = vmatmul.bf16.gmra.mxu1 %v12839_v6 }
 0x36e   : > { %v3080_v40 = vadd.f32 %v3079_v59, %v2991_v9  ;;  %3029 = vmatmul.bf16.gmra.mxu0 %v12837_v17  ;;  %v5188_v10 = vmul.f32 0.2, %v3255_v36  ;;  %3207 = vmatmul.bf16.gmra.mxu2 %v12841_v30 }
 0x370   : > { %3296 = vmatmul.bf16.gmra.mxu3 %v12844_v31  ;;  %v5444_v39 = vmax.f32 %v3255_v36, %v5188_v10  ;;  %v15021_v10 = vld [vmem:[#allocation16_spill] sm:$0xff] }
 0x371   : > { %v3168_v38 = vpop.f32.mrf.mxu2  ;;  %v3081_v58 = vpop.f32.mrf.mxu1 }
 0x372   : > { %v3169_v4 = vadd.f32 %v3168_v38, %v3080_v40  ;;  %v13110_v28 = vpack.c.bf16 %v5444_v39, %v5436_v8  ;;  %v15020_v40 = vld [vmem:[#allocation15_spill] sm:$0xff]  ;;  %v10450_v38 = vld [vmem:[#allocation5 + $0x590] sm:$0xf] }
 0x373   : > { %v3257_v20 = vpop.f32.mrf.mxu3  ;;  %v2992_v29 = vpop.f32.mrf.mxu0 }
 0x374   : > { %15019 = vst [vmem:[#allocation78_spill] sm:$0xff] %v13110_v28  ;;  %v2993_v37 = vadd.f32 %v2992_v29, %v13047_v18  ;;  %v3258_v11 = vadd.f32 %v3257_v20, %v3169_v4  ;;  %v11773_v4 = vld [vmem:[#allocation5 + $0x5ac] sm:$0xf0] }
 0x375   : > { %v9938_v20 = vld [vmem:[#allocation5 + $0x190] sm:$0xf] }
 0x376   : > { %v3082_v53 = vadd.f32 %v3081_v58, %v2993_v37  ;;  %v5196_v52 = vmul.f32 0.2, %v3258_v11  ;;  %v10451_v37 = vor.u32 %v11773_v4, %v10450_v38  ;;  %v11645_v58 = vld [vmem:[#allocation5 + $0x1ac] sm:$0xf0] }
 0x378   : > { %v5452_v8 = vmax.f32 %v3258_v11, %v5196_v52  ;;  %3837 = vmatpush.bf16.msra.mxu2 %v10451_v37 }
 0x379   : > { %v3170_v7 = vpop.f32.mrf.mxu2  ;;  %v3084_v9 = vpop.f32.mrf.mxu1 }
 0x37a   : > { %v3171_v5 = vadd.f32 %v3170_v7, %v3082_v53  ;;  %v10706_v53 = vld [vmem:[#allocation5 + $0x790] sm:$0xf] }
 0x37b   : > { %v3259_v16 = vpop.f32.mrf.mxu3  ;;  %v2995_v61 = vpop.f32.mrf.mxu0  ;;  %v11837_v7 = vld [vmem:[#allocation5 + $0x7ac] sm:$0xf0] }
 0x37c   : > { %v2996_v43 = vadd.f32 %v2995_v61, %v13047_v18  ;;  %v3260_v59 = vadd.f32 %v3259_v16, %v3171_v5  ;;  %3399 = vmatmul.bf16.vlgmr.msrb.gmra.mxu1 %v12511_v51 }
 0x37e   : > { %v3085_v41 = vadd.f32 %v3084_v9, %v2996_v43  ;;  %3310 = vmatmul.bf16.vlgmr.msrb.gmra.mxu0 %v12509_v47  ;;  %v5204_v36 = vmul.f32 0.2, %v3260_v59  ;;  %3488 = vmatmul.bf16.vlgmr.msrb.gmra.mxu2 %v15020_v40  ;;  %v9939_v43 = vor.u32 %v11645_v58, %v9938_v20  ;;  %v10707_v9 = vor.u32 %v11837_v7, %v10706_v53 }
 0x380   : > { %3577 = vmatmul.bf16.vlgmr.msrb.gmra.mxu3 %v15021_v10  ;;  %v5460_v39 = vmax.f32 %v3260_v59, %v5204_v36  ;;  %3659 = vmatpush.bf16.msra.mxu0 %v9939_v43  ;;  %v10194_v59 = vld [vmem:[#allocation5 + $0x390] sm:$0xf] }
 0x381   : > { %v3173_v29 = vpop.f32.mrf.mxu2  ;;  %v3086_v10 = vpop.f32.mrf.mxu1  ;;  %3926 = vmatpush.bf16.msra.mxu3 %v10707_v9  ;;  %v11709_v36 = vld [vmem:[#allocation5 + $0x3ac] sm:$0xf0] }
 0x382   : > { %v3174_v5 = vadd.f32 %v3173_v29, %v3085_v41  ;;  %v13118_v28 = vpack.c.bf16 %v5460_v39, %v5452_v8  ;;  %v10195_v4 = vor.u32 %v11709_v36, %v10194_v59 }
 0x383   : > { %v3262_v16 = vpop.f32.mrf.mxu3  ;;  %v2997_v61 = vpop.f32.mrf.mxu0 }
 0x384   : > { %15022 = vst [vmem:[#allocation79_spill] sm:$0xff] %v13118_v28  ;;  %v2998_v62 = vadd.f32 %v2997_v61, %v13047_v18  ;;  %v3263_v11 = vadd.f32 %v3262_v16, %v3174_v5  ;;  %3748 = vmatpush.bf16.msra.mxu1 %v10195_v4 }
 0x386   : > { %v3087_v52 = vadd.f32 %v3086_v10, %v2998_v62  ;;  %v5212_v8 = vmul.f32 0.2, %v3263_v11 }
 0x388   : > { %v5468_v62 = vmax.f32 %v3263_v11, %v5212_v8 }
 0x389   : > { %v3175_v38 = vpop.f32.mrf.mxu2  ;;  %v3089_v58 = vpop.f32.mrf.mxu1 }
 0x38a   : > { %v3176_v40 = vadd.f32 %v3175_v38, %v3087_v52 }
 0x38b   : > { %v3264_v41 = vpop.f32.mrf.mxu3  ;;  %v3000_v29 = vpop.f32.mrf.mxu0 }
 0x38c   : > { %v3001_v20 = vadd.f32 %v3000_v29, %v13047_v18  ;;  %v3265_v39 = vadd.f32 %v3264_v41, %v3176_v40  ;;  %3404 = vmatmul.bf16.gmra.mxu1 %v12531_v13 }
 0x38e   : > { %v3090_v53 = vadd.f32 %v3089_v58, %v3001_v20  ;;  %3315 = vmatmul.bf16.gmra.mxu0 %v12529_v12  ;;  %v5220_v37 = vmul.f32 0.2, %v3265_v39  ;;  %3493 = vmatmul.bf16.gmra.mxu2 %v12533_v14 }
 0x390   : > { %3582 = vmatmul.bf16.gmra.mxu3 %v12535_v15  ;;  %v5476_v10 = vmax.f32 %v3265_v39, %v5220_v37 }
 0x391   : > { %v3178_v7 = vpop.f32.mrf.mxu2  ;;  %v3091_v9 = vpop.f32.mrf.mxu1 }
 0x392   : > { %v3179_v5 = vadd.f32 %v3178_v7, %v3090_v53  ;;  %v13126_v43 = vpack.c.bf16 %v5476_v10, %v5468_v62  ;;  %v10418_v62 = vld [vmem:[#allocation5 + $0x550] sm:$0xf] }
 0x393   : > { %v3267_v16 = vpop.f32.mrf.mxu3  ;;  %v3002_v61 = vpop.f32.mrf.mxu0  ;;  %v11765_v10 = vld [vmem:[#allocation5 + $0x56c] sm:$0xf0] }
 0x394   : > { %15023 = vst [vmem:[#allocation80_spill] sm:$0xff] %v13126_v43  ;;  %v3003_v40 = vadd.f32 %v3002_v61, %v13047_v18  ;;  %v3268_v52 = vadd.f32 %v3267_v16, %v3179_v5  ;;  %v9906_v7 = vld [vmem:[#allocation5 + $0x150] sm:$0xf]  ;;  %v10419_v16 = vor.u32 %v11765_v10, %v10418_v62 }
 0x395   : > { %v11637_v61 = vld [vmem:[#allocation5 + $0x16c] sm:$0xf0] }
 0x396   : > { %v3092_v59 = vadd.f32 %v3091_v9, %v3003_v40  ;;  %v5228_v11 = vmul.f32 0.2, %v3268_v52  ;;  %v10674_v40 = vld [vmem:[#allocation5 + $0x750] sm:$0xf]  ;;  %3838 = vmatpush.bf16.msra.mxu2 %v10419_v16 }
 0x397   : > { %v11829_v9 = vld [vmem:[#allocation5 + $0x76c] sm:$0xf0] }
 0x398   : > { %v5484_v53 = vmax.f32 %v3268_v52, %v5228_v11 }
 0x399   : > { %v3180_v36 = vpop.f32.mrf.mxu2  ;;  %v3094_v20 = vpop.f32.mrf.mxu1 }
 0x39a   : > { %v3181_v38 = vadd.f32 %v3180_v36, %v3092_v59 }
 0x39b   : > { %v3269_v4 = vpop.f32.mrf.mxu3  ;;  %v3005_v41 = vpop.f32.mrf.mxu0 }
 0x39c   : > { %v3006_v29 = vadd.f32 %v3005_v41, %v13047_v18  ;;  %v3270_v58 = vadd.f32 %v3269_v4, %v3181_v38  ;;  %3409 = vmatmul.bf16.gmra.mxu1 %v12551_v25  ;;  %v9907_v4 = vor.u32 %v11637_v61, %v9906_v7  ;;  %v10675_v41 = vor.u32 %v11829_v9, %v10674_v40 }
 0x39e   : > { %v3095_v8 = vadd.f32 %v3094_v20, %v3006_v29  ;;  %3320 = vmatmul.bf16.gmra.mxu0 %v12549_v24  ;;  %v5236_v39 = vmul.f32 0.2, %v3270_v58  ;;  %3498 = vmatmul.bf16.gmra.mxu2 %v12553_v26 }
 0x39f   : > { %3660 = vmatpush.bf16.msra.mxu0 %v9907_v4  ;;  %3927 = vmatpush.bf16.msra.mxu3 %v10675_v41 }
 0x3a0   : > { %3587 = vmatmul.bf16.gmra.mxu3 %v12555_v27  ;;  %v5492_v37 = vmax.f32 %v3270_v58, %v5236_v39  ;;  %v10162_v58 = vld [vmem:[#allocation5 + $0x350] sm:$0xf] }
 0x3a1   : > { %v3183_v5 = vpop.f32.mrf.mxu2  ;;  %v3096_v43 = vpop.f32.mrf.mxu1  ;;  %v11701_v39 = vld [vmem:[#allocation5 + $0x36c] sm:$0xf0] }
 0x3a2   : > { %v3184_v59 = vadd.f32 %v3183_v5, %v3095_v8  ;;  %v13134_v29 = vpack.c.bf16 %v5492_v37, %v5484_v53  ;;  %v10163_v10 = vor.u32 %v11701_v39, %v10162_v58 }
 0x3a3   : > { %v3272_v36 = vpop.f32.mrf.mxu3  ;;  %v3007_v38 = vpop.f32.mrf.mxu0 }
 0x3a4   : > { %15024 = vst [vmem:[#allocation81_spill] sm:$0xff] %v13134_v29  ;;  %v3008_v20 = vadd.f32 %v3007_v38, %v13047_v18  ;;  %v3273_v52 = vadd.f32 %v3272_v36, %v3184_v59  ;;  %3749 = vmatpush.bf16.msra.mxu1 %v10163_v10 }
 0x3a6   : > { %v3097_v11 = vadd.f32 %v3096_v43, %v3008_v20  ;;  %v5244_v53 = vmul.f32 0.2, %v3273_v52 }
 0x3a8   : > { %v5500_v43 = vmax.f32 %v3273_v52, %v5244_v53 }
 0x3a9   : > { %v3185_v62 = vpop.f32.mrf.mxu2  ;;  %v3099_v61 = vpop.f32.mrf.mxu1 }
 0x3aa   : > { %v3186_v28 = vadd.f32 %v3185_v62, %v3097_v11 }
 0x3ab   : > { %v3274_v8 = vpop.f32.mrf.mxu3  ;;  %v3010_v5 = vpop.f32.mrf.mxu0 }
 0x3ac   : > { %v3011_v7 = vadd.f32 %v3010_v5, %v13047_v18  ;;  %v3275_v37 = vadd.f32 %v3274_v8, %v3186_v28  ;;  %3414 = vmatmul.bf16.gmra.mxu1 %v12571_v50 }
 0x3ae   : > { %v3100_v40 = vadd.f32 %v3099_v61, %v3011_v7  ;;  %3325 = vmatmul.bf16.gmra.mxu0 %v12569_v49  ;;  %v5252_v16 = vmul.f32 0.2, %v3275_v37  ;;  %3503 = vmatmul.bf16.gmra.mxu2 %v12573_v54 }
 0x3b0   : > { %3592 = vmatmul.bf16.gmra.mxu3 %v12575_v55  ;;  %v5508_v9 = vmax.f32 %v3275_v37, %v5252_v16 }
 0x3b1   : > { %v3188_v59 = vpop.f32.mrf.mxu2  ;;  %v3101_v20 = vpop.f32.mrf.mxu1 }
 0x3b2   : > { %v3189_v36 = vadd.f32 %v3188_v59, %v3100_v40  ;;  %v13142_v41 = vpack.c.bf16 %v5508_v9, %v5500_v43  ;;  %v10386_v43 = vld [vmem:[#allocation5 + $0x510] sm:$0xf] }
 0x3b3   : > { %v3277_v38 = vpop.f32.mrf.mxu3  ;;  %v3012_v4 = vpop.f32.mrf.mxu0  ;;  %v11757_v9 = vld [vmem:[#allocation5 + $0x52c] sm:$0xf0] }
 0x3b4   : > { %15025 = vst [vmem:[#allocation82_spill] sm:$0xff] %v13142_v41  ;;  %v3013_v28 = vadd.f32 %v3012_v4, %v13047_v18  ;;  %v3278_v11 = vadd.f32 %v3277_v38, %v3189_v36  ;;  %v9874_v59 = vld [vmem:[#allocation5 + $0x110] sm:$0xf]  ;;  %v10387_v38 = vor.u32 %v11757_v9, %v10386_v43 }
 0x3b5   : > { %v11629_v4 = vld [vmem:[#allocation5 + $0x12c] sm:$0xf0] }
 0x3b6   : > { %v3102_v58 = vadd.f32 %v3101_v20, %v3013_v28  ;;  %v5260_v52 = vmul.f32 0.2, %v3278_v11  ;;  %v10642_v28 = vld [vmem:[#allocation5 + $0x710] sm:$0xf]  ;;  %3839 = vmatpush.bf16.msra.mxu2 %v10387_v38 }
 0x3b7   : > { %v11821_v20 = vld [vmem:[#allocation5 + $0x72c] sm:$0xf0] }
 0x3b8   : > { %v5516_v40 = vmax.f32 %v3278_v11, %v5260_v52 }
 0x3b9   : > { %v3190_v39 = vpop.f32.mrf.mxu2  ;;  %v3104_v7 = vpop.f32.mrf.mxu1 }
 0x3ba   : > { %v3191_v62 = vadd.f32 %v3190_v39, %v3102_v58 }
 0x3bb   : > { %v3279_v10 = vpop.f32.mrf.mxu3  ;;  %v3015_v8 = vpop.f32.mrf.mxu0 }
 0x3bc   : > { %v3016_v5 = vadd.f32 %v3015_v8, %v13047_v18  ;;  %v3280_v61 = vadd.f32 %v3279_v10, %v3191_v62  ;;  %3419 = vmatmul.bf16.gmra.mxu1 %v12591_v1  ;;  %v9875_v10 = vor.u32 %v11629_v4, %v9874_v59  ;;  %v10643_v8 = vor.u32 %v11821_v20, %v10642_v28 }
 0x3be   : > { %v3105_v53 = vadd.f32 %v3104_v7, %v3016_v5  ;;  %3330 = vmatmul.bf16.gmra.mxu0 %v12589_v0  ;;  %v5268_v37 = vmul.f32 0.2, %v3280_v61  ;;  %3508 = vmatmul.bf16.gmra.mxu2 %v12593_v2 }
 0x3bf   : > { %3661 = vmatpush.bf16.msra.mxu0 %v9875_v10  ;;  %3928 = vmatpush.bf16.msra.mxu3 %v10643_v8 }
 0x3c0   : > { %3597 = vmatmul.bf16.gmra.mxu3 %v12595_v3  ;;  %v5524_v16 = vmax.f32 %v3280_v61, %v5268_v37  ;;  %v10130_v61 = vld [vmem:[#allocation5 + $0x310] sm:$0xf] }
 0x3c1   : > { %v3193_v36 = vpop.f32.mrf.mxu2  ;;  %v3106_v41 = vpop.f32.mrf.mxu1  ;;  %v11693_v37 = vld [vmem:[#allocation5 + $0x32c] sm:$0xf0] }
 0x3c2   : > { %v3194_v58 = vadd.f32 %v3193_v36, %v3105_v53  ;;  %v13150_v5 = vpack.c.bf16 %v5524_v16, %v5516_v40  ;;  %v10131_v9 = vor.u32 %v11693_v37, %v10130_v61 }
 0x3c3   : > { %v3282_v39 = vpop.f32.mrf.mxu3  ;;  %v3017_v62 = vpop.f32.mrf.mxu0 }
 0x3c4   : > { %15026 = vst [vmem:[#allocation83_spill] sm:$0xff] %v13150_v5  ;;  %v3018_v7 = vadd.f32 %v3017_v62, %v13047_v18  ;;  %v3283_v11 = vadd.f32 %v3282_v39, %v3194_v58  ;;  %3750 = vmatpush.bf16.msra.mxu1 %v10131_v9 }
 0x3c6   : > { %v3107_v52 = vadd.f32 %v3106_v41, %v3018_v7  ;;  %v5276_v40 = vmul.f32 0.2, %v3283_v11 }
 0x3c8   : > { %v5532_v41 = vmax.f32 %v3283_v11, %v5276_v40 }
 0x3c9   : > { %v3195_v43 = vpop.f32.mrf.mxu2  ;;  %v3109_v4 = vpop.f32.mrf.mxu1 }
 0x3ca   : > { %v3196_v29 = vadd.f32 %v3195_v43, %v3107_v52 }
 0x3cb   : > { %v3284_v53 = vpop.f32.mrf.mxu3  ;;  %v3020_v36 = vpop.f32.mrf.mxu0 }
 0x3cc   : > { %v3021_v59 = vadd.f32 %v3020_v36, %v13047_v18  ;;  %v3285_v16 = vadd.f32 %v3284_v53, %v3196_v29  ;;  %3424 = vmatmul.bf16.gmra.mxu1 %v12611_v33 }
 0x3ce   : > { %v3110_v28 = vadd.f32 %v3109_v4, %v3021_v59  ;;  %3335 = vmatmul.bf16.gmra.mxu0 %v12609_v32  ;;  %v5284_v38 = vmul.f32 0.2, %v3285_v16  ;;  %3513 = vmatmul.bf16.gmra.mxu2 %v12613_v34 }
 0x3d0   : > { %3602 = vmatmul.bf16.gmra.mxu3 %v12615_v35  ;;  %v5540_v20 = vmax.f32 %v3285_v16, %v5284_v38 }
 0x3d1   : > { %v3198_v58 = vpop.f32.mrf.mxu2  ;;  %v3111_v7 = vpop.f32.mrf.mxu1 }
 0x3d2   : > { %v3199_v39 = vadd.f32 %v3198_v58, %v3110_v28  ;;  %v13158_v8 = vpack.c.bf16 %v5540_v20, %v5532_v41  ;;  %v10354_v41 = vld [vmem:[#allocation5 + $0x4d0] sm:$0xf] }
 0x3d3   : > { %v3287_v62 = vpop.f32.mrf.mxu3  ;;  %v3022_v10 = vpop.f32.mrf.mxu0  ;;  %v11749_v20 = vld [vmem:[#allocation5 + $0x4ec] sm:$0xf0] }
 0x3d4   : > { %15027 = vst [vmem:[#allocation84_spill] sm:$0xff] %v13158_v8  ;;  %v3023_v29 = vadd.f32 %v3022_v10, %v13047_v18  ;;  %v3288_v52 = vadd.f32 %v3287_v62, %v3199_v39  ;;  %v9842_v58 = vld [vmem:[#allocation5 + $0xd0] sm:$0xf]  ;;  %v10355_v62 = vor.u32 %v11749_v20, %v10354_v41 }
 0x3d5   : > { %v11621_v10 = vld [vmem:[#allocation5 + $0xec] sm:$0xf0] }
 0x3d6   : > { %v3112_v61 = vadd.f32 %v3111_v7, %v3023_v29  ;;  %v5292_v11 = vmul.f32 0.2, %v3288_v52  ;;  %v10610_v29 = vld [vmem:[#allocation5 + $0x6d0] sm:$0xf]  ;;  %3840 = vmatpush.bf16.msra.mxu2 %v10355_v62 }
 0x3d7   : > { %v11813_v7 = vld [vmem:[#allocation5 + $0x6ec] sm:$0xf0] }
 0x3d8   : > { %v5548_v28 = vmax.f32 %v3288_v52, %v5292_v11 }
 0x3d9   : > { %v3200_v37 = vpop.f32.mrf.mxu2  ;;  %v3114_v59 = vpop.f32.mrf.mxu1 }
 0x3da   : > { %v3201_v43 = vadd.f32 %v3200_v37, %v3112_v61 }
 0x3db   : > { %v3289_v9 = vpop.f32.mrf.mxu3  ;;  %v3025_v53 = vpop.f32.mrf.mxu0 }
 0x3dc   : > { %v3026_v36 = vadd.f32 %v3025_v53, %v13047_v18  ;;  %v3290_v4 = vadd.f32 %v3289_v9, %v3201_v43  ;;  %3429 = vmatmul.bf16.gmra.mxu1 %v12631_v45  ;;  %v9843_v9 = vor.u32 %v11621_v10, %v9842_v58  ;;  %v10611_v53 = vor.u32 %v11813_v7, %v10610_v29 }
 0x3de   : > { %v3115_v40 = vadd.f32 %v3114_v59, %v3026_v36  ;;  %3340 = vmatmul.bf16.gmra.mxu0 %v12629_v44  ;;  %v5300_v16 = vmul.f32 0.2, %v3290_v4  ;;  %3518 = vmatmul.bf16.gmra.mxu2 %v12633_v46 }
 0x3df   : > { %3662 = vmatpush.bf16.msra.mxu0 %v9843_v9  ;;  %3929 = vmatpush.bf16.msra.mxu3 %v10611_v53 }
 0x3e0   : > { %3607 = vmatmul.bf16.gmra.mxu3 %v12635_v48  ;;  %v5556_v38 = vmax.f32 %v3290_v4, %v5300_v16  ;;  %v10098_v4 = vld [vmem:[#allocation5 + $0x2d0] sm:$0xf] }
 0x3e1   : > { %v3203_v39 = vpop.f32.mrf.mxu2  ;;  %v3116_v8 = vpop.f32.mrf.mxu1  ;;  %v11685_v16 = vld [vmem:[#allocation5 + $0x2ec] sm:$0xf0] }
 0x3e2   : > { %v3204_v61 = vadd.f32 %v3203_v39, %v3115_v40  ;;  %v13166_v36 = vpack.c.bf16 %v5556_v38, %v5548_v28  ;;  %v10099_v20 = vor.u32 %v11685_v16, %v10098_v4  ;;  %v12128_v16 = vld [vmem:[#allocation7] sm:$0xff] }
 0x3e3   : > { %v3292_v37 = vpop.f32.mrf.mxu3  ;;  %v3027_v43 = vpop.f32.mrf.mxu0 }
 0x3e4   : > { %15028 = vst [vmem:[#allocation85_spill] sm:$0xff] %v13166_v36  ;;  %v3028_v59 = vadd.f32 %v3027_v43, %v13047_v18  ;;  %v3293_v52 = vadd.f32 %v3292_v37, %v3204_v61  ;;  %3751 = vmatpush.bf16.msra.mxu1 %v10099_v20 }
 0x3e6   : > { %v3117_v11 = vadd.f32 %v3116_v8, %v3028_v59  ;;  %v5308_v28 = vmul.f32 0.2, %v3293_v52 }
 0x3e8   : > { %v5564_v8 = vmax.f32 %v3293_v52, %v5308_v28 }
 0x3e9   : > { %v3205_v41 = vpop.f32.mrf.mxu2  ;;  %v3119_v10 = vpop.f32.mrf.mxu1 }
 0x3ea   : > { %v3206_v5 = vadd.f32 %v3205_v41, %v3117_v11  ;;  %v13177_v41 = vperm.slane %v12128_v16, 3 }
 0x3eb   : > { %v3294_v40 = vpop.f32.mrf.mxu3  ;;  %v3030_v39 = vpop.f32.mrf.mxu0 }
 0x3ec   : > { %v3031_v58 = vadd.f32 %v3030_v39, %v13047_v18  ;;  %v3295_v38 = vadd.f32 %v3294_v40, %v3206_v5  ;;  %3434 = vmatmul.bf16.gmra.mxu1 %v12651_v21 }
 0x3ee   : > { %v3120_v29 = vadd.f32 %v3119_v10, %v3031_v58  ;;  %3345 = vmatmul.bf16.gmra.mxu0 %v12649_v19  ;;  %v5316_v62 = vmul.f32 0.2, %v3295_v38  ;;  %3523 = vmatmul.bf16.gmra.mxu2 %v12653_v22 }
 0x3f0   : > { %3612 = vmatmul.bf16.gmra.mxu3 %v12655_v23  ;;  %v5572_v7 = vmax.f32 %v3295_v38, %v5316_v62 }
 0x3f1   : > { %v3208_v61 = vpop.f32.mrf.mxu2  ;;  %v3121_v59 = vpop.f32.mrf.mxu1 }
 0x3f2   : > { %v3209_v37 = vadd.f32 %v3208_v61, %v3120_v29  ;;  %v13174_v53 = vpack.c.bf16 %v5572_v7, %v5564_v8  ;;  %v10322_v7 = vld [vmem:[#allocation5 + $0x490] sm:$0xf] }
 0x3f3   : > { %v3297_v43 = vpop.f32.mrf.mxu3  ;;  %v3032_v9 = vpop.f32.mrf.mxu0  ;;  %v11741_v61 = vld [vmem:[#allocation5 + $0x4ac] sm:$0xf0] }
 0x3f4   : > { %15029 = vst [vmem:[#allocation86_spill] sm:$0xff] %v13174_v53  ;;  %v3033_v5 = vadd.f32 %v3032_v9, %v13047_v18  ;;  %v3298_v11 = vadd.f32 %v3297_v43, %v3209_v37  ;;  %v9810_v37 = vld [vmem:[#allocation5 + $0x90] sm:$0xf]  ;;  %v10323_v9 = vor.u32 %v11741_v61, %v10322_v7 }
 0x3f6   : > { %v3122_v4 = vadd.f32 %v3121_v59, %v3033_v5  ;;  %v5324_v28 = vmul.f32 0.2, %v3298_v11  ;;  %v11613_v5 = vld [vmem:[#allocation5 + $0xac] sm:$0xf0]  ;;  %3841 = vmatpush.bf16.msra.mxu2 %v10323_v9 }
 0x3f7   : > { %v10578_v59 = vld [vmem:[#allocation5 + $0x690] sm:$0xf] }
 0x3f8   : > { %v5580_v18 = vmax.f32 %v3298_v11, %v5324_v28 }
 0x3f9   : > { %v3210_v20 = vpop.f32.mrf.mxu2  ;;  %v3400_v10 = vpop.f32.mrf.mxu1 }
 0x3fa   : > { %v3211_v40 = vadd.f32 %v3210_v20, %v3122_v4  ;;  %v11805_v4 = vld [vmem:[#allocation5 + $0x6ac] sm:$0xf0] }
 0x3fb   : > { %v3299_v39 = vpop.f32.mrf.mxu3  ;;  %v3311_v58 = vpop.f32.mrf.mxu0 }
 0x3fc   : > { %v3312_v52 = vadd.f32 %v3311_v58, %v13177_v41  ;;  %v3300_v38 = vadd.f32 %v3299_v39, %v3211_v40  ;;  %3439 = vmatmul.bf16.gmra.mxu1 %v12673_v56  ;;  %v9811_v39 = vor.u32 %v11613_v5, %v9810_v37  ;;  %v10579_v58 = vor.u32 %v11805_v4, %v10578_v59  ;;  %v15031_v4 = vld [vmem:[#allocation17_spill] sm:$0xff] }
 0x3fe   : > { %v3401_v29 = vadd.f32 %v3400_v10, %v3312_v52  ;;  %3350 = vmatmul.bf16.gmra.mxu0 %v12671_v42  ;;  %v5332_v62 = vmul.f32 0.2, %v3300_v38  ;;  %3528 = vmatmul.bf16.gmra.mxu2 %v12675_v57 }
 0x3ff   : > { %3663 = vmatpush.bf16.msra.mxu0 %v9811_v39  ;;  %3930 = vmatpush.bf16.msra.mxu3 %v10579_v58 }
 0x400   : > { %3617 = vmatmul.bf16.gmra.mxu3 %v12678_v60  ;;  %v5588_v8 = vmax.f32 %v3300_v38, %v5332_v62  ;;  %v10066_v38 = vld [vmem:[#allocation5 + $0x290] sm:$0xf] }
 0x401   : > { %v3489_v43 = vpop.f32.mrf.mxu2  ;;  %v3402_v53 = vpop.f32.mrf.mxu1  ;;  %v11677_v62 = vld [vmem:[#allocation5 + $0x2ac] sm:$0xf0] }
 0x402   : > { %v3490_v16 = vadd.f32 %v3489_v43, %v3401_v29  ;;  %v13184_v52 = vpack.c.bf16 %v5588_v8, %v5580_v18  ;;  %v10067_v61 = vor.u32 %v11677_v62, %v10066_v38 }
 0x403   : > { %v3578_v20 = vpop.f32.mrf.mxu3  ;;  %v3313_v40 = vpop.f32.mrf.mxu0 }
 0x404   : > { %15030 = vst [vmem:[#allocation87_spill] sm:$0xff] %v13184_v52  ;;  %v3314_v10 = vadd.f32 %v3313_v40, %v13177_v41  ;;  %v3579_v11 = vadd.f32 %v3578_v20, %v3490_v16  ;;  %3752 = vmatpush.bf16.msra.mxu1 %v10067_v61  ;;  %v15033_v16 = vld [vmem:[#allocation19_spill] sm:$0xff] }
 0x406   : > { %v3403_v28 = vadd.f32 %v3402_v53, %v3314_v10  ;;  %v5085_v18 = vmul.f32 0.2, %v3579_v11  ;;  %v15032_v53 = vld [vmem:[#allocation18_spill] sm:$0xff] }
 0x408   : > { %v5341_v20 = vmax.f32 %v3579_v11, %v5085_v18 }
 0x409   : > { %v3491_v7 = vpop.f32.mrf.mxu2  ;;  %v3405_v5 = vpop.f32.mrf.mxu1 }
 0x40a   : > { %v3492_v36 = vadd.f32 %v3491_v7, %v3403_v28 }
 0x40b   : > { %v3580_v29 = vpop.f32.mrf.mxu3  ;;  %v3316_v43 = vpop.f32.mrf.mxu0 }
 0x40c   : > { %v3317_v37 = vadd.f32 %v3316_v43, %v13177_v41  ;;  %v3581_v8 = vadd.f32 %v3580_v29, %v3492_v36  ;;  %3444 = vmatmul.bf16.gmra.mxu1 %v15031_v4 }
 0x40e   : > { %v3406_v59 = vadd.f32 %v3405_v5, %v3317_v37  ;;  %3355 = vmatmul.bf16.gmra.mxu0 %v12693_v63  ;;  %v5093_v9 = vmul.f32 0.2, %v3581_v8  ;;  %3533 = vmatmul.bf16.gmra.mxu2 %v15032_v53 }
 0x410   : > { %3622 = vmatmul.bf16.gmra.mxu3 %v15033_v16  ;;  %v5349_v40 = vmax.f32 %v3581_v8, %v5093_v9  ;;  %v15035_v9 = vld [vmem:[#allocation21_spill] sm:$0xff] }
 0x411   : > { %v3494_v39 = vpop.f32.mrf.mxu2  ;;  %v3407_v62 = vpop.f32.mrf.mxu1 }
 0x412   : > { %v13192_v58 = vpack.c.bf16 %v5349_v40, %v5341_v20  ;;  %v3495_v10 = vadd.f32 %v3494_v39, %v3406_v59  ;;  %v15036_v20 = vld [vmem:[#allocation22_spill] sm:$0xff]  ;;  %v15037_v40 = vld [vmem:[#allocation23_spill] sm:$0xff]  ;;  %v15038_v39 = vld [vmem:[#allocation24_spill] sm:$0xff] }
 0x413   : > { %v3583_v28 = vpop.f32.mrf.mxu3  ;;  %v3318_v38 = vpop.f32.mrf.mxu0 }
 0x414   : > { %15034 = vst [vmem:[#allocation88_spill] sm:$0xff] %v13192_v58  ;;  %v3319_v36 = vadd.f32 %v3318_v38, %v13177_v41  ;;  %v3584_v7 = vadd.f32 %v3583_v28, %v3495_v10  ;;  %v10290_v38 = vld [vmem:[#allocation5 + $0x450] sm:$0xf] }
 0x415   : > { %v10546_v58 = vld [vmem:[#allocation5 + $0x650] sm:$0xf] }
 0x416   : > { %v3408_v61 = vadd.f32 %v3407_v62, %v3319_v36  ;;  %v5101_v11 = vmul.f32 0.2, %v3584_v7  ;;  %v11733_v36 = vld [vmem:[#allocation5 + $0x46c] sm:$0xf0] }
 0x417   : > { %v9778_v62 = vld [vmem:[#allocation5 + $0x50] sm:$0xf] }
 0x418   : > { %v5357_v10 = vmax.f32 %v3584_v7, %v5101_v11 }
 0x419   : > { %v3496_v29 = vpop.f32.mrf.mxu2  ;;  %v3410_v16 = vpop.f32.mrf.mxu1 }
 0x41a   : > { %v3497_v43 = vadd.f32 %v3496_v29, %v3408_v61  ;;  %v10291_v29 = vor.u32 %v11733_v36, %v10290_v38 }
 0x41b   : > { %v3585_v37 = vpop.f32.mrf.mxu3  ;;  %v3321_v5 = vpop.f32.mrf.mxu0 }
 0x41c   : > { %v3322_v52 = vadd.f32 %v3321_v5, %v13177_v41  ;;  %v3586_v18 = vadd.f32 %v3585_v37, %v3497_v43  ;;  %3449 = vmatmul.bf16.gmra.mxu1 %v15036_v20  ;;  %v11605_v5 = vld [vmem:[#allocation5 + $0x6c] sm:$0xf0]  ;;  %3842 = vmatpush.bf16.msra.mxu2 %v10291_v29 }
 0x41d   : > { %v11797_v43 = vld [vmem:[#allocation5 + $0x66c] sm:$0xf0] }
 0x41e   : > { %v3411_v8 = vadd.f32 %v3410_v16, %v3322_v52  ;;  %3360 = vmatmul.bf16.gmra.mxu0 %v15035_v9  ;;  %v5109_v59 = vmul.f32 0.2, %v3586_v18  ;;  %3538 = vmatmul.bf16.gmra.mxu2 %v15037_v40  ;;  %v9779_v9 = vor.u32 %v11605_v5, %v9778_v62  ;;  %v10547_v53 = vor.u32 %v11797_v43, %v10546_v58  ;;  %v15040_v43 = vld [vmem:[#allocation26_spill] sm:$0xff] }
 0x420   : > { %3627 = vmatmul.bf16.gmra.mxu3 %v15038_v39  ;;  %v5365_v28 = vmax.f32 %v3586_v18, %v5109_v59  ;;  %3664 = vmatpush.bf16.msra.mxu0 %v9779_v9  ;;  %v10034_v18 = vld [vmem:[#allocation5 + $0x250] sm:$0xf]  ;;  %v15041_v9 = vld [vmem:[#allocation27_spill] sm:$0xff] }
 0x421   : > { %v3499_v61 = vpop.f32.mrf.mxu2  ;;  %v3412_v39 = vpop.f32.mrf.mxu1  ;;  %3931 = vmatpush.bf16.msra.mxu3 %v10547_v53  ;;  %v11669_v59 = vld [vmem:[#allocation5 + $0x26c] sm:$0xf0] }
 0x422   : > { %v3500_v52 = vadd.f32 %v3499_v61, %v3411_v8  ;;  %v13200_v20 = vpack.c.bf16 %v5365_v28, %v5357_v10  ;;  %v10035_v36 = vor.u32 %v11669_v59, %v10034_v18  ;;  %v15042_v53 = vld [vmem:[#allocation28_spill] sm:$0xff] }
 0x423   : > { %v3588_v16 = vpop.f32.mrf.mxu3  ;;  %v3323_v37 = vpop.f32.mrf.mxu0 }
 0x424   : > { %15039 = vst [vmem:[#allocation89_spill] sm:$0xff] %v13200_v20  ;;  %v3324_v40 = vadd.f32 %v3323_v37, %v13177_v41  ;;  %v3589_v7 = vadd.f32 %v3588_v16, %v3500_v52  ;;  %3753 = vmatpush.bf16.msra.mxu1 %v10035_v36 }
 0x426   : > { %v3413_v11 = vadd.f32 %v3412_v39, %v3324_v40  ;;  %v5117_v10 = vmul.f32 0.2, %v3589_v7  ;;  %v15043_v40 = vld [vmem:[#allocation29_spill] sm:$0xff] }
 0x428   : > { %v5373_v39 = vmax.f32 %v3589_v7, %v5117_v10 }
 0x429   : > { %v3501_v38 = vpop.f32.mrf.mxu2  ;;  %v3415_v58 = vpop.f32.mrf.mxu1 }
 0x42a   : > { %v3502_v4 = vadd.f32 %v3501_v38, %v3413_v11 }
 0x42b   : > { %v3590_v8 = vpop.f32.mrf.mxu3  ;;  %v3326_v61 = vpop.f32.mrf.mxu0 }
 0x42c   : > { %v3327_v62 = vadd.f32 %v3326_v61, %v13177_v41  ;;  %v3591_v28 = vadd.f32 %v3590_v8, %v3502_v4  ;;  %3454 = vmatmul.bf16.gmra.mxu1 %v15041_v9 }
 0x42e   : > { %v3416_v5 = vadd.f32 %v3415_v58, %v3327_v62  ;;  %3365 = vmatmul.bf16.gmra.mxu0 %v15040_v43  ;;  %v5125_v29 = vmul.f32 0.2, %v3591_v28  ;;  %3543 = vmatmul.bf16.gmra.mxu2 %v15042_v53 }
 0x430   : > { %3632 = vmatmul.bf16.gmra.mxu3 %v15043_v40  ;;  %v5381_v52 = vmax.f32 %v3591_v28, %v5125_v29 }
 0x431   : > { %v3504_v16 = vpop.f32.mrf.mxu2  ;;  %v3417_v38 = vpop.f32.mrf.mxu1 }
 0x432   : > { %v3505_v37 = vadd.f32 %v3504_v16, %v3416_v5  ;;  %v13208_v59 = vpack.c.bf16 %v5381_v52, %v5373_v39  ;;  %v15045_v5 = vld [vmem:[#allocation31_spill] sm:$0xff]  ;;  %v15046_v39 = vld [vmem:[#allocation32_spill] sm:$0xff]  ;;  %v15047_v52 = vld [vmem:[#allocation33_spill] sm:$0xff] }
 0x433   : > { %v3593_v11 = vpop.f32.mrf.mxu3  ;;  %v3328_v18 = vpop.f32.mrf.mxu0  ;;  %v15048_v16 = vld [vmem:[#allocation34_spill] sm:$0xff] }
 0x434   : > { %15044 = vst [vmem:[#allocation90_spill] sm:$0xff] %v13208_v59  ;;  %v3329_v4 = vadd.f32 %v3328_v18, %v13177_v41  ;;  %v3594_v36 = vadd.f32 %v3593_v11, %v3505_v37  ;;  %v10258_v18 = vld [vmem:[#allocation5 + $0x410] sm:$0xf] }
 0x435   : > { %v10514_v59 = vld [vmem:[#allocation5 + $0x610] sm:$0xf] }
 0x436   : > { %v3418_v8 = vadd.f32 %v3417_v38, %v3329_v4  ;;  %v5133_v7 = vmul.f32 0.2, %v3594_v36  ;;  %v11725_v4 = vld [vmem:[#allocation5 + $0x42c] sm:$0xf0] }
 0x437   : > { %v9746_v38 = vld [vmem:[#allocation5 + $0x10] sm:$0xf] }
 0x438   : > { %v5389_v37 = vmax.f32 %v3594_v36, %v5133_v7 }
 0x439   : > { %v3506_v61 = vpop.f32.mrf.mxu2  ;;  %v3420_v40 = vpop.f32.mrf.mxu1 }
 0x43a   : > { %v3507_v62 = vadd.f32 %v3506_v61, %v3418_v8  ;;  %v11597_v61 = vld [vmem:[#allocation5 + $0x2c] sm:$0xf0] }
 0x43b   : > { %v3595_v58 = vpop.f32.mrf.mxu3  ;;  %v3331_v20 = vpop.f32.mrf.mxu0 }
 0x43c   : > { %v3332_v53 = vadd.f32 %v3331_v20, %v13177_v41  ;;  %v3596_v10 = vadd.f32 %v3595_v58, %v3507_v62  ;;  %3459 = vmatmul.bf16.gmra.mxu1 %v15046_v39  ;;  %v10259_v20 = vor.u32 %v11725_v4, %v10258_v18  ;;  %v11789_v62 = vld [vmem:[#allocation5 + $0x62c] sm:$0xf0] }
 0x43d   : > { %v10515_v9 = vor.u32 %v11789_v62, %v10514_v59  ;;  %v15050_v62 = vld [vmem:[#allocation36_spill] sm:$0xff] }
 0x43e   : > { %v3421_v28 = vadd.f32 %v3420_v40, %v3332_v53  ;;  %3370 = vmatmul.bf16.gmra.mxu0 %v15045_v5  ;;  %v5141_v29 = vmul.f32 0.2, %v3596_v10  ;;  %3548 = vmatmul.bf16.gmra.mxu2 %v15047_v52  ;;  %v9747_v5 = vor.u32 %v11597_v61, %v9746_v38 }
 0x43f   : > { %3843 = vmatpush.bf16.msra.mxu2 %v10259_v20  ;;  %3932 = vmatpush.bf16.msra.mxu3 %v10515_v9  ;;  %v15052_v9 = vld [vmem:[#allocation38_spill] sm:$0xff] }
 0x440   : > { %3637 = vmatmul.bf16.gmra.mxu3 %v15048_v16  ;;  %v5397_v11 = vmax.f32 %v3596_v10, %v5141_v29  ;;  %3665 = vmatpush.bf16.msra.mxu0 %v9747_v5  ;;  %v10002_v10 = vld [vmem:[#allocation5 + $0x210] sm:$0xf]  ;;  %v15051_v5 = vld [vmem:[#allocation37_spill] sm:$0xff] }
 0x441   : > { %v3509_v8 = vpop.f32.mrf.mxu2  ;;  %v3422_v16 = vpop.f32.mrf.mxu1  ;;  %v11661_v29 = vld [vmem:[#allocation5 + $0x22c] sm:$0xf0] }
 0x442   : > { %v3510_v53 = vadd.f32 %v3509_v8, %v3421_v28  ;;  %v13216_v39 = vpack.c.bf16 %v5397_v11, %v5389_v37  ;;  %v10003_v4 = vor.u32 %v11661_v29, %v10002_v10 }
 0x443   : > { %v3598_v40 = vpop.f32.mrf.mxu3  ;;  %v3333_v58 = vpop.f32.mrf.mxu0 }
 0x444   : > { %15049 = vst [vmem:[#allocation91_spill] sm:$0xff] %v13216_v39  ;;  %v3334_v52 = vadd.f32 %v3333_v58, %v13177_v41  ;;  %v3599_v36 = vadd.f32 %v3598_v40, %v3510_v53  ;;  %3754 = vmatpush.bf16.msra.mxu1 %v10003_v4 }
 0x446   : > { %v3423_v7 = vadd.f32 %v3422_v16, %v3334_v52  ;;  %v5149_v37 = vmul.f32 0.2, %v3599_v36  ;;  %v15053_v52 = vld [vmem:[#allocation39_spill] sm:$0xff] }
 0x448   : > { %v5405_v16 = vmax.f32 %v3599_v36, %v5149_v37 }
 0x449   : > { %v3511_v18 = vpop.f32.mrf.mxu2  ;;  %v3425_v59 = vpop.f32.mrf.mxu1 }
 0x44a   : > { %v3512_v43 = vadd.f32 %v3511_v18, %v3423_v7 }
 0x44b   : > { %v3600_v28 = vpop.f32.mrf.mxu3  ;;  %v3336_v8 = vpop.f32.mrf.mxu0 }
 0x44c   : > { %v3337_v38 = vadd.f32 %v3336_v8, %v13177_v41  ;;  %v3601_v11 = vadd.f32 %v3600_v28, %v3512_v43  ;;  %3464 = vmatmul.bf16.gmra.mxu1 %v15051_v5 }
 0x44e   : > { %v3426_v61 = vadd.f32 %v3425_v59, %v3337_v38  ;;  %3375 = vmatmul.bf16.gmra.mxu0 %v15050_v62  ;;  %v5157_v20 = vmul.f32 0.2, %v3601_v11  ;;  %3553 = vmatmul.bf16.gmra.mxu2 %v15052_v9 }
 0x450   : > { %3642 = vmatmul.bf16.gmra.mxu3 %v15053_v52  ;;  %v5413_v53 = vmax.f32 %v3601_v11, %v5157_v20 }
 0x451   : > { %v3514_v40 = vpop.f32.mrf.mxu2  ;;  %v3427_v18 = vpop.f32.mrf.mxu1 }
 0x452   : > { %v3515_v58 = vadd.f32 %v3514_v40, %v3426_v61  ;;  %v13224_v29 = vpack.c.bf16 %v5413_v53, %v5405_v16  ;;  %v15055_v61 = vld [vmem:[#allocation41_spill] sm:$0xff]  ;;  %v15056_v16 = vld [vmem:[#allocation42_spill] sm:$0xff]  ;;  %v15057_v53 = vld [vmem:[#allocation43_spill] sm:$0xff] }
 0x453   : > { %v3603_v7 = vpop.f32.mrf.mxu3  ;;  %v3338_v10 = vpop.f32.mrf.mxu0  ;;  %v15058_v40 = vld [vmem:[#allocation44_spill] sm:$0xff] }
 0x454   : > { %15054 = vst [vmem:[#allocation92_spill] sm:$0xff] %v13224_v29  ;;  %v3339_v43 = vadd.f32 %v3338_v10, %v13177_v41  ;;  %v3604_v4 = vadd.f32 %v3603_v7, %v3515_v58  ;;  %v11777_v10 = vld [vmem:[#allocation5 + $0x5d4] sm:$0xf] }
 0x455   : > { %v11841_v29 = vld [vmem:[#allocation5 + $0x7d4] sm:$0xf] }
 0x456   : > { %v3428_v28 = vadd.f32 %v3427_v18, %v3339_v43  ;;  %v5165_v36 = vmul.f32 0.2, %v3604_v4  ;;  %v10484_v43 = vld [vmem:[#allocation5 + $0x5f0] sm:$0xf0] }
 0x457   : > { %v11649_v18 = vld [vmem:[#allocation5 + $0x1d4] sm:$0xf] }
 0x458   : > { %v5421_v58 = vmax.f32 %v3604_v4, %v5165_v36 }
 0x459   : > { %v3516_v8 = vpop.f32.mrf.mxu2  ;;  %v3430_v52 = vpop.f32.mrf.mxu1 }
 0x45a   : > { %v3517_v38 = vadd.f32 %v3516_v8, %v3428_v28  ;;  %v9972_v8 = vld [vmem:[#allocation5 + $0x1f0] sm:$0xf0] }
 0x45b   : > { %v3605_v59 = vpop.f32.mrf.mxu3  ;;  %v3341_v39 = vpop.f32.mrf.mxu0 }
 0x45c   : > { %v3342_v9 = vadd.f32 %v3341_v39, %v13177_v41  ;;  %v3606_v37 = vadd.f32 %v3605_v59, %v3517_v38  ;;  %3469 = vmatmul.bf16.gmra.mxu1 %v15056_v16  ;;  %v10487_v39 = vor.u32 %v11777_v10, %v10484_v43  ;;  %v10740_v38 = vld [vmem:[#allocation5 + $0x7f0] sm:$0xf0] }
 0x45d   : > { %v10743_v5 = vor.u32 %v11841_v29, %v10740_v38 }
 0x45e   : > { %v3431_v11 = vadd.f32 %v3430_v52, %v3342_v9  ;;  %3380 = vmatmul.bf16.gmra.mxu0 %v15055_v61  ;;  %v5173_v20 = vmul.f32 0.2, %v3606_v37  ;;  %3558 = vmatmul.bf16.gmra.mxu2 %v15057_v53  ;;  %v9975_v61 = vor.u32 %v11649_v18, %v9972_v8 }
 0x45f   : > { %4192 = vmatpush.bf16.msrb.mxu2 %v10487_v39  ;;  %4281 = vmatpush.bf16.msrb.mxu3 %v10743_v5 }
 0x460   : > { %3647 = vmatmul.bf16.gmra.mxu3 %v15058_v40  ;;  %v5429_v7 = vmax.f32 %v3606_v37, %v5173_v20  ;;  %4014 = vmatpush.bf16.msrb.mxu0 %v9975_v61  ;;  %v11713_v37 = vld [vmem:[#allocation5 + $0x3d4] sm:$0xf] }
 0x461   : > { %v3519_v28 = vpop.f32.mrf.mxu2  ;;  %v3432_v40 = vpop.f32.mrf.mxu1  ;;  %v10228_v20 = vld [vmem:[#allocation5 + $0x3f0] sm:$0xf0] }
 0x462   : > { %v3520_v9 = vadd.f32 %v3519_v28, %v3431_v11  ;;  %v13232_v16 = vpack.c.bf16 %v5429_v7, %v5421_v58  ;;  %v10231_v43 = vor.u32 %v11713_v37, %v10228_v20 }
 0x463   : > { %v3608_v52 = vpop.f32.mrf.mxu3  ;;  %v3343_v59 = vpop.f32.mrf.mxu0 }
 0x464   : > { %15059 = vst [vmem:[#allocation93_spill] sm:$0xff] %v13232_v16  ;;  %v3344_v53 = vadd.f32 %v3343_v59, %v13177_v41  ;;  %v3609_v4 = vadd.f32 %v3608_v52, %v3520_v9  ;;  %4103 = vmatpush.bf16.msrb.mxu1 %v10231_v43 }
 0x466   : > { %v3433_v36 = vadd.f32 %v3432_v40, %v3344_v53  ;;  %v5181_v58 = vmul.f32 0.2, %v3609_v4 }
 0x468   : > { %v5437_v5 = vmax.f32 %v3609_v4, %v5181_v58 }
 0x469   : > { %v3521_v10 = vpop.f32.mrf.mxu2  ;;  %v3435_v29 = vpop.f32.mrf.mxu1 }
 0x46a   : > { %v3522_v62 = vadd.f32 %v3521_v10, %v3433_v36 }
 0x46b   : > { %v3610_v11 = vpop.f32.mrf.mxu3  ;;  %v3346_v28 = vpop.f32.mrf.mxu0 }
 0x46c   : > { %v3347_v18 = vadd.f32 %v3346_v28, %v13177_v41  ;;  %v3611_v7 = vadd.f32 %v3610_v11, %v3522_v62  ;;  %3474 = vmatmul.bf16.gmra.mxu1 %v12839_v6 }
 0x46e   : > { %v3436_v8 = vadd.f32 %v3435_v29, %v3347_v18  ;;  %3385 = vmatmul.bf16.gmra.mxu0 %v12837_v17  ;;  %v5189_v39 = vmul.f32 0.2, %v3611_v7  ;;  %3563 = vmatmul.bf16.gmra.mxu2 %v12841_v30 }
 0x470   : > { %3652 = vmatmul.bf16.gmra.mxu3 %v12844_v31  ;;  %v5445_v61 = vmax.f32 %v3611_v7, %v5189_v39  ;;  %v15062_v39 = vld [vmem:[#allocation16_spill] sm:$0xff] }
 0x471   : > { %v3524_v53 = vpop.f32.mrf.mxu2  ;;  %v3437_v59 = vpop.f32.mrf.mxu1 }
 0x472   : > { %v3525_v40 = vadd.f32 %v3524_v53, %v3436_v8  ;;  %v13240_v52 = vpack.c.bf16 %v5445_v61, %v5437_v5  ;;  %v15061_v8 = vld [vmem:[#allocation15_spill] sm:$0xff]  ;;  %v11769_v53 = vld [vmem:[#allocation5 + $0x594] sm:$0xf] }
 0x473   : > { %v3613_v38 = vpop.f32.mrf.mxu3  ;;  %v3348_v9 = vpop.f32.mrf.mxu0 }
 0x474   : > { %15060 = vst [vmem:[#allocation94_spill] sm:$0xff] %v13240_v52  ;;  %v3349_v62 = vadd.f32 %v3348_v9, %v13177_v41  ;;  %v3614_v36 = vadd.f32 %v3613_v38, %v3525_v40  ;;  %v10452_v40 = vld [vmem:[#allocation5 + $0x5b0] sm:$0xf0] }
 0x475   : > { %v11641_v38 = vld [vmem:[#allocation5 + $0x194] sm:$0xf] }
 0x476   : > { %v3438_v37 = vadd.f32 %v3437_v59, %v3349_v62  ;;  %v5197_v4 = vmul.f32 0.2, %v3614_v36  ;;  %v10455_v62 = vor.u32 %v11769_v53, %v10452_v40  ;;  %v9940_v59 = vld [vmem:[#allocation5 + $0x1b0] sm:$0xf0] }
 0x478   : > { %v5453_v5 = vmax.f32 %v3614_v36, %v5197_v4  ;;  %4193 = vmatpush.bf16.msrb.mxu2 %v10455_v62 }
 0x479   : > { %v3526_v20 = vpop.f32.mrf.mxu2  ;;  %v3440_v18 = vpop.f32.mrf.mxu1 }
 0x47a   : > { %v3527_v10 = vadd.f32 %v3526_v20, %v3438_v37  ;;  %v11833_v37 = vld [vmem:[#allocation5 + $0x794] sm:$0xf] }
 0x47b   : > { %v3615_v43 = vpop.f32.mrf.mxu3  ;;  %v3351_v11 = vpop.f32.mrf.mxu0  ;;  %v10708_v20 = vld [vmem:[#allocation5 + $0x7b0] sm:$0xf0] }
 0x47c   : > { %v3352_v28 = vadd.f32 %v3351_v11, %v13177_v41  ;;  %v3616_v29 = vadd.f32 %v3615_v43, %v3527_v10  ;;  %3755 = vmatmul.bf16.vlgmr.msra.gmra.mxu1 %v12511_v51 }
 0x47e   : > { %v3441_v58 = vadd.f32 %v3440_v18, %v3352_v28  ;;  %3666 = vmatmul.bf16.vlgmr.msra.gmra.mxu0 %v12509_v47  ;;  %v5205_v7 = vmul.f32 0.2, %v3616_v29  ;;  %3844 = vmatmul.bf16.vlgmr.msra.gmra.mxu2 %v15061_v8  ;;  %v9943_v28 = vor.u32 %v11641_v38, %v9940_v59  ;;  %v10711_v18 = vor.u32 %v11833_v37, %v10708_v20 }
 0x480   : > { %3933 = vmatmul.bf16.vlgmr.msra.gmra.mxu3 %v15062_v39  ;;  %v5461_v61 = vmax.f32 %v3616_v29, %v5205_v7  ;;  %4015 = vmatpush.bf16.msrb.mxu0 %v9943_v28  ;;  %v11705_v29 = vld [vmem:[#allocation5 + $0x394] sm:$0xf] }
 0x481   : > { %v3529_v9 = vpop.f32.mrf.mxu2  ;;  %v3442_v39 = vpop.f32.mrf.mxu1  ;;  %4282 = vmatpush.bf16.msrb.mxu3 %v10711_v18  ;;  %v10196_v7 = vld [vmem:[#allocation5 + $0x3b0] sm:$0xf0] }
 0x482   : > { %v3530_v10 = vadd.f32 %v3529_v9, %v3441_v58  ;;  %v13248_v52 = vpack.c.bf16 %v5461_v61, %v5453_v5  ;;  %v10199_v40 = vor.u32 %v11705_v29, %v10196_v7 }
 0x483   : > { %v3618_v43 = vpop.f32.mrf.mxu3  ;;  %v3353_v11 = vpop.f32.mrf.mxu0 }
 0x484   : > { %15063 = vst [vmem:[#allocation95_spill] sm:$0xff] %v13248_v52  ;;  %v3354_v16 = vadd.f32 %v3353_v11, %v13177_v41  ;;  %v3619_v36 = vadd.f32 %v3618_v43, %v3530_v10  ;;  %4104 = vmatpush.bf16.msrb.mxu1 %v10199_v40 }
 0x486   : > { %v3443_v4 = vadd.f32 %v3442_v39, %v3354_v16  ;;  %v5213_v5 = vmul.f32 0.2, %v3619_v36 }
 0x488   : > { %v5469_v16 = vmax.f32 %v3619_v36, %v5213_v5 }
 0x489   : > { %v3531_v53 = vpop.f32.mrf.mxu2  ;;  %v3445_v59 = vpop.f32.mrf.mxu1 }
 0x48a   : > { %v3532_v8 = vadd.f32 %v3531_v53, %v3443_v4 }
 0x48b   : > { %v3620_v58 = vpop.f32.mrf.mxu3  ;;  %v3356_v9 = vpop.f32.mrf.mxu0 }
 0x48c   : > { %v3357_v38 = vadd.f32 %v3356_v9, %v13177_v41  ;;  %v3621_v61 = vadd.f32 %v3620_v58, %v3532_v8  ;;  %3760 = vmatmul.bf16.gmra.mxu1 %v12531_v13 }
 0x48e   : > { %v3446_v37 = vadd.f32 %v3445_v59, %v3357_v38  ;;  %3671 = vmatmul.bf16.gmra.mxu0 %v12529_v12  ;;  %v5221_v62 = vmul.f32 0.2, %v3621_v61  ;;  %3849 = vmatmul.bf16.gmra.mxu2 %v12533_v14 }
 0x490   : > { %3938 = vmatmul.bf16.gmra.mxu3 %v12535_v15  ;;  %v5477_v39 = vmax.f32 %v3621_v61, %v5221_v62 }
 0x491   : > { %v3534_v20 = vpop.f32.mrf.mxu2  ;;  %v3447_v18 = vpop.f32.mrf.mxu1 }
 0x492   : > { %v3535_v10 = vadd.f32 %v3534_v20, %v3446_v37  ;;  %v13256_v28 = vpack.c.bf16 %v5477_v39, %v5469_v16  ;;  %v11761_v16 = vld [vmem:[#allocation5 + $0x554] sm:$0xf] }
 0x493   : > { %v3623_v43 = vpop.f32.mrf.mxu3  ;;  %v3358_v11 = vpop.f32.mrf.mxu0  ;;  %v10420_v39 = vld [vmem:[#allocation5 + $0x570] sm:$0xf0] }
 0x494   : > { %15064 = vst [vmem:[#allocation96_spill] sm:$0xff] %v13256_v28  ;;  %v3359_v8 = vadd.f32 %v3358_v11, %v13177_v41  ;;  %v3624_v4 = vadd.f32 %v3623_v43, %v3535_v10  ;;  %v11633_v20 = vld [vmem:[#allocation5 + $0x154] sm:$0xf]  ;;  %v10423_v43 = vor.u32 %v11761_v16, %v10420_v39 }
 0x495   : > { %v9908_v11 = vld [vmem:[#allocation5 + $0x170] sm:$0xf0] }
 0x496   : > { %v3448_v29 = vadd.f32 %v3447_v18, %v3359_v8  ;;  %v5229_v36 = vmul.f32 0.2, %v3624_v4  ;;  %v11825_v8 = vld [vmem:[#allocation5 + $0x754] sm:$0xf]  ;;  %4194 = vmatpush.bf16.msrb.mxu2 %v10423_v43 }
 0x497   : > { %v10676_v18 = vld [vmem:[#allocation5 + $0x770] sm:$0xf0] }
 0x498   : > { %v5485_v37 = vmax.f32 %v3624_v4, %v5229_v36 }
 0x499   : > { %v3536_v7 = vpop.f32.mrf.mxu2  ;;  %v3450_v38 = vpop.f32.mrf.mxu1 }
 0x49a   : > { %v3537_v53 = vadd.f32 %v3536_v7, %v3448_v29 }
 0x49b   : > { %v3625_v40 = vpop.f32.mrf.mxu3  ;;  %v3361_v58 = vpop.f32.mrf.mxu0 }
 0x49c   : > { %v3362_v9 = vadd.f32 %v3361_v58, %v13177_v41  ;;  %v3626_v59 = vadd.f32 %v3625_v40, %v3537_v53  ;;  %3765 = vmatmul.bf16.gmra.mxu1 %v12551_v25  ;;  %v9911_v40 = vor.u32 %v11633_v20, %v9908_v11  ;;  %v10679_v58 = vor.u32 %v11825_v8, %v10676_v18 }
 0x49e   : > { %v3451_v5 = vadd.f32 %v3450_v38, %v3362_v9  ;;  %3676 = vmatmul.bf16.gmra.mxu0 %v12549_v24  ;;  %v5237_v61 = vmul.f32 0.2, %v3626_v59  ;;  %3854 = vmatmul.bf16.gmra.mxu2 %v12553_v26 }
 0x49f   : > { %4016 = vmatpush.bf16.msrb.mxu0 %v9911_v40  ;;  %4283 = vmatpush.bf16.msrb.mxu3 %v10679_v58 }
 0x4a0   : > { %3943 = vmatmul.bf16.gmra.mxu3 %v12555_v27  ;;  %v5493_v62 = vmax.f32 %v3626_v59, %v5237_v61  ;;  %v11697_v59 = vld [vmem:[#allocation5 + $0x354] sm:$0xf] }
 0x4a1   : > { %v3539_v10 = vpop.f32.mrf.mxu2  ;;  %v3452_v28 = vpop.f32.mrf.mxu1  ;;  %v10164_v61 = vld [vmem:[#allocation5 + $0x370] sm:$0xf0] }
 0x4a2   : > { %v3540_v29 = vadd.f32 %v3539_v10, %v3451_v5  ;;  %v13264_v9 = vpack.c.bf16 %v5493_v62, %v5485_v37  ;;  %v10167_v39 = vor.u32 %v11697_v59, %v10164_v61 }
 0x4a3   : > { %v3628_v7 = vpop.f32.mrf.mxu3  ;;  %v3363_v53 = vpop.f32.mrf.mxu0 }
 0x4a4   : > { %15065 = vst [vmem:[#allocation97_spill] sm:$0xff] %v13264_v9  ;;  %v3364_v38 = vadd.f32 %v3363_v53, %v13177_v41  ;;  %v3629_v4 = vadd.f32 %v3628_v7, %v3540_v29  ;;  %4105 = vmatpush.bf16.msrb.mxu1 %v10167_v39 }
 0x4a6   : > { %v3453_v36 = vadd.f32 %v3452_v28, %v3364_v38  ;;  %v5245_v37 = vmul.f32 0.2, %v3629_v4 }
 0x4a8   : > { %v5501_v28 = vmax.f32 %v3629_v4, %v5245_v37 }
 0x4a9   : > { %v3541_v16 = vpop.f32.mrf.mxu2  ;;  %v3455_v11 = vpop.f32.mrf.mxu1 }
 0x4aa   : > { %v3542_v52 = vadd.f32 %v3541_v16, %v3453_v36 }
 0x4ab   : > { %v3630_v5 = vpop.f32.mrf.mxu3  ;;  %v3366_v10 = vpop.f32.mrf.mxu0 }
 0x4ac   : > { %v3367_v20 = vadd.f32 %v3366_v10, %v13177_v41  ;;  %v3631_v62 = vadd.f32 %v3630_v5, %v3542_v52  ;;  %3770 = vmatmul.bf16.gmra.mxu1 %v12571_v50 }
 0x4ae   : > { %v3456_v8 = vadd.f32 %v3455_v11, %v3367_v20  ;;  %3681 = vmatmul.bf16.gmra.mxu0 %v12569_v49  ;;  %v5253_v43 = vmul.f32 0.2, %v3631_v62  ;;  %3859 = vmatmul.bf16.gmra.mxu2 %v12573_v54 }
 0x4b0   : > { %3948 = vmatmul.bf16.gmra.mxu3 %v12575_v55  ;;  %v5509_v18 = vmax.f32 %v3631_v62, %v5253_v43 }
 0x4b1   : > { %v3544_v29 = vpop.f32.mrf.mxu2  ;;  %v3457_v38 = vpop.f32.mrf.mxu1 }
 0x4b2   : > { %v3545_v7 = vadd.f32 %v3544_v29, %v3456_v8  ;;  %v13272_v58 = vpack.c.bf16 %v5509_v18, %v5501_v28  ;;  %v11753_v28 = vld [vmem:[#allocation5 + $0x514] sm:$0xf] }
 0x4b3   : > { %v3633_v53 = vpop.f32.mrf.mxu3  ;;  %v3368_v40 = vpop.f32.mrf.mxu0  ;;  %v10388_v18 = vld [vmem:[#allocation5 + $0x530] sm:$0xf0] }
 0x4b4   : > { %15066 = vst [vmem:[#allocation98_spill] sm:$0xff] %v13272_v58  ;;  %v3369_v52 = vadd.f32 %v3368_v40, %v13177_v41  ;;  %v3634_v36 = vadd.f32 %v3633_v53, %v3545_v7  ;;  %v11625_v29 = vld [vmem:[#allocation5 + $0x114] sm:$0xf]  ;;  %v10391_v53 = vor.u32 %v11753_v28, %v10388_v18 }
 0x4b5   : > { %v9876_v40 = vld [vmem:[#allocation5 + $0x130] sm:$0xf0] }
 0x4b6   : > { %v3458_v59 = vadd.f32 %v3457_v38, %v3369_v52  ;;  %v5261_v4 = vmul.f32 0.2, %v3634_v36  ;;  %v11817_v52 = vld [vmem:[#allocation5 + $0x714] sm:$0xf]  ;;  %4195 = vmatpush.bf16.msrb.mxu2 %v10391_v53 }
 0x4b7   : > { %v10644_v38 = vld [vmem:[#allocation5 + $0x730] sm:$0xf0] }
 0x4b8   : > { %v5517_v8 = vmax.f32 %v3634_v36, %v5261_v4 }
 0x4b9   : > { %v3546_v61 = vpop.f32.mrf.mxu2  ;;  %v3460_v20 = vpop.f32.mrf.mxu1 }
 0x4ba   : > { %v3547_v16 = vadd.f32 %v3546_v61, %v3458_v59 }
 0x4bb   : > { %v3635_v39 = vpop.f32.mrf.mxu3  ;;  %v3371_v5 = vpop.f32.mrf.mxu0 }
 0x4bc   : > { %v3372_v10 = vadd.f32 %v3371_v5, %v13177_v41  ;;  %v3636_v11 = vadd.f32 %v3635_v39, %v3547_v16  ;;  %3775 = vmatmul.bf16.gmra.mxu1 %v12591_v1  ;;  %v9879_v39 = vor.u32 %v11625_v29, %v9876_v40  ;;  %v10647_v5 = vor.u32 %v11817_v52, %v10644_v38 }
 0x4be   : > { %v3461_v37 = vadd.f32 %v3460_v20, %v3372_v10  ;;  %3686 = vmatmul.bf16.gmra.mxu0 %v12589_v0  ;;  %v5269_v62 = vmul.f32 0.2, %v3636_v11  ;;  %3864 = vmatmul.bf16.gmra.mxu2 %v12593_v2 }
 0x4bf   : > { %4017 = vmatpush.bf16.msrb.mxu0 %v9879_v39  ;;  %4284 = vmatpush.bf16.msrb.mxu3 %v10647_v5 }
 0x4c0   : > { %3953 = vmatmul.bf16.gmra.mxu3 %v12595_v3  ;;  %v5525_v43 = vmax.f32 %v3636_v11, %v5269_v62  ;;  %v11689_v11 = vld [vmem:[#allocation5 + $0x314] sm:$0xf] }
 0x4c1   : > { %v3549_v7 = vpop.f32.mrf.mxu2  ;;  %v3462_v58 = vpop.f32.mrf.mxu1  ;;  %v10132_v62 = vld [vmem:[#allocation5 + $0x330] sm:$0xf0] }
 0x4c2   : > { %v3550_v59 = vadd.f32 %v3549_v7, %v3461_v37  ;;  %v13280_v10 = vpack.c.bf16 %v5525_v43, %v5517_v8  ;;  %v10135_v18 = vor.u32 %v11689_v11, %v10132_v62 }
 0x4c3   : > { %v3638_v61 = vpop.f32.mrf.mxu3  ;;  %v3373_v16 = vpop.f32.mrf.mxu0 }
 0x4c4   : > { %15067 = vst [vmem:[#allocation99_spill] sm:$0xff] %v13280_v10  ;;  %v3374_v20 = vadd.f32 %v3373_v16, %v13177_v41  ;;  %v3639_v36 = vadd.f32 %v3638_v61, %v3550_v59  ;;  %4106 = vmatpush.bf16.msrb.mxu1 %v10135_v18 }
 0x4c6   : > { %v3463_v4 = vadd.f32 %v3462_v58, %v3374_v20  ;;  %v5277_v8 = vmul.f32 0.2, %v3639_v36 }
 0x4c8   : > { %v5533_v58 = vmax.f32 %v3639_v36, %v5277_v8 }
 0x4c9   : > { %v3551_v28 = vpop.f32.mrf.mxu2  ;;  %v3465_v40 = vpop.f32.mrf.mxu1 }
 0x4ca   : > { %v3552_v9 = vadd.f32 %v3551_v28, %v3463_v4 }
 0x4cb   : > { %v3640_v37 = vpop.f32.mrf.mxu3  ;;  %v3376_v7 = vpop.f32.mrf.mxu0 }
 0x4cc   : > { %v3377_v29 = vadd.f32 %v3376_v7, %v13177_v41  ;;  %v3641_v43 = vadd.f32 %v3640_v37, %v3552_v9  ;;  %3780 = vmatmul.bf16.gmra.mxu1 %v12611_v33 }
 0x4ce   : > { %v3466_v52 = vadd.f32 %v3465_v40, %v3377_v29  ;;  %3691 = vmatmul.bf16.gmra.mxu0 %v12609_v32  ;;  %v5285_v53 = vmul.f32 0.2, %v3641_v43  ;;  %3869 = vmatmul.bf16.gmra.mxu2 %v12613_v34 }
 0x4d0   : > { %3958 = vmatmul.bf16.gmra.mxu3 %v12615_v35  ;;  %v5541_v38 = vmax.f32 %v3641_v43, %v5285_v53 }
 0x4d1   : > { %v3554_v59 = vpop.f32.mrf.mxu2  ;;  %v3467_v20 = vpop.f32.mrf.mxu1 }
 0x4d2   : > { %v3555_v61 = vadd.f32 %v3554_v59, %v3466_v52  ;;  %v13288_v5 = vpack.c.bf16 %v5541_v38, %v5533_v58  ;;  %v11745_v58 = vld [vmem:[#allocation5 + $0x4d4] sm:$0xf] }
 0x4d3   : > { %v3643_v16 = vpop.f32.mrf.mxu3  ;;  %v3378_v39 = vpop.f32.mrf.mxu0  ;;  %v10356_v38 = vld [vmem:[#allocation5 + $0x4f0] sm:$0xf0] }
 0x4d4   : > { %15068 = vst [vmem:[#allocation100_spill] sm:$0xff] %v13288_v5  ;;  %v3379_v9 = vadd.f32 %v3378_v39, %v13177_v41  ;;  %v3644_v4 = vadd.f32 %v3643_v16, %v3555_v61  ;;  %v11617_v59 = vld [vmem:[#allocation5 + $0xd4] sm:$0xf]  ;;  %v10359_v16 = vor.u32 %v11745_v58, %v10356_v38 }
 0x4d5   : > { %v9844_v39 = vld [vmem:[#allocation5 + $0xf0] sm:$0xf0] }
 0x4d6   : > { %v3468_v11 = vadd.f32 %v3467_v20, %v3379_v9  ;;  %v5293_v36 = vmul.f32 0.2, %v3644_v4  ;;  %v11809_v9 = vld [vmem:[#allocation5 + $0x6d4] sm:$0xf]  ;;  %4196 = vmatpush.bf16.msrb.mxu2 %v10359_v16 }
 0x4d7   : > { %v10612_v20 = vld [vmem:[#allocation5 + $0x6f0] sm:$0xf0] }
 0x4d8   : > { %v5549_v52 = vmax.f32 %v3644_v4, %v5293_v36 }
 0x4d9   : > { %v3556_v62 = vpop.f32.mrf.mxu2  ;;  %v3470_v29 = vpop.f32.mrf.mxu1 }
 0x4da   : > { %v3557_v28 = vadd.f32 %v3556_v62, %v3468_v11 }
 0x4db   : > { %v3645_v18 = vpop.f32.mrf.mxu3  ;;  %v3381_v37 = vpop.f32.mrf.mxu0 }
 0x4dc   : > { %v3382_v7 = vadd.f32 %v3381_v37, %v13177_v41  ;;  %v3646_v40 = vadd.f32 %v3645_v18, %v3557_v28  ;;  %3785 = vmatmul.bf16.gmra.mxu1 %v12631_v45  ;;  %v9847_v18 = vor.u32 %v11617_v59, %v9844_v39  ;;  %v10615_v37 = vor.u32 %v11809_v9, %v10612_v20 }
 0x4de   : > { %v3471_v8 = vadd.f32 %v3470_v29, %v3382_v7  ;;  %3696 = vmatmul.bf16.gmra.mxu0 %v12629_v44  ;;  %v5301_v43 = vmul.f32 0.2, %v3646_v40  ;;  %3874 = vmatmul.bf16.gmra.mxu2 %v12633_v46 }
 0x4df   : > { %4018 = vmatpush.bf16.msrb.mxu0 %v9847_v18  ;;  %4285 = vmatpush.bf16.msrb.mxu3 %v10615_v37 }
 0x4e0   : > { %3963 = vmatmul.bf16.gmra.mxu3 %v12635_v48  ;;  %v5557_v53 = vmax.f32 %v3646_v40, %v5301_v43  ;;  %v11681_v40 = vld [vmem:[#allocation5 + $0x2d4] sm:$0xf] }
 0x4e1   : > { %v3559_v61 = vpop.f32.mrf.mxu2  ;;  %v3472_v5 = vpop.f32.mrf.mxu1  ;;  %v10100_v43 = vld [vmem:[#allocation5 + $0x2f0] sm:$0xf0] }
 0x4e2   : > { %v3560_v11 = vadd.f32 %v3559_v61, %v3471_v8  ;;  %v13296_v7 = vpack.c.bf16 %v5557_v53, %v5549_v52  ;;  %v10103_v38 = vor.u32 %v11681_v40, %v10100_v43  ;;  %v12129_v43 = vld [vmem:[#allocation7] sm:$0xff] }
 0x4e3   : > { %v3648_v62 = vpop.f32.mrf.mxu3  ;;  %v3383_v28 = vpop.f32.mrf.mxu0 }
 0x4e4   : > { %15069 = vst [vmem:[#allocation101_spill] sm:$0xff] %v13296_v7  ;;  %v3384_v29 = vadd.f32 %v3383_v28, %v13177_v41  ;;  %v3649_v4 = vadd.f32 %v3648_v62, %v3560_v11  ;;  %4107 = vmatpush.bf16.msrb.mxu1 %v10103_v38 }
 0x4e6   : > { %v3473_v36 = vadd.f32 %v3472_v5, %v3384_v29  ;;  %v5309_v52 = vmul.f32 0.2, %v3649_v4 }
 0x4e8   : > { %v5565_v5 = vmax.f32 %v3649_v4, %v5309_v52 }
 0x4e9   : > { %v3561_v58 = vpop.f32.mrf.mxu2  ;;  %v3475_v39 = vpop.f32.mrf.mxu1 }
 0x4ea   : > { %v3562_v10 = vadd.f32 %v3561_v58, %v3473_v36  ;;  %v13307_v58 = vperm.slane %v12129_v43, 4 }
 0x4eb   : > { %v3650_v8 = vpop.f32.mrf.mxu3  ;;  %v3386_v61 = vpop.f32.mrf.mxu0 }
 0x4ec   : > { %v3387_v59 = vadd.f32 %v3386_v61, %v13177_v41  ;;  %v3651_v53 = vadd.f32 %v3650_v8, %v3562_v10  ;;  %3790 = vmatmul.bf16.gmra.mxu1 %v12651_v21 }
 0x4ee   : > { %v3476_v9 = vadd.f32 %v3475_v39, %v3387_v59  ;;  %3701 = vmatmul.bf16.gmra.mxu0 %v12649_v19  ;;  %v5317_v16 = vmul.f32 0.2, %v3651_v53  ;;  %3879 = vmatmul.bf16.gmra.mxu2 %v12653_v22 }
 0x4f0   : > { %3968 = vmatmul.bf16.gmra.mxu3 %v12655_v23  ;;  %v5573_v20 = vmax.f32 %v3651_v53, %v5317_v16 }
 0x4f1   : > { %v3564_v11 = vpop.f32.mrf.mxu2  ;;  %v3477_v29 = vpop.f32.mrf.mxu1 }
 0x4f2   : > { %v3565_v62 = vadd.f32 %v3564_v11, %v3476_v9  ;;  %v13304_v37 = vpack.c.bf16 %v5573_v20, %v5565_v5  ;;  %v11737_v20 = vld [vmem:[#allocation5 + $0x494] sm:$0xf] }
 0x4f3   : > { %v3653_v28 = vpop.f32.mrf.mxu3  ;;  %v3388_v18 = vpop.f32.mrf.mxu0  ;;  %v10324_v11 = vld [vmem:[#allocation5 + $0x4b0] sm:$0xf0] }
 0x4f4   : > { %15070 = vst [vmem:[#allocation102_spill] sm:$0xff] %v13304_v37  ;;  %v3389_v10 = vadd.f32 %v3388_v18, %v13177_v41  ;;  %v3654_v36 = vadd.f32 %v3653_v28, %v3565_v62  ;;  %v11609_v62 = vld [vmem:[#allocation5 + $0x94] sm:$0xf]  ;;  %v10327_v18 = vor.u32 %v11737_v20, %v10324_v11 }
 0x4f6   : > { %v3478_v40 = vadd.f32 %v3477_v29, %v3389_v10  ;;  %v5325_v52 = vmul.f32 0.2, %v3654_v36  ;;  %v9812_v10 = vld [vmem:[#allocation5 + $0xb0] sm:$0xf0]  ;;  %4197 = vmatpush.bf16.msrb.mxu2 %v10327_v18 }
 0x4f7   : > { %v11801_v29 = vld [vmem:[#allocation5 + $0x694] sm:$0xf] }
 0x4f8   : > { %v5581_v41 = vmax.f32 %v3654_v36, %v5325_v52 }
 0x4f9   : > { %v3566_v38 = vpop.f32.mrf.mxu2  ;;  %v3756_v39 = vpop.f32.mrf.mxu1 }
 0x4fa   : > { %v3567_v8 = vadd.f32 %v3566_v38, %v3478_v40  ;;  %v10580_v40 = vld [vmem:[#allocation5 + $0x6b0] sm:$0xf0] }
 0x4fb   : > { %v3655_v61 = vpop.f32.mrf.mxu3  ;;  %v3667_v59 = vpop.f32.mrf.mxu0 }
 0x4fc   : > { %v3668_v4 = vadd.f32 %v3667_v59, %v13307_v58  ;;  %v3656_v53 = vadd.f32 %v3655_v61, %v3567_v8  ;;  %3795 = vmatmul.bf16.gmra.mxu1 %v12673_v56  ;;  %v9815_v61 = vor.u32 %v11609_v62, %v9812_v10  ;;  %v10583_v59 = vor.u32 %v11801_v29, %v10580_v40  ;;  %v15072_v40 = vld [vmem:[#allocation17_spill] sm:$0xff] }
 0x4fe   : > { %v3757_v9 = vadd.f32 %v3756_v39, %v3668_v4  ;;  %3706 = vmatmul.bf16.gmra.mxu0 %v12671_v42  ;;  %v5333_v16 = vmul.f32 0.2, %v3656_v53  ;;  %3884 = vmatmul.bf16.gmra.mxu2 %v12675_v57 }
 0x4ff   : > { %4019 = vmatpush.bf16.msrb.mxu0 %v9815_v61  ;;  %4286 = vmatpush.bf16.msrb.mxu3 %v10583_v59 }
 0x500   : > { %3973 = vmatmul.bf16.gmra.mxu3 %v12678_v60  ;;  %v5589_v5 = vmax.f32 %v3656_v53, %v5333_v16  ;;  %v11673_v53 = vld [vmem:[#allocation5 + $0x294] sm:$0xf] }
 0x501   : > { %v3845_v28 = vpop.f32.mrf.mxu2  ;;  %v3758_v37 = vpop.f32.mrf.mxu1  ;;  %v10068_v16 = vld [vmem:[#allocation5 + $0x2b0] sm:$0xf0] }
 0x502   : > { %v3846_v43 = vadd.f32 %v3845_v28, %v3757_v9  ;;  %v13314_v4 = vpack.c.bf16 %v5589_v5, %v5581_v41  ;;  %v10071_v11 = vor.u32 %v11673_v53, %v10068_v16 }
 0x503   : > { %v3934_v38 = vpop.f32.mrf.mxu3  ;;  %v3669_v8 = vpop.f32.mrf.mxu0 }
 0x504   : > { %15071 = vst [vmem:[#allocation103_spill] sm:$0xff] %v13314_v4  ;;  %v3670_v39 = vadd.f32 %v3669_v8, %v13307_v58  ;;  %v3935_v36 = vadd.f32 %v3934_v38, %v3846_v43  ;;  %4108 = vmatpush.bf16.msrb.mxu1 %v10071_v11  ;;  %v15074_v43 = vld [vmem:[#allocation19_spill] sm:$0xff] }
 0x506   : > { %v3759_v52 = vadd.f32 %v3758_v37, %v3670_v39  ;;  %v5086_v41 = vmul.f32 0.2, %v3935_v36  ;;  %v15073_v37 = vld [vmem:[#allocation18_spill] sm:$0xff] }
 0x508   : > { %v5342_v38 = vmax.f32 %v3935_v36, %v5086_v41 }
 0x509   : > { %v3847_v20 = vpop.f32.mrf.mxu2  ;;  %v3761_v10 = vpop.f32.mrf.mxu1 }
 0x50a   : > { %v3848_v7 = vadd.f32 %v3847_v20, %v3759_v52 }
 0x50b   : > { %v3936_v9 = vpop.f32.mrf.mxu3  ;;  %v3672_v28 = vpop.f32.mrf.mxu0 }
 0x50c   : > { %v3673_v62 = vadd.f32 %v3672_v28, %v13307_v58  ;;  %v3937_v5 = vadd.f32 %v3936_v9, %v3848_v7  ;;  %3800 = vmatmul.bf16.gmra.mxu1 %v15072_v40 }
 0x50e   : > { %v3762_v29 = vadd.f32 %v3761_v10, %v3673_v62  ;;  %3711 = vmatmul.bf16.gmra.mxu0 %v12693_v63  ;;  %v5094_v18 = vmul.f32 0.2, %v3937_v5  ;;  %3889 = vmatmul.bf16.gmra.mxu2 %v15073_v37 }
 0x510   : > { %3978 = vmatmul.bf16.gmra.mxu3 %v15074_v43  ;;  %v5350_v8 = vmax.f32 %v3937_v5, %v5094_v18  ;;  %v15076_v18 = vld [vmem:[#allocation21_spill] sm:$0xff] }
 0x511   : > { %v3850_v61 = vpop.f32.mrf.mxu2  ;;  %v3763_v16 = vpop.f32.mrf.mxu1 }
 0x512   : > { %v13322_v59 = vpack.c.bf16 %v5350_v8, %v5342_v38  ;;  %v3851_v39 = vadd.f32 %v3850_v61, %v3762_v29  ;;  %v15077_v38 = vld [vmem:[#allocation22_spill] sm:$0xff]  ;;  %v15078_v8 = vld [vmem:[#allocation23_spill] sm:$0xff]  ;;  %v15079_v61 = vld [vmem:[#allocation24_spill] sm:$0xff] }
 0x513   : > { %v3939_v52 = vpop.f32.mrf.mxu3  ;;  %v3674_v53 = vpop.f32.mrf.mxu0 }
 0x514   : > { %15075 = vst [vmem:[#allocation104_spill] sm:$0xff] %v13322_v59  ;;  %v3675_v7 = vadd.f32 %v3674_v53, %v13307_v58  ;;  %v3940_v20 = vadd.f32 %v3939_v52, %v3851_v39  ;;  %v11729_v53 = vld [vmem:[#allocation5 + $0x454] sm:$0xf] }
 0x515   : > { %v11793_v59 = vld [vmem:[#allocation5 + $0x654] sm:$0xf] }
 0x516   : > { %v3764_v11 = vadd.f32 %v3763_v16, %v3675_v7  ;;  %v5102_v36 = vmul.f32 0.2, %v3940_v20  ;;  %v10292_v7 = vld [vmem:[#allocation5 + $0x470] sm:$0xf0] }
 0x517   : > { %v11601_v16 = vld [vmem:[#allocation5 + $0x54] sm:$0xf] }
 0x518   : > { %v5358_v39 = vmax.f32 %v3940_v20, %v5102_v36 }
 0x519   : > { %v3852_v9 = vpop.f32.mrf.mxu2  ;;  %v3766_v43 = vpop.f32.mrf.mxu1 }
 0x51a   : > { %v3853_v28 = vadd.f32 %v3852_v9, %v3764_v11  ;;  %v10295_v9 = vor.u32 %v11729_v53, %v10292_v7 }
 0x51b   : > { %v3941_v62 = vpop.f32.mrf.mxu3  ;;  %v3677_v10 = vpop.f32.mrf.mxu0 }
 0x51c   : > { %v3678_v4 = vadd.f32 %v3677_v10, %v13307_v58  ;;  %v3942_v41 = vadd.f32 %v3941_v62, %v3853_v28  ;;  %3805 = vmatmul.bf16.gmra.mxu1 %v15077_v38  ;;  %v9780_v10 = vld [vmem:[#allocation5 + $0x70] sm:$0xf0]  ;;  %4198 = vmatpush.bf16.msrb.mxu2 %v10295_v9 }
 0x51d   : > { %v10548_v28 = vld [vmem:[#allocation5 + $0x670] sm:$0xf0] }
 0x51e   : > { %v3767_v5 = vadd.f32 %v3766_v43, %v3678_v4  ;;  %3716 = vmatmul.bf16.gmra.mxu0 %v15076_v18  ;;  %v5110_v29 = vmul.f32 0.2, %v3942_v41  ;;  %3894 = vmatmul.bf16.gmra.mxu2 %v15078_v8  ;;  %v9783_v18 = vor.u32 %v11601_v16, %v9780_v10  ;;  %v10551_v37 = vor.u32 %v11793_v59, %v10548_v28  ;;  %v15081_v28 = vld [vmem:[#allocation26_spill] sm:$0xff] }
 0x520   : > { %3983 = vmatmul.bf16.gmra.mxu3 %v15079_v61  ;;  %v5366_v52 = vmax.f32 %v3942_v41, %v5110_v29  ;;  %4020 = vmatpush.bf16.msrb.mxu0 %v9783_v18  ;;  %v11665_v41 = vld [vmem:[#allocation5 + $0x254] sm:$0xf]  ;;  %v15082_v18 = vld [vmem:[#allocation27_spill] sm:$0xff] }
 0x521   : > { %v3855_v11 = vpop.f32.mrf.mxu2  ;;  %v3768_v61 = vpop.f32.mrf.mxu1  ;;  %4287 = vmatpush.bf16.msrb.mxu3 %v10551_v37  ;;  %v10036_v29 = vld [vmem:[#allocation5 + $0x270] sm:$0xf0] }
 0x522   : > { %v3856_v4 = vadd.f32 %v3855_v11, %v3767_v5  ;;  %v13330_v38 = vpack.c.bf16 %v5366_v52, %v5358_v39  ;;  %v10039_v7 = vor.u32 %v11665_v41, %v10036_v29  ;;  %v15083_v37 = vld [vmem:[#allocation28_spill] sm:$0xff] }
 0x523   : > { %v3944_v43 = vpop.f32.mrf.mxu3  ;;  %v3679_v62 = vpop.f32.mrf.mxu0 }
 0x524   : > { %15080 = vst [vmem:[#allocation105_spill] sm:$0xff] %v13330_v38  ;;  %v3680_v8 = vadd.f32 %v3679_v62, %v13307_v58  ;;  %v3945_v20 = vadd.f32 %v3944_v43, %v3856_v4  ;;  %4109 = vmatpush.bf16.msrb.mxu1 %v10039_v7 }
 0x526   : > { %v3769_v36 = vadd.f32 %v3768_v61, %v3680_v8  ;;  %v5118_v39 = vmul.f32 0.2, %v3945_v20  ;;  %v15084_v8 = vld [vmem:[#allocation29_spill] sm:$0xff] }
 0x528   : > { %v5374_v61 = vmax.f32 %v3945_v20, %v5118_v39 }
 0x529   : > { %v3857_v53 = vpop.f32.mrf.mxu2  ;;  %v3771_v59 = vpop.f32.mrf.mxu1 }
 0x52a   : > { %v3858_v40 = vadd.f32 %v3857_v53, %v3769_v36 }
 0x52b   : > { %v3946_v5 = vpop.f32.mrf.mxu3  ;;  %v3682_v11 = vpop.f32.mrf.mxu0 }
 0x52c   : > { %v3683_v16 = vadd.f32 %v3682_v11, %v13307_v58  ;;  %v3947_v52 = vadd.f32 %v3946_v5, %v3858_v40  ;;  %3810 = vmatmul.bf16.gmra.mxu1 %v15082_v18 }
 0x52e   : > { %v3772_v10 = vadd.f32 %v3771_v59, %v3683_v16  ;;  %3721 = vmatmul.bf16.gmra.mxu0 %v15081_v28  ;;  %v5126_v9 = vmul.f32 0.2, %v3947_v52  ;;  %3899 = vmatmul.bf16.gmra.mxu2 %v15083_v37 }
 0x530   : > { %3988 = vmatmul.bf16.gmra.mxu3 %v15084_v8  ;;  %v5382_v4 = vmax.f32 %v3947_v52, %v5126_v9 }
 0x531   : > { %v3860_v43 = vpop.f32.mrf.mxu2  ;;  %v3773_v53 = vpop.f32.mrf.mxu1 }
 0x532   : > { %v3861_v62 = vadd.f32 %v3860_v43, %v3772_v10  ;;  %v13338_v29 = vpack.c.bf16 %v5382_v4, %v5374_v61  ;;  %v15086_v10 = vld [vmem:[#allocation31_spill] sm:$0xff]  ;;  %v15087_v61 = vld [vmem:[#allocation32_spill] sm:$0xff]  ;;  %v15088_v4 = vld [vmem:[#allocation33_spill] sm:$0xff] }
 0x533   : > { %v3949_v36 = vpop.f32.mrf.mxu3  ;;  %v3684_v41 = vpop.f32.mrf.mxu0  ;;  %v15089_v43 = vld [vmem:[#allocation34_spill] sm:$0xff] }
 0x534   : > { %15085 = vst [vmem:[#allocation106_spill] sm:$0xff] %v13338_v29  ;;  %v3685_v40 = vadd.f32 %v3684_v41, %v13307_v58  ;;  %v3950_v7 = vadd.f32 %v3949_v36, %v3861_v62  ;;  %v11721_v41 = vld [vmem:[#allocation5 + $0x414] sm:$0xf] }
 0x535   : > { %v11785_v29 = vld [vmem:[#allocation5 + $0x614] sm:$0xf] }
 0x536   : > { %v3774_v5 = vadd.f32 %v3773_v53, %v3685_v40  ;;  %v5134_v20 = vmul.f32 0.2, %v3950_v7  ;;  %v10260_v40 = vld [vmem:[#allocation5 + $0x430] sm:$0xf0] }
 0x537   : > { %v11593_v53 = vld [vmem:[#allocation5 + $0x14] sm:$0xf] }
 0x538   : > { %v5390_v62 = vmax.f32 %v3950_v7, %v5134_v20 }
 0x539   : > { %v3862_v11 = vpop.f32.mrf.mxu2  ;;  %v3776_v8 = vpop.f32.mrf.mxu1 }
 0x53a   : > { %v3863_v16 = vadd.f32 %v3862_v11, %v3774_v5  ;;  %v9748_v11 = vld [vmem:[#allocation5 + $0x30] sm:$0xf0] }
 0x53b   : > { %v3951_v59 = vpop.f32.mrf.mxu3  ;;  %v3687_v38 = vpop.f32.mrf.mxu0 }
 0x53c   : > { %v3688_v37 = vadd.f32 %v3687_v38, %v13307_v58  ;;  %v3952_v39 = vadd.f32 %v3951_v59, %v3863_v16  ;;  %3815 = vmatmul.bf16.gmra.mxu1 %v15087_v61  ;;  %v10263_v38 = vor.u32 %v11721_v41, %v10260_v40  ;;  %v10516_v16 = vld [vmem:[#allocation5 + $0x630] sm:$0xf0] }
 0x53d   : > { %v10519_v18 = vor.u32 %v11785_v29, %v10516_v16  ;;  %v15091_v16 = vld [vmem:[#allocation36_spill] sm:$0xff] }
 0x53e   : > { %v3777_v52 = vadd.f32 %v3776_v8, %v3688_v37  ;;  %3726 = vmatmul.bf16.gmra.mxu0 %v15086_v10  ;;  %v5142_v9 = vmul.f32 0.2, %v3952_v39  ;;  %3904 = vmatmul.bf16.gmra.mxu2 %v15088_v4  ;;  %v9751_v10 = vor.u32 %v11593_v53, %v9748_v11 }
 0x53f   : > { %4199 = vmatpush.bf16.msrb.mxu2 %v10263_v38  ;;  %4288 = vmatpush.bf16.msrb.mxu3 %v10519_v18  ;;  %v15093_v18 = vld [vmem:[#allocation38_spill] sm:$0xff] }
 0x540   : > { %3993 = vmatmul.bf16.gmra.mxu3 %v15089_v43  ;;  %v5398_v36 = vmax.f32 %v3952_v39, %v5142_v9  ;;  %4021 = vmatpush.bf16.msrb.mxu0 %v9751_v10  ;;  %v11657_v39 = vld [vmem:[#allocation5 + $0x214] sm:$0xf]  ;;  %v15092_v10 = vld [vmem:[#allocation37_spill] sm:$0xff] }
 0x541   : > { %v3865_v5 = vpop.f32.mrf.mxu2  ;;  %v3778_v43 = vpop.f32.mrf.mxu1  ;;  %v10004_v9 = vld [vmem:[#allocation5 + $0x230] sm:$0xf0] }
 0x542   : > { %v3866_v37 = vadd.f32 %v3865_v5, %v3777_v52  ;;  %v13346_v61 = vpack.c.bf16 %v5398_v36, %v5390_v62  ;;  %v10007_v40 = vor.u32 %v11657_v39, %v10004_v9 }
 0x543   : > { %v3954_v8 = vpop.f32.mrf.mxu3  ;;  %v3689_v59 = vpop.f32.mrf.mxu0 }
 0x544   : > { %15090 = vst [vmem:[#allocation107_spill] sm:$0xff] %v13346_v61  ;;  %v3690_v4 = vadd.f32 %v3689_v59, %v13307_v58  ;;  %v3955_v7 = vadd.f32 %v3954_v8, %v3866_v37  ;;  %4110 = vmatpush.bf16.msrb.mxu1 %v10007_v40 }
 0x546   : > { %v3779_v20 = vadd.f32 %v3778_v43, %v3690_v4  ;;  %v5150_v62 = vmul.f32 0.2, %v3955_v7  ;;  %v15094_v4 = vld [vmem:[#allocation39_spill] sm:$0xff] }
 0x548   : > { %v5406_v43 = vmax.f32 %v3955_v7, %v5150_v62 }
 0x549   : > { %v3867_v41 = vpop.f32.mrf.mxu2  ;;  %v3781_v29 = vpop.f32.mrf.mxu1 }
 0x54a   : > { %v3868_v28 = vadd.f32 %v3867_v41, %v3779_v20 }
 0x54b   : > { %v3956_v52 = vpop.f32.mrf.mxu3  ;;  %v3692_v5 = vpop.f32.mrf.mxu0 }
 0x54c   : > { %v3693_v53 = vadd.f32 %v3692_v5, %v13307_v58  ;;  %v3957_v36 = vadd.f32 %v3956_v52, %v3868_v28  ;;  %3820 = vmatmul.bf16.gmra.mxu1 %v15092_v10 }
 0x54e   : > { %v3782_v11 = vadd.f32 %v3781_v29, %v3693_v53  ;;  %3731 = vmatmul.bf16.gmra.mxu0 %v15091_v16  ;;  %v5158_v38 = vmul.f32 0.2, %v3957_v36  ;;  %3909 = vmatmul.bf16.gmra.mxu2 %v15093_v18 }
 0x550   : > { %3998 = vmatmul.bf16.gmra.mxu3 %v15094_v4  ;;  %v5414_v37 = vmax.f32 %v3957_v36, %v5158_v38 }
 0x551   : > { %v3870_v8 = vpop.f32.mrf.mxu2  ;;  %v3783_v41 = vpop.f32.mrf.mxu1 }
 0x552   : > { %v3871_v59 = vadd.f32 %v3870_v8, %v3782_v11  ;;  %v13354_v9 = vpack.c.bf16 %v5414_v37, %v5406_v43  ;;  %v15096_v11 = vld [vmem:[#allocation41_spill] sm:$0xff]  ;;  %v15097_v43 = vld [vmem:[#allocation42_spill] sm:$0xff]  ;;  %v15098_v37 = vld [vmem:[#allocation43_spill] sm:$0xff] }
 0x553   : > { %v3959_v20 = vpop.f32.mrf.mxu3  ;;  %v3694_v39 = vpop.f32.mrf.mxu0  ;;  %v15099_v8 = vld [vmem:[#allocation44_spill] sm:$0xff] }
 0x554   : > { %15095 = vst [vmem:[#allocation108_spill] sm:$0xff] %v13354_v9  ;;  %v3695_v28 = vadd.f32 %v3694_v39, %v13307_v58  ;;  %v3960_v40 = vadd.f32 %v3959_v20, %v3871_v59  ;;  %v10490_v39 = vld [vmem:[#allocation5 + $0x5d8] sm:$0xf] }
 0x555   : > { %v10746_v9 = vld [vmem:[#allocation5 + $0x7d8] sm:$0xf] }
 0x556   : > { %v3784_v52 = vadd.f32 %v3783_v41, %v3695_v28  ;;  %v5166_v7 = vmul.f32 0.2, %v3960_v40  ;;  %v11782_v28 = vld [vmem:[#allocation5 + $0x5f4] sm:$0xf0] }
 0x557   : > { %v9978_v41 = vld [vmem:[#allocation5 + $0x1d8] sm:$0xf] }
 0x558   : > { %v5422_v59 = vmax.f32 %v3960_v40, %v5166_v7 }
 0x559   : > { %v3872_v5 = vpop.f32.mrf.mxu2  ;;  %v3786_v4 = vpop.f32.mrf.mxu1 }
 0x55a   : > { %v3873_v53 = vadd.f32 %v3872_v5, %v3784_v52  ;;  %v11654_v5 = vld [vmem:[#allocation5 + $0x1f4] sm:$0xf0] }
 0x55b   : > { %v3961_v29 = vpop.f32.mrf.mxu3  ;;  %v3697_v61 = vpop.f32.mrf.mxu0 }
 0x55c   : > { %v3698_v18 = vadd.f32 %v3697_v61, %v13307_v58  ;;  %v3962_v62 = vadd.f32 %v3961_v29, %v3873_v53  ;;  %3825 = vmatmul.bf16.gmra.mxu1 %v15097_v43  ;;  %v10491_v61 = vor.u32 %v11782_v28, %v10490_v39  ;;  %v11846_v53 = vld [vmem:[#allocation5 + $0x7f4] sm:$0xf0] }
 0x55d   : > { %v10747_v10 = vor.u32 %v11846_v53, %v10746_v9 }
 0x55e   : > { %v3787_v36 = vadd.f32 %v3786_v4, %v3698_v18  ;;  %3736 = vmatmul.bf16.gmra.mxu0 %v15096_v11  ;;  %v5174_v38 = vmul.f32 0.2, %v3962_v62  ;;  %3914 = vmatmul.bf16.gmra.mxu2 %v15098_v37  ;;  %v9979_v11 = vor.u32 %v11654_v5, %v9978_v41 }
 0x55f   : > { %4548 = vmatpush.bf16.msra.mxu2 %v10491_v61  ;;  %4637 = vmatpush.bf16.msra.mxu3 %v10747_v10 }
 0x560   : > { %4003 = vmatmul.bf16.gmra.mxu3 %v15099_v8  ;;  %v5430_v20 = vmax.f32 %v3962_v62, %v5174_v38  ;;  %4370 = vmatpush.bf16.msra.mxu0 %v9979_v11  ;;  %v10234_v62 = vld [vmem:[#allocation5 + $0x3d8] sm:$0xf] }
 0x561   : > { %v3875_v52 = vpop.f32.mrf.mxu2  ;;  %v3788_v8 = vpop.f32.mrf.mxu1  ;;  %v11718_v38 = vld [vmem:[#allocation5 + $0x3f4] sm:$0xf0] }
 0x562   : > { %v3876_v18 = vadd.f32 %v3875_v52, %v3787_v36  ;;  %v13362_v43 = vpack.c.bf16 %v5430_v20, %v5422_v59  ;;  %v10235_v28 = vor.u32 %v11718_v38, %v10234_v62 }
 0x563   : > { %v3964_v4 = vpop.f32.mrf.mxu3  ;;  %v3699_v29 = vpop.f32.mrf.mxu0 }
 0x564   : > { %15100 = vst [vmem:[#allocation109_spill] sm:$0xff] %v13362_v43  ;;  %v3700_v37 = vadd.f32 %v3699_v29, %v13307_v58  ;;  %v3965_v40 = vadd.f32 %v3964_v4, %v3876_v18  ;;  %4459 = vmatpush.bf16.msra.mxu1 %v10235_v28 }
 0x566   : > { %v3789_v7 = vadd.f32 %v3788_v8, %v3700_v37  ;;  %v5182_v59 = vmul.f32 0.2, %v3965_v40 }
 0x568   : > { %v5438_v10 = vmax.f32 %v3965_v40, %v5182_v59 }
 0x569   : > { %v3877_v39 = vpop.f32.mrf.mxu2  ;;  %v3791_v9 = vpop.f32.mrf.mxu1 }
 0x56a   : > { %v3878_v16 = vadd.f32 %v3877_v39, %v3789_v7 }
 0x56b   : > { %v3966_v36 = vpop.f32.mrf.mxu3  ;;  %v3702_v52 = vpop.f32.mrf.mxu0 }
 0x56c   : > { %v3703_v41 = vadd.f32 %v3702_v52, %v13307_v58  ;;  %v3967_v20 = vadd.f32 %v3966_v36, %v3878_v16  ;;  %3830 = vmatmul.bf16.gmra.mxu1 %v12839_v6 }
 0x56e   : > { %v3792_v5 = vadd.f32 %v3791_v9, %v3703_v41  ;;  %3741 = vmatmul.bf16.gmra.mxu0 %v12837_v17  ;;  %v5190_v61 = vmul.f32 0.2, %v3967_v20  ;;  %3919 = vmatmul.bf16.gmra.mxu2 %v12841_v30 }
 0x570   : > { %4008 = vmatmul.bf16.gmra.mxu3 %v12844_v31  ;;  %v5446_v11 = vmax.f32 %v3967_v20, %v5190_v61  ;;  %v15103_v61 = vld [vmem:[#allocation16_spill] sm:$0xff] }
 0x571   : > { %v3880_v37 = vpop.f32.mrf.mxu2  ;;  %v3793_v29 = vpop.f32.mrf.mxu1 }
 0x572   : > { %v3881_v8 = vadd.f32 %v3880_v37, %v3792_v5  ;;  %v13370_v4 = vpack.c.bf16 %v5446_v11, %v5438_v10  ;;  %v15102_v5 = vld [vmem:[#allocation15_spill] sm:$0xff]  ;;  %v10458_v37 = vld [vmem:[#allocation5 + $0x598] sm:$0xf] }
 0x573   : > { %v3969_v53 = vpop.f32.mrf.mxu3  ;;  %v3704_v18 = vpop.f32.mrf.mxu0 }
 0x574   : > { %15101 = vst [vmem:[#allocation110_spill] sm:$0xff] %v13370_v4  ;;  %v3705_v16 = vadd.f32 %v3704_v18, %v13307_v58  ;;  %v3970_v7 = vadd.f32 %v3969_v53, %v3881_v8  ;;  %v11774_v8 = vld [vmem:[#allocation5 + $0x5b4] sm:$0xf0] }
 0x575   : > { %v9946_v53 = vld [vmem:[#allocation5 + $0x198] sm:$0xf] }
 0x576   : > { %v3794_v62 = vadd.f32 %v3793_v29, %v3705_v16  ;;  %v5198_v40 = vmul.f32 0.2, %v3970_v7  ;;  %v10459_v16 = vor.u32 %v11774_v8, %v10458_v37  ;;  %v11646_v29 = vld [vmem:[#allocation5 + $0x1b4] sm:$0xf0] }
 0x578   : > { %v5454_v10 = vmax.f32 %v3970_v7, %v5198_v40  ;;  %4549 = vmatpush.bf16.msra.mxu2 %v10459_v16 }
 0x579   : > { %v3882_v38 = vpop.f32.mrf.mxu2  ;;  %v3796_v41 = vpop.f32.mrf.mxu1 }
 0x57a   : > { %v3883_v39 = vadd.f32 %v3882_v38, %v3794_v62  ;;  %v10714_v62 = vld [vmem:[#allocation5 + $0x798] sm:$0xf] }
 0x57b   : > { %v3971_v28 = vpop.f32.mrf.mxu3  ;;  %v3707_v36 = vpop.f32.mrf.mxu0  ;;  %v11838_v38 = vld [vmem:[#allocation5 + $0x7b4] sm:$0xf0] }
 0x57c   : > { %v3708_v52 = vadd.f32 %v3707_v36, %v13307_v58  ;;  %v3972_v9 = vadd.f32 %v3971_v28, %v3883_v39  ;;  %4111 = vmatmul.bf16.vlgmr.msrb.gmra.mxu1 %v12511_v51 }
 0x57e   : > { %v3797_v59 = vadd.f32 %v3796_v41, %v3708_v52  ;;  %4022 = vmatmul.bf16.vlgmr.msrb.gmra.mxu0 %v12509_v47  ;;  %v5206_v20 = vmul.f32 0.2, %v3972_v9  ;;  %4200 = vmatmul.bf16.vlgmr.msrb.gmra.mxu2 %v15102_v5  ;;  %v9947_v52 = vor.u32 %v11646_v29, %v9946_v53  ;;  %v10715_v41 = vor.u32 %v11838_v38, %v10714_v62 }
 0x580   : > { %4289 = vmatmul.bf16.vlgmr.msrb.gmra.mxu3 %v15103_v61  ;;  %v5462_v11 = vmax.f32 %v3972_v9, %v5206_v20  ;;  %4371 = vmatpush.bf16.msra.mxu0 %v9947_v52  ;;  %v10202_v9 = vld [vmem:[#allocation5 + $0x398] sm:$0xf] }
 0x581   : > { %v3885_v18 = vpop.f32.mrf.mxu2  ;;  %v3798_v61 = vpop.f32.mrf.mxu1  ;;  %4638 = vmatpush.bf16.msra.mxu3 %v10715_v41  ;;  %v11710_v20 = vld [vmem:[#allocation5 + $0x3b4] sm:$0xf0] }
 0x582   : > { %v3886_v39 = vadd.f32 %v3885_v18, %v3797_v59  ;;  %v13378_v4 = vpack.c.bf16 %v5462_v11, %v5454_v10  ;;  %v10203_v8 = vor.u32 %v11710_v20, %v10202_v9 }
 0x583   : > { %v3974_v28 = vpop.f32.mrf.mxu3  ;;  %v3709_v36 = vpop.f32.mrf.mxu0 }
 0x584   : > { %15104 = vst [vmem:[#allocation111_spill] sm:$0xff] %v13378_v4  ;;  %v3710_v43 = vadd.f32 %v3709_v36, %v13307_v58  ;;  %v3975_v7 = vadd.f32 %v3974_v28, %v3886_v39  ;;  %4460 = vmatpush.bf16.msra.mxu1 %v10203_v8 }
 0x586   : > { %v3799_v40 = vadd.f32 %v3798_v61, %v3710_v43  ;;  %v5214_v10 = vmul.f32 0.2, %v3975_v7 }
 0x588   : > { %v5470_v43 = vmax.f32 %v3975_v7, %v5214_v10 }
 0x589   : > { %v3887_v37 = vpop.f32.mrf.mxu2  ;;  %v3801_v29 = vpop.f32.mrf.mxu1 }
 0x58a   : > { %v3888_v5 = vadd.f32 %v3887_v37, %v3799_v40 }
 0x58b   : > { %v3976_v59 = vpop.f32.mrf.mxu3  ;;  %v3712_v18 = vpop.f32.mrf.mxu0 }
 0x58c   : > { %v3713_v53 = vadd.f32 %v3712_v18, %v13307_v58  ;;  %v3977_v11 = vadd.f32 %v3976_v59, %v3888_v5  ;;  %4116 = vmatmul.bf16.gmra.mxu1 %v12531_v13 }
 0x58e   : > { %v3802_v62 = vadd.f32 %v3801_v29, %v3713_v53  ;;  %4027 = vmatmul.bf16.gmra.mxu0 %v12529_v12  ;;  %v5222_v16 = vmul.f32 0.2, %v3977_v11  ;;  %4205 = vmatmul.bf16.gmra.mxu2 %v12533_v14 }
 0x590   : > { %4294 = vmatmul.bf16.gmra.mxu3 %v12535_v15  ;;  %v5478_v61 = vmax.f32 %v3977_v11, %v5222_v16 }
 0x591   : > { %v3890_v38 = vpop.f32.mrf.mxu2  ;;  %v3803_v41 = vpop.f32.mrf.mxu1 }
 0x592   : > { %v3891_v39 = vadd.f32 %v3890_v38, %v3802_v62  ;;  %v13386_v52 = vpack.c.bf16 %v5478_v61, %v5470_v43  ;;  %v10426_v43 = vld [vmem:[#allocation5 + $0x558] sm:$0xf] }
 0x593   : > { %v3979_v28 = vpop.f32.mrf.mxu3  ;;  %v3714_v36 = vpop.f32.mrf.mxu0  ;;  %v11766_v61 = vld [vmem:[#allocation5 + $0x574] sm:$0xf0] }
 0x594   : > { %15105 = vst [vmem:[#allocation112_spill] sm:$0xff] %v13386_v52  ;;  %v3715_v5 = vadd.f32 %v3714_v36, %v13307_v58  ;;  %v3980_v40 = vadd.f32 %v3979_v28, %v3891_v39  ;;  %v9914_v38 = vld [vmem:[#allocation5 + $0x158] sm:$0xf]  ;;  %v10427_v28 = vor.u32 %v11766_v61, %v10426_v43 }
 0x595   : > { %v11638_v36 = vld [vmem:[#allocation5 + $0x174] sm:$0xf0] }
 0x596   : > { %v3804_v9 = vadd.f32 %v3803_v41, %v3715_v5  ;;  %v5230_v7 = vmul.f32 0.2, %v3980_v40  ;;  %v10682_v5 = vld [vmem:[#allocation5 + $0x758] sm:$0xf]  ;;  %4550 = vmatpush.bf16.msra.mxu2 %v10427_v28 }
 0x597   : > { %v11830_v41 = vld [vmem:[#allocation5 + $0x774] sm:$0xf0] }
 0x598   : > { %v5486_v62 = vmax.f32 %v3980_v40, %v5230_v7 }
 0x599   : > { %v3892_v20 = vpop.f32.mrf.mxu2  ;;  %v3806_v53 = vpop.f32.mrf.mxu1 }
 0x59a   : > { %v3893_v37 = vadd.f32 %v3892_v20, %v3804_v9 }
 0x59b   : > { %v3981_v8 = vpop.f32.mrf.mxu3  ;;  %v3717_v59 = vpop.f32.mrf.mxu0 }
 0x59c   : > { %v3718_v18 = vadd.f32 %v3717_v59, %v13307_v58  ;;  %v3982_v29 = vadd.f32 %v3981_v8, %v3893_v37  ;;  %4121 = vmatmul.bf16.gmra.mxu1 %v12551_v25  ;;  %v9915_v8 = vor.u32 %v11638_v36, %v9914_v38  ;;  %v10683_v59 = vor.u32 %v11830_v41, %v10682_v5 }
 0x59e   : > { %v3807_v10 = vadd.f32 %v3806_v53, %v3718_v18  ;;  %4032 = vmatmul.bf16.gmra.mxu0 %v12549_v24  ;;  %v5238_v11 = vmul.f32 0.2, %v3982_v29  ;;  %4210 = vmatmul.bf16.gmra.mxu2 %v12553_v26 }
 0x59f   : > { %4372 = vmatpush.bf16.msra.mxu0 %v9915_v8  ;;  %4639 = vmatpush.bf16.msra.mxu3 %v10683_v59 }
 0x5a0   : > { %4299 = vmatmul.bf16.gmra.mxu3 %v12555_v27  ;;  %v5494_v16 = vmax.f32 %v3982_v29, %v5238_v11  ;;  %v10170_v29 = vld [vmem:[#allocation5 + $0x358] sm:$0xf] }
 0x5a1   : > { %v3895_v39 = vpop.f32.mrf.mxu2  ;;  %v3808_v52 = vpop.f32.mrf.mxu1  ;;  %v11702_v11 = vld [vmem:[#allocation5 + $0x374] sm:$0xf0] }
 0x5a2   : > { %v3896_v9 = vadd.f32 %v3895_v39, %v3807_v10  ;;  %v13394_v18 = vpack.c.bf16 %v5494_v16, %v5486_v62  ;;  %v10171_v61 = vor.u32 %v11702_v11, %v10170_v29 }
 0x5a3   : > { %v3984_v20 = vpop.f32.mrf.mxu3  ;;  %v3719_v37 = vpop.f32.mrf.mxu0 }
 0x5a4   : > { %15106 = vst [vmem:[#allocation113_spill] sm:$0xff] %v13394_v18  ;;  %v3720_v53 = vadd.f32 %v3719_v37, %v13307_v58  ;;  %v3985_v40 = vadd.f32 %v3984_v20, %v3896_v9  ;;  %4461 = vmatpush.bf16.msra.mxu1 %v10171_v61 }
 0x5a6   : > { %v3809_v7 = vadd.f32 %v3808_v52, %v3720_v53  ;;  %v5246_v62 = vmul.f32 0.2, %v3985_v40 }
 0x5a8   : > { %v5502_v52 = vmax.f32 %v3985_v40, %v5246_v62 }
 0x5a9   : > { %v3897_v43 = vpop.f32.mrf.mxu2  ;;  %v3811_v36 = vpop.f32.mrf.mxu1 }
 0x5aa   : > { %v3898_v4 = vadd.f32 %v3897_v43, %v3809_v7 }
 0x5ab   : > { %v3986_v10 = vpop.f32.mrf.mxu3  ;;  %v3722_v39 = vpop.f32.mrf.mxu0 }
 0x5ac   : > { %v3723_v38 = vadd.f32 %v3722_v39, %v13307_v58  ;;  %v3987_v16 = vadd.f32 %v3986_v10, %v3898_v4  ;;  %4126 = vmatmul.bf16.gmra.mxu1 %v12571_v50 }
 0x5ae   : > { %v3812_v5 = vadd.f32 %v3811_v36, %v3723_v38  ;;  %4037 = vmatmul.bf16.gmra.mxu0 %v12569_v49  ;;  %v5254_v28 = vmul.f32 0.2, %v3987_v16  ;;  %4215 = vmatmul.bf16.gmra.mxu2 %v12573_v54 }
 0x5b0   : > { %4304 = vmatmul.bf16.gmra.mxu3 %v12575_v55  ;;  %v5510_v41 = vmax.f32 %v3987_v16, %v5254_v28 }
 0x5b1   : > { %v3900_v9 = vpop.f32.mrf.mxu2  ;;  %v3813_v53 = vpop.f32.mrf.mxu1 }
 0x5b2   : > { %v3901_v20 = vadd.f32 %v3900_v9, %v3812_v5  ;;  %v13402_v59 = vpack.c.bf16 %v5510_v41, %v5502_v52  ;;  %v10394_v52 = vld [vmem:[#allocation5 + $0x518] sm:$0xf] }
 0x5b3   : > { %v3989_v37 = vpop.f32.mrf.mxu3  ;;  %v3724_v8 = vpop.f32.mrf.mxu0  ;;  %v11758_v41 = vld [vmem:[#allocation5 + $0x534] sm:$0xf0] }
 0x5b4   : > { %15107 = vst [vmem:[#allocation114_spill] sm:$0xff] %v13402_v59  ;;  %v3725_v4 = vadd.f32 %v3724_v8, %v13307_v58  ;;  %v3990_v7 = vadd.f32 %v3989_v37, %v3901_v20  ;;  %v9882_v9 = vld [vmem:[#allocation5 + $0x118] sm:$0xf]  ;;  %v10395_v37 = vor.u32 %v11758_v41, %v10394_v52 }
 0x5b5   : > { %v11630_v8 = vld [vmem:[#allocation5 + $0x134] sm:$0xf0] }
 0x5b6   : > { %v3814_v29 = vadd.f32 %v3813_v53, %v3725_v4  ;;  %v5262_v40 = vmul.f32 0.2, %v3990_v7  ;;  %v10650_v4 = vld [vmem:[#allocation5 + $0x718] sm:$0xf]  ;;  %4551 = vmatpush.bf16.msra.mxu2 %v10395_v37 }
 0x5b7   : > { %v11822_v53 = vld [vmem:[#allocation5 + $0x734] sm:$0xf0] }
 0x5b8   : > { %v5518_v5 = vmax.f32 %v3990_v7, %v5262_v40 }
 0x5b9   : > { %v3902_v11 = vpop.f32.mrf.mxu2  ;;  %v3816_v38 = vpop.f32.mrf.mxu1 }
 0x5ba   : > { %v3903_v43 = vadd.f32 %v3902_v11, %v3814_v29 }
 0x5bb   : > { %v3991_v61 = vpop.f32.mrf.mxu3  ;;  %v3727_v10 = vpop.f32.mrf.mxu0 }
 0x5bc   : > { %v3728_v39 = vadd.f32 %v3727_v10, %v13307_v58  ;;  %v3992_v36 = vadd.f32 %v3991_v61, %v3903_v43  ;;  %4131 = vmatmul.bf16.gmra.mxu1 %v12591_v1  ;;  %v9883_v61 = vor.u32 %v11630_v8, %v9882_v9  ;;  %v10651_v10 = vor.u32 %v11822_v53, %v10650_v4 }
 0x5be   : > { %v3817_v62 = vadd.f32 %v3816_v38, %v3728_v39  ;;  %4042 = vmatmul.bf16.gmra.mxu0 %v12589_v0  ;;  %v5270_v16 = vmul.f32 0.2, %v3992_v36  ;;  %4220 = vmatmul.bf16.gmra.mxu2 %v12593_v2 }
 0x5bf   : > { %4373 = vmatpush.bf16.msra.mxu0 %v9883_v61  ;;  %4640 = vmatpush.bf16.msra.mxu3 %v10651_v10 }
 0x5c0   : > { %4309 = vmatmul.bf16.gmra.mxu3 %v12595_v3  ;;  %v5526_v28 = vmax.f32 %v3992_v36, %v5270_v16  ;;  %v10138_v36 = vld [vmem:[#allocation5 + $0x318] sm:$0xf] }
 0x5c1   : > { %v3905_v20 = vpop.f32.mrf.mxu2  ;;  %v3818_v59 = vpop.f32.mrf.mxu1  ;;  %v11694_v16 = vld [vmem:[#allocation5 + $0x334] sm:$0xf0] }
 0x5c2   : > { %v3906_v29 = vadd.f32 %v3905_v20, %v3817_v62  ;;  %v13410_v39 = vpack.c.bf16 %v5526_v28, %v5518_v5  ;;  %v10139_v41 = vor.u32 %v11694_v16, %v10138_v36 }
 0x5c3   : > { %v3994_v11 = vpop.f32.mrf.mxu3  ;;  %v3729_v43 = vpop.f32.mrf.mxu0 }
 0x5c4   : > { %15108 = vst [vmem:[#allocation115_spill] sm:$0xff] %v13410_v39  ;;  %v3730_v38 = vadd.f32 %v3729_v43, %v13307_v58  ;;  %v3995_v7 = vadd.f32 %v3994_v11, %v3906_v29  ;;  %4462 = vmatpush.bf16.msra.mxu1 %v10139_v41 }
 0x5c6   : > { %v3819_v40 = vadd.f32 %v3818_v59, %v3730_v38  ;;  %v5278_v5 = vmul.f32 0.2, %v3995_v7 }
 0x5c8   : > { %v5534_v59 = vmax.f32 %v3995_v7, %v5278_v5 }
 0x5c9   : > { %v3907_v52 = vpop.f32.mrf.mxu2  ;;  %v3821_v8 = vpop.f32.mrf.mxu1 }
 0x5ca   : > { %v3908_v18 = vadd.f32 %v3907_v52, %v3819_v40 }
 0x5cb   : > { %v3996_v62 = vpop.f32.mrf.mxu3  ;;  %v3732_v20 = vpop.f32.mrf.mxu0 }
 0x5cc   : > { %v3733_v9 = vadd.f32 %v3732_v20, %v13307_v58  ;;  %v3997_v28 = vadd.f32 %v3996_v62, %v3908_v18  ;;  %4136 = vmatmul.bf16.gmra.mxu1 %v12611_v33 }
 0x5ce   : > { %v3822_v4 = vadd.f32 %v3821_v8, %v3733_v9  ;;  %4047 = vmatmul.bf16.gmra.mxu0 %v12609_v32  ;;  %v5286_v37 = vmul.f32 0.2, %v3997_v28  ;;  %4225 = vmatmul.bf16.gmra.mxu2 %v12613_v34 }
 0x5d0   : > { %4314 = vmatmul.bf16.gmra.mxu3 %v12615_v35  ;;  %v5542_v53 = vmax.f32 %v3997_v28, %v5286_v37 }
 0x5d1   : > { %v3910_v29 = vpop.f32.mrf.mxu2  ;;  %v3823_v38 = vpop.f32.mrf.mxu1 }
 0x5d2   : > { %v3911_v11 = vadd.f32 %v3910_v29, %v3822_v4  ;;  %v13418_v10 = vpack.c.bf16 %v5542_v53, %v5534_v59  ;;  %v10362_v59 = vld [vmem:[#allocation5 + $0x4d8] sm:$0xf] }
 0x5d3   : > { %v3999_v43 = vpop.f32.mrf.mxu3  ;;  %v3734_v61 = vpop.f32.mrf.mxu0  ;;  %v11750_v53 = vld [vmem:[#allocation5 + $0x4f4] sm:$0xf0] }
 0x5d4   : > { %15109 = vst [vmem:[#allocation116_spill] sm:$0xff] %v13418_v10  ;;  %v3735_v18 = vadd.f32 %v3734_v61, %v13307_v58  ;;  %v4000_v40 = vadd.f32 %v3999_v43, %v3911_v11  ;;  %v9850_v29 = vld [vmem:[#allocation5 + $0xd8] sm:$0xf]  ;;  %v10363_v43 = vor.u32 %v11750_v53, %v10362_v59 }
 0x5d5   : > { %v11622_v61 = vld [vmem:[#allocation5 + $0xf4] sm:$0xf0] }
 0x5d6   : > { %v3824_v36 = vadd.f32 %v3823_v38, %v3735_v18  ;;  %v5294_v7 = vmul.f32 0.2, %v4000_v40  ;;  %v10618_v18 = vld [vmem:[#allocation5 + $0x6d8] sm:$0xf]  ;;  %4552 = vmatpush.bf16.msra.mxu2 %v10363_v43 }
 0x5d7   : > { %v11814_v38 = vld [vmem:[#allocation5 + $0x6f4] sm:$0xf0] }
 0x5d8   : > { %v5550_v4 = vmax.f32 %v4000_v40, %v5294_v7 }
 0x5d9   : > { %v3912_v16 = vpop.f32.mrf.mxu2  ;;  %v3826_v9 = vpop.f32.mrf.mxu1 }
 0x5da   : > { %v3913_v52 = vadd.f32 %v3912_v16, %v3824_v36 }
 0x5db   : > { %v4001_v41 = vpop.f32.mrf.mxu3  ;;  %v3737_v62 = vpop.f32.mrf.mxu0 }
 0x5dc   : > { %v3738_v20 = vadd.f32 %v3737_v62, %v13307_v58  ;;  %v4002_v8 = vadd.f32 %v4001_v41, %v3913_v52  ;;  %4141 = vmatmul.bf16.gmra.mxu1 %v12631_v45  ;;  %v9851_v41 = vor.u32 %v11622_v61, %v9850_v29  ;;  %v10619_v62 = vor.u32 %v11814_v38, %v10618_v18 }
 0x5de   : > { %v3827_v5 = vadd.f32 %v3826_v9, %v3738_v20  ;;  %4052 = vmatmul.bf16.gmra.mxu0 %v12629_v44  ;;  %v5302_v28 = vmul.f32 0.2, %v4002_v8  ;;  %4230 = vmatmul.bf16.gmra.mxu2 %v12633_v46 }
 0x5df   : > { %4374 = vmatpush.bf16.msra.mxu0 %v9851_v41  ;;  %4641 = vmatpush.bf16.msra.mxu3 %v10619_v62 }
 0x5e0   : > { %4319 = vmatmul.bf16.gmra.mxu3 %v12635_v48  ;;  %v5558_v37 = vmax.f32 %v4002_v8, %v5302_v28  ;;  %v10106_v8 = vld [vmem:[#allocation5 + $0x2d8] sm:$0xf] }
 0x5e1   : > { %v3915_v11 = vpop.f32.mrf.mxu2  ;;  %v3828_v10 = vpop.f32.mrf.mxu1  ;;  %v11686_v28 = vld [vmem:[#allocation5 + $0x2f4] sm:$0xf0] }
 0x5e2   : > { %v3916_v36 = vadd.f32 %v3915_v11, %v3827_v5  ;;  %v13426_v20 = vpack.c.bf16 %v5558_v37, %v5550_v4  ;;  %v10107_v53 = vor.u32 %v11686_v28, %v10106_v8  ;;  %v12130_v28 = vld [vmem:[#allocation7] sm:$0xff] }
 0x5e3   : > { %v4004_v16 = vpop.f32.mrf.mxu3  ;;  %v3739_v52 = vpop.f32.mrf.mxu0 }
 0x5e4   : > { %15110 = vst [vmem:[#allocation117_spill] sm:$0xff] %v13426_v20  ;;  %v3740_v9 = vadd.f32 %v3739_v52, %v13307_v58  ;;  %v4005_v40 = vadd.f32 %v4004_v16, %v3916_v36  ;;  %4463 = vmatpush.bf16.msra.mxu1 %v10107_v53 }
 0x5e6   : > { %v3829_v7 = vadd.f32 %v3828_v10, %v3740_v9  ;;  %v5310_v4 = vmul.f32 0.2, %v4005_v40 }
 0x5e8   : > { %v5566_v10 = vmax.f32 %v4005_v40, %v5310_v4 }
 0x5e9   : > { %v3917_v59 = vpop.f32.mrf.mxu2  ;;  %v3831_v61 = vpop.f32.mrf.mxu1 }
 0x5ea   : > { %v3918_v39 = vadd.f32 %v3917_v59, %v3829_v7  ;;  %v13437_v59 = vperm.slane %v12130_v28, 5 }
 0x5eb   : > { %v4006_v5 = vpop.f32.mrf.mxu3  ;;  %v3742_v11 = vpop.f32.mrf.mxu0 }
 0x5ec   : > { %v3743_v29 = vadd.f32 %v3742_v11, %v13307_v58  ;;  %v4007_v37 = vadd.f32 %v4006_v5, %v3918_v39  ;;  %4146 = vmatmul.bf16.gmra.mxu1 %v12651_v21 }
 0x5ee   : > { %v3832_v18 = vadd.f32 %v3831_v61, %v3743_v29  ;;  %4057 = vmatmul.bf16.gmra.mxu0 %v12649_v19  ;;  %v5318_v43 = vmul.f32 0.2, %v4007_v37  ;;  %4235 = vmatmul.bf16.gmra.mxu2 %v12653_v22 }
 0x5f0   : > { %4324 = vmatmul.bf16.gmra.mxu3 %v12655_v23  ;;  %v5574_v38 = vmax.f32 %v4007_v37, %v5318_v43 }
 0x5f1   : > { %v3920_v36 = vpop.f32.mrf.mxu2  ;;  %v3833_v9 = vpop.f32.mrf.mxu1 }
 0x5f2   : > { %v3921_v16 = vadd.f32 %v3920_v36, %v3832_v18  ;;  %v13434_v62 = vpack.c.bf16 %v5574_v38, %v5566_v10  ;;  %v10330_v38 = vld [vmem:[#allocation5 + $0x498] sm:$0xf] }
 0x5f3   : > { %v4009_v52 = vpop.f32.mrf.mxu3  ;;  %v3744_v41 = vpop.f32.mrf.mxu0  ;;  %v11742_v36 = vld [vmem:[#allocation5 + $0x4b4] sm:$0xf0] }
 0x5f4   : > { %15111 = vst [vmem:[#allocation118_spill] sm:$0xff] %v13434_v62  ;;  %v3745_v39 = vadd.f32 %v3744_v41, %v13307_v58  ;;  %v4010_v7 = vadd.f32 %v4009_v52, %v3921_v16  ;;  %v9818_v16 = vld [vmem:[#allocation5 + $0x98] sm:$0xf]  ;;  %v10331_v41 = vor.u32 %v11742_v36, %v10330_v38 }
 0x5f6   : > { %v3834_v8 = vadd.f32 %v3833_v9, %v3745_v39  ;;  %v5326_v4 = vmul.f32 0.2, %v4010_v7  ;;  %v11614_v39 = vld [vmem:[#allocation5 + $0xb4] sm:$0xf0]  ;;  %4553 = vmatpush.bf16.msra.mxu2 %v10331_v41 }
 0x5f7   : > { %v10586_v9 = vld [vmem:[#allocation5 + $0x698] sm:$0xf] }
 0x5f8   : > { %v5582_v58 = vmax.f32 %v4010_v7, %v5326_v4 }
 0x5f9   : > { %v3922_v53 = vpop.f32.mrf.mxu2  ;;  %v4112_v61 = vpop.f32.mrf.mxu1 }
 0x5fa   : > { %v3923_v5 = vadd.f32 %v3922_v53, %v3834_v8  ;;  %v11806_v8 = vld [vmem:[#allocation5 + $0x6b4] sm:$0xf0] }
 0x5fb   : > { %v4011_v11 = vpop.f32.mrf.mxu3  ;;  %v4023_v29 = vpop.f32.mrf.mxu0 }
 0x5fc   : > { %v4024_v40 = vadd.f32 %v4023_v29, %v13437_v59  ;;  %v4012_v37 = vadd.f32 %v4011_v11, %v3923_v5  ;;  %4151 = vmatmul.bf16.gmra.mxu1 %v12673_v56  ;;  %v9819_v11 = vor.u32 %v11614_v39, %v9818_v16  ;;  %v10587_v29 = vor.u32 %v11806_v8, %v10586_v9  ;;  %v15113_v8 = vld [vmem:[#allocation17_spill] sm:$0xff] }
 0x5fe   : > { %v4113_v18 = vadd.f32 %v4112_v61, %v4024_v40  ;;  %4062 = vmatmul.bf16.gmra.mxu0 %v12671_v42  ;;  %v5334_v43 = vmul.f32 0.2, %v4012_v37  ;;  %4240 = vmatmul.bf16.gmra.mxu2 %v12675_v57 }
 0x5ff   : > { %4375 = vmatpush.bf16.msra.mxu0 %v9819_v11  ;;  %4642 = vmatpush.bf16.msra.mxu3 %v10587_v29 }
 0x600   : > { %4329 = vmatmul.bf16.gmra.mxu3 %v12678_v60  ;;  %v5590_v10 = vmax.f32 %v4012_v37, %v5334_v43  ;;  %v10074_v37 = vld [vmem:[#allocation5 + $0x298] sm:$0xf] }
 0x601   : > { %v4201_v52 = vpop.f32.mrf.mxu2  ;;  %v4114_v62 = vpop.f32.mrf.mxu1  ;;  %v11678_v43 = vld [vmem:[#allocation5 + $0x2b4] sm:$0xf0] }
 0x602   : > { %v4202_v28 = vadd.f32 %v4201_v52, %v4113_v18  ;;  %v13444_v40 = vpack.c.bf16 %v5590_v10, %v5582_v58  ;;  %v10075_v36 = vor.u32 %v11678_v43, %v10074_v37 }
 0x603   : > { %v4290_v53 = vpop.f32.mrf.mxu3  ;;  %v4025_v5 = vpop.f32.mrf.mxu0 }
 0x604   : > { %15112 = vst [vmem:[#allocation119_spill] sm:$0xff] %v13444_v40  ;;  %v4026_v61 = vadd.f32 %v4025_v5, %v13437_v59  ;;  %v4291_v7 = vadd.f32 %v4290_v53, %v4202_v28  ;;  %4464 = vmatpush.bf16.msra.mxu1 %v10075_v36  ;;  %v15115_v28 = vld [vmem:[#allocation19_spill] sm:$0xff] }
 0x606   : > { %v4115_v4 = vadd.f32 %v4114_v62, %v4026_v61  ;;  %v5087_v58 = vmul.f32 0.2, %v4291_v7  ;;  %v15114_v62 = vld [vmem:[#allocation18_spill] sm:$0xff] }
 0x608   : > { %v5343_v53 = vmax.f32 %v4291_v7, %v5087_v58 }
 0x609   : > { %v4203_v38 = vpop.f32.mrf.mxu2  ;;  %v4117_v39 = vpop.f32.mrf.mxu1 }
 0x60a   : > { %v4204_v20 = vadd.f32 %v4203_v38, %v4115_v4 }
 0x60b   : > { %v4292_v18 = vpop.f32.mrf.mxu3  ;;  %v4028_v52 = vpop.f32.mrf.mxu0 }
 0x60c   : > { %v4029_v16 = vadd.f32 %v4028_v52, %v13437_v59  ;;  %v4293_v10 = vadd.f32 %v4292_v18, %v4204_v20  ;;  %4156 = vmatmul.bf16.gmra.mxu1 %v15113_v8 }
 0x60e   : > { %v4118_v9 = vadd.f32 %v4117_v39, %v4029_v16  ;;  %4067 = vmatmul.bf16.gmra.mxu0 %v12693_v63  ;;  %v5095_v41 = vmul.f32 0.2, %v4293_v10  ;;  %4245 = vmatmul.bf16.gmra.mxu2 %v15114_v62 }
 0x610   : > { %4334 = vmatmul.bf16.gmra.mxu3 %v15115_v28  ;;  %v5351_v5 = vmax.f32 %v4293_v10, %v5095_v41  ;;  %v15117_v41 = vld [vmem:[#allocation21_spill] sm:$0xff] }
 0x611   : > { %v4206_v11 = vpop.f32.mrf.mxu2  ;;  %v4119_v43 = vpop.f32.mrf.mxu1 }
 0x612   : > { %v13452_v29 = vpack.c.bf16 %v5351_v5, %v5343_v53  ;;  %v4207_v61 = vadd.f32 %v4206_v11, %v4118_v9  ;;  %v15118_v53 = vld [vmem:[#allocation22_spill] sm:$0xff]  ;;  %v15119_v5 = vld [vmem:[#allocation23_spill] sm:$0xff]  ;;  %v15120_v11 = vld [vmem:[#allocation24_spill] sm:$0xff] }
 0x613   : > { %v4295_v4 = vpop.f32.mrf.mxu3  ;;  %v4030_v37 = vpop.f32.mrf.mxu0 }
 0x614   : > { %15116 = vst [vmem:[#allocation120_spill] sm:$0xff] %v13452_v29  ;;  %v4031_v20 = vadd.f32 %v4030_v37, %v13437_v59  ;;  %v4296_v38 = vadd.f32 %v4295_v4, %v4207_v61  ;;  %v10298_v37 = vld [vmem:[#allocation5 + $0x458] sm:$0xf] }
 0x615   : > { %v10554_v29 = vld [vmem:[#allocation5 + $0x658] sm:$0xf] }
 0x616   : > { %v4120_v36 = vadd.f32 %v4119_v43, %v4031_v20  ;;  %v5103_v7 = vmul.f32 0.2, %v4296_v38  ;;  %v11734_v20 = vld [vmem:[#allocation5 + $0x474] sm:$0xf0] }
 0x617   : > { %v9786_v43 = vld [vmem:[#allocation5 + $0x58] sm:$0xf] }
 0x618   : > { %v5359_v61 = vmax.f32 %v4296_v38, %v5103_v7 }
 0x619   : > { %v4208_v18 = vpop.f32.mrf.mxu2  ;;  %v4122_v28 = vpop.f32.mrf.mxu1 }
 0x61a   : > { %v4209_v52 = vadd.f32 %v4208_v18, %v4120_v36  ;;  %v10299_v18 = vor.u32 %v11734_v20, %v10298_v37 }
 0x61b   : > { %v4297_v16 = vpop.f32.mrf.mxu3  ;;  %v4033_v39 = vpop.f32.mrf.mxu0 }
 0x61c   : > { %v4034_v40 = vadd.f32 %v4033_v39, %v13437_v59  ;;  %v4298_v58 = vadd.f32 %v4297_v16, %v4209_v52  ;;  %4161 = vmatmul.bf16.gmra.mxu1 %v15118_v53  ;;  %v11606_v39 = vld [vmem:[#allocation5 + $0x74] sm:$0xf0]  ;;  %4554 = vmatpush.bf16.msra.mxu2 %v10299_v18 }
 0x61d   : > { %v11798_v52 = vld [vmem:[#allocation5 + $0x674] sm:$0xf0] }
 0x61e   : > { %v4123_v10 = vadd.f32 %v4122_v28, %v4034_v40  ;;  %4072 = vmatmul.bf16.gmra.mxu0 %v15117_v41  ;;  %v5111_v9 = vmul.f32 0.2, %v4298_v58  ;;  %4250 = vmatmul.bf16.gmra.mxu2 %v15119_v5  ;;  %v9787_v41 = vor.u32 %v11606_v39, %v9786_v43  ;;  %v10555_v62 = vor.u32 %v11798_v52, %v10554_v29  ;;  %v15122_v52 = vld [vmem:[#allocation26_spill] sm:$0xff] }
 0x620   : > { %4339 = vmatmul.bf16.gmra.mxu3 %v15120_v11  ;;  %v5367_v4 = vmax.f32 %v4298_v58, %v5111_v9  ;;  %4376 = vmatpush.bf16.msra.mxu0 %v9787_v41  ;;  %v10042_v58 = vld [vmem:[#allocation5 + $0x258] sm:$0xf]  ;;  %v15123_v41 = vld [vmem:[#allocation27_spill] sm:$0xff] }
 0x621   : > { %v4211_v36 = vpop.f32.mrf.mxu2  ;;  %v4124_v11 = vpop.f32.mrf.mxu1  ;;  %4643 = vmatpush.bf16.msra.mxu3 %v10555_v62  ;;  %v11670_v9 = vld [vmem:[#allocation5 + $0x274] sm:$0xf0]  ;;  %v15124_v62 = vld [vmem:[#allocation28_spill] sm:$0xff] }
 0x622   : > { %v4212_v40 = vadd.f32 %v4211_v36, %v4123_v10  ;;  %v13460_v53 = vpack.c.bf16 %v5367_v4, %v5359_v61  ;;  %v10043_v20 = vor.u32 %v11670_v9, %v10042_v58 }
 0x623   : > { %v4300_v28 = vpop.f32.mrf.mxu3  ;;  %v4035_v16 = vpop.f32.mrf.mxu0 }
 0x624   : > { %15121 = vst [vmem:[#allocation121_spill] sm:$0xff] %v13460_v53  ;;  %v4036_v5 = vadd.f32 %v4035_v16, %v13437_v59  ;;  %v4301_v38 = vadd.f32 %v4300_v28, %v4212_v40  ;;  %4465 = vmatpush.bf16.msra.mxu1 %v10043_v20 }
 0x626   : > { %v4125_v7 = vadd.f32 %v4124_v11, %v4036_v5  ;;  %v5119_v61 = vmul.f32 0.2, %v4301_v38  ;;  %v15125_v5 = vld [vmem:[#allocation29_spill] sm:$0xff] }
 0x628   : > { %v5375_v11 = vmax.f32 %v4301_v38, %v5119_v61 }
 0x629   : > { %v4213_v37 = vpop.f32.mrf.mxu2  ;;  %v4127_v29 = vpop.f32.mrf.mxu1 }
 0x62a   : > { %v4214_v8 = vadd.f32 %v4213_v37, %v4125_v7 }
 0x62b   : > { %v4302_v10 = vpop.f32.mrf.mxu3  ;;  %v4038_v36 = vpop.f32.mrf.mxu0 }
 0x62c   : > { %v4039_v43 = vadd.f32 %v4038_v36, %v13437_v59  ;;  %v4303_v4 = vadd.f32 %v4302_v10, %v4214_v8  ;;  %4166 = vmatmul.bf16.gmra.mxu1 %v15123_v41 }
 0x62e   : > { %v4128_v39 = vadd.f32 %v4127_v29, %v4039_v43  ;;  %4077 = vmatmul.bf16.gmra.mxu0 %v15122_v52  ;;  %v5127_v18 = vmul.f32 0.2, %v4303_v4  ;;  %4255 = vmatmul.bf16.gmra.mxu2 %v15124_v62 }
 0x630   : > { %4344 = vmatmul.bf16.gmra.mxu3 %v15125_v5  ;;  %v5383_v40 = vmax.f32 %v4303_v4, %v5127_v18 }
 0x631   : > { %v4216_v28 = vpop.f32.mrf.mxu2  ;;  %v4129_v37 = vpop.f32.mrf.mxu1 }
 0x632   : > { %v4217_v16 = vadd.f32 %v4216_v28, %v4128_v39  ;;  %v13468_v9 = vpack.c.bf16 %v5383_v40, %v5375_v11  ;;  %v15127_v39 = vld [vmem:[#allocation31_spill] sm:$0xff]  ;;  %v15128_v11 = vld [vmem:[#allocation32_spill] sm:$0xff]  ;;  %v15129_v40 = vld [vmem:[#allocation33_spill] sm:$0xff] }
 0x633   : > { %v4305_v7 = vpop.f32.mrf.mxu3  ;;  %v4040_v58 = vpop.f32.mrf.mxu0  ;;  %v15130_v28 = vld [vmem:[#allocation34_spill] sm:$0xff] }
 0x634   : > { %15126 = vst [vmem:[#allocation122_spill] sm:$0xff] %v13468_v9  ;;  %v4041_v8 = vadd.f32 %v4040_v58, %v13437_v59  ;;  %v4306_v20 = vadd.f32 %v4305_v7, %v4217_v16  ;;  %v10266_v58 = vld [vmem:[#allocation5 + $0x418] sm:$0xf] }
 0x635   : > { %v10522_v9 = vld [vmem:[#allocation5 + $0x618] sm:$0xf] }
 0x636   : > { %v4130_v10 = vadd.f32 %v4129_v37, %v4041_v8  ;;  %v5135_v38 = vmul.f32 0.2, %v4306_v20  ;;  %v11726_v8 = vld [vmem:[#allocation5 + $0x434] sm:$0xf0] }
 0x637   : > { %v9754_v37 = vld [vmem:[#allocation5 + $0x18] sm:$0xf] }
 0x638   : > { %v5391_v16 = vmax.f32 %v4306_v20, %v5135_v38 }
 0x639   : > { %v4218_v36 = vpop.f32.mrf.mxu2  ;;  %v4132_v5 = vpop.f32.mrf.mxu1 }
 0x63a   : > { %v4219_v43 = vadd.f32 %v4218_v36, %v4130_v10  ;;  %v11598_v36 = vld [vmem:[#allocation5 + $0x34] sm:$0xf0] }
 0x63b   : > { %v4307_v29 = vpop.f32.mrf.mxu3  ;;  %v4043_v53 = vpop.f32.mrf.mxu0 }
 0x63c   : > { %v4044_v62 = vadd.f32 %v4043_v53, %v13437_v59  ;;  %v4308_v61 = vadd.f32 %v4307_v29, %v4219_v43  ;;  %4171 = vmatmul.bf16.gmra.mxu1 %v15128_v11  ;;  %v10267_v53 = vor.u32 %v11726_v8, %v10266_v58  ;;  %v11790_v43 = vld [vmem:[#allocation5 + $0x634] sm:$0xf0] }
 0x63d   : > { %v10523_v41 = vor.u32 %v11790_v43, %v10522_v9  ;;  %v15132_v43 = vld [vmem:[#allocation36_spill] sm:$0xff] }
 0x63e   : > { %v4133_v4 = vadd.f32 %v4132_v5, %v4044_v62  ;;  %4082 = vmatmul.bf16.gmra.mxu0 %v15127_v39  ;;  %v5143_v18 = vmul.f32 0.2, %v4308_v61  ;;  %4260 = vmatmul.bf16.gmra.mxu2 %v15129_v40  ;;  %v9755_v39 = vor.u32 %v11598_v36, %v9754_v37 }
 0x63f   : > { %4555 = vmatpush.bf16.msra.mxu2 %v10267_v53  ;;  %4644 = vmatpush.bf16.msra.mxu3 %v10523_v41  ;;  %v15134_v41 = vld [vmem:[#allocation38_spill] sm:$0xff] }
 0x640   : > { %4349 = vmatmul.bf16.gmra.mxu3 %v15130_v28  ;;  %v5399_v7 = vmax.f32 %v4308_v61, %v5143_v18  ;;  %4377 = vmatpush.bf16.msra.mxu0 %v9755_v39  ;;  %v10010_v61 = vld [vmem:[#allocation5 + $0x218] sm:$0xf] }
 0x641   : > { %v4221_v10 = vpop.f32.mrf.mxu2  ;;  %v4134_v28 = vpop.f32.mrf.mxu1  ;;  %v11662_v18 = vld [vmem:[#allocation5 + $0x234] sm:$0xf0] }
 0x642   : > { %v4222_v62 = vadd.f32 %v4221_v10, %v4133_v4  ;;  %v13476_v11 = vpack.c.bf16 %v5399_v7, %v5391_v16  ;;  %v10011_v8 = vor.u32 %v11662_v18, %v10010_v61  ;;  %v15133_v39 = vld [vmem:[#allocation37_spill] sm:$0xff] }
 0x643   : > { %v4310_v5 = vpop.f32.mrf.mxu3  ;;  %v4045_v29 = vpop.f32.mrf.mxu0 }
 0x644   : > { %15131 = vst [vmem:[#allocation123_spill] sm:$0xff] %v13476_v11  ;;  %v4046_v40 = vadd.f32 %v4045_v29, %v13437_v59  ;;  %v4311_v20 = vadd.f32 %v4310_v5, %v4222_v62  ;;  %4466 = vmatpush.bf16.msra.mxu1 %v10011_v8 }
 0x646   : > { %v4135_v38 = vadd.f32 %v4134_v28, %v4046_v40  ;;  %v5151_v16 = vmul.f32 0.2, %v4311_v20  ;;  %v15135_v40 = vld [vmem:[#allocation39_spill] sm:$0xff] }
 0x648   : > { %v5407_v28 = vmax.f32 %v4311_v20, %v5151_v16 }
 0x649   : > { %v4223_v58 = vpop.f32.mrf.mxu2  ;;  %v4137_v9 = vpop.f32.mrf.mxu1 }
 0x64a   : > { %v4224_v52 = vadd.f32 %v4223_v58, %v4135_v38 }
 0x64b   : > { %v4312_v4 = vpop.f32.mrf.mxu3  ;;  %v4048_v10 = vpop.f32.mrf.mxu0 }
 0x64c   : > { %v4049_v37 = vadd.f32 %v4048_v10, %v13437_v59  ;;  %v4313_v7 = vadd.f32 %v4312_v4, %v4224_v52  ;;  %4176 = vmatmul.bf16.gmra.mxu1 %v15133_v39 }
 0x64e   : > { %v4138_v36 = vadd.f32 %v4137_v9, %v4049_v37  ;;  %4087 = vmatmul.bf16.gmra.mxu0 %v15132_v43  ;;  %v5159_v53 = vmul.f32 0.2, %v4313_v7  ;;  %4265 = vmatmul.bf16.gmra.mxu2 %v15134_v41 }
 0x650   : > { %4354 = vmatmul.bf16.gmra.mxu3 %v15135_v40  ;;  %v5415_v62 = vmax.f32 %v4313_v7, %v5159_v53 }
 0x651   : > { %v4226_v5 = vpop.f32.mrf.mxu2  ;;  %v4139_v58 = vpop.f32.mrf.mxu1 }
 0x652   : > { %v4227_v29 = vadd.f32 %v4226_v5, %v4138_v36  ;;  %v13484_v18 = vpack.c.bf16 %v5415_v62, %v5407_v28  ;;  %v15137_v36 = vld [vmem:[#allocation41_spill] sm:$0xff]  ;;  %v15138_v28 = vld [vmem:[#allocation42_spill] sm:$0xff]  ;;  %v15139_v62 = vld [vmem:[#allocation43_spill] sm:$0xff] }
 0x653   : > { %v4315_v38 = vpop.f32.mrf.mxu3  ;;  %v4050_v61 = vpop.f32.mrf.mxu0  ;;  %v15140_v5 = vld [vmem:[#allocation44_spill] sm:$0xff] }
 0x654   : > { %15136 = vst [vmem:[#allocation124_spill] sm:$0xff] %v13484_v18  ;;  %v4051_v52 = vadd.f32 %v4050_v61, %v13437_v59  ;;  %v4316_v8 = vadd.f32 %v4315_v38, %v4227_v29  ;;  %v11778_v61 = vld [vmem:[#allocation5 + $0x5dc] sm:$0xf] }
 0x655   : > { %v11842_v18 = vld [vmem:[#allocation5 + $0x7dc] sm:$0xf] }
 0x656   : > { %v4140_v4 = vadd.f32 %v4139_v58, %v4051_v52  ;;  %v5167_v20 = vmul.f32 0.2, %v4316_v8  ;;  %v10492_v52 = vld [vmem:[#allocation5 + $0x5f8] sm:$0xf0] }
 0x657   : > { %v11650_v58 = vld [vmem:[#allocation5 + $0x1dc] sm:$0xf] }
 0x658   : > { %v5423_v29 = vmax.f32 %v4316_v8, %v5167_v20 }
 0x659   : > { %v4228_v10 = vpop.f32.mrf.mxu2  ;;  %v4142_v40 = vpop.f32.mrf.mxu1 }
 0x65a   : > { %v4229_v37 = vadd.f32 %v4228_v10, %v4140_v4  ;;  %v9980_v10 = vld [vmem:[#allocation5 + $0x1f8] sm:$0xf0] }
 0x65b   : > { %v4317_v9 = vpop.f32.mrf.mxu3  ;;  %v4053_v11 = vpop.f32.mrf.mxu0 }
 0x65c   : > { %v4054_v41 = vadd.f32 %v4053_v11, %v13437_v59  ;;  %v4318_v16 = vadd.f32 %v4317_v9, %v4229_v37  ;;  %4181 = vmatmul.bf16.gmra.mxu1 %v15138_v28  ;;  %v10495_v11 = vor.u32 %v11778_v61, %v10492_v52  ;;  %v10748_v37 = vld [vmem:[#allocation5 + $0x7f8] sm:$0xf0] }
 0x65d   : > { %v10751_v39 = vor.u32 %v11842_v18, %v10748_v37 }
 0x65e   : > { %v4143_v7 = vadd.f32 %v4142_v40, %v4054_v41  ;;  %4092 = vmatmul.bf16.gmra.mxu0 %v15137_v36  ;;  %v5175_v53 = vmul.f32 0.2, %v4318_v16  ;;  %4270 = vmatmul.bf16.gmra.mxu2 %v15139_v62  ;;  %v9983_v36 = vor.u32 %v11650_v58, %v9980_v10 }
 0x65f   : > { %4904 = vmatpush.bf16.msrb.mxu2 %v10495_v11  ;;  %4993 = vmatpush.bf16.msrb.mxu3 %v10751_v39 }
 0x660   : > { %4359 = vmatmul.bf16.gmra.mxu3 %v15140_v5  ;;  %v5431_v38 = vmax.f32 %v4318_v16, %v5175_v53  ;;  %4726 = vmatpush.bf16.msrb.mxu0 %v9983_v36  ;;  %v11714_v16 = vld [vmem:[#allocation5 + $0x3dc] sm:$0xf] }
 0x661   : > { %v4231_v4 = vpop.f32.mrf.mxu2  ;;  %v4144_v5 = vpop.f32.mrf.mxu1  ;;  %v10236_v53 = vld [vmem:[#allocation5 + $0x3f8] sm:$0xf0] }
 0x662   : > { %v4232_v41 = vadd.f32 %v4231_v4, %v4143_v7  ;;  %v13492_v28 = vpack.c.bf16 %v5431_v38, %v5423_v29  ;;  %v10239_v52 = vor.u32 %v11714_v16, %v10236_v53 }
 0x663   : > { %v4320_v40 = vpop.f32.mrf.mxu3  ;;  %v4055_v9 = vpop.f32.mrf.mxu0 }
 0x664   : > { %15141 = vst [vmem:[#allocation125_spill] sm:$0xff] %v13492_v28  ;;  %v4056_v62 = vadd.f32 %v4055_v9, %v13437_v59  ;;  %v4321_v8 = vadd.f32 %v4320_v40, %v4232_v41  ;;  %4815 = vmatpush.bf16.msrb.mxu1 %v10239_v52 }
 0x666   : > { %v4145_v20 = vadd.f32 %v4144_v5, %v4056_v62  ;;  %v5183_v29 = vmul.f32 0.2, %v4321_v8 }
 0x668   : > { %v5439_v39 = vmax.f32 %v4321_v8, %v5183_v29 }
 0x669   : > { %v4233_v61 = vpop.f32.mrf.mxu2  ;;  %v4147_v18 = vpop.f32.mrf.mxu1 }
 0x66a   : > { %v4234_v43 = vadd.f32 %v4233_v61, %v4145_v20 }
 0x66b   : > { %v4322_v7 = vpop.f32.mrf.mxu3  ;;  %v4058_v4 = vpop.f32.mrf.mxu0 }
 0x66c   : > { %v4059_v58 = vadd.f32 %v4058_v4, %v13437_v59  ;;  %v4323_v38 = vadd.f32 %v4322_v7, %v4234_v43  ;;  %4186 = vmatmul.bf16.gmra.mxu1 %v12839_v6 }
 0x66e   : > { %v4148_v10 = vadd.f32 %v4147_v18, %v4059_v58  ;;  %4097 = vmatmul.bf16.gmra.mxu0 %v12837_v17  ;;  %v5191_v11 = vmul.f32 0.2, %v4323_v38  ;;  %4275 = vmatmul.bf16.gmra.mxu2 %v12841_v30 }
 0x670   : > { %4364 = vmatmul.bf16.gmra.mxu3 %v12844_v31  ;;  %v5447_v36 = vmax.f32 %v4323_v38, %v5191_v11  ;;  %v15144_v11 = vld [vmem:[#allocation16_spill] sm:$0xff] }
 0x671   : > { %v4236_v62 = vpop.f32.mrf.mxu2  ;;  %v4149_v9 = vpop.f32.mrf.mxu1 }
 0x672   : > { %v4237_v5 = vadd.f32 %v4236_v62, %v4148_v10  ;;  %v13500_v40 = vpack.c.bf16 %v5447_v36, %v5439_v39  ;;  %v15143_v10 = vld [vmem:[#allocation15_spill] sm:$0xff]  ;;  %v11770_v62 = vld [vmem:[#allocation5 + $0x59c] sm:$0xf] }
 0x673   : > { %v4325_v37 = vpop.f32.mrf.mxu3  ;;  %v4060_v41 = vpop.f32.mrf.mxu0 }
 0x674   : > { %15142 = vst [vmem:[#allocation126_spill] sm:$0xff] %v13500_v40  ;;  %v4061_v43 = vadd.f32 %v4060_v41, %v13437_v59  ;;  %v4326_v20 = vadd.f32 %v4325_v37, %v4237_v5  ;;  %v10460_v5 = vld [vmem:[#allocation5 + $0x5b8] sm:$0xf0] }
 0x675   : > { %v11642_v37 = vld [vmem:[#allocation5 + $0x19c] sm:$0xf] }
 0x676   : > { %v4150_v16 = vadd.f32 %v4149_v9, %v4061_v43  ;;  %v5199_v8 = vmul.f32 0.2, %v4326_v20  ;;  %v10463_v43 = vor.u32 %v11770_v62, %v10460_v5  ;;  %v9948_v9 = vld [vmem:[#allocation5 + $0x1b8] sm:$0xf0] }
 0x678   : > { %v5455_v39 = vmax.f32 %v4326_v20, %v5199_v8  ;;  %4905 = vmatpush.bf16.msrb.mxu2 %v10463_v43 }
 0x679   : > { %v4238_v53 = vpop.f32.mrf.mxu2  ;;  %v4152_v58 = vpop.f32.mrf.mxu1 }
 0x67a   : > { %v4239_v61 = vadd.f32 %v4238_v53, %v4150_v16  ;;  %v11834_v16 = vld [vmem:[#allocation5 + $0x79c] sm:$0xf] }
 0x67b   : > { %v4327_v52 = vpop.f32.mrf.mxu3  ;;  %v4063_v7 = vpop.f32.mrf.mxu0  ;;  %v10716_v53 = vld [vmem:[#allocation5 + $0x7b8] sm:$0xf0] }
 0x67c   : > { %v4064_v4 = vadd.f32 %v4063_v7, %v13437_v59  ;;  %v4328_v18 = vadd.f32 %v4327_v52, %v4239_v61  ;;  %4467 = vmatmul.bf16.vlgmr.msra.gmra.mxu1 %v12511_v51 }
 0x67e   : > { %v4153_v29 = vadd.f32 %v4152_v58, %v4064_v4  ;;  %4378 = vmatmul.bf16.vlgmr.msra.gmra.mxu0 %v12509_v47  ;;  %v5207_v38 = vmul.f32 0.2, %v4328_v18  ;;  %4556 = vmatmul.bf16.vlgmr.msra.gmra.mxu2 %v15143_v10  ;;  %v9951_v4 = vor.u32 %v11642_v37, %v9948_v9  ;;  %v10719_v58 = vor.u32 %v11834_v16, %v10716_v53 }
 0x680   : > { %4645 = vmatmul.bf16.vlgmr.msra.gmra.mxu3 %v15144_v11  ;;  %v5463_v36 = vmax.f32 %v4328_v18, %v5207_v38  ;;  %4727 = vmatpush.bf16.msrb.mxu0 %v9951_v4  ;;  %v11706_v18 = vld [vmem:[#allocation5 + $0x39c] sm:$0xf] }
 0x681   : > { %v4241_v41 = vpop.f32.mrf.mxu2  ;;  %v4154_v11 = vpop.f32.mrf.mxu1  ;;  %4994 = vmatpush.bf16.msrb.mxu3 %v10719_v58  ;;  %v10204_v38 = vld [vmem:[#allocation5 + $0x3b8] sm:$0xf0] }
 0x682   : > { %v4242_v61 = vadd.f32 %v4241_v41, %v4153_v29  ;;  %v13508_v40 = vpack.c.bf16 %v5463_v36, %v5455_v39  ;;  %v10207_v5 = vor.u32 %v11706_v18, %v10204_v38 }
 0x683   : > { %v4330_v52 = vpop.f32.mrf.mxu3  ;;  %v4065_v7 = vpop.f32.mrf.mxu0 }
 0x684   : > { %15145 = vst [vmem:[#allocation127_spill] sm:$0xff] %v13508_v40  ;;  %v4066_v28 = vadd.f32 %v4065_v7, %v13437_v59  ;;  %v4331_v20 = vadd.f32 %v4330_v52, %v4242_v61  ;;  %4816 = vmatpush.bf16.msrb.mxu1 %v10207_v5 }
 0x686   : > { %v4155_v8 = vadd.f32 %v4154_v11, %v4066_v28  ;;  %v5215_v39 = vmul.f32 0.2, %v4331_v20 }
 0x688   : > { %v5471_v28 = vmax.f32 %v4331_v20, %v5215_v39 }
 0x689   : > { %v4243_v62 = vpop.f32.mrf.mxu2  ;;  %v4157_v9 = vpop.f32.mrf.mxu1 }
 0x68a   : > { %v4244_v10 = vadd.f32 %v4243_v62, %v4155_v8 }
 0x68b   : > { %v4332_v29 = vpop.f32.mrf.mxu3  ;;  %v4068_v41 = vpop.f32.mrf.mxu0 }
 0x68c   : > { %v4069_v37 = vadd.f32 %v4068_v41, %v13437_v59  ;;  %v4333_v36 = vadd.f32 %v4332_v29, %v4244_v10  ;;  %4472 = vmatmul.bf16.gmra.mxu1 %v12531_v13 }
 0x68e   : > { %v4158_v16 = vadd.f32 %v4157_v9, %v4069_v37  ;;  %4383 = vmatmul.bf16.gmra.mxu0 %v12529_v12  ;;  %v5223_v43 = vmul.f32 0.2, %v4333_v36  ;;  %4561 = vmatmul.bf16.gmra.mxu2 %v12533_v14 }
 0x690   : > { %4650 = vmatmul.bf16.gmra.mxu3 %v12535_v15  ;;  %v5479_v11 = vmax.f32 %v4333_v36, %v5223_v43 }
 0x691   : > { %v4246_v53 = vpop.f32.mrf.mxu2  ;;  %v4159_v58 = vpop.f32.mrf.mxu1 }
 0x692   : > { %v4247_v61 = vadd.f32 %v4246_v53, %v4158_v16  ;;  %v13516_v4 = vpack.c.bf16 %v5479_v11, %v5471_v28  ;;  %v11762_v28 = vld [vmem:[#allocation5 + $0x55c] sm:$0xf] }
 0x693   : > { %v4335_v52 = vpop.f32.mrf.mxu3  ;;  %v4070_v7 = vpop.f32.mrf.mxu0  ;;  %v10428_v11 = vld [vmem:[#allocation5 + $0x578] sm:$0xf0] }
 0x694   : > { %15146 = vst [vmem:[#allocation128_spill] sm:$0xff] %v13516_v4  ;;  %v4071_v10 = vadd.f32 %v4070_v7, %v13437_v59  ;;  %v4336_v8 = vadd.f32 %v4335_v52, %v4247_v61  ;;  %v11634_v53 = vld [vmem:[#allocation5 + $0x15c] sm:$0xf]  ;;  %v10431_v52 = vor.u32 %v11762_v28, %v10428_v11 }
 0x695   : > { %v9916_v7 = vld [vmem:[#allocation5 + $0x178] sm:$0xf0] }
 0x696   : > { %v4160_v18 = vadd.f32 %v4159_v58, %v4071_v10  ;;  %v5231_v20 = vmul.f32 0.2, %v4336_v8  ;;  %v11826_v10 = vld [vmem:[#allocation5 + $0x75c] sm:$0xf]  ;;  %4906 = vmatpush.bf16.msrb.mxu2 %v10431_v52 }
 0x697   : > { %v10684_v58 = vld [vmem:[#allocation5 + $0x778] sm:$0xf0] }
 0x698   : > { %v5487_v16 = vmax.f32 %v4336_v8, %v5231_v20 }
 0x699   : > { %v4248_v38 = vpop.f32.mrf.mxu2  ;;  %v4162_v37 = vpop.f32.mrf.mxu1 }
 0x69a   : > { %v4249_v62 = vadd.f32 %v4248_v38, %v4160_v18 }
 0x69b   : > { %v4337_v5 = vpop.f32.mrf.mxu3  ;;  %v4073_v29 = vpop.f32.mrf.mxu0 }
 0x69c   : > { %v4074_v41 = vadd.f32 %v4073_v29, %v13437_v59  ;;  %v4338_v9 = vadd.f32 %v4337_v5, %v4249_v62  ;;  %4477 = vmatmul.bf16.gmra.mxu1 %v12551_v25  ;;  %v9919_v5 = vor.u32 %v11634_v53, %v9916_v7  ;;  %v10687_v29 = vor.u32 %v11826_v10, %v10684_v58 }
 0x69e   : > { %v4163_v39 = vadd.f32 %v4162_v37, %v4074_v41  ;;  %4388 = vmatmul.bf16.gmra.mxu0 %v12549_v24  ;;  %v5239_v36 = vmul.f32 0.2, %v4338_v9  ;;  %4566 = vmatmul.bf16.gmra.mxu2 %v12553_v26 }
 0x69f   : > { %4728 = vmatpush.bf16.msrb.mxu0 %v9919_v5  ;;  %4995 = vmatpush.bf16.msrb.mxu3 %v10687_v29 }
 0x6a0   : > { %4655 = vmatmul.bf16.gmra.mxu3 %v12555_v27  ;;  %v5495_v43 = vmax.f32 %v4338_v9, %v5239_v36  ;;  %v11698_v9 = vld [vmem:[#allocation5 + $0x35c] sm:$0xf] }
 0x6a1   : > { %v4251_v61 = vpop.f32.mrf.mxu2  ;;  %v4164_v4 = vpop.f32.mrf.mxu1  ;;  %v10172_v36 = vld [vmem:[#allocation5 + $0x378] sm:$0xf0] }
 0x6a2   : > { %v4252_v18 = vadd.f32 %v4251_v61, %v4163_v39  ;;  %v13524_v41 = vpack.c.bf16 %v5495_v43, %v5487_v16  ;;  %v10175_v11 = vor.u32 %v11698_v9, %v10172_v36 }
 0x6a3   : > { %v4340_v38 = vpop.f32.mrf.mxu3  ;;  %v4075_v62 = vpop.f32.mrf.mxu0 }
 0x6a4   : > { %15147 = vst [vmem:[#allocation129_spill] sm:$0xff] %v13524_v41  ;;  %v4076_v37 = vadd.f32 %v4075_v62, %v13437_v59  ;;  %v4341_v8 = vadd.f32 %v4340_v38, %v4252_v18  ;;  %4817 = vmatpush.bf16.msrb.mxu1 %v10175_v11 }
 0x6a6   : > { %v4165_v20 = vadd.f32 %v4164_v4, %v4076_v37  ;;  %v5247_v16 = vmul.f32 0.2, %v4341_v8 }
 0x6a8   : > { %v5503_v4 = vmax.f32 %v4341_v8, %v5247_v16 }
 0x6a9   : > { %v4253_v28 = vpop.f32.mrf.mxu2  ;;  %v4167_v7 = vpop.f32.mrf.mxu1 }
 0x6aa   : > { %v4254_v40 = vadd.f32 %v4253_v28, %v4165_v20 }
 0x6ab   : > { %v4342_v39 = vpop.f32.mrf.mxu3  ;;  %v4078_v61 = vpop.f32.mrf.mxu0 }
 0x6ac   : > { %v4079_v53 = vadd.f32 %v4078_v61, %v13437_v59  ;;  %v4343_v43 = vadd.f32 %v4342_v39, %v4254_v40  ;;  %4482 = vmatmul.bf16.gmra.mxu1 %v12571_v50 }
 0x6ae   : > { %v4168_v10 = vadd.f32 %v4167_v7, %v4079_v53  ;;  %4393 = vmatmul.bf16.gmra.mxu0 %v12569_v49  ;;  %v5255_v52 = vmul.f32 0.2, %v4343_v43  ;;  %4571 = vmatmul.bf16.gmra.mxu2 %v12573_v54 }
 0x6b0   : > { %4660 = vmatmul.bf16.gmra.mxu3 %v12575_v55  ;;  %v5511_v58 = vmax.f32 %v4343_v43, %v5255_v52 }
 0x6b1   : > { %v4256_v18 = vpop.f32.mrf.mxu2  ;;  %v4169_v37 = vpop.f32.mrf.mxu1 }
 0x6b2   : > { %v4257_v38 = vadd.f32 %v4256_v18, %v4168_v10  ;;  %v13532_v29 = vpack.c.bf16 %v5511_v58, %v5503_v4  ;;  %v11754_v4 = vld [vmem:[#allocation5 + $0x51c] sm:$0xf] }
 0x6b3   : > { %v4345_v62 = vpop.f32.mrf.mxu3  ;;  %v4080_v5 = vpop.f32.mrf.mxu0  ;;  %v10396_v58 = vld [vmem:[#allocation5 + $0x538] sm:$0xf0] }
 0x6b4   : > { %15148 = vst [vmem:[#allocation130_spill] sm:$0xff] %v13532_v29  ;;  %v4081_v40 = vadd.f32 %v4080_v5, %v13437_v59  ;;  %v4346_v20 = vadd.f32 %v4345_v62, %v4257_v38  ;;  %v11626_v18 = vld [vmem:[#allocation5 + $0x11c] sm:$0xf]  ;;  %v10399_v62 = vor.u32 %v11754_v4, %v10396_v58 }
 0x6b5   : > { %v9884_v5 = vld [vmem:[#allocation5 + $0x138] sm:$0xf0] }
 0x6b6   : > { %v4170_v9 = vadd.f32 %v4169_v37, %v4081_v40  ;;  %v5263_v8 = vmul.f32 0.2, %v4346_v20  ;;  %v11818_v40 = vld [vmem:[#allocation5 + $0x71c] sm:$0xf]  ;;  %4907 = vmatpush.bf16.msrb.mxu2 %v10399_v62 }
 0x6b7   : > { %v10652_v37 = vld [vmem:[#allocation5 + $0x738] sm:$0xf0] }
 0x6b8   : > { %v5519_v10 = vmax.f32 %v4346_v20, %v5263_v8 }
 0x6b9   : > { %v4258_v36 = vpop.f32.mrf.mxu2  ;;  %v4172_v53 = vpop.f32.mrf.mxu1 }
 0x6ba   : > { %v4259_v28 = vadd.f32 %v4258_v36, %v4170_v9 }
 0x6bb   : > { %v4347_v11 = vpop.f32.mrf.mxu3  ;;  %v4083_v39 = vpop.f32.mrf.mxu0 }
 0x6bc   : > { %v4084_v61 = vadd.f32 %v4083_v39, %v13437_v59  ;;  %v4348_v7 = vadd.f32 %v4347_v11, %v4259_v28  ;;  %4487 = vmatmul.bf16.gmra.mxu1 %v12591_v1  ;;  %v9887_v11 = vor.u32 %v11626_v18, %v9884_v5  ;;  %v10655_v39 = vor.u32 %v11818_v40, %v10652_v37 }
 0x6be   : > { %v4173_v16 = vadd.f32 %v4172_v53, %v4084_v61  ;;  %4398 = vmatmul.bf16.gmra.mxu0 %v12589_v0  ;;  %v5271_v43 = vmul.f32 0.2, %v4348_v7  ;;  %4576 = vmatmul.bf16.gmra.mxu2 %v12593_v2 }
 0x6bf   : > { %4729 = vmatpush.bf16.msrb.mxu0 %v9887_v11  ;;  %4996 = vmatpush.bf16.msrb.mxu3 %v10655_v39 }
 0x6c0   : > { %4665 = vmatmul.bf16.gmra.mxu3 %v12595_v3  ;;  %v5527_v52 = vmax.f32 %v4348_v7, %v5271_v43  ;;  %v11690_v7 = vld [vmem:[#allocation5 + $0x31c] sm:$0xf] }
 0x6c1   : > { %v4261_v38 = vpop.f32.mrf.mxu2  ;;  %v4174_v29 = vpop.f32.mrf.mxu1  ;;  %v10140_v43 = vld [vmem:[#allocation5 + $0x338] sm:$0xf0] }
 0x6c2   : > { %v4262_v9 = vadd.f32 %v4261_v38, %v4173_v16  ;;  %v13540_v61 = vpack.c.bf16 %v5527_v52, %v5519_v10  ;;  %v10143_v58 = vor.u32 %v11690_v7, %v10140_v43 }
 0x6c3   : > { %v4350_v36 = vpop.f32.mrf.mxu3  ;;  %v4085_v28 = vpop.f32.mrf.mxu0 }
 0x6c4   : > { %15149 = vst [vmem:[#allocation131_spill] sm:$0xff] %v13540_v61  ;;  %v4086_v53 = vadd.f32 %v4085_v28, %v13437_v59  ;;  %v4351_v20 = vadd.f32 %v4350_v36, %v4262_v9  ;;  %4818 = vmatpush.bf16.msrb.mxu1 %v10143_v58 }
 0x6c6   : > { %v4175_v8 = vadd.f32 %v4174_v29, %v4086_v53  ;;  %v5279_v10 = vmul.f32 0.2, %v4351_v20 }
 0x6c8   : > { %v5535_v29 = vmax.f32 %v4351_v20, %v5279_v10 }
 0x6c9   : > { %v4263_v4 = vpop.f32.mrf.mxu2  ;;  %v4177_v5 = vpop.f32.mrf.mxu1 }
 0x6ca   : > { %v4264_v41 = vadd.f32 %v4263_v4, %v4175_v8 }
 0x6cb   : > { %v4352_v16 = vpop.f32.mrf.mxu3  ;;  %v4088_v38 = vpop.f32.mrf.mxu0 }
 0x6cc   : > { %v4089_v18 = vadd.f32 %v4088_v38, %v13437_v59  ;;  %v4353_v52 = vadd.f32 %v4352_v16, %v4264_v41  ;;  %4492 = vmatmul.bf16.gmra.mxu1 %v12611_v33 }
 0x6ce   : > { %v4178_v40 = vadd.f32 %v4177_v5, %v4089_v18  ;;  %4403 = vmatmul.bf16.gmra.mxu0 %v12609_v32  ;;  %v5287_v62 = vmul.f32 0.2, %v4353_v52  ;;  %4581 = vmatmul.bf16.gmra.mxu2 %v12613_v34 }
 0x6d0   : > { %4670 = vmatmul.bf16.gmra.mxu3 %v12615_v35  ;;  %v5543_v37 = vmax.f32 %v4353_v52, %v5287_v62 }
 0x6d1   : > { %v4266_v9 = vpop.f32.mrf.mxu2  ;;  %v4179_v53 = vpop.f32.mrf.mxu1 }
 0x6d2   : > { %v4267_v36 = vadd.f32 %v4266_v9, %v4178_v40  ;;  %v13548_v39 = vpack.c.bf16 %v5543_v37, %v5535_v29  ;;  %v11746_v29 = vld [vmem:[#allocation5 + $0x4dc] sm:$0xf] }
 0x6d3   : > { %v4355_v28 = vpop.f32.mrf.mxu3  ;;  %v4090_v11 = vpop.f32.mrf.mxu0  ;;  %v10364_v37 = vld [vmem:[#allocation5 + $0x4f8] sm:$0xf0] }
 0x6d4   : > { %15150 = vst [vmem:[#allocation132_spill] sm:$0xff] %v13548_v39  ;;  %v4091_v41 = vadd.f32 %v4090_v11, %v13437_v59  ;;  %v4356_v8 = vadd.f32 %v4355_v28, %v4267_v36  ;;  %v11618_v9 = vld [vmem:[#allocation5 + $0xdc] sm:$0xf]  ;;  %v10367_v28 = vor.u32 %v11746_v29, %v10364_v37 }
 0x6d5   : > { %v9852_v11 = vld [vmem:[#allocation5 + $0xf8] sm:$0xf0] }
 0x6d6   : > { %v4180_v7 = vadd.f32 %v4179_v53, %v4091_v41  ;;  %v5295_v20 = vmul.f32 0.2, %v4356_v8  ;;  %v11810_v41 = vld [vmem:[#allocation5 + $0x6dc] sm:$0xf]  ;;  %4908 = vmatpush.bf16.msrb.mxu2 %v10367_v28 }
 0x6d7   : > { %v10620_v53 = vld [vmem:[#allocation5 + $0x6f8] sm:$0xf0] }
 0x6d8   : > { %v5551_v40 = vmax.f32 %v4356_v8, %v5295_v20 }
 0x6d9   : > { %v4268_v43 = vpop.f32.mrf.mxu2  ;;  %v4182_v18 = vpop.f32.mrf.mxu1 }
 0x6da   : > { %v4269_v4 = vadd.f32 %v4268_v43, %v4180_v7 }
 0x6db   : > { %v4357_v58 = vpop.f32.mrf.mxu3  ;;  %v4093_v16 = vpop.f32.mrf.mxu0 }
 0x6dc   : > { %v4094_v38 = vadd.f32 %v4093_v16, %v13437_v59  ;;  %v4358_v5 = vadd.f32 %v4357_v58, %v4269_v4  ;;  %4497 = vmatmul.bf16.gmra.mxu1 %v12631_v45  ;;  %v9855_v58 = vor.u32 %v11618_v9, %v9852_v11  ;;  %v10623_v16 = vor.u32 %v11810_v41, %v10620_v53 }
 0x6de   : > { %v4183_v10 = vadd.f32 %v4182_v18, %v4094_v38  ;;  %4408 = vmatmul.bf16.gmra.mxu0 %v12629_v44  ;;  %v5303_v52 = vmul.f32 0.2, %v4358_v5  ;;  %4586 = vmatmul.bf16.gmra.mxu2 %v12633_v46 }
 0x6df   : > { %4730 = vmatpush.bf16.msrb.mxu0 %v9855_v58  ;;  %4997 = vmatpush.bf16.msrb.mxu3 %v10623_v16 }
 0x6e0   : > { %4675 = vmatmul.bf16.gmra.mxu3 %v12635_v48  ;;  %v5559_v62 = vmax.f32 %v4358_v5, %v5303_v52  ;;  %v11682_v5 = vld [vmem:[#allocation5 + $0x2dc] sm:$0xf] }
 0x6e1   : > { %v4271_v36 = vpop.f32.mrf.mxu2  ;;  %v4184_v39 = vpop.f32.mrf.mxu1  ;;  %v10108_v52 = vld [vmem:[#allocation5 + $0x2f8] sm:$0xf0] }
 0x6e2   : > { %v4272_v7 = vadd.f32 %v4271_v36, %v4183_v10  ;;  %v13556_v38 = vpack.c.bf16 %v5559_v62, %v5551_v40  ;;  %v10111_v37 = vor.u32 %v11682_v5, %v10108_v52  ;;  %v12131_v52 = vld [vmem:[#allocation7] sm:$0xff] }
 0x6e3   : > { %v4360_v43 = vpop.f32.mrf.mxu3  ;;  %v4095_v4 = vpop.f32.mrf.mxu0 }
 0x6e4   : > { %15151 = vst [vmem:[#allocation133_spill] sm:$0xff] %v13556_v38  ;;  %v4096_v18 = vadd.f32 %v4095_v4, %v13437_v59  ;;  %v4361_v8 = vadd.f32 %v4360_v43, %v4272_v7  ;;  %4819 = vmatpush.bf16.msrb.mxu1 %v10111_v37 }
 0x6e6   : > { %v4185_v20 = vadd.f32 %v4184_v39, %v4096_v18  ;;  %v5311_v40 = vmul.f32 0.2, %v4361_v8 }
 0x6e8   : > { %v5567_v39 = vmax.f32 %v4361_v8, %v5311_v40 }
 0x6e9   : > { %v4273_v29 = vpop.f32.mrf.mxu2  ;;  %v4187_v11 = vpop.f32.mrf.mxu1 }
 0x6ea   : > { %v4274_v61 = vadd.f32 %v4273_v29, %v4185_v20  ;;  %v13567_v29 = vperm.slane %v12131_v52, 6 }
 0x6eb   : > { %v4362_v10 = vpop.f32.mrf.mxu3  ;;  %v4098_v36 = vpop.f32.mrf.mxu0 }
 0x6ec   : > { %v4099_v9 = vadd.f32 %v4098_v36, %v13437_v59  ;;  %v4363_v62 = vadd.f32 %v4362_v10, %v4274_v61  ;;  %4502 = vmatmul.bf16.gmra.mxu1 %v12651_v21 }
 0x6ee   : > { %v4188_v41 = vadd.f32 %v4187_v11, %v4099_v9  ;;  %4413 = vmatmul.bf16.gmra.mxu0 %v12649_v19  ;;  %v5319_v28 = vmul.f32 0.2, %v4363_v62  ;;  %4591 = vmatmul.bf16.gmra.mxu2 %v12653_v22 }
 0x6f0   : > { %4680 = vmatmul.bf16.gmra.mxu3 %v12655_v23  ;;  %v5575_v53 = vmax.f32 %v4363_v62, %v5319_v28 }
 0x6f1   : > { %v4276_v7 = vpop.f32.mrf.mxu2  ;;  %v4189_v18 = vpop.f32.mrf.mxu1 }
 0x6f2   : > { %v4277_v43 = vadd.f32 %v4276_v7, %v4188_v41  ;;  %v13564_v16 = vpack.c.bf16 %v5575_v53, %v5567_v39  ;;  %v11738_v53 = vld [vmem:[#allocation5 + $0x49c] sm:$0xf] }
 0x6f3   : > { %v4365_v4 = vpop.f32.mrf.mxu3  ;;  %v4100_v58 = vpop.f32.mrf.mxu0  ;;  %v10332_v7 = vld [vmem:[#allocation5 + $0x4b8] sm:$0xf0] }
 0x6f4   : > { %15152 = vst [vmem:[#allocation134_spill] sm:$0xff] %v13564_v16  ;;  %v4101_v61 = vadd.f32 %v4100_v58, %v13437_v59  ;;  %v4366_v20 = vadd.f32 %v4365_v4, %v4277_v43  ;;  %v11610_v43 = vld [vmem:[#allocation5 + $0x9c] sm:$0xf]  ;;  %v10335_v58 = vor.u32 %v11738_v53, %v10332_v7 }
 0x6f6   : > { %v4190_v5 = vadd.f32 %v4189_v18, %v4101_v61  ;;  %v5327_v40 = vmul.f32 0.2, %v4366_v20  ;;  %v9820_v61 = vld [vmem:[#allocation5 + $0xb8] sm:$0xf0]  ;;  %4909 = vmatpush.bf16.msrb.mxu2 %v10335_v58 }
 0x6f7   : > { %v11802_v18 = vld [vmem:[#allocation5 + $0x69c] sm:$0xf] }
 0x6f8   : > { %v5583_v59 = vmax.f32 %v4366_v20, %v5327_v40 }
 0x6f9   : > { %v4278_v37 = vpop.f32.mrf.mxu2  ;;  %v4468_v11 = vpop.f32.mrf.mxu1 }
 0x6fa   : > { %v4279_v10 = vadd.f32 %v4278_v37, %v4190_v5  ;;  %v10588_v5 = vld [vmem:[#allocation5 + $0x6b8] sm:$0xf0] }
 0x6fb   : > { %v4367_v36 = vpop.f32.mrf.mxu3  ;;  %v4379_v9 = vpop.f32.mrf.mxu0 }
 0x6fc   : > { %v4380_v8 = vadd.f32 %v4379_v9, %v13567_v29  ;;  %v4368_v62 = vadd.f32 %v4367_v36, %v4279_v10  ;;  %4507 = vmatmul.bf16.gmra.mxu1 %v12673_v56  ;;  %v9823_v36 = vor.u32 %v11610_v43, %v9820_v61  ;;  %v10591_v9 = vor.u32 %v11802_v18, %v10588_v5  ;;  %v15154_v5 = vld [vmem:[#allocation17_spill] sm:$0xff] }
 0x6fe   : > { %v4469_v41 = vadd.f32 %v4468_v11, %v4380_v8  ;;  %4418 = vmatmul.bf16.gmra.mxu0 %v12671_v42  ;;  %v5335_v28 = vmul.f32 0.2, %v4368_v62  ;;  %4596 = vmatmul.bf16.gmra.mxu2 %v12675_v57 }
 0x6ff   : > { %4731 = vmatpush.bf16.msrb.mxu0 %v9823_v36  ;;  %4998 = vmatpush.bf16.msrb.mxu3 %v10591_v9 }
 0x700   : > { %4685 = vmatmul.bf16.gmra.mxu3 %v12678_v60  ;;  %v5591_v39 = vmax.f32 %v4368_v62, %v5335_v28  ;;  %v11674_v62 = vld [vmem:[#allocation5 + $0x29c] sm:$0xf] }
 0x701   : > { %v4557_v4 = vpop.f32.mrf.mxu2  ;;  %v4470_v16 = vpop.f32.mrf.mxu1  ;;  %v10076_v28 = vld [vmem:[#allocation5 + $0x2b8] sm:$0xf0] }
 0x702   : > { %v4558_v52 = vadd.f32 %v4557_v4, %v4469_v41  ;;  %v13574_v8 = vpack.c.bf16 %v5591_v39, %v5583_v59  ;;  %v10079_v7 = vor.u32 %v11674_v62, %v10076_v28 }
 0x703   : > { %v4646_v37 = vpop.f32.mrf.mxu3  ;;  %v4381_v10 = vpop.f32.mrf.mxu0 }
 0x704   : > { %15153 = vst [vmem:[#allocation135_spill] sm:$0xff] %v13574_v8  ;;  %v4382_v11 = vadd.f32 %v4381_v10, %v13567_v29  ;;  %v4647_v20 = vadd.f32 %v4646_v37, %v4558_v52  ;;  %4820 = vmatpush.bf16.msrb.mxu1 %v10079_v7  ;;  %v15156_v52 = vld [vmem:[#allocation19_spill] sm:$0xff] }
 0x706   : > { %v4471_v40 = vadd.f32 %v4470_v16, %v4382_v11  ;;  %v5088_v59 = vmul.f32 0.2, %v4647_v20  ;;  %v15155_v16 = vld [vmem:[#allocation18_spill] sm:$0xff] }
 0x708   : > { %v5344_v37 = vmax.f32 %v4647_v20, %v5088_v59 }
 0x709   : > { %v4559_v53 = vpop.f32.mrf.mxu2  ;;  %v4473_v61 = vpop.f32.mrf.mxu1 }
 0x70a   : > { %v4560_v38 = vadd.f32 %v4559_v53, %v4471_v40 }
 0x70b   : > { %v4648_v41 = vpop.f32.mrf.mxu3  ;;  %v4384_v4 = vpop.f32.mrf.mxu0 }
 0x70c   : > { %v4385_v43 = vadd.f32 %v4384_v4, %v13567_v29  ;;  %v4649_v39 = vadd.f32 %v4648_v41, %v4560_v38  ;;  %4512 = vmatmul.bf16.gmra.mxu1 %v15154_v5 }
 0x70e   : > { %v4474_v18 = vadd.f32 %v4473_v61, %v4385_v43  ;;  %4423 = vmatmul.bf16.gmra.mxu0 %v12693_v63  ;;  %v5096_v58 = vmul.f32 0.2, %v4649_v39  ;;  %4601 = vmatmul.bf16.gmra.mxu2 %v15155_v16 }
 0x710   : > { %4690 = vmatmul.bf16.gmra.mxu3 %v15156_v52  ;;  %v5352_v10 = vmax.f32 %v4649_v39, %v5096_v58  ;;  %v15158_v58 = vld [vmem:[#allocation21_spill] sm:$0xff] }
 0x711   : > { %v4562_v36 = vpop.f32.mrf.mxu2  ;;  %v4475_v28 = vpop.f32.mrf.mxu1 }
 0x712   : > { %v13582_v9 = vpack.c.bf16 %v5352_v10, %v5344_v37  ;;  %v4563_v11 = vadd.f32 %v4562_v36, %v4474_v18  ;;  %v15159_v37 = vld [vmem:[#allocation22_spill] sm:$0xff]  ;;  %v15160_v10 = vld [vmem:[#allocation23_spill] sm:$0xff]  ;;  %v15161_v36 = vld [vmem:[#allocation24_spill] sm:$0xff] }
 0x713   : > { %v4651_v40 = vpop.f32.mrf.mxu3  ;;  %v4386_v62 = vpop.f32.mrf.mxu0 }
 0x714   : > { %15157 = vst [vmem:[#allocation136_spill] sm:$0xff] %v13582_v9  ;;  %v4387_v38 = vadd.f32 %v4386_v62, %v13567_v29  ;;  %v4652_v53 = vadd.f32 %v4651_v40, %v4563_v11  ;;  %v11730_v62 = vld [vmem:[#allocation5 + $0x45c] sm:$0xf] }
 0x715   : > { %v11794_v9 = vld [vmem:[#allocation5 + $0x65c] sm:$0xf] }
 0x716   : > { %v4476_v7 = vadd.f32 %v4475_v28, %v4387_v38  ;;  %v5104_v20 = vmul.f32 0.2, %v4652_v53  ;;  %v10300_v38 = vld [vmem:[#allocation5 + $0x478] sm:$0xf0] }
 0x717   : > { %v11602_v28 = vld [vmem:[#allocation5 + $0x5c] sm:$0xf] }
 0x718   : > { %v5360_v11 = vmax.f32 %v4652_v53, %v5104_v20 }
 0x719   : > { %v4564_v41 = vpop.f32.mrf.mxu2  ;;  %v4478_v52 = vpop.f32.mrf.mxu1 }
 0x71a   : > { %v4565_v4 = vadd.f32 %v4564_v41, %v4476_v7  ;;  %v10303_v41 = vor.u32 %v11730_v62, %v10300_v38 }
 0x71b   : > { %v4653_v43 = vpop.f32.mrf.mxu3  ;;  %v4389_v61 = vpop.f32.mrf.mxu0 }
 0x71c   : > { %v4390_v8 = vadd.f32 %v4389_v61, %v13567_v29  ;;  %v4654_v59 = vadd.f32 %v4653_v43, %v4565_v4  ;;  %4517 = vmatmul.bf16.gmra.mxu1 %v15159_v37  ;;  %v9788_v61 = vld [vmem:[#allocation5 + $0x78] sm:$0xf0]  ;;  %4910 = vmatpush.bf16.msrb.mxu2 %v10303_v41 }
 0x71d   : > { %v10556_v4 = vld [vmem:[#allocation5 + $0x678] sm:$0xf0] }
 0x71e   : > { %v4479_v39 = vadd.f32 %v4478_v52, %v4390_v8  ;;  %4428 = vmatmul.bf16.gmra.mxu0 %v15158_v58  ;;  %v5112_v18 = vmul.f32 0.2, %v4654_v59  ;;  %4606 = vmatmul.bf16.gmra.mxu2 %v15160_v10  ;;  %v9791_v58 = vor.u32 %v11602_v28, %v9788_v61  ;;  %v10559_v16 = vor.u32 %v11794_v9, %v10556_v4  ;;  %v15163_v4 = vld [vmem:[#allocation26_spill] sm:$0xff] }
 0x720   : > { %4695 = vmatmul.bf16.gmra.mxu3 %v15161_v36  ;;  %v5368_v40 = vmax.f32 %v4654_v59, %v5112_v18  ;;  %4732 = vmatpush.bf16.msrb.mxu0 %v9791_v58  ;;  %v11666_v59 = vld [vmem:[#allocation5 + $0x25c] sm:$0xf]  ;;  %v15164_v58 = vld [vmem:[#allocation27_spill] sm:$0xff] }
 0x721   : > { %v4567_v7 = vpop.f32.mrf.mxu2  ;;  %v4480_v36 = vpop.f32.mrf.mxu1  ;;  %4999 = vmatpush.bf16.msrb.mxu3 %v10559_v16  ;;  %v10044_v18 = vld [vmem:[#allocation5 + $0x278] sm:$0xf0]  ;;  %v15165_v16 = vld [vmem:[#allocation28_spill] sm:$0xff] }
 0x722   : > { %v4568_v8 = vadd.f32 %v4567_v7, %v4479_v39  ;;  %v13590_v37 = vpack.c.bf16 %v5368_v40, %v5360_v11  ;;  %v10047_v38 = vor.u32 %v11666_v59, %v10044_v18 }
 0x723   : > { %v4656_v52 = vpop.f32.mrf.mxu3  ;;  %v4391_v43 = vpop.f32.mrf.mxu0 }
 0x724   : > { %15162 = vst [vmem:[#allocation137_spill] sm:$0xff] %v13590_v37  ;;  %v4392_v10 = vadd.f32 %v4391_v43, %v13567_v29  ;;  %v4657_v53 = vadd.f32 %v4656_v52, %v4568_v8  ;;  %4821 = vmatpush.bf16.msrb.mxu1 %v10047_v38 }
 0x726   : > { %v4481_v20 = vadd.f32 %v4480_v36, %v4392_v10  ;;  %v5120_v11 = vmul.f32 0.2, %v4657_v53  ;;  %v15166_v10 = vld [vmem:[#allocation29_spill] sm:$0xff] }
 0x728   : > { %v5376_v36 = vmax.f32 %v4657_v53, %v5120_v11 }
 0x729   : > { %v4569_v62 = vpop.f32.mrf.mxu2  ;;  %v4483_v9 = vpop.f32.mrf.mxu1 }
 0x72a   : > { %v4570_v5 = vadd.f32 %v4569_v62, %v4481_v20 }
 0x72b   : > { %v4658_v39 = vpop.f32.mrf.mxu3  ;;  %v4394_v7 = vpop.f32.mrf.mxu0 }
 0x72c   : > { %v4395_v28 = vadd.f32 %v4394_v7, %v13567_v29  ;;  %v4659_v40 = vadd.f32 %v4658_v39, %v4570_v5  ;;  %4522 = vmatmul.bf16.gmra.mxu1 %v15164_v58 }
 0x72e   : > { %v4484_v61 = vadd.f32 %v4483_v9, %v4395_v28  ;;  %4433 = vmatmul.bf16.gmra.mxu0 %v15163_v4  ;;  %v5128_v41 = vmul.f32 0.2, %v4659_v40  ;;  %4611 = vmatmul.bf16.gmra.mxu2 %v15165_v16 }
 0x730   : > { %4700 = vmatmul.bf16.gmra.mxu3 %v15166_v10  ;;  %v5384_v8 = vmax.f32 %v4659_v40, %v5128_v41 }
 0x731   : > { %v4572_v52 = vpop.f32.mrf.mxu2  ;;  %v4485_v62 = vpop.f32.mrf.mxu1 }
 0x732   : > { %v4573_v43 = vadd.f32 %v4572_v52, %v4484_v61  ;;  %v13598_v18 = vpack.c.bf16 %v5384_v8, %v5376_v36  ;;  %v15168_v61 = vld [vmem:[#allocation31_spill] sm:$0xff]  ;;  %v15169_v36 = vld [vmem:[#allocation32_spill] sm:$0xff]  ;;  %v15170_v8 = vld [vmem:[#allocation33_spill] sm:$0xff] }
 0x733   : > { %v4661_v20 = vpop.f32.mrf.mxu3  ;;  %v4396_v59 = vpop.f32.mrf.mxu0  ;;  %v15171_v52 = vld [vmem:[#allocation34_spill] sm:$0xff] }
 0x734   : > { %15167 = vst [vmem:[#allocation138_spill] sm:$0xff] %v13598_v18  ;;  %v4397_v5 = vadd.f32 %v4396_v59, %v13567_v29  ;;  %v4662_v38 = vadd.f32 %v4661_v20, %v4573_v43  ;;  %v11722_v59 = vld [vmem:[#allocation5 + $0x41c] sm:$0xf] }
 0x735   : > { %v11786_v18 = vld [vmem:[#allocation5 + $0x61c] sm:$0xf] }
 0x736   : > { %v4486_v39 = vadd.f32 %v4485_v62, %v4397_v5  ;;  %v5136_v53 = vmul.f32 0.2, %v4662_v38  ;;  %v10268_v5 = vld [vmem:[#allocation5 + $0x438] sm:$0xf0] }
 0x737   : > { %v11594_v62 = vld [vmem:[#allocation5 + $0x1c] sm:$0xf] }
 0x738   : > { %v5392_v43 = vmax.f32 %v4662_v38, %v5136_v53 }
 0x739   : > { %v4574_v7 = vpop.f32.mrf.mxu2  ;;  %v4488_v10 = vpop.f32.mrf.mxu1 }
 0x73a   : > { %v4575_v28 = vadd.f32 %v4574_v7, %v4486_v39  ;;  %v9756_v7 = vld [vmem:[#allocation5 + $0x38] sm:$0xf0] }
 0x73b   : > { %v4663_v9 = vpop.f32.mrf.mxu3  ;;  %v4399_v37 = vpop.f32.mrf.mxu0 }
 0x73c   : > { %v4400_v16 = vadd.f32 %v4399_v37, %v13567_v29  ;;  %v4664_v11 = vadd.f32 %v4663_v9, %v4575_v28  ;;  %4527 = vmatmul.bf16.gmra.mxu1 %v15169_v36  ;;  %v10271_v37 = vor.u32 %v11722_v59, %v10268_v5  ;;  %v10524_v28 = vld [vmem:[#allocation5 + $0x638] sm:$0xf0] }
 0x73d   : > { %v10527_v58 = vor.u32 %v11786_v18, %v10524_v28  ;;  %v15173_v28 = vld [vmem:[#allocation36_spill] sm:$0xff] }
 0x73e   : > { %v4489_v40 = vadd.f32 %v4488_v10, %v4400_v16  ;;  %4438 = vmatmul.bf16.gmra.mxu0 %v15168_v61  ;;  %v5144_v41 = vmul.f32 0.2, %v4664_v11  ;;  %4616 = vmatmul.bf16.gmra.mxu2 %v15170_v8  ;;  %v9759_v61 = vor.u32 %v11594_v62, %v9756_v7 }
 0x73f   : > { %4911 = vmatpush.bf16.msrb.mxu2 %v10271_v37  ;;  %5000 = vmatpush.bf16.msrb.mxu3 %v10527_v58  ;;  %v15175_v58 = vld [vmem:[#allocation38_spill] sm:$0xff] }
 0x740   : > { %4705 = vmatmul.bf16.gmra.mxu3 %v15171_v52  ;;  %v5400_v20 = vmax.f32 %v4664_v11, %v5144_v41  ;;  %4733 = vmatpush.bf16.msrb.mxu0 %v9759_v61  ;;  %v11658_v11 = vld [vmem:[#allocation5 + $0x21c] sm:$0xf] }
 0x741   : > { %v4577_v39 = vpop.f32.mrf.mxu2  ;;  %v4490_v52 = vpop.f32.mrf.mxu1  ;;  %v10012_v41 = vld [vmem:[#allocation5 + $0x238] sm:$0xf0] }
 0x742   : > { %v4578_v16 = vadd.f32 %v4577_v39, %v4489_v40  ;;  %v13606_v36 = vpack.c.bf16 %v5400_v20, %v5392_v43  ;;  %v10015_v5 = vor.u32 %v11658_v11, %v10012_v41  ;;  %v15174_v61 = vld [vmem:[#allocation37_spill] sm:$0xff] }
 0x743   : > { %v4666_v10 = vpop.f32.mrf.mxu3  ;;  %v4401_v9 = vpop.f32.mrf.mxu0 }
 0x744   : > { %15172 = vst [vmem:[#allocation139_spill] sm:$0xff] %v13606_v36  ;;  %v4402_v8 = vadd.f32 %v4401_v9, %v13567_v29  ;;  %v4667_v38 = vadd.f32 %v4666_v10, %v4578_v16  ;;  %4822 = vmatpush.bf16.msrb.mxu1 %v10015_v5 }
 0x746   : > { %v4491_v53 = vadd.f32 %v4490_v52, %v4402_v8  ;;  %v5152_v43 = vmul.f32 0.2, %v4667_v38  ;;  %v15176_v8 = vld [vmem:[#allocation39_spill] sm:$0xff] }
 0x748   : > { %v5408_v52 = vmax.f32 %v4667_v38, %v5152_v43 }
 0x749   : > { %v4579_v59 = vpop.f32.mrf.mxu2  ;;  %v4493_v18 = vpop.f32.mrf.mxu1 }
 0x74a   : > { %v4580_v4 = vadd.f32 %v4579_v59, %v4491_v53 }
 0x74b   : > { %v4668_v40 = vpop.f32.mrf.mxu3  ;;  %v4404_v39 = vpop.f32.mrf.mxu0 }
 0x74c   : > { %v4405_v62 = vadd.f32 %v4404_v39, %v13567_v29  ;;  %v4669_v20 = vadd.f32 %v4668_v40, %v4580_v4  ;;  %4532 = vmatmul.bf16.gmra.mxu1 %v15174_v61 }
 0x74e   : > { %v4494_v7 = vadd.f32 %v4493_v18, %v4405_v62  ;;  %4443 = vmatmul.bf16.gmra.mxu0 %v15173_v28  ;;  %v5160_v37 = vmul.f32 0.2, %v4669_v20  ;;  %4621 = vmatmul.bf16.gmra.mxu2 %v15175_v58 }
 0x750   : > { %4710 = vmatmul.bf16.gmra.mxu3 %v15176_v8  ;;  %v5416_v16 = vmax.f32 %v4669_v20, %v5160_v37 }
 0x751   : > { %v4582_v10 = vpop.f32.mrf.mxu2  ;;  %v4495_v59 = vpop.f32.mrf.mxu1 }
 0x752   : > { %v4583_v9 = vadd.f32 %v4582_v10, %v4494_v7  ;;  %v13614_v41 = vpack.c.bf16 %v5416_v16, %v5408_v52  ;;  %v15178_v7 = vld [vmem:[#allocation41_spill] sm:$0xff]  ;;  %v15179_v52 = vld [vmem:[#allocation42_spill] sm:$0xff]  ;;  %v15180_v16 = vld [vmem:[#allocation43_spill] sm:$0xff] }
 0x753   : > { %v4671_v53 = vpop.f32.mrf.mxu3  ;;  %v4406_v11 = vpop.f32.mrf.mxu0  ;;  %v15181_v10 = vld [vmem:[#allocation44_spill] sm:$0xff] }
 0x754   : > { %15177 = vst [vmem:[#allocation140_spill] sm:$0xff] %v13614_v41  ;;  %v4407_v4 = vadd.f32 %v4406_v11, %v13567_v29  ;;  %v4672_v5 = vadd.f32 %v4671_v53, %v4583_v9  ;;  %v11030_v11 = vld [vmem:[#allocation8 + $0x228] sm:$0xf] }
 0x755   : > { %v11126_v41 = vld [vmem:[#allocation8 + $0x2e8] sm:$0xf] }
 0x756   : > { %v4496_v40 = vadd.f32 %v4495_v59, %v4407_v4  ;;  %v5168_v38 = vmul.f32 0.2, %v4672_v5  ;;  %v11917_v4 = vld [vmem:[#allocation8 + $0x230] sm:$0xf0]  ;;  %v10838_v59 = vld [vmem:[#allocation8 + $0xa8] sm:$0xf] }
 0x758   : > { %v5424_v9 = vmax.f32 %v4672_v5, %v5168_v38 }
 0x759   : > { %v4584_v39 = vpop.f32.mrf.mxu2  ;;  %v4498_v8 = vpop.f32.mrf.mxu1 }
 0x75a   : > { %v4585_v62 = vadd.f32 %v4584_v39, %v4496_v40  ;;  %v11869_v39 = vld [vmem:[#allocation8 + $0xb0] sm:$0xf0] }
 0x75b   : > { %v4673_v18 = vpop.f32.mrf.mxu3  ;;  %v4409_v36 = vpop.f32.mrf.mxu0 }
 0x75c   : > { %v4410_v58 = vadd.f32 %v4409_v36, %v13567_v29  ;;  %v4674_v43 = vadd.f32 %v4673_v18, %v4585_v62  ;;  %4537 = vmatmul.bf16.gmra.mxu1 %v15179_v52  ;;  %v11031_v36 = vor.u32 %v11917_v4, %v11030_v11  ;;  %v11941_v62 = vld [vmem:[#allocation8 + $0x2f0] sm:$0xf0] }
 0x75d   : > { %v11127_v61 = vor.u32 %v11941_v62, %v11126_v41 }
 0x75e   : > { %v4499_v20 = vadd.f32 %v4498_v8, %v4410_v58  ;;  %4448 = vmatmul.bf16.gmra.mxu0 %v15178_v7  ;;  %v5176_v37 = vmul.f32 0.2, %v4674_v43  ;;  %4626 = vmatmul.bf16.gmra.mxu2 %v15180_v16  ;;  %v10839_v7 = vor.u32 %v11869_v39, %v10838_v59 }
 0x75f   : > { %7188 = vmatpush.bf16.msra.mxu2 %v11031_v36  ;;  %7277 = vmatpush.bf16.msra.mxu3 %v11127_v61 }
 0x760   : > { %4715 = vmatmul.bf16.gmra.mxu3 %v15181_v10  ;;  %v5432_v53 = vmax.f32 %v4674_v43, %v5176_v37  ;;  %7010 = vmatpush.bf16.msra.mxu0 %v10839_v7  ;;  %v10934_v43 = vld [vmem:[#allocation8 + $0x168] sm:$0xf]  ;;  %v11893_v37 = vld [vmem:[#allocation8 + $0x170] sm:$0xf0] }
 0x761   : > { %v4587_v40 = vpop.f32.mrf.mxu2  ;;  %v4500_v10 = vpop.f32.mrf.mxu1  ;;  %v10935_v4 = vor.u32 %v11893_v37, %v10934_v43 }
 0x762   : > { %v4588_v58 = vadd.f32 %v4587_v40, %v4499_v20  ;;  %v13622_v52 = vpack.c.bf16 %v5432_v53, %v5424_v9 }
 0x763   : > { %v4676_v8 = vpop.f32.mrf.mxu3  ;;  %v4411_v18 = vpop.f32.mrf.mxu0  ;;  %7099 = vmatpush.bf16.msra.mxu1 %v10935_v4 }
 0x764   : > { %15182 = vst [vmem:[#allocation141_spill] sm:$0xff] %v13622_v52  ;;  %v4412_v16 = vadd.f32 %v4411_v18, %v13567_v29  ;;  %v4677_v5 = vadd.f32 %v4676_v8, %v4588_v58 }
 0x766   : > { %v4501_v38 = vadd.f32 %v4500_v10, %v4412_v16  ;;  %v5184_v9 = vmul.f32 0.2, %v4677_v5 }
 0x768   : > { %v5440_v61 = vmax.f32 %v4677_v5, %v5184_v9 }
 0x769   : > { %v4589_v11 = vpop.f32.mrf.mxu2  ;;  %v4503_v41 = vpop.f32.mrf.mxu1 }
 0x76a   : > { %v4590_v28 = vadd.f32 %v4589_v11, %v4501_v38 }
 0x76b   : > { %v4678_v20 = vpop.f32.mrf.mxu3  ;;  %v4414_v40 = vpop.f32.mrf.mxu0 }
 0x76c   : > { %v4415_v59 = vadd.f32 %v4414_v40, %v13567_v29  ;;  %v4679_v53 = vadd.f32 %v4678_v20, %v4590_v28  ;;  %4542 = vmatmul.bf16.gmra.mxu1 %v12839_v6 }
 0x76e   : > { %v4504_v39 = vadd.f32 %v4503_v41, %v4415_v59  ;;  %4453 = vmatmul.bf16.gmra.mxu0 %v12837_v17  ;;  %v5192_v36 = vmul.f32 0.2, %v4679_v53  ;;  %4631 = vmatmul.bf16.gmra.mxu2 %v12841_v30 }
 0x770   : > { %4720 = vmatmul.bf16.gmra.mxu3 %v12844_v31  ;;  %v5448_v7 = vmax.f32 %v4679_v53, %v5192_v36  ;;  %v15185_v36 = vld [vmem:[#allocation16_spill] sm:$0xff] }
 0x771   : > { %v4592_v16 = vpop.f32.mrf.mxu2  ;;  %v4505_v18 = vpop.f32.mrf.mxu1 }
 0x772   : > { %v4593_v10 = vadd.f32 %v4592_v16, %v4504_v39  ;;  %v13630_v8 = vpack.c.bf16 %v5448_v7, %v5440_v61  ;;  %v15184_v39 = vld [vmem:[#allocation15_spill] sm:$0xff]  ;;  %v11018_v16 = vld [vmem:[#allocation8 + $0x210] sm:$0xf] }
 0x773   : > { %v4681_v62 = vpop.f32.mrf.mxu3  ;;  %v4416_v58 = vpop.f32.mrf.mxu0 }
 0x774   : > { %15183 = vst [vmem:[#allocation142_spill] sm:$0xff] %v13630_v8  ;;  %v4417_v28 = vadd.f32 %v4416_v58, %v13567_v29  ;;  %v4682_v38 = vadd.f32 %v4681_v62, %v4593_v10  ;;  %v11914_v10 = vld [vmem:[#allocation8 + $0x218] sm:$0xf0]  ;;  %v10826_v62 = vld [vmem:[#allocation8 + $0x90] sm:$0xf] }
 0x776   : > { %v4506_v43 = vadd.f32 %v4505_v18, %v4417_v28  ;;  %v5200_v5 = vmul.f32 0.2, %v4682_v38  ;;  %v11019_v28 = vor.u32 %v11914_v10, %v11018_v16  ;;  %v11866_v18 = vld [vmem:[#allocation8 + $0x98] sm:$0xf0] }
 0x778   : > { %v5456_v61 = vmax.f32 %v4682_v38, %v5200_v5  ;;  %7189 = vmatpush.bf16.msra.mxu2 %v11019_v28 }
 0x779   : > { %v4594_v37 = vpop.f32.mrf.mxu2  ;;  %v4508_v59 = vpop.f32.mrf.mxu1 }
 0x77a   : > { %v4595_v11 = vadd.f32 %v4594_v37, %v4506_v43  ;;  %v11114_v43 = vld [vmem:[#allocation8 + $0x2d0] sm:$0xf]  ;;  %v11938_v37 = vld [vmem:[#allocation8 + $0x2d8] sm:$0xf0] }
 0x77b   : > { %v4683_v4 = vpop.f32.mrf.mxu3  ;;  %v4419_v20 = vpop.f32.mrf.mxu0 }
 0x77c   : > { %v4420_v40 = vadd.f32 %v4419_v20, %v13567_v29  ;;  %v4684_v41 = vadd.f32 %v4683_v4, %v4595_v11  ;;  %4823 = vmatmul.bf16.vlgmr.msrb.gmra.mxu1 %v12511_v51  ;;  %v10827_v20 = vor.u32 %v11866_v18, %v10826_v62 }
 0x77e   : > { %v4509_v9 = vadd.f32 %v4508_v59, %v4420_v40  ;;  %4734 = vmatmul.bf16.vlgmr.msrb.gmra.mxu0 %v12509_v47  ;;  %v5208_v53 = vmul.f32 0.2, %v4684_v41  ;;  %4912 = vmatmul.bf16.vlgmr.msrb.gmra.mxu2 %v15184_v39  ;;  %v11115_v40 = vor.u32 %v11938_v37, %v11114_v43 }
 0x77f   : > { %7011 = vmatpush.bf16.msra.mxu0 %v10827_v20 }
 0x780   : > { %5001 = vmatmul.bf16.vlgmr.msrb.gmra.mxu3 %v15185_v36  ;;  %v5464_v7 = vmax.f32 %v4684_v41, %v5208_v53  ;;  %v10922_v41 = vld [vmem:[#allocation8 + $0x150] sm:$0xf]  ;;  %v11890_v53 = vld [vmem:[#allocation8 + $0x158] sm:$0xf0] }
 0x781   : > { %v4597_v58 = vpop.f32.mrf.mxu2  ;;  %v4510_v39 = vpop.f32.mrf.mxu1  ;;  %7278 = vmatpush.bf16.msra.mxu3 %v11115_v40  ;;  %v10923_v16 = vor.u32 %v11890_v53, %v10922_v41 }
 0x782   : > { %v4598_v11 = vadd.f32 %v4597_v58, %v4509_v9  ;;  %v13638_v51 = vpack.c.bf16 %v5464_v7, %v5456_v61 }
 0x783   : > { %v4686_v4 = vpop.f32.mrf.mxu3  ;;  %v4421_v47 = vpop.f32.mrf.mxu0  ;;  %7100 = vmatpush.bf16.msra.mxu1 %v10923_v16 }
 0x784   : > { %v4422_v59 = vadd.f32 %v4421_v47, %v13567_v29  ;;  %v4687_v38 = vadd.f32 %v4686_v4, %v4598_v11 }
 0x786   : > { %v4511_v5 = vadd.f32 %v4510_v39, %v4422_v59  ;;  %v5216_v61 = vmul.f32 0.2, %v4687_v38 }
 0x788   : > { %v5472_v37 = vmax.f32 %v4687_v38, %v5216_v61  ;;  %v11006_v61 = vld [vmem:[#allocation8 + $0x1f8] sm:$0xf] }
 0x789   : > { %v4599_v36 = vpop.f32.mrf.mxu2  ;;  %v4513_v18 = vpop.f32.mrf.mxu1 }
 0x78a   : > { %v4600_v10 = vadd.f32 %v4599_v36, %v4511_v5 }
 0x78b   : > { %v4688_v9 = vpop.f32.mrf.mxu3  ;;  %v4424_v58 = vpop.f32.mrf.mxu0 }
 0x78c   : > { %v4425_v62 = vadd.f32 %v4424_v58, %v13567_v29  ;;  %v4689_v7 = vadd.f32 %v4688_v9, %v4600_v10  ;;  %4828 = vmatmul.bf16.gmra.mxu1 %v12531_v13 }
 0x78e   : > { %v4514_v43 = vadd.f32 %v4513_v18, %v4425_v62  ;;  %4739 = vmatmul.bf16.gmra.mxu0 %v12529_v12  ;;  %v5224_v28 = vmul.f32 0.2, %v4689_v7  ;;  %4917 = vmatmul.bf16.gmra.mxu2 %v12533_v14 }
 0x790   : > { %5006 = vmatmul.bf16.gmra.mxu3 %v12535_v15  ;;  %v5480_v11 = vmax.f32 %v4689_v7, %v5224_v28  ;;  %v11911_v7 = vld [vmem:[#allocation8 + $0x200] sm:$0xf0] }
 0x791   : > { %v4602_v4 = vpop.f32.mrf.mxu2  ;;  %v4515_v5 = vpop.f32.mrf.mxu1 }
 0x792   : > { %v4603_v47 = vadd.f32 %v4602_v4, %v4514_v43  ;;  %v13646_v59 = vpack.c.bf16 %v5480_v11, %v5472_v37  ;;  %v10814_v43 = vld [vmem:[#allocation8 + $0x78] sm:$0xf]  ;;  %v11007_v37 = vor.u32 %v11911_v7, %v11006_v61  ;;  %v11863_v11 = vld [vmem:[#allocation8 + $0x80] sm:$0xf0] }
 0x793   : > { %v4691_v20 = vpop.f32.mrf.mxu3  ;;  %v4426_v40 = vpop.f32.mrf.mxu0  ;;  %v11102_v4 = vld [vmem:[#allocation8 + $0x2b8] sm:$0xf] }
 0x794   : > { %15186 = vst [vmem:[#allocation15_spill] sm:$0xff] %v13646_v59  ;;  %v4427_v39 = vadd.f32 %v4426_v40, %v13567_v29  ;;  %v4692_v41 = vadd.f32 %v4691_v20, %v4603_v47  ;;  %v11935_v47 = vld [vmem:[#allocation8 + $0x2c0] sm:$0xf0]  ;;  %7190 = vmatpush.bf16.msra.mxu2 %v11007_v37 }
 0x796   : > { %v4516_v12 = vadd.f32 %v4515_v5, %v4427_v39  ;;  %v5232_v38 = vmul.f32 0.2, %v4692_v41  ;;  %v10815_v39 = vor.u32 %v11863_v11, %v10814_v43  ;;  %v11103_v5 = vor.u32 %v11935_v47, %v11102_v4 }
 0x798   : > { %v5488_v62 = vmax.f32 %v4692_v41, %v5232_v38  ;;  %7012 = vmatpush.bf16.msra.mxu0 %v10815_v39  ;;  %7279 = vmatpush.bf16.msra.mxu3 %v11103_v5 }
 0x799   : > { %v4604_v53 = vpop.f32.mrf.mxu2  ;;  %v4518_v15 = vpop.f32.mrf.mxu1 }
 0x79a   : > { %v4605_v36 = vadd.f32 %v4604_v53, %v4516_v12  ;;  %v10910_v53 = vld [vmem:[#allocation8 + $0x138] sm:$0xf] }
 0x79b   : > { %v4693_v13 = vpop.f32.mrf.mxu3  ;;  %v4429_v16 = vpop.f32.mrf.mxu0 }
 0x79c   : > { %v4430_v14 = vadd.f32 %v4429_v16, %v13567_v29  ;;  %v4694_v10 = vadd.f32 %v4693_v13, %v4605_v36  ;;  %4833 = vmatmul.bf16.gmra.mxu1 %v12551_v25  ;;  %v11887_v36 = vld [vmem:[#allocation8 + $0x140] sm:$0xf0] }
 0x79d   : > { %v10911_v16 = vor.u32 %v11887_v36, %v10910_v53 }
 0x79e   : > { %v4519_v9 = vadd.f32 %v4518_v15, %v4430_v14  ;;  %4744 = vmatmul.bf16.gmra.mxu0 %v12549_v24  ;;  %v5240_v58 = vmul.f32 0.2, %v4694_v10  ;;  %4922 = vmatmul.bf16.gmra.mxu2 %v12553_v26 }
 0x79f   : > { %7101 = vmatpush.bf16.msra.mxu1 %v10911_v16  ;;  %v10994_v16 = vld [vmem:[#allocation8 + $0x1e0] sm:$0xf] }
 0x7a0   : > { %5011 = vmatmul.bf16.gmra.mxu3 %v12555_v27  ;;  %v5496_v18 = vmax.f32 %v4694_v10, %v5240_v58 }
 0x7a1   : > { %v4607_v28 = vpop.f32.mrf.mxu2  ;;  %v4520_v27 = vpop.f32.mrf.mxu1 }
 0x7a2   : > { %v4608_v20 = vadd.f32 %v4607_v28, %v4519_v9  ;;  %v13654_v25 = vpack.c.bf16 %v5496_v18, %v5488_v62 }
 0x7a3   : > { %v4696_v40 = vpop.f32.mrf.mxu3  ;;  %v4431_v24 = vpop.f32.mrf.mxu0 }
 0x7a4   : > { %v4432_v26 = vadd.f32 %v4431_v24, %v13567_v29  ;;  %v4697_v41 = vadd.f32 %v4696_v40, %v4608_v20 }
 0x7a6   : > { %v4521_v12 = vadd.f32 %v4520_v27, %v4432_v26  ;;  %v5248_v58 = vmul.f32 0.2, %v4697_v41 }
 0x7a8   : > { %v5504_v7 = vmax.f32 %v4697_v41, %v5248_v58  ;;  %v11090_v58 = vld [vmem:[#allocation8 + $0x2a0] sm:$0xf] }
 0x7a9   : > { %v4609_v13 = vpop.f32.mrf.mxu2  ;;  %v4523_v9 = vpop.f32.mrf.mxu1 }
 0x7aa   : > { %v4610_v14 = vadd.f32 %v4609_v13, %v4521_v12 }
 0x7ab   : > { %v4698_v15 = vpop.f32.mrf.mxu3  ;;  %v4434_v38 = vpop.f32.mrf.mxu0 }
 0x7ac   : > { %v4435_v10 = vadd.f32 %v4434_v38, %v13567_v29  ;;  %v4699_v62 = vadd.f32 %v4698_v15, %v4610_v14  ;;  %4838 = vmatmul.bf16.gmra.mxu1 %v12571_v50  ;;  %v11908_v14 = vld [vmem:[#allocation8 + $0x1e8] sm:$0xf0]  ;;  %v10802_v15 = vld [vmem:[#allocation8 + $0x60] sm:$0xf] }
 0x7ae   : > { %v4524_v18 = vadd.f32 %v4523_v9, %v4435_v10  ;;  %4749 = vmatmul.bf16.gmra.mxu0 %v12569_v49  ;;  %v5256_v61 = vmul.f32 0.2, %v4699_v62  ;;  %4927 = vmatmul.bf16.gmra.mxu2 %v12573_v54  ;;  %v10995_v10 = vor.u32 %v11908_v14, %v10994_v16  ;;  %v11860_v9 = vld [vmem:[#allocation8 + $0x68] sm:$0xf0] }
 0x7b0   : > { %5016 = vmatmul.bf16.gmra.mxu3 %v12575_v55  ;;  %v5512_v43 = vmax.f32 %v4699_v62, %v5256_v61  ;;  %v11932_v62 = vld [vmem:[#allocation8 + $0x2a8] sm:$0xf0]  ;;  %7191 = vmatpush.bf16.msra.mxu2 %v10995_v10 }
 0x7b1   : > { %v4612_v28 = vpop.f32.mrf.mxu2  ;;  %v4525_v40 = vpop.f32.mrf.mxu1 }
 0x7b2   : > { %v4613_v37 = vadd.f32 %v4612_v28, %v4524_v18  ;;  %v13662_v47 = vpack.c.bf16 %v5512_v43, %v5504_v7  ;;  %v10803_v7 = vor.u32 %v11860_v9, %v10802_v15  ;;  %v11091_v43 = vor.u32 %v11932_v62, %v11090_v58 }
 0x7b3   : > { %v4701_v11 = vpop.f32.mrf.mxu3  ;;  %v4436_v4 = vpop.f32.mrf.mxu0 }
 0x7b4   : > { %15187 = vst [vmem:[#allocation16_spill] sm:$0xff] %v13662_v47  ;;  %v4437_v20 = vadd.f32 %v4436_v4, %v13567_v29  ;;  %v4702_v24 = vadd.f32 %v4701_v11, %v4613_v37  ;;  %7013 = vmatpush.bf16.msra.mxu0 %v10803_v7  ;;  %7280 = vmatpush.bf16.msra.mxu3 %v11091_v43  ;;  %v10898_v11 = vld [vmem:[#allocation8 + $0x120] sm:$0xf]  ;;  %v11884_v4 = vld [vmem:[#allocation8 + $0x128] sm:$0xf0] }
 0x7b6   : > { %v4526_v49 = vadd.f32 %v4525_v40, %v4437_v20  ;;  %v5264_v27 = vmul.f32 0.2, %v4702_v24  ;;  %v10899_v40 = vor.u32 %v11884_v4, %v10898_v11 }
 0x7b8   : > { %v5520_v36 = vmax.f32 %v4702_v24, %v5264_v27  ;;  %7102 = vmatpush.bf16.msra.mxu1 %v10899_v40  ;;  %v11078_v40 = vld [vmem:[#allocation8 + $0x288] sm:$0xf] }
 0x7b9   : > { %v4614_v39 = vpop.f32.mrf.mxu2  ;;  %v4528_v55 = vpop.f32.mrf.mxu1 }
 0x7ba   : > { %v4615_v5 = vadd.f32 %v4614_v39, %v4526_v49 }
 0x7bb   : > { %v4703_v50 = vpop.f32.mrf.mxu3  ;;  %v4439_v26 = vpop.f32.mrf.mxu0 }
 0x7bc   : > { %v4440_v54 = vadd.f32 %v4439_v26, %v13567_v29  ;;  %v4704_v41 = vadd.f32 %v4703_v50, %v4615_v5  ;;  %4843 = vmatmul.bf16.gmra.mxu1 %v12591_v1 }
 0x7be   : > { %v4529_v12 = vadd.f32 %v4528_v55, %v4440_v54  ;;  %4754 = vmatmul.bf16.gmra.mxu0 %v12589_v0  ;;  %v5272_v53 = vmul.f32 0.2, %v4704_v41  ;;  %4932 = vmatmul.bf16.gmra.mxu2 %v12593_v2 }
 0x7c0   : > { %5021 = vmatmul.bf16.gmra.mxu3 %v12595_v3  ;;  %v5528_v13 = vmax.f32 %v4704_v41, %v5272_v53 }
 0x7c1   : > { %v4617_v38 = vpop.f32.mrf.mxu2  ;;  %v4530_v3 = vpop.f32.mrf.mxu1 }
 0x7c2   : > { %v4618_v18 = vadd.f32 %v4617_v38, %v4529_v12  ;;  %v13670_v1 = vpack.c.bf16 %v5528_v13, %v5520_v36 }
 0x7c3   : > { %v4706_v61 = vpop.f32.mrf.mxu3  ;;  %v4441_v0 = vpop.f32.mrf.mxu0 }
 0x7c4   : > { %v4442_v2 = vadd.f32 %v4441_v0, %v13567_v29  ;;  %v4707_v28 = vadd.f32 %v4706_v61, %v4618_v18 }
 0x7c6   : > { %v4531_v37 = vadd.f32 %v4530_v3, %v4442_v2  ;;  %v5280_v26 = vmul.f32 0.2, %v4707_v28  ;;  %v10982_v3 = vld [vmem:[#allocation8 + $0x1c8] sm:$0xf] }
 0x7c8   : > { %v5536_v41 = vmax.f32 %v4707_v28, %v5280_v26  ;;  %v11905_v28 = vld [vmem:[#allocation8 + $0x1d0] sm:$0xf0] }
 0x7c9   : > { %v4619_v20 = vpop.f32.mrf.mxu2  ;;  %v4533_v50 = vpop.f32.mrf.mxu1  ;;  %v10983_v4 = vor.u32 %v11905_v28, %v10982_v3 }
 0x7ca   : > { %v4620_v24 = vadd.f32 %v4619_v20, %v4531_v37  ;;  %v10790_v37 = vld [vmem:[#allocation8 + $0x48] sm:$0xf]  ;;  %v11857_v20 = vld [vmem:[#allocation8 + $0x50] sm:$0xf0] }
 0x7cb   : > { %v4708_v49 = vpop.f32.mrf.mxu3  ;;  %v4444_v39 = vpop.f32.mrf.mxu0  ;;  %7192 = vmatpush.bf16.msra.mxu2 %v10983_v4 }
 0x7cc   : > { %v4445_v5 = vadd.f32 %v4444_v39, %v13567_v29  ;;  %v4709_v54 = vadd.f32 %v4708_v49, %v4620_v24  ;;  %4848 = vmatmul.bf16.gmra.mxu1 %v12611_v33  ;;  %v11929_v24 = vld [vmem:[#allocation8 + $0x290] sm:$0xf0] }
 0x7ce   : > { %v4534_v55 = vadd.f32 %v4533_v50, %v4445_v5  ;;  %4759 = vmatmul.bf16.gmra.mxu0 %v12609_v32  ;;  %v5288_v27 = vmul.f32 0.2, %v4709_v54  ;;  %4937 = vmatmul.bf16.gmra.mxu2 %v12613_v34  ;;  %v10791_v5 = vor.u32 %v11857_v20, %v10790_v37  ;;  %v11079_v50 = vor.u32 %v11929_v24, %v11078_v40 }
 0x7d0   : > { %5026 = vmatmul.bf16.gmra.mxu3 %v12615_v35  ;;  %v5544_v12 = vmax.f32 %v4709_v54, %v5288_v27  ;;  %7014 = vmatpush.bf16.msra.mxu0 %v10791_v5  ;;  %v11881_v27 = vld [vmem:[#allocation8 + $0x110] sm:$0xf0]  ;;  %v10778_v5 = vld [vmem:[#allocation8 + $0x30] sm:$0xf] }
 0x7d1   : > { %v4622_v53 = vpop.f32.mrf.mxu2  ;;  %v4535_v38 = vpop.f32.mrf.mxu1  ;;  %7281 = vmatpush.bf16.msra.mxu3 %v11079_v50 }
 0x7d2   : > { %v4623_v36 = vadd.f32 %v4622_v53, %v4534_v55  ;;  %v13678_v14 = vpack.c.bf16 %v5544_v12, %v5536_v41  ;;  %v10886_v55 = vld [vmem:[#allocation8 + $0x108] sm:$0xf] }
 0x7d3   : > { %v4711_v13 = vpop.f32.mrf.mxu3  ;;  %v4446_v16 = vpop.f32.mrf.mxu0  ;;  %v10887_v12 = vor.u32 %v11881_v27, %v10886_v55 }
 0x7d4   : > { %v4447_v15 = vadd.f32 %v4446_v16, %v13567_v29  ;;  %v4712_v10 = vadd.f32 %v4711_v13, %v4623_v36 }
 0x7d5   : > { %7103 = vmatpush.bf16.msra.mxu1 %v10887_v12 }
 0x7d6   : > { %v4536_v32 = vadd.f32 %v4535_v38, %v4447_v15  ;;  %v5296_v18 = vmul.f32 0.2, %v4712_v10 }
 0x7d8   : > { %v5552_v43 = vmax.f32 %v4712_v10, %v5296_v18 }
 0x7d9   : > { %v4624_v9 = vpop.f32.mrf.mxu2  ;;  %v4538_v35 = vpop.f32.mrf.mxu1 }
 0x7da   : > { %v4625_v58 = vadd.f32 %v4624_v9, %v4536_v32 }
 0x7db   : > { %v4713_v33 = vpop.f32.mrf.mxu3  ;;  %v4449_v62 = vpop.f32.mrf.mxu0 }
 0x7dc   : > { %v4450_v34 = vadd.f32 %v4449_v62, %v13567_v29  ;;  %v4714_v61 = vadd.f32 %v4713_v33, %v4625_v58  ;;  %4853 = vmatmul.bf16.gmra.mxu1 %v12631_v45 }
 0x7de   : > { %v4539_v0 = vadd.f32 %v4538_v35, %v4450_v34  ;;  %4764 = vmatmul.bf16.gmra.mxu0 %v12629_v44  ;;  %v5304_v7 = vmul.f32 0.2, %v4714_v61  ;;  %4942 = vmatmul.bf16.gmra.mxu2 %v12633_v46 }
 0x7e0   : > { %5031 = vmatmul.bf16.gmra.mxu3 %v12635_v48  ;;  %v5560_v2 = vmax.f32 %v4714_v61, %v5304_v7 }
 0x7e1   : > { %v4627_v11 = vpop.f32.mrf.mxu2  ;;  %v4540_v48 = vpop.f32.mrf.mxu1 }
 0x7e2   : > { %v4628_v49 = vadd.f32 %v4627_v11, %v4539_v0  ;;  %v13686_v45 = vpack.c.bf16 %v5560_v2, %v5552_v43  ;;  %v12132_v2 = vld [vmem:[#allocation7] sm:$0xff] }
 0x7e3   : > { %v4716_v39 = vpop.f32.mrf.mxu3  ;;  %v4451_v44 = vpop.f32.mrf.mxu0  ;;  %v13697_v3 = vperm.slane %v12132_v2, 7 }
 0x7e4   : > { %v4452_v46 = vadd.f32 %v4451_v44, %v13567_v29  ;;  %v4717_v26 = vadd.f32 %v4716_v39, %v4628_v49  ;;  %v10970_v39 = vld [vmem:[#allocation8 + $0x1b0] sm:$0xf]  ;;  %v11902_v44 = vld [vmem:[#allocation8 + $0x1b8] sm:$0xf0] }
 0x7e6   : > { %v4541_v54 = vadd.f32 %v4540_v48, %v4452_v46  ;;  %v5312_v38 = vmul.f32 0.2, %v4717_v26  ;;  %v10971_v46 = vor.u32 %v11902_v44, %v10970_v39  ;;  %v11854_v48 = vld [vmem:[#allocation8 + $0x38] sm:$0xf0] }
 0x7e8   : > { %v5568_v58 = vmax.f32 %v4717_v26, %v5312_v38  ;;  %v11066_v26 = vld [vmem:[#allocation8 + $0x270] sm:$0xf]  ;;  %7193 = vmatpush.bf16.msra.mxu2 %v10971_v46 }
 0x7e9   : > { %v4629_v41 = vpop.f32.mrf.mxu2  ;;  %v4543_v15 = vpop.f32.mrf.mxu1 }
 0x7ea   : > { %v4630_v53 = vadd.f32 %v4629_v41, %v4541_v54  ;;  %v11926_v54 = vld [vmem:[#allocation8 + $0x278] sm:$0xf0]  ;;  %v10779_v41 = vor.u32 %v11854_v48, %v10778_v5  ;;  %v15193_v48 = vld [vmem:[#allocation21_spill] sm:$0xff] }
 0x7eb   : > { %v4718_v36 = vpop.f32.mrf.mxu3  ;;  %v4454_v13 = vpop.f32.mrf.mxu0  ;;  %v11067_v12 = vor.u32 %v11926_v54, %v11066_v26  ;;  %v15194_v54 = vld [vmem:[#allocation22_spill] sm:$0xff] }
 0x7ec   : > { %v4455_v16 = vadd.f32 %v4454_v13, %v13567_v29  ;;  %v4719_v10 = vadd.f32 %v4718_v36, %v4630_v53  ;;  %4858 = vmatmul.bf16.gmra.mxu1 %v12651_v21  ;;  %7015 = vmatpush.bf16.msra.mxu0 %v10779_v41  ;;  %v10874_v13 = vld [vmem:[#allocation8 + $0xf0] sm:$0xf] }
 0x7ed   : > { %7282 = vmatpush.bf16.msra.mxu3 %v11067_v12  ;;  %v10958_v12 = vld [vmem:[#allocation8 + $0x198] sm:$0xf] }
 0x7ee   : > { %v4544_v32 = vadd.f32 %v4543_v15, %v4455_v16  ;;  %4769 = vmatmul.bf16.gmra.mxu0 %v12649_v19  ;;  %v5320_v9 = vmul.f32 0.2, %v4719_v10  ;;  %4947 = vmatmul.bf16.gmra.mxu2 %v12653_v22  ;;  %v11878_v16 = vld [vmem:[#allocation8 + $0xf8] sm:$0xf0] }
 0x7ef   : > { %v10875_v38 = vor.u32 %v11878_v16, %v10874_v13  ;;  %v11851_v13 = vld [vmem:[#allocation8 + $0x20] sm:$0xf0]  ;;  %v11054_v16 = vld [vmem:[#allocation8 + $0x258] sm:$0xf] }
 0x7f0   : > { %5036 = vmatmul.bf16.gmra.mxu3 %v12655_v23  ;;  %v5576_v33 = vmax.f32 %v4719_v10, %v5320_v9 }
 0x7f1   : > { %v4632_v62 = vpop.f32.mrf.mxu2  ;;  %v4545_v7 = vpop.f32.mrf.mxu1  ;;  %7104 = vmatpush.bf16.msra.mxu1 %v10875_v38 }
 0x7f2   : > { %v4633_v34 = vadd.f32 %v4632_v62, %v4544_v32  ;;  %v13694_v61 = vpack.c.bf16 %v5576_v33, %v5568_v58 }
 0x7f3   : > { %v4721_v35 = vpop.f32.mrf.mxu3  ;;  %v4456_v18 = vpop.f32.mrf.mxu0 }
 0x7f4   : > { %v4457_v0 = vadd.f32 %v4456_v18, %v13567_v29  ;;  %v4722_v43 = vadd.f32 %v4721_v35, %v4633_v34 }
 0x7f6   : > { %v4546_v19 = vadd.f32 %v4545_v7, %v4457_v0  ;;  %v5328_v4 = vmul.f32 0.2, %v4722_v43  ;;  %v15189_v0 = vld [vmem:[#allocation17_spill] sm:$0xff]  ;;  %v15190_v7 = vld [vmem:[#allocation18_spill] sm:$0xff] }
 0x7f8   : > { %v5584_v29 = vmax.f32 %v4722_v43, %v5328_v4  ;;  %v15191_v43 = vld [vmem:[#allocation19_spill] sm:$0xff] }
 0x7f9   : > { %v4634_v21 = vpop.f32.mrf.mxu2  ;;  %v4824_v11 = vpop.f32.mrf.mxu1 }
 0x7fa   : > { %v4635_v22 = vadd.f32 %v4634_v21, %v4546_v19 }
 0x7fb   : > { %v4723_v28 = vpop.f32.mrf.mxu3  ;;  %v4735_v23 = vpop.f32.mrf.mxu0 }
 0x7fc   : > { %v4736_v37 = vadd.f32 %v4735_v23, %v13697_v3  ;;  %v4724_v20 = vadd.f32 %v4723_v28, %v4635_v22  ;;  %4863 = vmatmul.bf16.gmra.mxu1 %v12673_v56 }
 0x7fe   : > { %v4825_v40 = vadd.f32 %v4824_v11, %v4736_v37  ;;  %4774 = vmatmul.bf16.gmra.mxu0 %v12671_v42  ;;  %v5336_v24 = vmul.f32 0.2, %v4724_v20  ;;  %4952 = vmatmul.bf16.gmra.mxu2 %v12675_v57 }
 0x800   : > { %5041 = vmatmul.bf16.gmra.mxu3 %v12678_v60  ;;  %v5592_v49 = vmax.f32 %v4724_v20, %v5336_v24 }
 0x801   : > { %v4913_v50 = vpop.f32.mrf.mxu2  ;;  %v4826_v60 = vpop.f32.mrf.mxu1 }
 0x802   : > { %v4914_v55 = vadd.f32 %v4913_v50, %v4825_v40  ;;  %v13704_v56 = vpack.c.bf16 %v5592_v49, %v5584_v29 }
 0x803   : > { %v5002_v27 = vpop.f32.mrf.mxu3  ;;  %v4737_v42 = vpop.f32.mrf.mxu0 }
 0x804   : > { %15188 = vst [vmem:[#allocation143_spill] sm:$0xff] %v13704_v56  ;;  %v4738_v57 = vadd.f32 %v4737_v42, %v13697_v3  ;;  %v5003_v53 = vadd.f32 %v5002_v27, %v4914_v55  ;;  %v15195_v55 = vld [vmem:[#allocation23_spill] sm:$0xff]  ;;  %v15196_v27 = vld [vmem:[#allocation24_spill] sm:$0xff] }
 0x806   : > { %v4827_v36 = vadd.f32 %v4826_v60, %v4738_v57  ;;  %v5089_v62 = vmul.f32 0.2, %v5003_v53  ;;  %v11899_v57 = vld [vmem:[#allocation8 + $0x1a0] sm:$0xf0]  ;;  %v10766_v60 = vld [vmem:[#allocation8 + $0x18] sm:$0xf] }
 0x808   : > { %v5345_v19 = vmax.f32 %v5003_v53, %v5089_v62 }
 0x809   : > { %v4915_v15 = vpop.f32.mrf.mxu2  ;;  %v4829_v33 = vpop.f32.mrf.mxu1 }
 0x80a   : > { %v4916_v10 = vadd.f32 %v4915_v15, %v4827_v36  ;;  %v10959_v36 = vor.u32 %v11899_v57, %v10958_v12  ;;  %v11923_v15 = vld [vmem:[#allocation8 + $0x260] sm:$0xf0] }
 0x80b   : > { %v5004_v32 = vpop.f32.mrf.mxu3  ;;  %v4740_v9 = vpop.f32.mrf.mxu0 }
 0x80c   : > { %v4741_v58 = vadd.f32 %v4740_v9, %v13697_v3  ;;  %v5005_v34 = vadd.f32 %v5004_v32, %v4916_v10  ;;  %4868 = vmatmul.bf16.gmra.mxu1 %v15189_v0  ;;  %v10767_v9 = vor.u32 %v11851_v13, %v10766_v60  ;;  %7194 = vmatpush.bf16.msra.mxu2 %v10959_v36  ;;  %v10862_v0 = vld [vmem:[#allocation8 + $0xd8] sm:$0xf] }
 0x80e   : > { %v4830_v35 = vadd.f32 %v4829_v33, %v4741_v58  ;;  %4779 = vmatmul.bf16.gmra.mxu0 %v12693_v63  ;;  %v5097_v18 = vmul.f32 0.2, %v5005_v34  ;;  %4957 = vmatmul.bf16.gmra.mxu2 %v15190_v7  ;;  %v11055_v58 = vor.u32 %v11923_v15, %v11054_v16  ;;  %v11875_v7 = vld [vmem:[#allocation8 + $0xe0] sm:$0xf0] }
 0x80f   : > { %7016 = vmatpush.bf16.msra.mxu0 %v10767_v9  ;;  %v15205_v9 = vld [vmem:[#allocation33_spill] sm:$0xff] }
 0x810   : > { %5046 = vmatmul.bf16.gmra.mxu3 %v15191_v43  ;;  %v5353_v2 = vmax.f32 %v5005_v34, %v5097_v18 }
 0x811   : > { %v4918_v21 = vpop.f32.mrf.mxu2  ;;  %v4831_v4 = vpop.f32.mrf.mxu1  ;;  %7283 = vmatpush.bf16.msra.mxu3 %v11055_v58  ;;  %v15206_v58 = vld [vmem:[#allocation34_spill] sm:$0xff] }
 0x812   : > { %v13712_v22 = vpack.c.bf16 %v5353_v2, %v5345_v19  ;;  %v4919_v28 = vadd.f32 %v4918_v21, %v4830_v35  ;;  %v10863_v19 = vor.u32 %v11875_v7, %v10862_v0  ;;  %v10754_v0 = vld [vmem:[#allocation8] sm:$0xf] }
 0x813   : > { %v5007_v23 = vpop.f32.mrf.mxu3  ;;  %v4742_v37 = vpop.f32.mrf.mxu0 }
 0x814   : > { %15192 = vst [vmem:[#allocation17_spill] sm:$0xff] %v13712_v22  ;;  %v4743_v11 = vadd.f32 %v4742_v37, %v13697_v3  ;;  %v5008_v20 = vadd.f32 %v5007_v23, %v4919_v28  ;;  %7105 = vmatpush.bf16.msra.mxu1 %v10863_v19  ;;  %v11848_v19 = vld [vmem:[#allocation8 + $0x8] sm:$0xf0] }
 0x816   : > { %v4832_v63 = vadd.f32 %v4831_v4, %v4743_v11  ;;  %v5105_v5 = vmul.f32 0.2, %v5008_v20 }
 0x818   : > { %v5361_v42 = vmax.f32 %v5008_v20, %v5105_v5 }
 0x819   : > { %v4920_v40 = vpop.f32.mrf.mxu2  ;;  %v4834_v44 = vpop.f32.mrf.mxu1 }
 0x81a   : > { %v4921_v24 = vadd.f32 %v4920_v40, %v4832_v63  ;;  %v15198_v63 = vld [vmem:[#allocation26_spill] sm:$0xff] }
 0x81b   : > { %v5009_v29 = vpop.f32.mrf.mxu3  ;;  %v4745_v49 = vpop.f32.mrf.mxu0 }
 0x81c   : > { %v4746_v39 = vadd.f32 %v4745_v49, %v13697_v3  ;;  %v5010_v50 = vadd.f32 %v5009_v29, %v4921_v24  ;;  %4873 = vmatmul.bf16.gmra.mxu1 %v15194_v54  ;;  %v15199_v24 = vld [vmem:[#allocation27_spill] sm:$0xff]  ;;  %v15200_v29 = vld [vmem:[#allocation28_spill] sm:$0xff]  ;;  %v15201_v49 = vld [vmem:[#allocation29_spill] sm:$0xff] }
 0x81e   : > { %v4835_v46 = vadd.f32 %v4834_v44, %v4746_v39  ;;  %4784 = vmatmul.bf16.gmra.mxu0 %v15193_v48  ;;  %v5113_v26 = vmul.f32 0.2, %v5010_v50  ;;  %4962 = vmatmul.bf16.gmra.mxu2 %v15195_v55 }
 0x820   : > { %5051 = vmatmul.bf16.gmra.mxu3 %v15196_v27  ;;  %v5369_v41 = vmax.f32 %v5010_v50, %v5113_v26 }
 0x821   : > { %v4923_v53 = vpop.f32.mrf.mxu2  ;;  %v4836_v34 = vpop.f32.mrf.mxu1 }
 0x822   : > { %v4924_v38 = vadd.f32 %v4923_v53, %v4835_v46  ;;  %v13720_v33 = vpack.c.bf16 %v5369_v41, %v5361_v42 }
 0x823   : > { %v5012_v10 = vpop.f32.mrf.mxu3  ;;  %v4747_v32 = vpop.f32.mrf.mxu0 }
 0x824   : > { %15197 = vst [vmem:[#allocation18_spill] sm:$0xff] %v13720_v33  ;;  %v4748_v62 = vadd.f32 %v4747_v32, %v13697_v3  ;;  %v5013_v35 = vadd.f32 %v5012_v10, %v4924_v38  ;;  %v15203_v38 = vld [vmem:[#allocation31_spill] sm:$0xff]  ;;  %v15204_v32 = vld [vmem:[#allocation32_spill] sm:$0xff] }
 0x826   : > { %v4837_v18 = vadd.f32 %v4836_v34, %v4748_v62  ;;  %v5121_v11 = vmul.f32 0.2, %v5013_v35 }
 0x828   : > { %v5377_v39 = vmax.f32 %v5013_v35, %v5121_v11  ;;  %v10946_v35 = vld [vmem:[#allocation8 + $0x180] sm:$0xf]  ;;  %v10755_v11 = vor.u32 %v11848_v19, %v10754_v0 }
 0x829   : > { %v4925_v43 = vpop.f32.mrf.mxu2  ;;  %v4839_v37 = vpop.f32.mrf.mxu1 }
 0x82a   : > { %v4926_v2 = vadd.f32 %v4925_v43, %v4837_v18  ;;  %v11896_v18 = vld [vmem:[#allocation8 + $0x188] sm:$0xf0]  ;;  %7017 = vmatpush.bf16.msra.mxu0 %v10755_v11 }
 0x82b   : > { %v5014_v21 = vpop.f32.mrf.mxu3  ;;  %v4750_v28 = vpop.f32.mrf.mxu0  ;;  %v10947_v43 = vor.u32 %v11896_v18, %v10946_v35 }
 0x82c   : > { %v4751_v23 = vadd.f32 %v4750_v28, %v13697_v3  ;;  %v5015_v4 = vadd.f32 %v5014_v21, %v4926_v2  ;;  %4878 = vmatmul.bf16.gmra.mxu1 %v15199_v24  ;;  %v11042_v2 = vld [vmem:[#allocation8 + $0x240] sm:$0xf]  ;;  %v11920_v21 = vld [vmem:[#allocation8 + $0x248] sm:$0xf0] }
 0x82d   : > { %7195 = vmatpush.bf16.msra.mxu2 %v10947_v43 }
 0x82e   : > { %v4840_v20 = vadd.f32 %v4839_v37, %v4751_v23  ;;  %4789 = vmatmul.bf16.gmra.mxu0 %v15198_v63  ;;  %v5129_v40 = vmul.f32 0.2, %v5015_v4  ;;  %4967 = vmatmul.bf16.gmra.mxu2 %v15200_v29 }
 0x830   : > { %5056 = vmatmul.bf16.gmra.mxu3 %v15201_v49  ;;  %v5385_v44 = vmax.f32 %v5015_v4, %v5129_v40  ;;  %v11043_v4 = vor.u32 %v11920_v21, %v11042_v2  ;;  %v10850_v49 = vld [vmem:[#allocation8 + $0xc0] sm:$0xf] }
 0x831   : > { %v4928_v5 = vpop.f32.mrf.mxu2  ;;  %v4841_v55 = vpop.f32.mrf.mxu1 }
 0x832   : > { %v4929_v50 = vadd.f32 %v4928_v5, %v4840_v20  ;;  %v13728_v26 = vpack.c.bf16 %v5385_v44, %v5377_v39  ;;  %7284 = vmatpush.bf16.msra.mxu3 %v11043_v4  ;;  %v11872_v39 = vld [vmem:[#allocation8 + $0xc8] sm:$0xf0]  ;;  %v15214_v4 = vld [vmem:[#allocation42_spill] sm:$0xff] }
 0x833   : > { %v5017_v46 = vpop.f32.mrf.mxu3  ;;  %v4752_v48 = vpop.f32.mrf.mxu0  ;;  %v10851_v5 = vor.u32 %v11872_v39, %v10850_v49  ;;  %v11414_v49 = vld [vmem:[#allocation8 + $0x528] sm:$0xf]  ;;  %v12013_v39 = vld [vmem:[#allocation8 + $0x530] sm:$0xf0] }
 0x834   : > { %15202 = vst [vmem:[#allocation19_spill] sm:$0xff] %v13728_v26  ;;  %v4753_v54 = vadd.f32 %v4752_v48, %v13697_v3  ;;  %v5018_v27 = vadd.f32 %v5017_v46, %v4929_v50 }
 0x835   : > { %7106 = vmatpush.bf16.msra.mxu1 %v10851_v5 }
 0x836   : > { %v4842_v42 = vadd.f32 %v4841_v55, %v4753_v54  ;;  %v5137_v13 = vmul.f32 0.2, %v5018_v27 }
 0x838   : > { %v5393_v62 = vmax.f32 %v5018_v27, %v5137_v13 }
 0x839   : > { %v4930_v41 = vpop.f32.mrf.mxu2  ;;  %v4844_v36 = vpop.f32.mrf.mxu1 }
 0x83a   : > { %v4931_v12 = vadd.f32 %v4930_v41, %v4842_v42 }
 0x83b   : > { %v5019_v57 = vpop.f32.mrf.mxu3  ;;  %v4755_v60 = vpop.f32.mrf.mxu0 }
 0x83c   : > { %v4756_v53 = vadd.f32 %v4755_v60, %v13697_v3  ;;  %v5020_v16 = vadd.f32 %v5019_v57, %v4931_v12  ;;  %4883 = vmatmul.bf16.gmra.mxu1 %v15204_v32  ;;  %v15208_v12 = vld [vmem:[#allocation36_spill] sm:$0xff]  ;;  %v15209_v60 = vld [vmem:[#allocation37_spill] sm:$0xff] }
 0x83e   : > { %v4845_v15 = vadd.f32 %v4844_v36, %v4756_v53  ;;  %4794 = vmatmul.bf16.gmra.mxu0 %v15203_v38  ;;  %v5145_v10 = vmul.f32 0.2, %v5020_v16  ;;  %4972 = vmatmul.bf16.gmra.mxu2 %v15205_v9  ;;  %v15210_v53 = vld [vmem:[#allocation38_spill] sm:$0xff]  ;;  %v15211_v36 = vld [vmem:[#allocation39_spill] sm:$0xff] }
 0x840   : > { %5061 = vmatmul.bf16.gmra.mxu3 %v15206_v58  ;;  %v5401_v34 = vmax.f32 %v5020_v16, %v5145_v10 }
 0x841   : > { %v4933_v7 = vpop.f32.mrf.mxu2  ;;  %v4846_v40 = vpop.f32.mrf.mxu1 }
 0x842   : > { %v4934_v28 = vadd.f32 %v4933_v7, %v4845_v15  ;;  %v13736_v20 = vpack.c.bf16 %v5401_v34, %v5393_v62 }
 0x843   : > { %v5022_v23 = vpop.f32.mrf.mxu3  ;;  %v4757_v37 = vpop.f32.mrf.mxu0 }
 0x844   : > { %15207 = vst [vmem:[#allocation21_spill] sm:$0xff] %v13736_v20  ;;  %v4758_v63 = vadd.f32 %v4757_v37, %v13697_v3  ;;  %v5023_v24 = vadd.f32 %v5022_v23, %v4934_v28  ;;  %v15213_v37 = vld [vmem:[#allocation41_spill] sm:$0xff] }
 0x846   : > { %v4847_v29 = vadd.f32 %v4846_v40, %v4758_v63  ;;  %v5153_v27 = vmul.f32 0.2, %v5023_v24  ;;  %v15215_v63 = vld [vmem:[#allocation43_spill] sm:$0xff]  ;;  %v15216_v40 = vld [vmem:[#allocation44_spill] sm:$0xff] }
 0x848   : > { %v5409_v13 = vmax.f32 %v5023_v24, %v5153_v27 }
 0x849   : > { %v4935_v44 = vpop.f32.mrf.mxu2  ;;  %v4849_v55 = vpop.f32.mrf.mxu1 }
 0x84a   : > { %v4936_v50 = vadd.f32 %v4935_v44, %v4847_v29  ;;  %v11222_v44 = vld [vmem:[#allocation8 + $0x3a8] sm:$0xf] }
 0x84b   : > { %v5024_v46 = vpop.f32.mrf.mxu3  ;;  %v4760_v48 = vpop.f32.mrf.mxu0 }
 0x84c   : > { %v4761_v54 = vadd.f32 %v4760_v48, %v13697_v3  ;;  %v5025_v42 = vadd.f32 %v5024_v46, %v4936_v50  ;;  %4888 = vmatmul.bf16.gmra.mxu1 %v15209_v60  ;;  %v11415_v50 = vor.u32 %v12013_v39, %v11414_v49  ;;  %v11965_v46 = vld [vmem:[#allocation8 + $0x3b0] sm:$0xf0]  ;;  %v11510_v48 = vld [vmem:[#allocation8 + $0x5e8] sm:$0xf] }
 0x84e   : > { %v4850_v41 = vadd.f32 %v4849_v55, %v4761_v54  ;;  %4799 = vmatmul.bf16.gmra.mxu0 %v15208_v12  ;;  %v5161_v57 = vmul.f32 0.2, %v5025_v42  ;;  %4977 = vmatmul.bf16.gmra.mxu2 %v15210_v53  ;;  %v12037_v54 = vld [vmem:[#allocation8 + $0x5f0] sm:$0xf0] }
 0x84f   : > { %v11511_v12 = vor.u32 %v12037_v54, %v11510_v48  ;;  %7544 = vmatpush.bf16.msrb.mxu2 %v11415_v50  ;;  %v15219_v50 = vld [vmem:[#allocation20_spill] sm:$0xff] }
 0x850   : > { %5066 = vmatmul.bf16.gmra.mxu3 %v15211_v36  ;;  %v5417_v16 = vmax.f32 %v5025_v42, %v5161_v57  ;;  %v15220_v48 = vld [vmem:[#allocation56_spill] sm:$0xff] }
 0x851   : > { %v4938_v15 = vpop.f32.mrf.mxu2  ;;  %v4851_v62 = vpop.f32.mrf.mxu1  ;;  %7633 = vmatpush.bf16.msrb.mxu3 %v11511_v12  ;;  %v15221_v54 = vld [vmem:[#allocation72_spill] sm:$0xff]  ;;  %v12010_v12 = vld [vmem:[#allocation8 + $0x518] sm:$0xf0] }
 0x852   : > { %v4939_v38 = vadd.f32 %v4938_v15, %v4850_v41  ;;  %v13744_v9 = vpack.c.bf16 %v5417_v16, %v5409_v13  ;;  %v11223_v41 = vor.u32 %v11965_v46, %v11222_v44  ;;  %v11318_v16 = vld [vmem:[#allocation8 + $0x468] sm:$0xf]  ;;  %v11989_v15 = vld [vmem:[#allocation8 + $0x470] sm:$0xf0] }
 0x853   : > { %v5027_v10 = vpop.f32.mrf.mxu3  ;;  %v4762_v32 = vpop.f32.mrf.mxu0 }
 0x854   : > { %15212 = vst [vmem:[#allocation22_spill] sm:$0xff] %v13744_v9  ;;  %v4763_v58 = vadd.f32 %v4762_v32, %v13697_v3  ;;  %v5028_v34 = vadd.f32 %v5027_v10, %v4939_v38  ;;  %7366 = vmatpush.bf16.msrb.mxu0 %v11223_v41  ;;  %v11319_v10 = vor.u32 %v11989_v15, %v11318_v16  ;;  %v11402_v41 = vld [vmem:[#allocation8 + $0x510] sm:$0xf]  ;;  %v12034_v15 = vld [vmem:[#allocation8 + $0x5d8] sm:$0xf0] }
 0x855   : > { %v11498_v16 = vld [vmem:[#allocation8 + $0x5d0] sm:$0xf] }
 0x856   : > { %v4852_v35 = vadd.f32 %v4851_v62, %v4763_v58  ;;  %v5169_v21 = vmul.f32 0.2, %v5028_v34  ;;  %7455 = vmatpush.bf16.msrb.mxu1 %v11319_v10 }
 0x858   : > { %v5425_v24 = vmax.f32 %v5028_v34, %v5169_v21 }
 0x859   : > { %v4940_v18 = vpop.f32.mrf.mxu2  ;;  %v4854_v2 = vpop.f32.mrf.mxu1 }
 0x85a   : > { %v4941_v0 = vadd.f32 %v4940_v18, %v4852_v35 }
 0x85b   : > { %v5029_v7 = vpop.f32.mrf.mxu3  ;;  %v4765_v43 = vpop.f32.mrf.mxu0 }
 0x85c   : > { %v4766_v19 = vadd.f32 %v4765_v43, %v13697_v3  ;;  %v5030_v28 = vadd.f32 %v5029_v7, %v4941_v0  ;;  %4893 = vmatmul.bf16.gmra.mxu1 %v15214_v4 }
 0x85e   : > { %v4855_v23 = vadd.f32 %v4854_v2, %v4766_v19  ;;  %4804 = vmatmul.bf16.gmra.mxu0 %v15213_v37  ;;  %v5177_v11 = vmul.f32 0.2, %v5030_v28  ;;  %4982 = vmatmul.bf16.gmra.mxu2 %v15215_v63 }
 0x860   : > { %5071 = vmatmul.bf16.gmra.mxu3 %v15216_v40  ;;  %v5433_v29 = vmax.f32 %v5030_v28, %v5177_v11 }
 0x861   : > { %v4943_v5 = vpop.f32.mrf.mxu2  ;;  %v4856_v53 = vpop.f32.mrf.mxu1 }
 0x862   : > { %v4944_v55 = vadd.f32 %v4943_v5, %v4855_v23  ;;  %v13752_v57 = vpack.c.bf16 %v5433_v29, %v5425_v24 }
 0x863   : > { %v5032_v27 = vpop.f32.mrf.mxu3  ;;  %v4767_v42 = vpop.f32.mrf.mxu0 }
 0x864   : > { %15217 = vst [vmem:[#allocation23_spill] sm:$0xff] %v13752_v57  ;;  %v4768_v60 = vadd.f32 %v4767_v42, %v13697_v3  ;;  %v5033_v36 = vadd.f32 %v5032_v27, %v4944_v55  ;;  %v15222_v55 = vld [vmem:[#allocation88_spill] sm:$0xff] }
 0x866   : > { %v4857_v13 = vadd.f32 %v4856_v53, %v4768_v60  ;;  %v5185_v18 = vmul.f32 0.2, %v5033_v36  ;;  %v11210_v60 = vld [vmem:[#allocation8 + $0x390] sm:$0xf] }
 0x868   : > { %v5441_v19 = vmax.f32 %v5033_v36, %v5185_v18  ;;  %v11403_v36 = vor.u32 %v12010_v12, %v11402_v41 }
 0x869   : > { %v4945_v38 = vpop.f32.mrf.mxu2  ;;  %v4859_v35 = vpop.f32.mrf.mxu1 }
 0x86a   : > { %v4946_v32 = vadd.f32 %v4945_v38, %v4857_v13  ;;  %v11962_v13 = vld [vmem:[#allocation8 + $0x398] sm:$0xf0]  ;;  %7545 = vmatpush.bf16.msrb.mxu2 %v11403_v36 }
 0x86b   : > { %v5034_v58 = vpop.f32.mrf.mxu3  ;;  %v4770_v62 = vpop.f32.mrf.mxu0 }
 0x86c   : > { %v4771_v34 = vadd.f32 %v4770_v62, %v13697_v3  ;;  %v5035_v0 = vadd.f32 %v5034_v58, %v4946_v32  ;;  %4898 = vmatmul.bf16.gmra.mxu1 %v12839_v6  ;;  %v11211_v58 = vor.u32 %v11962_v13, %v11210_v60  ;;  %v11499_v62 = vor.u32 %v12034_v15, %v11498_v16 }
 0x86e   : > { %v4860_v7 = vadd.f32 %v4859_v35, %v4771_v34  ;;  %4809 = vmatmul.bf16.gmra.mxu0 %v12837_v17  ;;  %v5193_v43 = vmul.f32 0.2, %v5035_v0  ;;  %4987 = vmatmul.bf16.gmra.mxu2 %v12841_v30 }
 0x86f   : > { %7367 = vmatpush.bf16.msrb.mxu0 %v11211_v58  ;;  %7634 = vmatpush.bf16.msrb.mxu3 %v11499_v62 }
 0x870   : > { %5076 = vmatmul.bf16.gmra.mxu3 %v12844_v31  ;;  %v5449_v2 = vmax.f32 %v5035_v0, %v5193_v43  ;;  %v11306_v43 = vld [vmem:[#allocation8 + $0x450] sm:$0xf] }
 0x871   : > { %v4948_v21 = vpop.f32.mrf.mxu2  ;;  %v4861_v63 = vpop.f32.mrf.mxu1 }
 0x872   : > { %v4949_v28 = vadd.f32 %v4948_v21, %v4860_v7  ;;  %v13760_v11 = vpack.c.bf16 %v5449_v2, %v5441_v19  ;;  %v11986_v19 = vld [vmem:[#allocation8 + $0x458] sm:$0xf0] }
 0x873   : > { %v5037_v23 = vpop.f32.mrf.mxu3  ;;  %v4772_v37 = vpop.f32.mrf.mxu0  ;;  %v11307_v21 = vor.u32 %v11986_v19, %v11306_v43  ;;  %v15231_v43 = vld [vmem:[#allocation74_spill] sm:$0xff] }
 0x874   : > { %15218 = vst [vmem:[#allocation24_spill] sm:$0xff] %v13760_v11  ;;  %v4773_v4 = vadd.f32 %v4772_v37, %v13697_v3  ;;  %v5038_v40 = vadd.f32 %v5037_v23, %v4949_v28  ;;  %v15232_v19 = vld [vmem:[#allocation90_spill] sm:$0xff] }
 0x875   : > { %7456 = vmatpush.bf16.msrb.mxu1 %v11307_v21 }
 0x876   : > { %v4862_v17 = vadd.f32 %v4861_v63, %v4773_v4  ;;  %v5201_v39 = vmul.f32 0.2, %v5038_v40 }
 0x878   : > { %v5457_v27 = vmax.f32 %v5038_v40, %v5201_v39 }
 0x879   : > { %v4950_v24 = vpop.f32.mrf.mxu2  ;;  %v4864_v31 = vpop.f32.mrf.mxu1 }
 0x87a   : > { %v4951_v29 = vadd.f32 %v4950_v24, %v4862_v17 }
 0x87b   : > { %v5039_v6 = vpop.f32.mrf.mxu3  ;;  %v4775_v49 = vpop.f32.mrf.mxu0 }
 0x87c   : > { %v4776_v30 = vadd.f32 %v4775_v49, %v13697_v3  ;;  %v5040_v44 = vadd.f32 %v5039_v6, %v4951_v29  ;;  %7107 = vmatmul.bf16.vlgmr.msra.gmra.mxu1 %v15220_v48  ;;  %v15224_v29 = vld [vmem:[#allocation25_spill] sm:$0xff] }
 0x87d   : > { %v15225_v49 = vld [vmem:[#allocation57_spill] sm:$0xff] }
 0x87e   : > { %v4865_v5 = vadd.f32 %v4864_v31, %v4776_v30  ;;  %7018 = vmatmul.bf16.vlgmr.msra.gmra.mxu0 %v15219_v50  ;;  %v5209_v46 = vmul.f32 0.2, %v5040_v44  ;;  %7196 = vmatmul.bf16.vlgmr.msra.gmra.mxu2 %v15221_v54  ;;  %v15226_v30 = vld [vmem:[#allocation73_spill] sm:$0xff]  ;;  %v10924_v54 = vld [vmem:[#allocation8 + $0x15c] sm:$0xf0] }
 0x87f   : > { %v15227_v31 = vld [vmem:[#allocation89_spill] sm:$0xff] }
 0x880   : > { %7285 = vmatmul.bf16.vlgmr.msra.gmra.mxu3 %v15222_v55  ;;  %v5465_v42 = vmax.f32 %v5040_v44, %v5209_v46 }
 0x881   : > { %v4953_v53 = vpop.f32.mrf.mxu2  ;;  %v4866_v18 = vpop.f32.mrf.mxu1 }
 0x882   : > { %v4954_v38 = vadd.f32 %v4953_v53, %v4865_v5  ;;  %v13768_v34 = vpack.c.bf16 %v5465_v42, %v5457_v27 }
 0x883   : > { %v5042_v10 = vpop.f32.mrf.mxu3  ;;  %v4777_v32 = vpop.f32.mrf.mxu0 }
 0x884   : > { %15223 = vst [vmem:[#allocation26_spill] sm:$0xff] %v13768_v34  ;;  %v4778_v35 = vadd.f32 %v4777_v32, %v13697_v3  ;;  %v5043_v0 = vadd.f32 %v5042_v10, %v4954_v38 }
 0x886   : > { %v4867_v7 = vadd.f32 %v4866_v18, %v4778_v35  ;;  %v5217_v40 = vmul.f32 0.2, %v5043_v0  ;;  %v15229_v18 = vld [vmem:[#allocation30_spill] sm:$0xff] }
 0x888   : > { %v5473_v39 = vmax.f32 %v5043_v0, %v5217_v40  ;;  %v11959_v40 = vld [vmem:[#allocation8 + $0x380] sm:$0xf0] }
 0x889   : > { %v4955_v2 = vpop.f32.mrf.mxu2  ;;  %v4869_v63 = vpop.f32.mrf.mxu1 }
 0x88a   : > { %v4956_v28 = vadd.f32 %v4955_v2, %v4867_v7  ;;  %v15230_v7 = vld [vmem:[#allocation58_spill] sm:$0xff] }
 0x88b   : > { %v5044_v23 = vpop.f32.mrf.mxu3  ;;  %v4780_v37 = vpop.f32.mrf.mxu0 }
 0x88c   : > { %v4781_v4 = vadd.f32 %v4780_v37, %v13697_v3  ;;  %v5045_v17 = vadd.f32 %v5044_v23, %v4956_v28  ;;  %7112 = vmatmul.bf16.gmra.mxu1 %v15225_v49  ;;  %v11390_v28 = vld [vmem:[#allocation8 + $0x4f8] sm:$0xf]  ;;  %v12007_v23 = vld [vmem:[#allocation8 + $0x500] sm:$0xf0] }
 0x88d   : > { %v11198_v37 = vld [vmem:[#allocation8 + $0x378] sm:$0xf] }
 0x88e   : > { %v4870_v24 = vadd.f32 %v4869_v63, %v4781_v4  ;;  %7023 = vmatmul.bf16.gmra.mxu0 %v15224_v29  ;;  %v5225_v6 = vmul.f32 0.2, %v5045_v17  ;;  %7201 = vmatmul.bf16.gmra.mxu2 %v15226_v30  ;;  %v11391_v63 = vor.u32 %v12007_v23, %v11390_v28  ;;  %v15234_v23 = vld [vmem:[#allocation59_spill] sm:$0xff]  ;;  %v10936_v49 = vld [vmem:[#allocation8 + $0x174] sm:$0xf0] }
 0x890   : > { %7290 = vmatmul.bf16.gmra.mxu3 %v15227_v31  ;;  %v5481_v44 = vmax.f32 %v5045_v17, %v5225_v6  ;;  %v11486_v17 = vld [vmem:[#allocation8 + $0x5b8] sm:$0xf]  ;;  %7546 = vmatpush.bf16.msrb.mxu2 %v11391_v63 }
 0x891   : > { %v4958_v5 = vpop.f32.mrf.mxu2  ;;  %v4871_v60 = vpop.f32.mrf.mxu1 }
 0x892   : > { %v4959_v46 = vadd.f32 %v4958_v5, %v4870_v24  ;;  %v13776_v41 = vpack.c.bf16 %v5481_v44, %v5473_v39  ;;  %v12031_v24 = vld [vmem:[#allocation8 + $0x5c0] sm:$0xf0]  ;;  %v11199_v5 = vor.u32 %v11959_v40, %v11198_v37 }
 0x893   : > { %v5047_v27 = vpop.f32.mrf.mxu3  ;;  %v4782_v42 = vpop.f32.mrf.mxu0  ;;  %v15235_v37 = vld [vmem:[#allocation75_spill] sm:$0xff] }
 0x894   : > { %15228 = vst [vmem:[#allocation27_spill] sm:$0xff] %v13776_v41  ;;  %v4783_v12 = vadd.f32 %v4782_v42, %v13697_v3  ;;  %v5048_v53 = vadd.f32 %v5047_v27, %v4959_v46  ;;  %v11487_v46 = vor.u32 %v12031_v24, %v11486_v17  ;;  %7368 = vmatpush.bf16.msrb.mxu0 %v11199_v5 }
 0x896   : > { %v4872_v36 = vadd.f32 %v4871_v60, %v4783_v12  ;;  %v5233_v58 = vmul.f32 0.2, %v5048_v53  ;;  %7635 = vmatpush.bf16.msrb.mxu3 %v11487_v46 }
 0x898   : > { %v5489_v2 = vmax.f32 %v5048_v53, %v5233_v58 }
 0x899   : > { %v4960_v13 = vpop.f32.mrf.mxu2  ;;  %v4874_v32 = vpop.f32.mrf.mxu1 }
 0x89a   : > { %v4961_v16 = vadd.f32 %v4960_v13, %v4872_v36  ;;  %v11294_v36 = vld [vmem:[#allocation8 + $0x438] sm:$0xf]  ;;  %v11983_v13 = vld [vmem:[#allocation8 + $0x440] sm:$0xf0] }
 0x89b   : > { %v5049_v15 = vpop.f32.mrf.mxu3  ;;  %v4785_v38 = vpop.f32.mrf.mxu0 }
 0x89c   : > { %v4786_v10 = vadd.f32 %v4785_v38, %v13697_v3  ;;  %v5050_v62 = vadd.f32 %v5049_v15, %v4961_v16  ;;  %7117 = vmatmul.bf16.gmra.mxu1 %v15230_v7  ;;  %v11295_v15 = vor.u32 %v11983_v13, %v11294_v36  ;;  %v11968_v7 = vld [vmem:[#allocation8 + $0x3c8] sm:$0xf0] }
 0x89e   : > { %v4875_v35 = vadd.f32 %v4874_v32, %v4786_v10  ;;  %7028 = vmatmul.bf16.gmra.mxu0 %v15229_v18  ;;  %v5241_v0 = vmul.f32 0.2, %v5050_v62  ;;  %7206 = vmatmul.bf16.gmra.mxu2 %v15231_v43 }
 0x89f   : > { %7457 = vmatpush.bf16.msrb.mxu1 %v11295_v15 }
 0x8a0   : > { %7295 = vmatmul.bf16.gmra.mxu3 %v15232_v19  ;;  %v5497_v21 = vmax.f32 %v5050_v62, %v5241_v0 }
 0x8a1   : > { %v4963_v4 = vpop.f32.mrf.mxu2  ;;  %v4876_v12 = vpop.f32.mrf.mxu1 }
 0x8a2   : > { %v4964_v6 = vadd.f32 %v4963_v4, %v4875_v35  ;;  %v13784_v27 = vpack.c.bf16 %v5497_v21, %v5489_v2  ;;  %v15233_v21 = vld [vmem:[#allocation35_spill] sm:$0xff] }
 0x8a3   : > { %v5052_v39 = vpop.f32.mrf.mxu3  ;;  %v4787_v44 = vpop.f32.mrf.mxu0  ;;  %v15236_v4 = vld [vmem:[#allocation91_spill] sm:$0xff] }
 0x8a4   : > { %v4788_v42 = vadd.f32 %v4787_v44, %v13697_v3  ;;  %v5053_v60 = vadd.f32 %v5052_v39, %v4964_v6 }
 0x8a6   : > { %v4877_v53 = vadd.f32 %v4876_v12, %v4788_v42  ;;  %v5249_v35 = vmul.f32 0.2, %v5053_v60 }
 0x8a8   : > { %v5505_v63 = vmax.f32 %v5053_v60, %v5249_v35  ;;  %v15239_v35 = vld [vmem:[#allocation60_spill] sm:$0xff] }
 0x8a9   : > { %v4965_v16 = vpop.f32.mrf.mxu2  ;;  %v4879_v62 = vpop.f32.mrf.mxu1 }
 0x8aa   : > { %v4966_v38 = vadd.f32 %v4965_v16, %v4877_v53 }
 0x8ab   : > { %v5054_v10 = vpop.f32.mrf.mxu3  ;;  %v4790_v32 = vpop.f32.mrf.mxu0 }
 0x8ac   : > { %v4791_v58 = vadd.f32 %v4790_v32, %v13697_v3  ;;  %v5055_v0 = vadd.f32 %v5054_v10, %v4966_v38  ;;  %7122 = vmatmul.bf16.gmra.mxu1 %v15234_v23  ;;  %v11971_v23 = vld [vmem:[#allocation8 + $0x3e0] sm:$0xf0] }
 0x8ae   : > { %v4880_v2 = vadd.f32 %v4879_v62, %v4791_v58  ;;  %7033 = vmatmul.bf16.gmra.mxu0 %v15233_v21  ;;  %v5257_v28 = vmul.f32 0.2, %v5055_v0  ;;  %7211 = vmatmul.bf16.gmra.mxu2 %v15235_v37  ;;  %v15238_v58 = vld [vmem:[#allocation40_spill] sm:$0xff] }
 0x8b0   : > { %7300 = vmatmul.bf16.gmra.mxu3 %v15236_v4  ;;  %v5513_v40 = vmax.f32 %v5055_v0, %v5257_v28  ;;  %v15240_v0 = vld [vmem:[#allocation76_spill] sm:$0xff] }
 0x8b1   : > { %v4968_v17 = vpop.f32.mrf.mxu2  ;;  %v4881_v46 = vpop.f32.mrf.mxu1 }
 0x8b2   : > { %v4969_v24 = vadd.f32 %v4968_v17, %v4880_v2  ;;  %v13792_v44 = vpack.c.bf16 %v5513_v40, %v5505_v63  ;;  %v15241_v2 = vld [vmem:[#allocation92_spill] sm:$0xff]  ;;  %v11378_v40 = vld [vmem:[#allocation8 + $0x4e0] sm:$0xf] }
 0x8b3   : > { %v5057_v6 = vpop.f32.mrf.mxu3  ;;  %v4792_v39 = vpop.f32.mrf.mxu0  ;;  %v12004_v17 = vld [vmem:[#allocation8 + $0x4e8] sm:$0xf0] }
 0x8b4   : > { %15237 = vst [vmem:[#allocation28_spill] sm:$0xff] %v13792_v44  ;;  %v4793_v5 = vadd.f32 %v4792_v39, %v13697_v3  ;;  %v5058_v42 = vadd.f32 %v5057_v6, %v4969_v24  ;;  %v11186_v24 = vld [vmem:[#allocation8 + $0x360] sm:$0xf]  ;;  %v11379_v39 = vor.u32 %v12004_v17, %v11378_v40 }
 0x8b6   : > { %v4882_v12 = vadd.f32 %v4881_v46, %v4793_v5  ;;  %v5265_v60 = vmul.f32 0.2, %v5058_v42  ;;  %v11956_v5 = vld [vmem:[#allocation8 + $0x368] sm:$0xf0]  ;;  %v11474_v46 = vld [vmem:[#allocation8 + $0x5a0] sm:$0xf]  ;;  %7547 = vmatpush.bf16.msrb.mxu2 %v11379_v39 }
 0x8b8   : > { %v5521_v28 = vmax.f32 %v5058_v42, %v5265_v60 }
 0x8b9   : > { %v4970_v53 = vpop.f32.mrf.mxu2  ;;  %v4884_v38 = vpop.f32.mrf.mxu1 }
 0x8ba   : > { %v4971_v36 = vadd.f32 %v4970_v53, %v4882_v12  ;;  %v12028_v12 = vld [vmem:[#allocation8 + $0x5a8] sm:$0xf0] }
 0x8bb   : > { %v5059_v13 = vpop.f32.mrf.mxu3  ;;  %v4795_v16 = vpop.f32.mrf.mxu0 }
 0x8bc   : > { %v4796_v15 = vadd.f32 %v4795_v16, %v13697_v3  ;;  %v5060_v10 = vadd.f32 %v5059_v13, %v4971_v36  ;;  %7127 = vmatmul.bf16.gmra.mxu1 %v15239_v35  ;;  %v11187_v16 = vor.u32 %v11956_v5, %v11186_v24 }
 0x8be   : > { %v4885_v32 = vadd.f32 %v4884_v38, %v4796_v15  ;;  %7038 = vmatmul.bf16.gmra.mxu0 %v15238_v58  ;;  %v5273_v62 = vmul.f32 0.2, %v5060_v10  ;;  %7216 = vmatmul.bf16.gmra.mxu2 %v15240_v0  ;;  %v11475_v15 = vor.u32 %v12028_v12, %v11474_v46  ;;  %v15242_v12 = vld [vmem:[#allocation45_spill] sm:$0xff] }
 0x8bf   : > { %7369 = vmatpush.bf16.msrb.mxu0 %v11187_v16 }
 0x8c0   : > { %7305 = vmatmul.bf16.gmra.mxu3 %v15241_v2  ;;  %v5529_v63 = vmax.f32 %v5060_v10, %v5273_v62  ;;  %v11282_v10 = vld [vmem:[#allocation8 + $0x420] sm:$0xf]  ;;  %v11980_v62 = vld [vmem:[#allocation8 + $0x428] sm:$0xf0] }
 0x8c1   : > { %v4973_v6 = vpop.f32.mrf.mxu2  ;;  %v4886_v2 = vpop.f32.mrf.mxu1  ;;  %7636 = vmatpush.bf16.msrb.mxu3 %v11475_v15  ;;  %v11283_v17 = vor.u32 %v11980_v62, %v11282_v10 }
 0x8c2   : > { %v4974_v53 = vadd.f32 %v4973_v6, %v4885_v32  ;;  %v13800_v38 = vpack.c.bf16 %v5529_v63, %v5521_v28 }
 0x8c3   : > { %v5062_v36 = vpop.f32.mrf.mxu3  ;;  %v4797_v13 = vpop.f32.mrf.mxu0  ;;  %7458 = vmatpush.bf16.msrb.mxu1 %v11283_v17 }
 0x8c4   : > { %v4798_v0 = vadd.f32 %v4797_v13, %v13697_v3  ;;  %v5063_v42 = vadd.f32 %v5062_v36, %v4974_v53  ;;  %v15243_v53 = vld [vmem:[#allocation61_spill] sm:$0xff] }
 0x8c6   : > { %v4887_v60 = vadd.f32 %v4886_v2, %v4798_v0  ;;  %v5281_v28 = vmul.f32 0.2, %v5063_v42  ;;  %v15244_v0 = vld [vmem:[#allocation77_spill] sm:$0xff] }
 0x8c7   : > { %v15245_v2 = vld [vmem:[#allocation93_spill] sm:$0xff] }
 0x8c8   : > { %v5537_v36 = vmax.f32 %v5063_v42, %v5281_v28 }
 0x8c9   : > { %v4975_v40 = vpop.f32.mrf.mxu2  ;;  %v4889_v5 = vpop.f32.mrf.mxu1 }
 0x8ca   : > { %v4976_v35 = vadd.f32 %v4975_v40, %v4887_v60 }
 0x8cb   : > { %v5064_v32 = vpop.f32.mrf.mxu3  ;;  %v4800_v6 = vpop.f32.mrf.mxu0 }
 0x8cc   : > { %v4801_v24 = vadd.f32 %v4800_v6, %v13697_v3  ;;  %v5065_v63 = vadd.f32 %v5064_v32, %v4976_v35  ;;  %7132 = vmatmul.bf16.gmra.mxu1 %v15243_v53 }
 0x8ce   : > { %v4890_v46 = vadd.f32 %v4889_v5, %v4801_v24  ;;  %7043 = vmatmul.bf16.gmra.mxu0 %v15242_v12  ;;  %v5289_v39 = vmul.f32 0.2, %v5065_v63  ;;  %7221 = vmatmul.bf16.gmra.mxu2 %v15244_v0  ;;  %v11462_v12 = vld [vmem:[#allocation8 + $0x588] sm:$0xf] }
 0x8d0   : > { %7310 = vmatmul.bf16.gmra.mxu3 %v15245_v2  ;;  %v5545_v13 = vmax.f32 %v5065_v63, %v5289_v39 }
 0x8d1   : > { %v4978_v16 = vpop.f32.mrf.mxu2  ;;  %v4891_v40 = vpop.f32.mrf.mxu1 }
 0x8d2   : > { %v4979_v15 = vadd.f32 %v4978_v16, %v4890_v46  ;;  %v13808_v62 = vpack.c.bf16 %v5545_v13, %v5537_v36  ;;  %v15246_v46 = vld [vmem:[#allocation46_spill] sm:$0xff] }
 0x8d3   : > { %v5067_v60 = vpop.f32.mrf.mxu3  ;;  %v4802_v10 = vpop.f32.mrf.mxu0  ;;  %v15247_v36 = vld [vmem:[#allocation62_spill] sm:$0xff] }
 0x8d4   : > { %v4803_v35 = vadd.f32 %v4802_v10, %v13697_v3  ;;  %v5068_v17 = vadd.f32 %v5067_v60, %v4979_v15  ;;  %v15248_v13 = vld [vmem:[#allocation78_spill] sm:$0xff]  ;;  %v11366_v10 = vld [vmem:[#allocation8 + $0x4c8] sm:$0xf] }
 0x8d5   : > { %v15249_v16 = vld [vmem:[#allocation94_spill] sm:$0xff] }
 0x8d6   : > { %v4892_v32 = vadd.f32 %v4891_v40, %v4803_v35  ;;  %v5297_v42 = vmul.f32 0.2, %v5068_v17  ;;  %v12001_v35 = vld [vmem:[#allocation8 + $0x4d0] sm:$0xf0]  ;;  %v11174_v40 = vld [vmem:[#allocation8 + $0x348] sm:$0xf] }
 0x8d8   : > { %v5553_v15 = vmax.f32 %v5068_v17, %v5297_v42  ;;  %v11270_v42 = vld [vmem:[#allocation8 + $0x408] sm:$0xf] }
 0x8d9   : > { %v4980_v6 = vpop.f32.mrf.mxu2  ;;  %v4894_v2 = vpop.f32.mrf.mxu1 }
 0x8da   : > { %v4981_v24 = vadd.f32 %v4980_v6, %v4892_v32  ;;  %v11953_v6 = vld [vmem:[#allocation8 + $0x350] sm:$0xf0] }
 0x8db   : > { %v5069_v5 = vpop.f32.mrf.mxu3  ;;  %v4805_v53 = vpop.f32.mrf.mxu0 }
 0x8dc   : > { %v4806_v0 = vadd.f32 %v4805_v53, %v13697_v3  ;;  %v5070_v28 = vadd.f32 %v5069_v5, %v4981_v24  ;;  %7137 = vmatmul.bf16.gmra.mxu1 %v15247_v36  ;;  %v11367_v53 = vor.u32 %v12001_v35, %v11366_v10  ;;  %v12025_v24 = vld [vmem:[#allocation8 + $0x590] sm:$0xf0] }
 0x8dd   : > { %v11463_v58 = vor.u32 %v12025_v24, %v11462_v12  ;;  %v15250_v24 = vld [vmem:[#allocation47_spill] sm:$0xff] }
 0x8de   : > { %v4895_v63 = vadd.f32 %v4894_v2, %v4806_v0  ;;  %7048 = vmatmul.bf16.gmra.mxu0 %v15246_v46  ;;  %v5305_v39 = vmul.f32 0.2, %v5070_v28  ;;  %7226 = vmatmul.bf16.gmra.mxu2 %v15248_v13  ;;  %v11175_v46 = vor.u32 %v11953_v6, %v11174_v40 }
 0x8df   : > { %7548 = vmatpush.bf16.msrb.mxu2 %v11367_v53  ;;  %7637 = vmatpush.bf16.msrb.mxu3 %v11463_v58  ;;  %v15252_v58 = vld [vmem:[#allocation79_spill] sm:$0xff] }
 0x8e0   : > { %7315 = vmatmul.bf16.gmra.mxu3 %v15249_v16  ;;  %v5561_v60 = vmax.f32 %v5070_v28, %v5305_v39  ;;  %7370 = vmatpush.bf16.msrb.mxu0 %v11175_v46  ;;  %v11977_v28 = vld [vmem:[#allocation8 + $0x410] sm:$0xf0]  ;;  %v15251_v46 = vld [vmem:[#allocation63_spill] sm:$0xff] }
 0x8e1   : > { %v4983_v32 = vpop.f32.mrf.mxu2  ;;  %v4896_v16 = vpop.f32.mrf.mxu1  ;;  %v11271_v10 = vor.u32 %v11977_v28, %v11270_v42 }
 0x8e2   : > { %v4984_v0 = vadd.f32 %v4983_v32, %v4895_v63  ;;  %v13816_v36 = vpack.c.bf16 %v5561_v60, %v5553_v15 }
 0x8e3   : > { %v5072_v2 = vpop.f32.mrf.mxu3  ;;  %v4807_v5 = vpop.f32.mrf.mxu0  ;;  %7459 = vmatpush.bf16.msrb.mxu1 %v11271_v10 }
 0x8e4   : > { %v4808_v13 = vadd.f32 %v4807_v5, %v13697_v3  ;;  %v5073_v17 = vadd.f32 %v5072_v2, %v4984_v0 }
 0x8e6   : > { %v4897_v39 = vadd.f32 %v4896_v16, %v4808_v13  ;;  %v5313_v60 = vmul.f32 0.2, %v5073_v17  ;;  %v15253_v13 = vld [vmem:[#allocation95_spill] sm:$0xff] }
 0x8e8   : > { %v5569_v16 = vmax.f32 %v5073_v17, %v5313_v60 }
 0x8e9   : > { %v4985_v35 = vpop.f32.mrf.mxu2  ;;  %v4899_v15 = vpop.f32.mrf.mxu1 }
 0x8ea   : > { %v4986_v63 = vadd.f32 %v4985_v35, %v4897_v39 }
 0x8eb   : > { %v5074_v32 = vpop.f32.mrf.mxu3  ;;  %v4810_v4 = vpop.f32.mrf.mxu0 }
 0x8ec   : > { %v4811_v12 = vadd.f32 %v4810_v4, %v13697_v3  ;;  %v5075_v40 = vadd.f32 %v5074_v32, %v4986_v63  ;;  %7142 = vmatmul.bf16.gmra.mxu1 %v15251_v46  ;;  %v5978_v63 = vld [vmem:[%s14717_s4] sm:$0x7]  ;;  %v11450_v46 = vld [vmem:[#allocation8 + $0x570] sm:$0xf] }
 0x8ee   : > { %v4900_v6 = vadd.f32 %v4899_v15, %v4811_v12  ;;  %7053 = vmatmul.bf16.gmra.mxu0 %v15250_v24  ;;  %v5321_v53 = vmul.f32 0.2, %v5075_v40  ;;  %7231 = vmatmul.bf16.gmra.mxu2 %v15252_v58  ;;  %v13830_v12 = vperm.slane %v5978_v63, 0  ;;  %v11998_v63 = vld [vmem:[#allocation8 + $0x4b8] sm:$0xf0] }
 0x8ef   : > { %v12022_v24 = vld [vmem:[#allocation8 + $0x578] sm:$0xf0] }
 0x8f0   : > { %7320 = vmatmul.bf16.gmra.mxu3 %v15253_v13  ;;  %v5577_v0 = vmax.f32 %v5075_v40, %v5321_v53 }
 0x8f1   : > { %v4988_v2 = vpop.f32.mrf.mxu2  ;;  %v4901_v10 = vpop.f32.mrf.mxu1 }
 0x8f2   : > { %v4989_v5 = vadd.f32 %v4988_v2, %v4900_v6  ;;  %v13824_v4 = vpack.c.bf16 %v5577_v0, %v5569_v16 }
 0x8f3   : > { %v5077_v42 = vpop.f32.mrf.mxu3  ;;  %v4812_v28 = vpop.f32.mrf.mxu0 }
 0x8f4   : > { %v4813_v39 = vadd.f32 %v4812_v28, %v13697_v3  ;;  %v5078_v35 = vadd.f32 %v5077_v42, %v4989_v5  ;;  %v15254_v3 = vld [vmem:[#allocation48_spill] sm:$0xff] }
 0x8f5   : > { %v15255_v42 = vld [vmem:[#allocation64_spill] sm:$0xff] }
 0x8f6   : > { %v4902_v32 = vadd.f32 %v4901_v10, %v4813_v39  ;;  %v5329_v16 = vmul.f32 0.2, %v5078_v35  ;;  %v15256_v28 = vld [vmem:[#allocation80_spill] sm:$0xff]  ;;  %v11354_v10 = vld [vmem:[#allocation8 + $0x4b0] sm:$0xf] }
 0x8f7   : > { %v15257_v39 = vld [vmem:[#allocation96_spill] sm:$0xff]  ;;  %v11355_v58 = vor.u32 %v11998_v63, %v11354_v10 }
 0x8f9   : > { %v4990_v15 = vpop.f32.mrf.mxu2  ;;  %v7108_v53 = vpop.f32.mrf.mxu1  ;;  %7549 = vmatpush.bf16.msrb.mxu2 %v11355_v58 }
 0x8fa   : > { %v4991_v17 = vadd.f32 %v4990_v15, %v4902_v32  ;;  %v11162_v32 = vld [vmem:[#allocation8 + $0x330] sm:$0xf]  ;;  %v5585_v15 = vmax.f32 %v5078_v35, %v5329_v16 }
 0x8fb   : > { %v5079_v60 = vpop.f32.mrf.mxu3  ;;  %v7019_v40 = vpop.f32.mrf.mxu0  ;;  %v11258_v16 = vld [vmem:[#allocation8 + $0x3f0] sm:$0xf] }
 0x8fc   : > { %v7020_v6 = vadd.f32 %v7019_v40, %v13830_v12  ;;  %v5080_v0 = vadd.f32 %v5079_v60, %v4991_v17  ;;  %7147 = vmatmul.bf16.gmra.mxu1 %v15255_v42  ;;  %v11950_v40 = vld [vmem:[#allocation8 + $0x338] sm:$0xf0] }
 0x8fd   : > { %v11163_v60 = vor.u32 %v11950_v40, %v11162_v32  ;;  %v15260_v40 = vld [vmem:[#allocation65_spill] sm:$0xff] }
 0x8fe   : > { %v7109_v2 = vadd.f32 %v7108_v53, %v7020_v6  ;;  %7058 = vmatmul.bf16.gmra.mxu0 %v15254_v3  ;;  %v5337_v5 = vmul.f32 0.2, %v5080_v0  ;;  %7236 = vmatmul.bf16.gmra.mxu2 %v15256_v28  ;;  %v11451_v6 = vor.u32 %v12022_v24, %v11450_v46 }
 0x8ff   : > { %7371 = vmatpush.bf16.msrb.mxu0 %v11163_v60 }
 0x900   : > { %7325 = vmatmul.bf16.gmra.mxu3 %v15257_v39  ;;  %v5593_v13 = vmax.f32 %v5080_v0, %v5337_v5  ;;  %v11974_v0 = vld [vmem:[#allocation8 + $0x3f8] sm:$0xf0] }
 0x901   : > { %v7197_v17 = vpop.f32.mrf.mxu2  ;;  %v7110_v28 = vpop.f32.mrf.mxu1  ;;  %7638 = vmatpush.bf16.msrb.mxu3 %v11451_v6  ;;  %v11259_v10 = vor.u32 %v11974_v0, %v11258_v16 }
 0x902   : > { %v7198_v53 = vadd.f32 %v7197_v17, %v7109_v2  ;;  %v13837_v42 = vpack.c.bf16 %v5593_v13, %v5585_v15  ;;  %v15259_v15 = vld [vmem:[#allocation49_spill] sm:$0xff] }
 0x903   : > { %v7286_v3 = vpop.f32.mrf.mxu3  ;;  %v7021_v37 = vpop.f32.mrf.mxu0  ;;  %7460 = vmatpush.bf16.msrb.mxu1 %v11259_v10  ;;  %v15262_v17 = vld [vmem:[#allocation97_spill] sm:$0xff] }
 0x904   : > { %15258 = vst [vmem:[#allocation29_spill] sm:$0xff] %v13837_v42  ;;  %v7022_v39 = vadd.f32 %v7021_v37, %v13830_v12  ;;  %v13840_v35 = vadd.f32 %v7286_v3, %v7198_v53  ;;  %v15261_v3 = vld [vmem:[#allocation81_spill] sm:$0xff] }
 0x906   : > { %v7111_v5 = vadd.f32 %v7110_v28, %v7022_v39 }
 0x909   : > { %v7199_v63 = vpop.f32.mrf.mxu2  ;;  %v7113_v13 = vpop.f32.mrf.mxu1 }
 0x90a   : > { %v7200_v24 = vadd.f32 %v7199_v63, %v7111_v5 }
 0x90b   : > { %v7288_v46 = vpop.f32.mrf.mxu3  ;;  %v7024_v2 = vpop.f32.mrf.mxu0 }
 0x90c   : > { %v7025_v58 = vadd.f32 %v7024_v2, %v13830_v12  ;;  %v13843_v32 = vadd.f32 %v7288_v46, %v7200_v24  ;;  %7152 = vmatmul.bf16.gmra.mxu1 %v15260_v40  ;;  %v12019_v40 = vld [vmem:[#allocation8 + $0x560] sm:$0xf0] }
 0x90e   : > { %v7114_v37 = vadd.f32 %v7113_v13, %v7025_v58  ;;  %7063 = vmatmul.bf16.gmra.mxu0 %v15259_v15  ;;  %7241 = vmatmul.bf16.gmra.mxu2 %v15261_v3  ;;  %v15263_v3 = vld [vmem:[#allocation50_spill] sm:$0xff] }
 0x910   : > { %7330 = vmatmul.bf16.gmra.mxu3 %v15262_v17 }
 0x911   : > { %v7202_v28 = vpop.f32.mrf.mxu2  ;;  %v7115_v16 = vpop.f32.mrf.mxu1 }
 0x912   : > { %v7203_v39 = vadd.f32 %v7202_v28, %v7114_v37  ;;  %v15264_v37 = vld [vmem:[#allocation66_spill] sm:$0xff] }
 0x913   : > { %v7291_v60 = vpop.f32.mrf.mxu3  ;;  %v7026_v6 = vpop.f32.mrf.mxu0  ;;  %v15265_v28 = vld [vmem:[#allocation82_spill] sm:$0xff] }
 0x914   : > { %v7027_v53 = vadd.f32 %v7026_v6, %v13830_v12  ;;  %v13850_v0 = vadd.f32 %v7291_v60, %v7203_v39  ;;  %v15266_v6 = vld [vmem:[#allocation98_spill] sm:$0xff]  ;;  %v11995_v60 = vld [vmem:[#allocation8 + $0x4a0] sm:$0xf0] }
 0x915   : > { %v11342_v39 = vld [vmem:[#allocation8 + $0x498] sm:$0xf] }
 0x916   : > { %v7116_v5 = vadd.f32 %v7115_v16, %v7027_v53  ;;  %v11150_v53 = vld [vmem:[#allocation8 + $0x318] sm:$0xf]  ;;  %v11343_v16 = vor.u32 %v11995_v60, %v11342_v39 }
 0x918   : > { %7550 = vmatpush.bf16.msrb.mxu2 %v11343_v16 }
 0x919   : > { %v7204_v10 = vpop.f32.mrf.mxu2  ;;  %v7118_v58 = vpop.f32.mrf.mxu1 }
 0x91a   : > { %v7205_v63 = vadd.f32 %v7204_v10, %v7116_v5  ;;  %v11947_v5 = vld [vmem:[#allocation8 + $0x320] sm:$0xf0]  ;;  %v11438_v10 = vld [vmem:[#allocation8 + $0x558] sm:$0xf] }
 0x91b   : > { %v7293_v24 = vpop.f32.mrf.mxu3  ;;  %v7029_v46 = vpop.f32.mrf.mxu0  ;;  %v11151_v15 = vor.u32 %v11947_v5, %v11150_v53 }
 0x91c   : > { %v7030_v2 = vadd.f32 %v7029_v46, %v13830_v12  ;;  %v13853_v13 = vadd.f32 %v7293_v24, %v7205_v63  ;;  %7157 = vmatmul.bf16.gmra.mxu1 %v15264_v37  ;;  %v11439_v63 = vor.u32 %v12019_v40, %v11438_v10 }
 0x91d   : > { %7372 = vmatpush.bf16.msrb.mxu0 %v11151_v15  ;;  %v15268_v15 = vld [vmem:[#allocation67_spill] sm:$0xff] }
 0x91e   : > { %v7119_v17 = vadd.f32 %v7118_v58, %v7030_v2  ;;  %7068 = vmatmul.bf16.gmra.mxu0 %v15263_v3  ;;  %7246 = vmatmul.bf16.gmra.mxu2 %v15265_v28  ;;  %v11246_v28 = vld [vmem:[#allocation8 + $0x3d8] sm:$0xf] }
 0x91f   : > { %7639 = vmatpush.bf16.msrb.mxu3 %v11439_v63  ;;  %v11247_v60 = vor.u32 %v11971_v23, %v11246_v28  ;;  %v15269_v63 = vld [vmem:[#allocation83_spill] sm:$0xff] }
 0x920   : > { %7335 = vmatmul.bf16.gmra.mxu3 %v15266_v6 }
 0x921   : > { %v7207_v46 = vpop.f32.mrf.mxu2  ;;  %v7120_v3 = vpop.f32.mrf.mxu1  ;;  %7461 = vmatpush.bf16.msrb.mxu1 %v11247_v60 }
 0x922   : > { %v7208_v24 = vadd.f32 %v7207_v46, %v7119_v17  ;;  %v15267_v46 = vld [vmem:[#allocation51_spill] sm:$0xff] }
 0x923   : > { %v7296_v2 = vpop.f32.mrf.mxu3  ;;  %v7031_v58 = vpop.f32.mrf.mxu0 }
 0x924   : > { %v7032_v37 = vadd.f32 %v7031_v58, %v13830_v12  ;;  %v13860_v6 = vadd.f32 %v7296_v2, %v7208_v24  ;;  %v15270_v24 = vld [vmem:[#allocation99_spill] sm:$0xff] }
 0x926   : > { %v7121_v39 = vadd.f32 %v7120_v3, %v7032_v37 }
 0x929   : > { %v7209_v21 = vpop.f32.mrf.mxu2  ;;  %v7123_v5 = vpop.f32.mrf.mxu1 }
 0x92a   : > { %v7210_v19 = vadd.f32 %v7209_v21, %v7121_v39 }
 0x92b   : > { %v7298_v53 = vpop.f32.mrf.mxu3  ;;  %v7034_v40 = vpop.f32.mrf.mxu0 }
 0x92c   : > { %v7035_v17 = vadd.f32 %v7034_v40, %v13830_v12  ;;  %v13863_v16 = vadd.f32 %v7298_v53, %v7210_v19  ;;  %7162 = vmatmul.bf16.gmra.mxu1 %v15268_v15  ;;  %v15271_v15 = vld [vmem:[#allocation52_spill] sm:$0xff] }
 0x92e   : > { %v7124_v10 = vadd.f32 %v7123_v5, %v7035_v17  ;;  %7073 = vmatmul.bf16.gmra.mxu0 %v15267_v46  ;;  %7251 = vmatmul.bf16.gmra.mxu2 %v15269_v63  ;;  %v12016_v46 = vld [vmem:[#allocation8 + $0x548] sm:$0xf0] }
 0x930   : > { %7340 = vmatmul.bf16.gmra.mxu3 %v15270_v24 }
 0x931   : > { %v7212_v23 = vpop.f32.mrf.mxu2  ;;  %v7125_v2 = vpop.f32.mrf.mxu1 }
 0x932   : > { %v7213_v3 = vadd.f32 %v7212_v23, %v7124_v10  ;;  %v15272_v10 = vld [vmem:[#allocation68_spill] sm:$0xff] }
 0x933   : > { %v7301_v37 = vpop.f32.mrf.mxu3  ;;  %v7036_v21 = vpop.f32.mrf.mxu0  ;;  %v15273_v23 = vld [vmem:[#allocation84_spill] sm:$0xff] }
 0x934   : > { %v7037_v28 = vadd.f32 %v7036_v21, %v13830_v12  ;;  %v13870_v58 = vadd.f32 %v7301_v37, %v7213_v3  ;;  %v15274_v21 = vld [vmem:[#allocation100_spill] sm:$0xff]  ;;  %v11330_v3 = vld [vmem:[#allocation8 + $0x480] sm:$0xf] }
 0x935   : > { %v11992_v37 = vld [vmem:[#allocation8 + $0x488] sm:$0xf0] }
 0x936   : > { %v7126_v19 = vadd.f32 %v7125_v2, %v7037_v28  ;;  %v11138_v28 = vld [vmem:[#allocation8 + $0x300] sm:$0xf]  ;;  %v11331_v2 = vor.u32 %v11992_v37, %v11330_v3 }
 0x938   : > { %7551 = vmatpush.bf16.msrb.mxu2 %v11331_v2 }
 0x939   : > { %v7214_v39 = vpop.f32.mrf.mxu2  ;;  %v7128_v5 = vpop.f32.mrf.mxu1 }
 0x93a   : > { %v7215_v60 = vadd.f32 %v7214_v39, %v7126_v19  ;;  %v11944_v19 = vld [vmem:[#allocation8 + $0x308] sm:$0xf0]  ;;  %v11426_v39 = vld [vmem:[#allocation8 + $0x540] sm:$0xf] }
 0x93b   : > { %v7303_v53 = vpop.f32.mrf.mxu3  ;;  %v7039_v40 = vpop.f32.mrf.mxu0  ;;  %v11139_v43 = vor.u32 %v11944_v19, %v11138_v28 }
 0x93c   : > { %v7040_v17 = vadd.f32 %v7039_v40, %v13830_v12  ;;  %v13873_v63 = vadd.f32 %v7303_v53, %v7215_v60  ;;  %7167 = vmatmul.bf16.gmra.mxu1 %v15272_v10  ;;  %v11427_v60 = vor.u32 %v12016_v46, %v11426_v39 }
 0x93d   : > { %7373 = vmatpush.bf16.msrb.mxu0 %v11139_v43  ;;  %v15276_v43 = vld [vmem:[#allocation69_spill] sm:$0xff] }
 0x93e   : > { %v7129_v24 = vadd.f32 %v7128_v5, %v7040_v17  ;;  %7078 = vmatmul.bf16.gmra.mxu0 %v15271_v15  ;;  %7256 = vmatmul.bf16.gmra.mxu2 %v15273_v23  ;;  %v11234_v23 = vld [vmem:[#allocation8 + $0x3c0] sm:$0xf] }
 0x93f   : > { %7640 = vmatpush.bf16.msrb.mxu3 %v11427_v60  ;;  %v11235_v37 = vor.u32 %v11968_v7, %v11234_v23  ;;  %v15277_v60 = vld [vmem:[#allocation85_spill] sm:$0xff] }
 0x940   : > { %7345 = vmatmul.bf16.gmra.mxu3 %v15274_v21 }
 0x941   : > { %v7217_v40 = vpop.f32.mrf.mxu2  ;;  %v7130_v15 = vpop.f32.mrf.mxu1  ;;  %7462 = vmatpush.bf16.msrb.mxu1 %v11235_v37 }
 0x942   : > { %v7218_v53 = vadd.f32 %v7217_v40, %v7129_v24  ;;  %v15275_v40 = vld [vmem:[#allocation53_spill] sm:$0xff] }
 0x943   : > { %v7306_v17 = vpop.f32.mrf.mxu3  ;;  %v7041_v5 = vpop.f32.mrf.mxu0 }
 0x944   : > { %v7042_v10 = vadd.f32 %v7041_v5, %v13830_v12  ;;  %v13880_v21 = vadd.f32 %v7306_v17, %v7218_v53  ;;  %v15278_v53 = vld [vmem:[#allocation101_spill] sm:$0xff] }
 0x946   : > { %v7131_v3 = vadd.f32 %v7130_v15, %v7042_v10 }
 0x949   : > { %v7219_v18 = vpop.f32.mrf.mxu2  ;;  %v7133_v19 = vpop.f32.mrf.mxu1 }
 0x94a   : > { %v7220_v31 = vadd.f32 %v7219_v18, %v7131_v3 }
 0x94b   : > { %v7308_v28 = vpop.f32.mrf.mxu3  ;;  %v7044_v46 = vpop.f32.mrf.mxu0 }
 0x94c   : > { %v7045_v24 = vadd.f32 %v7044_v46, %v13830_v12  ;;  %v13883_v2 = vadd.f32 %v7308_v28, %v7220_v31  ;;  %7172 = vmatmul.bf16.gmra.mxu1 %v15276_v43  ;;  %v15279_v43 = vld [vmem:[#allocation54_spill] sm:$0xff] }
 0x94e   : > { %v7134_v39 = vadd.f32 %v7133_v19, %v7045_v24  ;;  %7083 = vmatmul.bf16.gmra.mxu0 %v15275_v40  ;;  %7261 = vmatmul.bf16.gmra.mxu2 %v15277_v60  ;;  %v11128_v40 = vld [vmem:[#allocation8 + $0x2f4] sm:$0xf0] }
 0x950   : > { %7350 = vmatmul.bf16.gmra.mxu3 %v15278_v53 }
 0x951   : > { %v7222_v7 = vpop.f32.mrf.mxu2  ;;  %v7135_v17 = vpop.f32.mrf.mxu1 }
 0x952   : > { %v7223_v15 = vadd.f32 %v7222_v7, %v7134_v39  ;;  %v15280_v39 = vld [vmem:[#allocation70_spill] sm:$0xff] }
 0x953   : > { %v7311_v10 = vpop.f32.mrf.mxu3  ;;  %v7046_v18 = vpop.f32.mrf.mxu0  ;;  %v15281_v7 = vld [vmem:[#allocation86_spill] sm:$0xff] }
 0x954   : > { %v7047_v23 = vadd.f32 %v7046_v18, %v13830_v12  ;;  %v13890_v5 = vadd.f32 %v7311_v10, %v7223_v15  ;;  %v15282_v18 = vld [vmem:[#allocation102_spill] sm:$0xff]  ;;  %v11916_v15 = vld [vmem:[#allocation8 + $0x22c] sm:$0xf] }
 0x955   : > { %v11032_v10 = vld [vmem:[#allocation8 + $0x234] sm:$0xf0] }
 0x956   : > { %v7136_v31 = vadd.f32 %v7135_v17, %v7047_v23  ;;  %v11868_v23 = vld [vmem:[#allocation8 + $0xac] sm:$0xf]  ;;  %v11035_v17 = vor.u32 %v11916_v15, %v11032_v10 }
 0x958   : > { %7900 = vmatpush.bf16.msra.mxu2 %v11035_v17 }
 0x959   : > { %v7224_v3 = vpop.f32.mrf.mxu2  ;;  %v7138_v19 = vpop.f32.mrf.mxu1 }
 0x95a   : > { %v7225_v37 = vadd.f32 %v7224_v3, %v7136_v31  ;;  %v10840_v31 = vld [vmem:[#allocation8 + $0xb4] sm:$0xf0]  ;;  %v11940_v3 = vld [vmem:[#allocation8 + $0x2ec] sm:$0xf] }
 0x95b   : > { %v7313_v28 = vpop.f32.mrf.mxu3  ;;  %v7049_v46 = vpop.f32.mrf.mxu0  ;;  %v10843_v30 = vor.u32 %v11868_v23, %v10840_v31 }
 0x95c   : > { %v7050_v24 = vadd.f32 %v7049_v46, %v13830_v12  ;;  %v13893_v60 = vadd.f32 %v7313_v28, %v7225_v37  ;;  %7177 = vmatmul.bf16.gmra.mxu1 %v15280_v39  ;;  %v11131_v37 = vor.u32 %v11940_v3, %v11128_v40 }
 0x95d   : > { %7722 = vmatpush.bf16.msra.mxu0 %v10843_v30  ;;  %v15284_v30 = vld [vmem:[#allocation71_spill] sm:$0xff] }
 0x95e   : > { %v7139_v53 = vadd.f32 %v7138_v19, %v7050_v24  ;;  %7088 = vmatmul.bf16.gmra.mxu0 %v15279_v43  ;;  %7266 = vmatmul.bf16.gmra.mxu2 %v15281_v7  ;;  %v11892_v7 = vld [vmem:[#allocation8 + $0x16c] sm:$0xf] }
 0x95f   : > { %7989 = vmatpush.bf16.msra.mxu3 %v11131_v37  ;;  %v10939_v10 = vor.u32 %v11892_v7, %v10936_v49  ;;  %v15285_v37 = vld [vmem:[#allocation87_spill] sm:$0xff] }
 0x960   : > { %7355 = vmatmul.bf16.gmra.mxu3 %v15282_v18 }
 0x961   : > { %v7227_v46 = vpop.f32.mrf.mxu2  ;;  %v7140_v43 = vpop.f32.mrf.mxu1  ;;  %7811 = vmatpush.bf16.msra.mxu1 %v10939_v10 }
 0x962   : > { %v7228_v28 = vadd.f32 %v7227_v46, %v7139_v53  ;;  %v15283_v46 = vld [vmem:[#allocation55_spill] sm:$0xff] }
 0x963   : > { %v7316_v24 = vpop.f32.mrf.mxu3  ;;  %v7051_v19 = vpop.f32.mrf.mxu0 }
 0x964   : > { %v7052_v39 = vadd.f32 %v7051_v19, %v13830_v12  ;;  %v13900_v18 = vadd.f32 %v7316_v24, %v7228_v28  ;;  %v15286_v28 = vld [vmem:[#allocation103_spill] sm:$0xff] }
 0x966   : > { %v7141_v15 = vadd.f32 %v7140_v43, %v7052_v39 }
 0x969   : > { %v7229_v29 = vpop.f32.mrf.mxu2  ;;  %v7143_v31 = vpop.f32.mrf.mxu1 }
 0x96a   : > { %v7230_v55 = vadd.f32 %v7229_v29, %v7141_v15 }
 0x96b   : > { %v7318_v23 = vpop.f32.mrf.mxu3  ;;  %v7054_v40 = vpop.f32.mrf.mxu0 }
 0x96c   : > { %v7055_v53 = vadd.f32 %v7054_v40, %v13830_v12  ;;  %v13903_v17 = vadd.f32 %v7318_v23, %v7230_v55  ;;  %7182 = vmatmul.bf16.gmra.mxu1 %v15284_v30  ;;  %v15287_v30 = vld [vmem:[#allocation104_spill] sm:$0xff] }
 0x96e   : > { %v7144_v3 = vadd.f32 %v7143_v31, %v7055_v53  ;;  %7093 = vmatmul.bf16.gmra.mxu0 %v15283_v46  ;;  %7271 = vmatmul.bf16.gmra.mxu2 %v15285_v37 }
 0x970   : > { %7360 = vmatmul.bf16.gmra.mxu3 %v15286_v28 }
 0x971   : > { %v7232_v49 = vpop.f32.mrf.mxu2  ;;  %v7145_v24 = vpop.f32.mrf.mxu1 }
 0x972   : > { %v7233_v43 = vadd.f32 %v7232_v49, %v7144_v3  ;;  %v15288_v3 = vld [vmem:[#allocation120_spill] sm:$0xff] }
 0x973   : > { %v7321_v39 = vpop.f32.mrf.mxu3  ;;  %v7056_v29 = vpop.f32.mrf.mxu0  ;;  %v15289_v49 = vld [vmem:[#allocation136_spill] sm:$0xff] }
 0x974   : > { %v7057_v7 = vadd.f32 %v7056_v29, %v13830_v12  ;;  %v13910_v19 = vadd.f32 %v7321_v39, %v7233_v43  ;;  %v11913_v43 = vld [vmem:[#allocation8 + $0x214] sm:$0xf]  ;;  %v11020_v39 = vld [vmem:[#allocation8 + $0x21c] sm:$0xf0] }
 0x975   : > { %v11865_v29 = vld [vmem:[#allocation8 + $0x94] sm:$0xf] }
 0x976   : > { %v7146_v55 = vadd.f32 %v7145_v24, %v7057_v7  ;;  %v11023_v7 = vor.u32 %v11913_v43, %v11020_v39  ;;  %v10828_v24 = vld [vmem:[#allocation8 + $0x9c] sm:$0xf0] }
 0x977   : > { %v10831_v46 = vor.u32 %v11865_v29, %v10828_v24 }
 0x978   : > { %7901 = vmatpush.bf16.msra.mxu2 %v11023_v7 }
 0x979   : > { %v7234_v15 = vpop.f32.mrf.mxu2  ;;  %v7148_v31 = vpop.f32.mrf.mxu1  ;;  %7723 = vmatpush.bf16.msra.mxu0 %v10831_v46  ;;  %v15291_v46 = vld [vmem:[#allocation121_spill] sm:$0xff] }
 0x97a   : > { %v7235_v10 = vadd.f32 %v7234_v15, %v7146_v55  ;;  %v11937_v55 = vld [vmem:[#allocation8 + $0x2d4] sm:$0xf]  ;;  %v11116_v15 = vld [vmem:[#allocation8 + $0x2dc] sm:$0xf0] }
 0x97b   : > { %v7323_v23 = vpop.f32.mrf.mxu3  ;;  %v7059_v40 = vpop.f32.mrf.mxu0 }
 0x97c   : > { %v7060_v53 = vadd.f32 %v7059_v40, %v13830_v12  ;;  %v13913_v37 = vadd.f32 %v7323_v23, %v7235_v10  ;;  %7463 = vmatmul.bf16.vlgmr.msrb.gmra.mxu1 %v15288_v3  ;;  %v11119_v10 = vor.u32 %v11937_v55, %v11116_v15 }
 0x97e   : > { %v7149_v28 = vadd.f32 %v7148_v31, %v7060_v53  ;;  %7374 = vmatmul.bf16.vlgmr.msrb.gmra.mxu0 %v15287_v30  ;;  %7552 = vmatmul.bf16.vlgmr.msrb.gmra.mxu2 %v15289_v49  ;;  %v11889_v49 = vld [vmem:[#allocation8 + $0x154] sm:$0xf] }
 0x97f   : > { %7990 = vmatpush.bf16.msra.mxu3 %v11119_v10  ;;  %v10927_v39 = vor.u32 %v11889_v49, %v10924_v54  ;;  %v15292_v10 = vld [vmem:[#allocation137_spill] sm:$0xff] }
 0x980   : > { %7641 = vmatmul.bf16.vlgmr.msrb.gmra.mxu3 %v13712_v22 }
 0x981   : > { %v7237_v40 = vpop.f32.mrf.mxu2  ;;  %v7150_v30 = vpop.f32.mrf.mxu1  ;;  %7812 = vmatpush.bf16.msra.mxu1 %v10927_v39 }
 0x982   : > { %v7238_v23 = vadd.f32 %v7237_v40, %v7149_v28  ;;  %v15290_v40 = vld [vmem:[#allocation105_spill] sm:$0xff] }
 0x983   : > { %v7326_v53 = vpop.f32.mrf.mxu3  ;;  %v7061_v31 = vpop.f32.mrf.mxu0 }
 0x984   : > { %v7062_v3 = vadd.f32 %v7061_v31, %v13830_v12  ;;  %v13920_v22 = vadd.f32 %v7326_v53, %v7238_v23 }
 0x986   : > { %v7151_v43 = vadd.f32 %v7150_v30, %v7062_v3 }
 0x989   : > { %v7239_v48 = vpop.f32.mrf.mxu2  ;;  %v7153_v55 = vpop.f32.mrf.mxu1 }
 0x98a   : > { %v7240_v50 = vadd.f32 %v7239_v48, %v7151_v43 }
 0x98b   : > { %v7328_v29 = vpop.f32.mrf.mxu3  ;;  %v7064_v24 = vpop.f32.mrf.mxu0 }
 0x98c   : > { %v7065_v28 = vadd.f32 %v7064_v24, %v13830_v12  ;;  %v13923_v7 = vadd.f32 %v7328_v29, %v7240_v50  ;;  %7468 = vmatmul.bf16.gmra.mxu1 %v15291_v46 }
 0x98e   : > { %v7154_v15 = vadd.f32 %v7153_v55, %v7065_v28  ;;  %7379 = vmatmul.bf16.gmra.mxu0 %v15290_v40  ;;  %7557 = vmatmul.bf16.gmra.mxu2 %v15292_v10  ;;  %v15295_v10 = vld [vmem:[#allocation106_spill] sm:$0xff]  ;;  %v10912_v40 = vld [vmem:[#allocation8 + $0x144] sm:$0xf0] }
 0x990   : > { %7646 = vmatmul.bf16.gmra.mxu3 %v13720_v33 }
 0x991   : > { %v7242_v54 = vpop.f32.mrf.mxu2  ;;  %v7155_v23 = vpop.f32.mrf.mxu1 }
 0x992   : > { %v7243_v30 = vadd.f32 %v7242_v54, %v7154_v15  ;;  %v15296_v15 = vld [vmem:[#allocation122_spill] sm:$0xff] }
 0x993   : > { %v7331_v3 = vpop.f32.mrf.mxu3  ;;  %v7066_v48 = vpop.f32.mrf.mxu0  ;;  %v15297_v54 = vld [vmem:[#allocation138_spill] sm:$0xff] }
 0x994   : > { %v7067_v49 = vadd.f32 %v7066_v48, %v13830_v12  ;;  %v13930_v53 = vadd.f32 %v7331_v3, %v7243_v30  ;;  %v11910_v30 = vld [vmem:[#allocation8 + $0x1fc] sm:$0xf]  ;;  %v11008_v3 = vld [vmem:[#allocation8 + $0x204] sm:$0xf0] }
 0x995   : > { %v11862_v48 = vld [vmem:[#allocation8 + $0x7c] sm:$0xf] }
 0x996   : > { %15293 = vst [vmem:[#allocation31_spill] sm:$0xff] %v13930_v53  ;;  %v7156_v50 = vadd.f32 %v7155_v23, %v7067_v49  ;;  %v11011_v49 = vor.u32 %v11910_v30, %v11008_v3  ;;  %v10816_v23 = vld [vmem:[#allocation8 + $0x84] sm:$0xf0] }
 0x997   : > { %v10819_v46 = vor.u32 %v11862_v48, %v10816_v23 }
 0x998   : > { %7902 = vmatpush.bf16.msra.mxu2 %v11011_v49 }
 0x999   : > { %v7244_v31 = vpop.f32.mrf.mxu2  ;;  %v7158_v28 = vpop.f32.mrf.mxu1  ;;  %7724 = vmatpush.bf16.msra.mxu0 %v10819_v46  ;;  %v15299_v46 = vld [vmem:[#allocation123_spill] sm:$0xff] }
 0x99a   : > { %v7245_v43 = vadd.f32 %v7244_v31, %v7156_v50  ;;  %v11934_v50 = vld [vmem:[#allocation8 + $0x2bc] sm:$0xf]  ;;  %v11104_v31 = vld [vmem:[#allocation8 + $0x2c4] sm:$0xf0] }
 0x99b   : > { %v7333_v39 = vpop.f32.mrf.mxu3  ;;  %v7069_v29 = vpop.f32.mrf.mxu0 }
 0x99c   : > { %v7070_v24 = vadd.f32 %v7069_v29, %v13830_v12  ;;  %v13933_v55 = vadd.f32 %v7333_v39, %v7245_v43  ;;  %7473 = vmatmul.bf16.gmra.mxu1 %v15296_v15  ;;  %v11107_v43 = vor.u32 %v11934_v50, %v11104_v31 }
 0x99e   : > { %15294 = vst [vmem:[#allocation32_spill] sm:$0xff] %v13933_v55  ;;  %v7159_v33 = vadd.f32 %v7158_v28, %v7070_v24  ;;  %7384 = vmatmul.bf16.gmra.mxu0 %v15295_v10  ;;  %7562 = vmatmul.bf16.gmra.mxu2 %v15297_v54  ;;  %v11886_v54 = vld [vmem:[#allocation8 + $0x13c] sm:$0xf] }
 0x99f   : > { %7991 = vmatpush.bf16.msra.mxu3 %v11107_v43  ;;  %v10915_v3 = vor.u32 %v11886_v54, %v10912_v40  ;;  %v15300_v43 = vld [vmem:[#allocation139_spill] sm:$0xff] }
 0x9a0   : > { %7651 = vmatmul.bf16.gmra.mxu3 %v13728_v26 }
 0x9a1   : > { %v7247_v29 = vpop.f32.mrf.mxu2  ;;  %v7160_v10 = vpop.f32.mrf.mxu1  ;;  %7813 = vmatpush.bf16.msra.mxu1 %v10915_v3 }
 0x9a2   : > { %v7248_v39 = vadd.f32 %v7247_v29, %v7159_v33  ;;  %v15298_v29 = vld [vmem:[#allocation107_spill] sm:$0xff] }
 0x9a3   : > { %v7336_v24 = vpop.f32.mrf.mxu3  ;;  %v7071_v28 = vpop.f32.mrf.mxu0 }
 0x9a4   : > { %v7072_v15 = vadd.f32 %v7071_v28, %v13830_v12  ;;  %v13940_v26 = vadd.f32 %v7336_v24, %v7248_v39 }
 0x9a6   : > { %v7161_v30 = vadd.f32 %v7160_v10, %v7072_v15 }
 0x9a9   : > { %v7249_v55 = vpop.f32.mrf.mxu2  ;;  %v7163_v50 = vpop.f32.mrf.mxu1 }
 0x9aa   : > { %v7250_v53 = vadd.f32 %v7249_v55, %v7161_v30 }
 0x9ab   : > { %v7338_v48 = vpop.f32.mrf.mxu3  ;;  %v7074_v23 = vpop.f32.mrf.mxu0 }
 0x9ac   : > { %v7075_v33 = vadd.f32 %v7074_v23, %v13830_v12  ;;  %v13943_v49 = vadd.f32 %v7338_v48, %v7250_v53  ;;  %7478 = vmatmul.bf16.gmra.mxu1 %v15299_v46 }
 0x9ae   : > { %v7164_v31 = vadd.f32 %v7163_v50, %v7075_v33  ;;  %7389 = vmatmul.bf16.gmra.mxu0 %v15298_v29  ;;  %7567 = vmatmul.bf16.gmra.mxu2 %v15300_v43  ;;  %v15303_v43 = vld [vmem:[#allocation108_spill] sm:$0xff]  ;;  %v10900_v29 = vld [vmem:[#allocation8 + $0x12c] sm:$0xf0] }
 0x9b0   : > { %7656 = vmatmul.bf16.gmra.mxu3 %v13736_v20 }
 0x9b1   : > { %v7252_v40 = vpop.f32.mrf.mxu2  ;;  %v7165_v39 = vpop.f32.mrf.mxu1 }
 0x9b2   : > { %v7253_v10 = vadd.f32 %v7252_v40, %v7164_v31  ;;  %v15304_v31 = vld [vmem:[#allocation124_spill] sm:$0xff] }
 0x9b3   : > { %v7341_v15 = vpop.f32.mrf.mxu3  ;;  %v7076_v55 = vpop.f32.mrf.mxu0  ;;  %v15305_v40 = vld [vmem:[#allocation140_spill] sm:$0xff] }
 0x9b4   : > { %v7077_v54 = vadd.f32 %v7076_v55, %v13830_v12  ;;  %v13950_v24 = vadd.f32 %v7341_v15, %v7253_v10  ;;  %v11907_v10 = vld [vmem:[#allocation8 + $0x1e4] sm:$0xf]  ;;  %v10996_v15 = vld [vmem:[#allocation8 + $0x1ec] sm:$0xf0] }
 0x9b5   : > { %v11859_v55 = vld [vmem:[#allocation8 + $0x64] sm:$0xf] }
 0x9b6   : > { %15301 = vst [vmem:[#allocation33_spill] sm:$0xff] %v13950_v24  ;;  %v7166_v53 = vadd.f32 %v7165_v39, %v7077_v54  ;;  %v10999_v54 = vor.u32 %v11907_v10, %v10996_v15  ;;  %v10804_v39 = vld [vmem:[#allocation8 + $0x6c] sm:$0xf0] }
 0x9b7   : > { %v10807_v46 = vor.u32 %v11859_v55, %v10804_v39 }
 0x9b8   : > { %7903 = vmatpush.bf16.msra.mxu2 %v10999_v54 }
 0x9b9   : > { %v7254_v28 = vpop.f32.mrf.mxu2  ;;  %v7168_v33 = vpop.f32.mrf.mxu1  ;;  %7725 = vmatpush.bf16.msra.mxu0 %v10807_v46  ;;  %v15307_v46 = vld [vmem:[#allocation125_spill] sm:$0xff] }
 0x9ba   : > { %v7255_v30 = vadd.f32 %v7254_v28, %v7166_v53  ;;  %v11931_v53 = vld [vmem:[#allocation8 + $0x2a4] sm:$0xf]  ;;  %v11092_v28 = vld [vmem:[#allocation8 + $0x2ac] sm:$0xf0] }
 0x9bb   : > { %v7343_v3 = vpop.f32.mrf.mxu3  ;;  %v7079_v48 = vpop.f32.mrf.mxu0 }
 0x9bc   : > { %v7080_v23 = vadd.f32 %v7079_v48, %v13830_v12  ;;  %v13953_v50 = vadd.f32 %v7343_v3, %v7255_v30  ;;  %7483 = vmatmul.bf16.gmra.mxu1 %v15304_v31  ;;  %v11095_v30 = vor.u32 %v11931_v53, %v11092_v28 }
 0x9be   : > { %15302 = vst [vmem:[#allocation34_spill] sm:$0xff] %v13953_v50  ;;  %v7169_v20 = vadd.f32 %v7168_v33, %v7080_v23  ;;  %7394 = vmatmul.bf16.gmra.mxu0 %v15303_v43  ;;  %7572 = vmatmul.bf16.gmra.mxu2 %v15305_v40  ;;  %v11883_v40 = vld [vmem:[#allocation8 + $0x124] sm:$0xf] }
 0x9bf   : > { %7992 = vmatpush.bf16.msra.mxu3 %v11095_v30  ;;  %v10903_v15 = vor.u32 %v11883_v40, %v10900_v29 }
 0x9c0   : > { %7661 = vmatmul.bf16.gmra.mxu3 %v13744_v9 }
 0x9c1   : > { %v7257_v48 = vpop.f32.mrf.mxu2  ;;  %v7170_v43 = vpop.f32.mrf.mxu1  ;;  %7814 = vmatpush.bf16.msra.mxu1 %v10903_v15 }
 0x9c2   : > { %v7258_v3 = vadd.f32 %v7257_v48, %v7169_v20  ;;  %v15306_v48 = vld [vmem:[#allocation109_spill] sm:$0xff] }
 0x9c3   : > { %v7346_v23 = vpop.f32.mrf.mxu3  ;;  %v7081_v33 = vpop.f32.mrf.mxu0 }
 0x9c4   : > { %v7082_v31 = vadd.f32 %v7081_v33, %v13830_v12  ;;  %v13960_v9 = vadd.f32 %v7346_v23, %v7258_v3 }
 0x9c6   : > { %v7171_v10 = vadd.f32 %v7170_v43, %v7082_v31 }
 0x9c9   : > { %v7259_v50 = vpop.f32.mrf.mxu2  ;;  %v7173_v53 = vpop.f32.mrf.mxu1 }
 0x9ca   : > { %v7260_v24 = vadd.f32 %v7259_v50, %v7171_v10 }
 0x9cb   : > { %v7348_v55 = vpop.f32.mrf.mxu3  ;;  %v7084_v39 = vpop.f32.mrf.mxu0 }
 0x9cc   : > { %v7085_v20 = vadd.f32 %v7084_v39, %v13830_v12  ;;  %v13963_v54 = vadd.f32 %v7348_v55, %v7260_v24  ;;  %7488 = vmatmul.bf16.gmra.mxu1 %v15307_v46 }
 0x9ce   : > { %v7174_v28 = vadd.f32 %v7173_v53, %v7085_v20  ;;  %7399 = vmatmul.bf16.gmra.mxu0 %v15306_v48  ;;  %7577 = vmatmul.bf16.gmra.mxu2 %v13622_v52  ;;  %v11880_v52 = vld [vmem:[#allocation8 + $0x10c] sm:$0xf] }
 0x9d0   : > { %7666 = vmatmul.bf16.gmra.mxu3 %v13752_v57  ;;  %v15309_v57 = vld [vmem:[#allocation110_spill] sm:$0xff] }
 0x9d1   : > { %v7262_v29 = vpop.f32.mrf.mxu2  ;;  %v7175_v30 = vpop.f32.mrf.mxu1 }
 0x9d2   : > { %v7263_v43 = vadd.f32 %v7262_v29, %v7174_v28  ;;  %v15310_v28 = vld [vmem:[#allocation126_spill] sm:$0xff]  ;;  %v11904_v29 = vld [vmem:[#allocation8 + $0x1cc] sm:$0xf] }
 0x9d3   : > { %v7351_v31 = vpop.f32.mrf.mxu3  ;;  %v7086_v50 = vpop.f32.mrf.mxu0 }
 0x9d4   : > { %v7087_v40 = vadd.f32 %v7086_v50, %v13830_v12  ;;  %v13970_v3 = vadd.f32 %v7351_v31, %v7263_v43  ;;  %v10984_v43 = vld [vmem:[#allocation8 + $0x1d4] sm:$0xf0]  ;;  %v11856_v31 = vld [vmem:[#allocation8 + $0x4c] sm:$0xf] }
 0x9d5   : > { %v10987_v50 = vor.u32 %v11904_v29, %v10984_v43  ;;  %v10888_v29 = vld [vmem:[#allocation8 + $0x114] sm:$0xf0] }
 0x9d6   : > { %v7176_v24 = vadd.f32 %v7175_v30, %v7087_v40  ;;  %v10792_v40 = vld [vmem:[#allocation8 + $0x54] sm:$0xf0]  ;;  %v11928_v30 = vld [vmem:[#allocation8 + $0x28c] sm:$0xf]  ;;  %v10891_v46 = vor.u32 %v11880_v52, %v10888_v29 }
 0x9d7   : > { %7904 = vmatpush.bf16.msra.mxu2 %v10987_v50 }
 0x9d8   : > { %7815 = vmatpush.bf16.msra.mxu1 %v10891_v46 }
 0x9d9   : > { %v7264_v23 = vpop.f32.mrf.mxu2  ;;  %v7178_v39 = vpop.f32.mrf.mxu1 }
 0x9da   : > { %v7265_v33 = vadd.f32 %v7264_v23, %v7176_v24  ;;  %v11080_v24 = vld [vmem:[#allocation8 + $0x294] sm:$0xf0] }
 0x9db   : > { %v7353_v10 = vpop.f32.mrf.mxu3  ;;  %v7089_v15 = vpop.f32.mrf.mxu0 }
 0x9dc   : > { %v7090_v55 = vadd.f32 %v7089_v15, %v13830_v12  ;;  %v13973_v20 = vadd.f32 %v7353_v10, %v7265_v33  ;;  %7493 = vmatmul.bf16.gmra.mxu1 %v15310_v28  ;;  %v10795_v15 = vor.u32 %v11856_v31, %v10792_v40  ;;  %v11083_v33 = vor.u32 %v11928_v30, %v11080_v24  ;;  %v15311_v24 = vld [vmem:[#allocation111_spill] sm:$0xff] }
 0x9de   : > { %15308 = vst [vmem:[#allocation36_spill] sm:$0xff] %v13973_v20  ;;  %v7179_v53 = vadd.f32 %v7178_v39, %v7090_v55  ;;  %7404 = vmatmul.bf16.gmra.mxu0 %v15309_v57  ;;  %7582 = vmatmul.bf16.gmra.mxu2 %v13630_v8 }
 0x9df   : > { %7726 = vmatpush.bf16.msra.mxu0 %v10795_v15  ;;  %7993 = vmatpush.bf16.msra.mxu3 %v11083_v33 }
 0x9e0   : > { %7671 = vmatmul.bf16.gmra.mxu3 %v13760_v11 }
 0x9e1   : > { %v7267_v23 = vpop.f32.mrf.mxu2  ;;  %v7180_v57 = vpop.f32.mrf.mxu1 }
 0x9e2   : > { %v7268_v10 = vadd.f32 %v7267_v23, %v7179_v53  ;;  %v15312_v23 = vld [vmem:[#allocation127_spill] sm:$0xff] }
 0x9e3   : > { %v7356_v55 = vpop.f32.mrf.mxu3  ;;  %v7091_v39 = vpop.f32.mrf.mxu0 }
 0x9e4   : > { %v7092_v28 = vadd.f32 %v7091_v39, %v13830_v12  ;;  %v13980_v11 = vadd.f32 %v7356_v55, %v7268_v10 }
 0x9e6   : > { %v7181_v8 = vadd.f32 %v7180_v57, %v7092_v28 }
 0x9e9   : > { %v7269_v43 = vpop.f32.mrf.mxu2  ;;  %v7183_v40 = vpop.f32.mrf.mxu1 }
 0x9ea   : > { %v7270_v48 = vadd.f32 %v7269_v43, %v7181_v8 }
 0x9eb   : > { %v7358_v20 = vpop.f32.mrf.mxu3  ;;  %v7094_v31 = vpop.f32.mrf.mxu0 }
 0x9ec   : > { %v7095_v53 = vadd.f32 %v7094_v31, %v13830_v12  ;;  %v13983_v50 = vadd.f32 %v7358_v20, %v7270_v48  ;;  %7498 = vmatmul.bf16.gmra.mxu1 %v15312_v23 }
 0x9ee   : > { %v7184_v30 = vadd.f32 %v7183_v40, %v7095_v53  ;;  %7409 = vmatmul.bf16.gmra.mxu0 %v15311_v24  ;;  %7587 = vmatmul.bf16.gmra.mxu2 %v13638_v51  ;;  %v15313_v53 = vld [vmem:[#allocation112_spill] sm:$0xff] }
 0x9ef   : > { %v15314_v40 = vld [vmem:[#allocation128_spill] sm:$0xff] }
 0x9f0   : > { %7676 = vmatmul.bf16.gmra.mxu3 %v13768_v34 }
 0x9f1   : > { %v7272_v57 = vpop.f32.mrf.mxu2  ;;  %v7185_v33 = vpop.f32.mrf.mxu1 }
 0x9f2   : > { %v7273_v52 = vadd.f32 %v7272_v57, %v7184_v30  ;;  %v11901_v30 = vld [vmem:[#allocation8 + $0x1b4] sm:$0xf]  ;;  %v10972_v57 = vld [vmem:[#allocation8 + $0x1bc] sm:$0xf0] }
 0x9f3   : > { %v7361_v8 = vpop.f32.mrf.mxu3  ;;  %v7096_v28 = vpop.f32.mrf.mxu0 }
 0x9f4   : > { %v7097_v15 = vadd.f32 %v7096_v28, %v13830_v12  ;;  %v13990_v46 = vadd.f32 %v7361_v8, %v7273_v52  ;;  %v11853_v52 = vld [vmem:[#allocation8 + $0x34] sm:$0xf]  ;;  %v10975_v28 = vor.u32 %v11901_v30, %v10972_v57 }
 0x9f5   : > { %v11877_v30 = vld [vmem:[#allocation8 + $0xf4] sm:$0xf] }
 0x9f6   : > { %v7186_v48 = vadd.f32 %v7185_v33, %v7097_v15  ;;  %v10780_v15 = vld [vmem:[#allocation8 + $0x3c] sm:$0xf0]  ;;  %v11925_v33 = vld [vmem:[#allocation8 + $0x274] sm:$0xf]  ;;  %7905 = vmatpush.bf16.msra.mxu2 %v10975_v28 }
 0x9f9   : > { %v7274_v20 = vpop.f32.mrf.mxu2  ;;  %v7464_v29 = vpop.f32.mrf.mxu1 }
 0x9fa   : > { %v7275_v10 = vadd.f32 %v7274_v20, %v7186_v48  ;;  %v11068_v48 = vld [vmem:[#allocation8 + $0x27c] sm:$0xf0] }
 0x9fb   : > { %v7363_v55 = vpop.f32.mrf.mxu3  ;;  %v7375_v39 = vpop.f32.mrf.mxu0 }
 0x9fc   : > { %v13992_v43 = vadd.f32 %v7363_v55, %v7275_v10  ;;  %v7376_v31 = vadd.f32 %v7375_v39, %v13840_v35  ;;  %7503 = vmatmul.bf16.gmra.mxu1 %v15314_v40  ;;  %v10783_v55 = vor.u32 %v11853_v52, %v10780_v15  ;;  %v11071_v39 = vor.u32 %v11925_v33, %v11068_v48 }
 0x9fe   : > { %7414 = vmatmul.bf16.gmra.mxu0 %v15313_v53  ;;  %7592 = vmatmul.bf16.gmra.mxu2 %v13646_v59  ;;  %v7465_v12 = vadd.f32 %v7464_v29, %v7376_v31 }
 0x9ff   : > { %7727 = vmatpush.bf16.msra.mxu0 %v10783_v55  ;;  %7994 = vmatpush.bf16.msra.mxu3 %v11071_v39 }
 0xa00   : > { %7681 = vmatmul.bf16.gmra.mxu3 %v13776_v41 }
 0xa01   : > { %v7553_v8 = vpop.f32.mrf.mxu2  ;;  %v7466_v40 = vpop.f32.mrf.mxu1 }
 0xa02   : > { %v7554_v20 = vadd.f32 %v7553_v8, %v7465_v12  ;;  %v10876_v12 = vld [vmem:[#allocation8 + $0xfc] sm:$0xf0] }
 0xa03   : > { %v7642_v35 = vpop.f32.mrf.mxu3  ;;  %v7377_v10 = vpop.f32.mrf.mxu0  ;;  %v10879_v8 = vor.u32 %v11877_v30, %v10876_v12 }
 0xa04   : > { %v7643_v59 = vadd.f32 %v7642_v35, %v7554_v20  ;;  %v7378_v41 = vadd.f32 %v7377_v10, %v13843_v32  ;;  %v15315_v20 = vld [vmem:[#allocation113_spill] sm:$0xff] }
 0xa05   : > { %7816 = vmatpush.bf16.msra.mxu1 %v10879_v8  ;;  %v15316_v35 = vld [vmem:[#allocation129_spill] sm:$0xff] }
 0xa06   : > { %v9146_v29 = vmax.f32 %v7643_v59, 0.0  ;;  %v7467_v31 = vadd.f32 %v7466_v40, %v7378_v41 }
 0xa08   : > { %9242 = vst [vmem:[%s14001_s23] sm:$0xff] %v9146_v29 }
 0xa09   : > { %v7555_v57 = vpop.f32.mrf.mxu2  ;;  %v7469_v28 = vpop.f32.mrf.mxu1 }
 0xa0a   : > { %v7556_v52 = vadd.f32 %v7555_v57, %v7467_v31 }
 0xa0b   : > { %v7644_v15 = vpop.f32.mrf.mxu3  ;;  %v7380_v33 = vpop.f32.mrf.mxu0 }
 0xa0c   : > { %v7645_v48 = vadd.f32 %v7644_v15, %v7556_v52  ;;  %v7381_v32 = vadd.f32 %v7380_v33, %v13850_v0  ;;  %7508 = vmatmul.bf16.gmra.mxu1 %v15316_v35 }
 0xa0e   : > { %7419 = vmatmul.bf16.gmra.mxu0 %v15315_v20  ;;  %v9149_v59 = vmax.f32 %v7645_v48, 0.0  ;;  %7597 = vmatmul.bf16.gmra.mxu2 %v13654_v25  ;;  %v7470_v41 = vadd.f32 %v7469_v28, %v7381_v32  ;;  %v15317_v32 = vld [vmem:[#allocation114_spill] sm:$0xff] }
 0xa10   : > { %7686 = vmatmul.bf16.gmra.mxu3 %v13784_v27  ;;  %9245 = vst [vmem:[%s14001_s23 + $0x18] sm:$0xff] %v9149_v59 }
 0xa11   : > { %v7558_v40 = vpop.f32.mrf.mxu2  ;;  %v7471_v29 = vpop.f32.mrf.mxu1 }
 0xa12   : > { %v7559_v10 = vadd.f32 %v7558_v40, %v7470_v41  ;;  %v15318_v41 = vld [vmem:[#allocation130_spill] sm:$0xff] }
 0xa13   : > { %v7647_v55 = vpop.f32.mrf.mxu3  ;;  %v7382_v39 = vpop.f32.mrf.mxu0  ;;  %v11898_v40 = vld [vmem:[#allocation8 + $0x19c] sm:$0xf] }
 0xa14   : > { %v7648_v31 = vadd.f32 %v7647_v55, %v7559_v10  ;;  %v7383_v0 = vadd.f32 %v7382_v39, %v13853_v13  ;;  %v10960_v10 = vld [vmem:[#allocation8 + $0x1a4] sm:$0xf0] }
 0xa15   : > { %v10963_v39 = vor.u32 %v11898_v40, %v10960_v10  ;;  %v11874_v40 = vld [vmem:[#allocation8 + $0xdc] sm:$0xf]  ;;  %v10864_v10 = vld [vmem:[#allocation8 + $0xe4] sm:$0xf0] }
 0xa16   : > { %v9152_v30 = vmax.f32 %v7648_v31, 0.0  ;;  %v7472_v12 = vadd.f32 %v7471_v29, %v7383_v0  ;;  %v11850_v29 = vld [vmem:[#allocation8 + $0x1c] sm:$0xf]  ;;  %v10768_v31 = vld [vmem:[#allocation8 + $0x24] sm:$0xf0] }
 0xa17   : > { %v11922_v0 = vld [vmem:[#allocation8 + $0x25c] sm:$0xf]  ;;  %7906 = vmatpush.bf16.msra.mxu2 %v10963_v39 }
 0xa18   : > { %9248 = vst [vmem:[%s14001_s23 + $0x30] sm:$0xff] %v9152_v30 }
 0xa19   : > { %v7560_v57 = vpop.f32.mrf.mxu2  ;;  %v7474_v33 = vpop.f32.mrf.mxu1 }
 0xa1a   : > { %v7561_v8 = vadd.f32 %v7560_v57, %v7472_v12  ;;  %v10771_v57 = vor.u32 %v11850_v29, %v10768_v31 }
 0xa1b   : > { %v7649_v52 = vpop.f32.mrf.mxu3  ;;  %v7385_v15 = vpop.f32.mrf.mxu0 }
 0xa1c   : > { %v7650_v48 = vadd.f32 %v7649_v52, %v7561_v8  ;;  %v7386_v28 = vadd.f32 %v7385_v15, %v13860_v6  ;;  %7513 = vmatmul.bf16.gmra.mxu1 %v15318_v41  ;;  %v11056_v8 = vld [vmem:[#allocation8 + $0x264] sm:$0xf0]  ;;  %7728 = vmatpush.bf16.msra.mxu0 %v10771_v57 }
 0xa1d   : > { %v11059_v15 = vor.u32 %v11922_v0, %v11056_v8 }
 0xa1e   : > { %7424 = vmatmul.bf16.gmra.mxu0 %v15317_v32  ;;  %v9155_v59 = vmax.f32 %v7650_v48, 0.0  ;;  %7602 = vmatmul.bf16.gmra.mxu2 %v13662_v47  ;;  %v7475_v13 = vadd.f32 %v7474_v33, %v7386_v28 }
 0xa1f   : > { %7995 = vmatpush.bf16.msra.mxu3 %v11059_v15 }
 0xa20   : > { %7691 = vmatmul.bf16.gmra.mxu3 %v13792_v44  ;;  %9251 = vst [vmem:[%s14001_s23 + $0x48] sm:$0xff] %v9155_v59 }
 0xa21   : > { %v7563_v55 = vpop.f32.mrf.mxu2  ;;  %v7476_v52 = vpop.f32.mrf.mxu1 }
 0xa22   : > { %v7564_v6 = vadd.f32 %v7563_v55, %v7475_v13  ;;  %v10867_v13 = vor.u32 %v11874_v40, %v10864_v10 }
 0xa23   : > { %v7652_v30 = vpop.f32.mrf.mxu3  ;;  %v7387_v12 = vpop.f32.mrf.mxu0 }
 0xa24   : > { %v7653_v48 = vadd.f32 %v7652_v30, %v7564_v6  ;;  %v7388_v59 = vadd.f32 %v7387_v12, %v13863_v16  ;;  %7817 = vmatpush.bf16.msra.mxu1 %v10867_v13  ;;  %v15319_v6 = vld [vmem:[#allocation115_spill] sm:$0xff] }
 0xa25   : > { %v15320_v30 = vld [vmem:[#allocation131_spill] sm:$0xff] }
 0xa26   : > { %v9158_v33 = vmax.f32 %v7653_v48, 0.0  ;;  %v7477_v28 = vadd.f32 %v7476_v52, %v7388_v59 }
 0xa28   : > { %9254 = vst [vmem:[%s14001_s23 + $0x60] sm:$0xff] %v9158_v33 }
 0xa29   : > { %v7565_v44 = vpop.f32.mrf.mxu2  ;;  %v7479_v31 = vpop.f32.mrf.mxu1 }
 0xa2a   : > { %v7566_v55 = vadd.f32 %v7565_v44, %v7477_v28 }
 0xa2b   : > { %v7654_v47 = vpop.f32.mrf.mxu3  ;;  %v7390_v29 = vpop.f32.mrf.mxu0 }
 0xa2c   : > { %v7655_v39 = vadd.f32 %v7654_v47, %v7566_v55  ;;  %v7391_v0 = vadd.f32 %v7390_v29, %v13870_v58  ;;  %7518 = vmatmul.bf16.gmra.mxu1 %v15320_v30 }
 0xa2e   : > { %7429 = vmatmul.bf16.gmra.mxu0 %v15319_v6  ;;  %v9161_v16 = vmax.f32 %v7655_v39, 0.0  ;;  %7607 = vmatmul.bf16.gmra.mxu2 %v13670_v1  ;;  %v7480_v12 = vadd.f32 %v7479_v31, %v7391_v0  ;;  %v15321_v31 = vld [vmem:[#allocation116_spill] sm:$0xff] }
 0xa2f   : > { %v15322_v0 = vld [vmem:[#allocation132_spill] sm:$0xff] }
 0xa30   : > { %7696 = vmatmul.bf16.gmra.mxu3 %v13800_v38  ;;  %9257 = vst [vmem:[%s14001_s23 + $0x78] sm:$0xff] %v9161_v16  ;;  %v11895_v16 = vld [vmem:[#allocation8 + $0x184] sm:$0xf] }
 0xa31   : > { %v7568_v44 = vpop.f32.mrf.mxu2  ;;  %v7481_v15 = vpop.f32.mrf.mxu1 }
 0xa32   : > { %v7569_v57 = vadd.f32 %v7568_v44, %v7480_v12  ;;  %v10948_v12 = vld [vmem:[#allocation8 + $0x18c] sm:$0xf0] }
 0xa33   : > { %v7657_v8 = vpop.f32.mrf.mxu3  ;;  %v7392_v52 = vpop.f32.mrf.mxu0 }
 0xa34   : > { %v7658_v47 = vadd.f32 %v7657_v8, %v7569_v57  ;;  %v7393_v58 = vadd.f32 %v7392_v52, %v13873_v63  ;;  %v10951_v57 = vor.u32 %v11895_v16, %v10948_v12  ;;  %v11847_v8 = vld [vmem:[#allocation8 + $0x4] sm:$0xf]  ;;  %v10756_v52 = vld [vmem:[#allocation8 + $0xc] sm:$0xf0] }
 0xa36   : > { %v9164_v48 = vmax.f32 %v7658_v47, 0.0  ;;  %v7482_v59 = vadd.f32 %v7481_v15, %v7393_v58  ;;  %v11919_v15 = vld [vmem:[#allocation8 + $0x244] sm:$0xf]  ;;  %7907 = vmatpush.bf16.msra.mxu2 %v10951_v57 }
 0xa38   : > { %9260 = vst [vmem:[%s14001_s23 + $0x90] sm:$0xff] %v9164_v48  ;;  %v10759_v48 = vor.u32 %v11847_v8, %v10756_v52 }
 0xa39   : > { %v7570_v33 = vpop.f32.mrf.mxu2  ;;  %v7484_v13 = vpop.f32.mrf.mxu1 }
 0xa3a   : > { %v7571_v28 = vadd.f32 %v7570_v33, %v7482_v59  ;;  %v11044_v59 = vld [vmem:[#allocation8 + $0x24c] sm:$0xf0]  ;;  %7729 = vmatpush.bf16.msra.mxu0 %v10759_v48 }
 0xa3b   : > { %v7659_v40 = vpop.f32.mrf.mxu3  ;;  %v7395_v10 = vpop.f32.mrf.mxu0 }
 0xa3c   : > { %v7660_v55 = vadd.f32 %v7659_v40, %v7571_v28  ;;  %v7396_v29 = vadd.f32 %v7395_v10, %v13880_v21  ;;  %7523 = vmatmul.bf16.gmra.mxu1 %v15322_v0  ;;  %v11047_v28 = vor.u32 %v11919_v15, %v11044_v59 }
 0xa3e   : > { %7434 = vmatmul.bf16.gmra.mxu0 %v15321_v31  ;;  %v9167_v39 = vmax.f32 %v7660_v55, 0.0  ;;  %7612 = vmatmul.bf16.gmra.mxu2 %v13678_v14  ;;  %v7485_v63 = vadd.f32 %v7484_v13, %v7396_v29  ;;  %v11871_v29 = vld [vmem:[#allocation8 + $0xc4] sm:$0xf] }
 0xa3f   : > { %7996 = vmatpush.bf16.msra.mxu3 %v11047_v28 }
 0xa40   : > { %7701 = vmatmul.bf16.gmra.mxu3 %v13808_v62  ;;  %9263 = vst [vmem:[%s14001_s23 + $0xa8] sm:$0xff] %v9167_v39  ;;  %v10852_v39 = vld [vmem:[#allocation8 + $0xcc] sm:$0xf0] }
 0xa41   : > { %v7573_v44 = vpop.f32.mrf.mxu2  ;;  %v7486_v33 = vpop.f32.mrf.mxu1 }
 0xa42   : > { %v7574_v21 = vadd.f32 %v7573_v44, %v7485_v63  ;;  %v10855_v63 = vor.u32 %v11871_v29, %v10852_v39 }
 0xa43   : > { %v7662_v47 = vpop.f32.mrf.mxu3  ;;  %v7397_v58 = vpop.f32.mrf.mxu0 }
 0xa44   : > { %v7663_v40 = vadd.f32 %v7662_v47, %v7574_v21  ;;  %v7398_v10 = vadd.f32 %v7397_v58, %v13883_v2  ;;  %7818 = vmatpush.bf16.msra.mxu1 %v10855_v63  ;;  %v15323_v21 = vld [vmem:[#allocation117_spill] sm:$0xff] }
 0xa45   : > { %v15324_v47 = vld [vmem:[#allocation133_spill] sm:$0xff] }
 0xa46   : > { %v9170_v13 = vmax.f32 %v7663_v40, 0.0  ;;  %v7487_v55 = vadd.f32 %v7486_v33, %v7398_v10 }
 0xa48   : > { %9266 = vst [vmem:[%s14001_s23 + $0xc0] sm:$0xff] %v9170_v13 }
 0xa49   : > { %v7575_v16 = vpop.f32.mrf.mxu2  ;;  %v7489_v52 = vpop.f32.mrf.mxu1 }
 0xa4a   : > { %v7576_v12 = vadd.f32 %v7575_v16, %v7487_v55 }
 0xa4b   : > { %v7664_v44 = vpop.f32.mrf.mxu3  ;;  %v7400_v8 = vpop.f32.mrf.mxu0 }
 0xa4c   : > { %v7665_v57 = vadd.f32 %v7664_v44, %v7576_v12  ;;  %v7401_v15 = vadd.f32 %v7400_v8, %v13890_v5  ;;  %7528 = vmatmul.bf16.gmra.mxu1 %v15324_v47 }
 0xa4e   : > { %7439 = vmatmul.bf16.gmra.mxu0 %v15323_v21  ;;  %v9173_v2 = vmax.f32 %v7665_v57, 0.0  ;;  %7617 = vmatmul.bf16.gmra.mxu2 %v13686_v45  ;;  %v7490_v58 = vadd.f32 %v7489_v52, %v7401_v15  ;;  %v15325_v52 = vld [vmem:[#allocation118_spill] sm:$0xff] }
 0xa4f   : > { %v15326_v15 = vld [vmem:[#allocation134_spill] sm:$0xff] }
 0xa50   : > { %7706 = vmatmul.bf16.gmra.mxu3 %v13816_v36  ;;  %9269 = vst [vmem:[%s14001_s23 + $0xd8] sm:$0xff] %v9173_v2  ;;  %v12012_v2 = vld [vmem:[#allocation8 + $0x52c] sm:$0xf] }
 0xa51   : > { %v7578_v48 = vpop.f32.mrf.mxu2  ;;  %v7491_v40 = vpop.f32.mrf.mxu1 }
 0xa52   : > { %v7579_v59 = vadd.f32 %v7578_v48, %v7490_v58  ;;  %v11416_v58 = vld [vmem:[#allocation8 + $0x534] sm:$0xf0] }
 0xa53   : > { %v7667_v33 = vpop.f32.mrf.mxu3  ;;  %v7402_v28 = vpop.f32.mrf.mxu0 }
 0xa54   : > { %v7668_v10 = vadd.f32 %v7667_v33, %v7579_v59  ;;  %v7403_v5 = vadd.f32 %v7402_v28, %v13893_v60  ;;  %v11419_v59 = vor.u32 %v12012_v2, %v11416_v58  ;;  %v11964_v33 = vld [vmem:[#allocation8 + $0x3ac] sm:$0xf]  ;;  %v11224_v28 = vld [vmem:[#allocation8 + $0x3b4] sm:$0xf0] }
 0xa56   : > { %v9176_v13 = vmax.f32 %v7668_v10, 0.0  ;;  %v7492_v55 = vadd.f32 %v7491_v40, %v7403_v5  ;;  %v12036_v40 = vld [vmem:[#allocation8 + $0x5ec] sm:$0xf]  ;;  %8256 = vmatpush.bf16.msrb.mxu2 %v11419_v59 }
 0xa58   : > { %9272 = vst [vmem:[%s14001_s23 + $0xf0] sm:$0xff] %v9176_v13  ;;  %v11227_v13 = vor.u32 %v11964_v33, %v11224_v28 }
 0xa59   : > { %v7580_v29 = vpop.f32.mrf.mxu2  ;;  %v7494_v12 = vpop.f32.mrf.mxu1 }
 0xa5a   : > { %v7581_v39 = vadd.f32 %v7580_v29, %v7492_v55  ;;  %v11512_v55 = vld [vmem:[#allocation8 + $0x5f4] sm:$0xf0]  ;;  %8078 = vmatpush.bf16.msrb.mxu0 %v11227_v13 }
 0xa5b   : > { %v7669_v16 = vpop.f32.mrf.mxu3  ;;  %v7405_v63 = vpop.f32.mrf.mxu0 }
 0xa5c   : > { %v7670_v44 = vadd.f32 %v7669_v16, %v7581_v39  ;;  %v7406_v8 = vadd.f32 %v7405_v63, %v13900_v18  ;;  %7533 = vmatmul.bf16.gmra.mxu1 %v15326_v15  ;;  %v11515_v39 = vor.u32 %v12036_v40, %v11512_v55 }
 0xa5e   : > { %7444 = vmatmul.bf16.gmra.mxu0 %v15325_v52  ;;  %v9179_v57 = vmax.f32 %v7670_v44, 0.0  ;;  %7622 = vmatmul.bf16.gmra.mxu2 %v13694_v61  ;;  %v7495_v60 = vadd.f32 %v7494_v12, %v7406_v8  ;;  %v11988_v8 = vld [vmem:[#allocation8 + $0x46c] sm:$0xf] }
 0xa5f   : > { %8345 = vmatpush.bf16.msrb.mxu3 %v11515_v39 }
 0xa60   : > { %7711 = vmatmul.bf16.gmra.mxu3 %v13824_v4  ;;  %9275 = vst [vmem:[%s14001_s23 + $0x108] sm:$0xff] %v9179_v57  ;;  %v11320_v57 = vld [vmem:[#allocation8 + $0x474] sm:$0xf0] }
 0xa61   : > { %v7583_v48 = vpop.f32.mrf.mxu2  ;;  %v7496_v29 = vpop.f32.mrf.mxu1 }
 0xa62   : > { %v7584_v18 = vadd.f32 %v7583_v48, %v7495_v60  ;;  %v11323_v60 = vor.u32 %v11988_v8, %v11320_v57 }
 0xa63   : > { %v7672_v10 = vpop.f32.mrf.mxu3  ;;  %v7407_v5 = vpop.f32.mrf.mxu0 }
 0xa64   : > { %v7673_v16 = vadd.f32 %v7672_v10, %v7584_v18  ;;  %v7408_v63 = vadd.f32 %v7407_v5, %v13903_v17  ;;  %8167 = vmatpush.bf16.msrb.mxu1 %v11323_v60  ;;  %v15327_v18 = vld [vmem:[#allocation119_spill] sm:$0xff] }
 0xa65   : > { %v15328_v10 = vld [vmem:[#allocation135_spill] sm:$0xff] }
 0xa66   : > { %v9182_v12 = vmax.f32 %v7673_v16, 0.0  ;;  %v7497_v44 = vadd.f32 %v7496_v29, %v7408_v63 }
 0xa68   : > { %9278 = vst [vmem:[%s14001_s23 + $0x120] sm:$0xff] %v9182_v12 }
 0xa69   : > { %v7585_v2 = vpop.f32.mrf.mxu2  ;;  %v7499_v28 = vpop.f32.mrf.mxu1 }
 0xa6a   : > { %v7586_v58 = vadd.f32 %v7585_v2, %v7497_v44 }
 0xa6b   : > { %v7674_v48 = vpop.f32.mrf.mxu3  ;;  %v7410_v33 = vpop.f32.mrf.mxu0 }
 0xa6c   : > { %v7675_v59 = vadd.f32 %v7674_v48, %v7586_v58  ;;  %v7411_v40 = vadd.f32 %v7410_v33, %v13910_v19  ;;  %7538 = vmatmul.bf16.gmra.mxu1 %v15328_v10 }
 0xa6e   : > { %7449 = vmatmul.bf16.gmra.mxu0 %v15327_v18  ;;  %v9185_v17 = vmax.f32 %v7675_v59, 0.0  ;;  %7627 = vmatmul.bf16.gmra.mxu2 %v13704_v56  ;;  %v7500_v5 = vadd.f32 %v7499_v28, %v7411_v40  ;;  %v15329_v28 = vld [vmem:[#allocation20_spill] sm:$0xff] }
 0xa6f   : > { %v15330_v40 = vld [vmem:[#allocation56_spill] sm:$0xff] }
 0xa70   : > { %7716 = vmatmul.bf16.gmra.mxu3 %v13837_v42  ;;  %9281 = vst [vmem:[%s14001_s23 + $0x138] sm:$0xff] %v9185_v17  ;;  %v15331_v17 = vld [vmem:[#allocation72_spill] sm:$0xff] }
 0xa71   : > { %v7588_v13 = vpop.f32.mrf.mxu2  ;;  %v7501_v16 = vpop.f32.mrf.mxu1 }
 0xa72   : > { %v7589_v55 = vadd.f32 %v7588_v13, %v7500_v5  ;;  %v12009_v13 = vld [vmem:[#allocation8 + $0x514] sm:$0xf] }
 0xa73   : > { %v7677_v29 = vpop.f32.mrf.mxu3  ;;  %v7412_v39 = vpop.f32.mrf.mxu0 }
 0xa74   : > { %v7678_v63 = vadd.f32 %v7677_v29, %v7589_v55  ;;  %v7413_v19 = vadd.f32 %v7412_v39, %v13913_v37  ;;  %v15332_v37 = vld [vmem:[#allocation88_spill] sm:$0xff]  ;;  %v11404_v55 = vld [vmem:[#allocation8 + $0x51c] sm:$0xf0] }
 0xa75   : > { %v11407_v39 = vor.u32 %v12009_v13, %v11404_v55  ;;  %v11985_v13 = vld [vmem:[#allocation8 + $0x454] sm:$0xf]  ;;  %v11308_v55 = vld [vmem:[#allocation8 + $0x45c] sm:$0xf0] }
 0xa76   : > { %v9188_v12 = vmax.f32 %v7678_v63, 0.0  ;;  %v7502_v44 = vadd.f32 %v7501_v16, %v7413_v19  ;;  %v11961_v16 = vld [vmem:[#allocation8 + $0x394] sm:$0xf]  ;;  %v11212_v63 = vld [vmem:[#allocation8 + $0x39c] sm:$0xf0] }
 0xa77   : > { %v12033_v19 = vld [vmem:[#allocation8 + $0x5d4] sm:$0xf]  ;;  %8257 = vmatpush.bf16.msrb.mxu2 %v11407_v39 }
 0xa78   : > { %9284 = vst [vmem:[%s14001_s23 + $0x150] sm:$0xff] %v9188_v12 }
 0xa79   : > { %v7590_v8 = vpop.f32.mrf.mxu2  ;;  %v7504_v58 = vpop.f32.mrf.mxu1 }
 0xa7a   : > { %v7591_v57 = vadd.f32 %v7590_v8, %v7502_v44  ;;  %v11215_v8 = vor.u32 %v11961_v16, %v11212_v63 }
 0xa7b   : > { %v7679_v2 = vpop.f32.mrf.mxu3  ;;  %v7415_v60 = vpop.f32.mrf.mxu0 }
 0xa7c   : > { %v7680_v48 = vadd.f32 %v7679_v2, %v7591_v57  ;;  %v7416_v33 = vadd.f32 %v7415_v60, %v13920_v22  ;;  %7819 = vmatmul.bf16.vlgmr.msra.gmra.mxu1 %v15330_v40  ;;  %v11500_v57 = vld [vmem:[#allocation8 + $0x5dc] sm:$0xf0]  ;;  %8079 = vmatpush.bf16.msrb.mxu0 %v11215_v8  ;;  %v15336_v8 = vld [vmem:[#allocation73_spill] sm:$0xff]  ;;  %v11894_v40 = vld [vmem:[#allocation8 + $0x178] sm:$0xf0] }
 0xa7d   : > { %v11503_v60 = vor.u32 %v12033_v19, %v11500_v57  ;;  %v15333_v19 = vld [vmem:[#allocation31_spill] sm:$0xff]  ;;  %v15337_v57 = vld [vmem:[#allocation89_spill] sm:$0xff] }
 0xa7e   : > { %7730 = vmatmul.bf16.vlgmr.msra.gmra.mxu0 %v15329_v28  ;;  %v9191_v59 = vmax.f32 %v7680_v48, 0.0  ;;  %7908 = vmatmul.bf16.vlgmr.msra.gmra.mxu2 %v15331_v17  ;;  %v7505_v5 = vadd.f32 %v7504_v58, %v7416_v33 }
 0xa7f   : > { %8346 = vmatpush.bf16.msrb.mxu3 %v11503_v60 }
 0xa80   : > { %7997 = vmatmul.bf16.vlgmr.msra.gmra.mxu3 %v15332_v37  ;;  %9287 = vst [vmem:[%s14001_s23 + $0x168] sm:$0xff] %v9191_v59 }
 0xa81   : > { %v7593_v29 = vpop.f32.mrf.mxu2  ;;  %v7506_v2 = vpop.f32.mrf.mxu1 }
 0xa82   : > { %v7594_v22 = vadd.f32 %v7593_v29, %v7505_v5  ;;  %v11311_v5 = vor.u32 %v11985_v13, %v11308_v55 }
 0xa83   : > { %v7682_v12 = vpop.f32.mrf.mxu3  ;;  %v7417_v44 = vpop.f32.mrf.mxu0 }
 0xa84   : > { %v7683_v48 = vadd.f32 %v7682_v12, %v7594_v22  ;;  %v7418_v59 = vadd.f32 %v7417_v44, %v13923_v7  ;;  %8168 = vmatpush.bf16.msrb.mxu1 %v11311_v5  ;;  %v15334_v12 = vld [vmem:[#allocation25_spill] sm:$0xff] }
 0xa85   : > { %v15335_v44 = vld [vmem:[#allocation57_spill] sm:$0xff] }
 0xa86   : > { %v9194_v58 = vmax.f32 %v7683_v48, 0.0  ;;  %v7507_v33 = vadd.f32 %v7506_v2, %v7418_v59 }
 0xa88   : > { %9290 = vst [vmem:[%s14001_s23 + $0x180] sm:$0xff] %v9194_v58 }
 0xa89   : > { %v7595_v37 = vpop.f32.mrf.mxu2  ;;  %v7509_v63 = vpop.f32.mrf.mxu1 }
 0xa8a   : > { %v7596_v29 = vadd.f32 %v7595_v37, %v7507_v33  ;;  %v15338_v33 = vld [vmem:[#allocation32_spill] sm:$0xff] }
 0xa8b   : > { %v7684_v17 = vpop.f32.mrf.mxu3  ;;  %v7420_v16 = vpop.f32.mrf.mxu0 }
 0xa8c   : > { %v7685_v39 = vadd.f32 %v7684_v17, %v7596_v29  ;;  %v7421_v22 = vadd.f32 %v7420_v16, %v15333_v19  ;;  %7824 = vmatmul.bf16.gmra.mxu1 %v15335_v44 }
 0xa8e   : > { %7735 = vmatmul.bf16.gmra.mxu0 %v15334_v12  ;;  %v9197_v7 = vmax.f32 %v7685_v39, 0.0  ;;  %7913 = vmatmul.bf16.gmra.mxu2 %v15336_v8  ;;  %v7510_v2 = vadd.f32 %v7509_v63, %v7421_v22  ;;  %v15339_v22 = vld [vmem:[#allocation30_spill] sm:$0xff] }
 0xa90   : > { %8002 = vmatmul.bf16.gmra.mxu3 %v15337_v57  ;;  %9293 = vst [vmem:[%s14001_s23 + $0x198] sm:$0xff] %v9197_v7 }
 0xa91   : > { %v7598_v37 = vpop.f32.mrf.mxu2  ;;  %v7511_v58 = vpop.f32.mrf.mxu1 }
 0xa92   : > { %v7599_v60 = vadd.f32 %v7598_v37, %v7510_v2  ;;  %v15340_v2 = vld [vmem:[#allocation58_spill] sm:$0xff] }
 0xa93   : > { %v7687_v48 = vpop.f32.mrf.mxu3  ;;  %v7422_v59 = vpop.f32.mrf.mxu0  ;;  %v15341_v37 = vld [vmem:[#allocation74_spill] sm:$0xff] }
 0xa94   : > { %v7688_v17 = vadd.f32 %v7687_v48, %v7599_v60  ;;  %v7423_v13 = vadd.f32 %v7422_v59, %v15338_v33  ;;  %v15342_v60 = vld [vmem:[#allocation90_spill] sm:$0xff] }
 0xa95   : > { %v12006_v59 = vld [vmem:[#allocation8 + $0x4fc] sm:$0xf] }
 0xa96   : > { %v9200_v55 = vmax.f32 %v7688_v17, 0.0  ;;  %v7512_v5 = vadd.f32 %v7511_v58, %v7423_v13  ;;  %v11392_v58 = vld [vmem:[#allocation8 + $0x504] sm:$0xf0]  ;;  %v11958_v13 = vld [vmem:[#allocation8 + $0x37c] sm:$0xf] }
 0xa97   : > { %v11395_v33 = vor.u32 %v12006_v59, %v11392_v58  ;;  %v11982_v59 = vld [vmem:[#allocation8 + $0x43c] sm:$0xf]  ;;  %v11296_v58 = vld [vmem:[#allocation8 + $0x444] sm:$0xf0] }
 0xa98   : > { %9296 = vst [vmem:[%s14001_s23 + $0x1b0] sm:$0xff] %v9200_v55  ;;  %v11200_v55 = vld [vmem:[#allocation8 + $0x384] sm:$0xf0] }
 0xa99   : > { %v7600_v29 = vpop.f32.mrf.mxu2  ;;  %v7514_v8 = vpop.f32.mrf.mxu1  ;;  %8258 = vmatpush.bf16.msrb.mxu2 %v11395_v33 }
 0xa9a   : > { %v7601_v16 = vadd.f32 %v7600_v29, %v7512_v5  ;;  %v12030_v5 = vld [vmem:[#allocation8 + $0x5bc] sm:$0xf] }
 0xa9b   : > { %v7689_v39 = vpop.f32.mrf.mxu3  ;;  %v7425_v19 = vpop.f32.mrf.mxu0 }
 0xa9c   : > { %v7690_v57 = vadd.f32 %v7689_v39, %v7601_v16  ;;  %v7426_v63 = vadd.f32 %v7425_v19, %v13940_v26  ;;  %7829 = vmatmul.bf16.gmra.mxu1 %v15340_v2  ;;  %v11488_v39 = vld [vmem:[#allocation8 + $0x5c4] sm:$0xf0] }
 0xa9e   : > { %7740 = vmatmul.bf16.gmra.mxu0 %v15339_v22  ;;  %v9203_v7 = vmax.f32 %v7690_v57, 0.0  ;;  %7918 = vmatmul.bf16.gmra.mxu2 %v15341_v37  ;;  %v7515_v48 = vadd.f32 %v7514_v8, %v7426_v63  ;;  %v11203_v57 = vor.u32 %v11958_v13, %v11200_v55  ;;  %v11491_v37 = vor.u32 %v12030_v5, %v11488_v39  ;;  %v15343_v5 = vld [vmem:[#allocation33_spill] sm:$0xff] }
 0xaa0   : > { %8007 = vmatmul.bf16.gmra.mxu3 %v15342_v60  ;;  %9299 = vst [vmem:[%s14001_s23 + $0x1c8] sm:$0xff] %v9203_v7  ;;  %8080 = vmatpush.bf16.msrb.mxu0 %v11203_v57 }
 0xaa1   : > { %v7603_v17 = vpop.f32.mrf.mxu2  ;;  %v7516_v19 = vpop.f32.mrf.mxu1  ;;  %8347 = vmatpush.bf16.msrb.mxu3 %v11491_v37  ;;  %v15346_v37 = vld [vmem:[#allocation75_spill] sm:$0xff] }
 0xaa2   : > { %v7604_v26 = vadd.f32 %v7603_v17, %v7515_v48  ;;  %v11299_v48 = vor.u32 %v11982_v59, %v11296_v58 }
 0xaa3   : > { %v7692_v29 = vpop.f32.mrf.mxu3  ;;  %v7427_v16 = vpop.f32.mrf.mxu0 }
 0xaa4   : > { %v7693_v2 = vadd.f32 %v7692_v29, %v7604_v26  ;;  %v7428_v7 = vadd.f32 %v7427_v16, %v13943_v49  ;;  %8169 = vmatpush.bf16.msrb.mxu1 %v11299_v48  ;;  %v15344_v29 = vld [vmem:[#allocation35_spill] sm:$0xff] }
 0xaa5   : > { %v15347_v16 = vld [vmem:[#allocation91_spill] sm:$0xff] }
 0xaa6   : > { %v9206_v8 = vmax.f32 %v7693_v2, 0.0  ;;  %v7517_v63 = vadd.f32 %v7516_v19, %v7428_v7  ;;  %v15345_v2 = vld [vmem:[#allocation59_spill] sm:$0xff] }
 0xaa8   : > { %9302 = vst [vmem:[%s14001_s23 + $0x1e0] sm:$0xff] %v9206_v8 }
 0xaa9   : > { %v7605_v60 = vpop.f32.mrf.mxu2  ;;  %v7519_v55 = vpop.f32.mrf.mxu1 }
 0xaaa   : > { %v7606_v17 = vadd.f32 %v7605_v60, %v7517_v63  ;;  %v15348_v63 = vld [vmem:[#allocation34_spill] sm:$0xff] }
 0xaab   : > { %v7694_v22 = vpop.f32.mrf.mxu3  ;;  %v7430_v13 = vpop.f32.mrf.mxu0 }
 0xaac   : > { %v7695_v33 = vadd.f32 %v7694_v22, %v7606_v17  ;;  %v7431_v26 = vadd.f32 %v7430_v13, %v15343_v5  ;;  %7834 = vmatmul.bf16.gmra.mxu1 %v15345_v2  ;;  %v11236_v2 = vld [vmem:[#allocation8 + $0x3cc] sm:$0xf0] }
 0xaae   : > { %7745 = vmatmul.bf16.gmra.mxu0 %v15344_v29  ;;  %v9209_v49 = vmax.f32 %v7695_v33, 0.0  ;;  %7923 = vmatmul.bf16.gmra.mxu2 %v15346_v37  ;;  %v7520_v57 = vadd.f32 %v7519_v55, %v7431_v26  ;;  %v15349_v26 = vld [vmem:[#allocation40_spill] sm:$0xff] }
 0xab0   : > { %8012 = vmatmul.bf16.gmra.mxu3 %v15347_v16  ;;  %9305 = vst [vmem:[%s14001_s23 + $0x1f8] sm:$0xff] %v9209_v49 }
 0xab1   : > { %v7608_v60 = vpop.f32.mrf.mxu2  ;;  %v7521_v8 = vpop.f32.mrf.mxu1 }
 0xab2   : > { %v7609_v39 = vadd.f32 %v7608_v60, %v7520_v57  ;;  %v15350_v57 = vld [vmem:[#allocation60_spill] sm:$0xff] }
 0xab3   : > { %v7697_v19 = vpop.f32.mrf.mxu3  ;;  %v7432_v7 = vpop.f32.mrf.mxu0  ;;  %v15351_v60 = vld [vmem:[#allocation76_spill] sm:$0xff] }
 0xab4   : > { %v7698_v22 = vadd.f32 %v7697_v19, %v7609_v39  ;;  %v7433_v59 = vadd.f32 %v7432_v7, %v15348_v63  ;;  %v15352_v39 = vld [vmem:[#allocation92_spill] sm:$0xff]  ;;  %v12003_v7 = vld [vmem:[#allocation8 + $0x4e4] sm:$0xf] }
 0xab6   : > { %v9212_v58 = vmax.f32 %v7698_v22, 0.0  ;;  %v7522_v48 = vadd.f32 %v7521_v8, %v7433_v59  ;;  %v11380_v8 = vld [vmem:[#allocation8 + $0x4ec] sm:$0xf0]  ;;  %v11955_v59 = vld [vmem:[#allocation8 + $0x364] sm:$0xf] }
 0xab7   : > { %v11383_v63 = vor.u32 %v12003_v7, %v11380_v8  ;;  %v11979_v7 = vld [vmem:[#allocation8 + $0x424] sm:$0xf]  ;;  %v11284_v8 = vld [vmem:[#allocation8 + $0x42c] sm:$0xf0] }
 0xab8   : > { %9308 = vst [vmem:[%s14001_s23 + $0x210] sm:$0xff] %v9212_v58  ;;  %v11188_v58 = vld [vmem:[#allocation8 + $0x36c] sm:$0xf0] }
 0xab9   : > { %v7610_v17 = vpop.f32.mrf.mxu2  ;;  %v7524_v37 = vpop.f32.mrf.mxu1  ;;  %8259 = vmatpush.bf16.msrb.mxu2 %v11383_v63 }
 0xaba   : > { %v7611_v13 = vadd.f32 %v7610_v17, %v7522_v48  ;;  %v12027_v48 = vld [vmem:[#allocation8 + $0x5a4] sm:$0xf] }
 0xabb   : > { %v7699_v33 = vpop.f32.mrf.mxu3  ;;  %v7435_v5 = vpop.f32.mrf.mxu0 }
 0xabc   : > { %v7700_v16 = vadd.f32 %v7699_v33, %v7611_v13  ;;  %v7436_v55 = vadd.f32 %v7435_v5, %v13960_v9  ;;  %7839 = vmatmul.bf16.gmra.mxu1 %v15350_v57  ;;  %v11476_v33 = vld [vmem:[#allocation8 + $0x5ac] sm:$0xf0] }
 0xabe   : > { %7750 = vmatmul.bf16.gmra.mxu0 %v15349_v26  ;;  %v9215_v49 = vmax.f32 %v7700_v16, 0.0  ;;  %7928 = vmatmul.bf16.gmra.mxu2 %v15351_v60  ;;  %v7525_v19 = vadd.f32 %v7524_v37, %v7436_v55  ;;  %v11191_v16 = vor.u32 %v11955_v59, %v11188_v58  ;;  %v11479_v60 = vor.u32 %v12027_v48, %v11476_v33 }
 0xac0   : > { %8017 = vmatmul.bf16.gmra.mxu3 %v15352_v39  ;;  %9311 = vst [vmem:[%s14001_s23 + $0x228] sm:$0xff] %v9215_v49  ;;  %8081 = vmatpush.bf16.msrb.mxu0 %v11191_v16 }
 0xac1   : > { %v7613_v22 = vpop.f32.mrf.mxu2  ;;  %v7526_v5 = vpop.f32.mrf.mxu1  ;;  %8348 = vmatpush.bf16.msrb.mxu3 %v11479_v60  ;;  %v15355_v60 = vld [vmem:[#allocation77_spill] sm:$0xff] }
 0xac2   : > { %v7614_v9 = vadd.f32 %v7613_v22, %v7525_v19  ;;  %v11287_v19 = vor.u32 %v11979_v7, %v11284_v8 }
 0xac3   : > { %v7702_v17 = vpop.f32.mrf.mxu3  ;;  %v7437_v13 = vpop.f32.mrf.mxu0 }
 0xac4   : > { %v7703_v57 = vadd.f32 %v7702_v17, %v7614_v9  ;;  %v7438_v49 = vadd.f32 %v7437_v13, %v13963_v54  ;;  %8170 = vmatpush.bf16.msrb.mxu1 %v11287_v19  ;;  %v15353_v9 = vld [vmem:[#allocation45_spill] sm:$0xff] }
 0xac5   : > { %v15356_v17 = vld [vmem:[#allocation93_spill] sm:$0xff] }
 0xac6   : > { %v9218_v37 = vmax.f32 %v7703_v57, 0.0  ;;  %v7527_v55 = vadd.f32 %v7526_v5, %v7438_v49  ;;  %v15354_v57 = vld [vmem:[#allocation61_spill] sm:$0xff] }
 0xac8   : > { %9314 = vst [vmem:[%s14001_s23 + $0x240] sm:$0xff] %v9218_v37  ;;  %v15357_v37 = vld [vmem:[#allocation36_spill] sm:$0xff] }
 0xac9   : > { %v7615_v39 = vpop.f32.mrf.mxu2  ;;  %v7529_v58 = vpop.f32.mrf.mxu1 }
 0xaca   : > { %v7616_v22 = vadd.f32 %v7615_v39, %v7527_v55 }
 0xacb   : > { %v7704_v26 = vpop.f32.mrf.mxu3  ;;  %v7440_v59 = vpop.f32.mrf.mxu0 }
 0xacc   : > { %v7705_v63 = vadd.f32 %v7704_v26, %v7616_v22  ;;  %v7441_v48 = vadd.f32 %v7440_v59, %v13970_v3  ;;  %7844 = vmatmul.bf16.gmra.mxu1 %v15354_v57 }
 0xace   : > { %7755 = vmatmul.bf16.gmra.mxu0 %v15353_v9  ;;  %v9221_v54 = vmax.f32 %v7705_v63, 0.0  ;;  %7933 = vmatmul.bf16.gmra.mxu2 %v15355_v60  ;;  %v7530_v13 = vadd.f32 %v7529_v58, %v7441_v48  ;;  %v15358_v48 = vld [vmem:[#allocation46_spill] sm:$0xff] }
 0xad0   : > { %8022 = vmatmul.bf16.gmra.mxu3 %v15356_v17  ;;  %9317 = vst [vmem:[%s14001_s23 + $0x258] sm:$0xff] %v9221_v54 }
 0xad1   : > { %v7618_v39 = vpop.f32.mrf.mxu2  ;;  %v7531_v49 = vpop.f32.mrf.mxu1 }
 0xad2   : > { %v7619_v16 = vadd.f32 %v7618_v39, %v7530_v13  ;;  %v15359_v13 = vld [vmem:[#allocation62_spill] sm:$0xff] }
 0xad3   : > { %v7707_v33 = vpop.f32.mrf.mxu3  ;;  %v7442_v5 = vpop.f32.mrf.mxu0  ;;  %v15360_v39 = vld [vmem:[#allocation78_spill] sm:$0xff] }
 0xad4   : > { %v7708_v26 = vadd.f32 %v7707_v33, %v7619_v16  ;;  %v7443_v3 = vadd.f32 %v7442_v5, %v15357_v37  ;;  %v15361_v16 = vld [vmem:[#allocation94_spill] sm:$0xff]  ;;  %v12000_v5 = vld [vmem:[#allocation8 + $0x4cc] sm:$0xf] }
 0xad6   : > { %v9224_v55 = vmax.f32 %v7708_v26, 0.0  ;;  %v7532_v7 = vadd.f32 %v7531_v49, %v7443_v3  ;;  %v11368_v49 = vld [vmem:[#allocation8 + $0x4d4] sm:$0xf0]  ;;  %v11952_v3 = vld [vmem:[#allocation8 + $0x34c] sm:$0xf] }
 0xad7   : > { %v11371_v37 = vor.u32 %v12000_v5, %v11368_v49 }
 0xad8   : > { %9320 = vst [vmem:[%s14001_s23 + $0x270] sm:$0xff] %v9224_v55  ;;  %v11176_v55 = vld [vmem:[#allocation8 + $0x354] sm:$0xf0] }
 0xad9   : > { %v7620_v8 = vpop.f32.mrf.mxu2  ;;  %v7534_v63 = vpop.f32.mrf.mxu1  ;;  %8260 = vmatpush.bf16.msrb.mxu2 %v11371_v37 }
 0xada   : > { %v7621_v19 = vadd.f32 %v7620_v8, %v7532_v7  ;;  %v12024_v7 = vld [vmem:[#allocation8 + $0x58c] sm:$0xf] }
 0xadb   : > { %v7709_v22 = vpop.f32.mrf.mxu3  ;;  %v7445_v59 = vpop.f32.mrf.mxu0 }
 0xadc   : > { %v7710_v17 = vadd.f32 %v7709_v22, %v7621_v19  ;;  %v7446_v58 = vadd.f32 %v7445_v59, %v13980_v11  ;;  %7849 = vmatmul.bf16.gmra.mxu1 %v15359_v13  ;;  %v11464_v22 = vld [vmem:[#allocation8 + $0x594] sm:$0xf0] }
 0xade   : > { %7760 = vmatmul.bf16.gmra.mxu0 %v15358_v48  ;;  %v9227_v54 = vmax.f32 %v7710_v17, 0.0  ;;  %7938 = vmatmul.bf16.gmra.mxu2 %v15360_v39  ;;  %v7535_v33 = vadd.f32 %v7534_v63, %v7446_v58  ;;  %v11179_v17 = vor.u32 %v11952_v3, %v11176_v55  ;;  %v11467_v39 = vor.u32 %v12024_v7, %v11464_v22  ;;  %v11976_v63 = vld [vmem:[#allocation8 + $0x40c] sm:$0xf]  ;;  %v11272_v58 = vld [vmem:[#allocation8 + $0x414] sm:$0xf0] }
 0xadf   : > { %v11275_v5 = vor.u32 %v11976_v63, %v11272_v58 }
 0xae0   : > { %8027 = vmatmul.bf16.gmra.mxu3 %v15361_v16  ;;  %9323 = vst [vmem:[%s14001_s23 + $0x288] sm:$0xff] %v9227_v54  ;;  %8082 = vmatpush.bf16.msrb.mxu0 %v11179_v17 }
 0xae1   : > { %v7623_v26 = vpop.f32.mrf.mxu2  ;;  %v7536_v59 = vpop.f32.mrf.mxu1  ;;  %8349 = vmatpush.bf16.msrb.mxu3 %v11467_v39  ;;  %8171 = vmatpush.bf16.msrb.mxu1 %v11275_v5  ;;  %v15364_v39 = vld [vmem:[#allocation79_spill] sm:$0xff]  ;;  %v12133_v5 = vld [vmem:[%s14717_s4] sm:$0x7] }
 0xae2   : > { %v7624_v8 = vadd.f32 %v7623_v26, %v7535_v33 }
 0xae3   : > { %v7712_v11 = vpop.f32.mrf.mxu3  ;;  %v7447_v19 = vpop.f32.mrf.mxu0 }
 0xae4   : > { %v7713_v13 = vadd.f32 %v7712_v11, %v7624_v8  ;;  %v7448_v54 = vadd.f32 %v7447_v19, %v13983_v50  ;;  %v15362_v8 = vld [vmem:[#allocation47_spill] sm:$0xff] }
 0xae5   : > { %v15363_v11 = vld [vmem:[#allocation63_spill] sm:$0xff] }
 0xae6   : > { %v9230_v49 = vmax.f32 %v7713_v13, 0.0  ;;  %v7537_v33 = vadd.f32 %v7536_v59, %v7448_v54  ;;  %v15365_v13 = vld [vmem:[#allocation95_spill] sm:$0xff] }
 0xae8   : > { %9326 = vst [vmem:[%s14001_s23 + $0x2a0] sm:$0xff] %v9230_v49  ;;  %v14126_v49 = vperm.slane %v12133_v5, 1  ;;  %v11164_v5 = vld [vmem:[#allocation8 + $0x33c] sm:$0xf0] }
 0xae9   : > { %v7625_v26 = vpop.f32.mrf.mxu2  ;;  %v7539_v48 = vpop.f32.mrf.mxu1 }
 0xaea   : > { %v7626_v16 = vadd.f32 %v7625_v26, %v7537_v33 }
 0xaeb   : > { %v7714_v3 = vpop.f32.mrf.mxu3  ;;  %v7450_v55 = vpop.f32.mrf.mxu0 }
 0xaec   : > { %v7715_v37 = vadd.f32 %v7714_v3, %v7626_v16  ;;  %v7451_v7 = vadd.f32 %v7450_v55, %v13990_v46  ;;  %7854 = vmatmul.bf16.gmra.mxu1 %v15363_v11 }
 0xaee   : > { %7765 = vmatmul.bf16.gmra.mxu0 %v15362_v8  ;;  %v9233_v50 = vmax.f32 %v7715_v37, 0.0  ;;  %7943 = vmatmul.bf16.gmra.mxu2 %v15364_v39  ;;  %v7540_v19 = vadd.f32 %v7539_v48, %v7451_v7  ;;  %v11440_v39 = vld [vmem:[#allocation8 + $0x564] sm:$0xf0] }
 0xaef   : > { %v11248_v8 = vld [vmem:[#allocation8 + $0x3e4] sm:$0xf0] }
 0xaf0   : > { %8032 = vmatmul.bf16.gmra.mxu3 %v15365_v13  ;;  %9329 = vst [vmem:[%s14001_s23 + $0x2b8] sm:$0xff] %v9233_v50 }
 0xaf1   : > { %v7628_v17 = vpop.f32.mrf.mxu2  ;;  %v7541_v63 = vpop.f32.mrf.mxu1 }
 0xaf2   : > { %v7629_v22 = vadd.f32 %v7628_v17, %v7540_v19 }
 0xaf3   : > { %v7717_v59 = vpop.f32.mrf.mxu3  ;;  %v7452_v54 = vpop.f32.mrf.mxu0 }
 0xaf4   : > { %v7718_v16 = vadd.f32 %v7717_v59, %v7629_v22  ;;  %v7453_v46 = vadd.f32 %v7452_v54, %v13992_v43  ;;  %v15366_v43 = vld [vmem:[#allocation48_spill] sm:$0xff] }
 0xaf5   : > { %v15367_v22 = vld [vmem:[#allocation64_spill] sm:$0xff] }
 0xaf6   : > { %v9236_v58 = vmax.f32 %v7718_v16, 0.0  ;;  %v7542_v33 = vadd.f32 %v7541_v63, %v7453_v46  ;;  %v15368_v59 = vld [vmem:[#allocation80_spill] sm:$0xff]  ;;  %v11997_v63 = vld [vmem:[#allocation8 + $0x4b4] sm:$0xf]  ;;  %v11356_v16 = vld [vmem:[#allocation8 + $0x4bc] sm:$0xf0] }
 0xaf7   : > { %v15369_v54 = vld [vmem:[#allocation96_spill] sm:$0xff]  ;;  %v11949_v46 = vld [vmem:[#allocation8 + $0x334] sm:$0xf] }
 0xaf8   : > { %9332 = vst [vmem:[%s14001_s23 + $0x2d0] sm:$0xff] %v9236_v58  ;;  %v11359_v58 = vor.u32 %v11997_v63, %v11356_v16 }
 0xaf9   : > { %v7630_v26 = vpop.f32.mrf.mxu2  ;;  %v7820_v7 = vpop.f32.mrf.mxu1 }
 0xafa   : > { %v7631_v48 = vadd.f32 %v7630_v26, %v7542_v33  ;;  %v12021_v33 = vld [vmem:[#allocation8 + $0x574] sm:$0xf]  ;;  %8261 = vmatpush.bf16.msrb.mxu2 %v11359_v58 }
 0xafb   : > { %v7719_v3 = vpop.f32.mrf.mxu3  ;;  %v7731_v55 = vpop.f32.mrf.mxu0 }
 0xafc   : > { %v7732_v37 = vadd.f32 %v7731_v55, %v14126_v49  ;;  %v7720_v50 = vadd.f32 %v7719_v3, %v7631_v48  ;;  %7859 = vmatmul.bf16.gmra.mxu1 %v15367_v22  ;;  %v11167_v55 = vor.u32 %v11949_v46, %v11164_v5  ;;  %v11452_v48 = vld [vmem:[#allocation8 + $0x57c] sm:$0xf0] }
 0xafe   : > { %v7821_v19 = vadd.f32 %v7820_v7, %v7732_v37  ;;  %7770 = vmatmul.bf16.gmra.mxu0 %v15366_v43  ;;  %v9239_v17 = vmax.f32 %v7720_v50, 0.0  ;;  %7948 = vmatmul.bf16.gmra.mxu2 %v15368_v59  ;;  %v11455_v50 = vor.u32 %v12021_v33, %v11452_v48  ;;  %v11973_v43 = vld [vmem:[#allocation8 + $0x3f4] sm:$0xf] }
 0xaff   : > { %8083 = vmatpush.bf16.msrb.mxu0 %v11167_v55  ;;  %v15371_v55 = vld [vmem:[#allocation65_spill] sm:$0xff] }
 0xb00   : > { %8037 = vmatmul.bf16.gmra.mxu3 %v15369_v54  ;;  %9335 = vst [vmem:[%s14001_s23 + $0x2e8] sm:$0xff] %v9239_v17  ;;  %v11260_v17 = vld [vmem:[#allocation8 + $0x3fc] sm:$0xf0] }
 0xb01   : > { %v7909_v26 = vpop.f32.mrf.mxu2  ;;  %v7822_v59 = vpop.f32.mrf.mxu1  ;;  %8350 = vmatpush.bf16.msrb.mxu3 %v11455_v50  ;;  %v11263_v16 = vor.u32 %v11973_v43, %v11260_v17 }
 0xb02   : > { %v7910_v3 = vadd.f32 %v7909_v26, %v7821_v19 }
 0xb03   : > { %v7998_v37 = vpop.f32.mrf.mxu3  ;;  %v7733_v7 = vpop.f32.mrf.mxu0  ;;  %8172 = vmatpush.bf16.msrb.mxu1 %v11263_v16 }
 0xb04   : > { %v7734_v22 = vadd.f32 %v7733_v7, %v14126_v49  ;;  %v14136_v54 = vadd.f32 %v7998_v37, %v7910_v3  ;;  %v15370_v7 = vld [vmem:[#allocation49_spill] sm:$0xff] }
 0xb05   : > { %v15372_v3 = vld [vmem:[#allocation81_spill] sm:$0xff] }
 0xb06   : > { %v7823_v63 = vadd.f32 %v7822_v59, %v7734_v22  ;;  %v15373_v37 = vld [vmem:[#allocation97_spill] sm:$0xff] }
 0xb09   : > { %v7911_v13 = vpop.f32.mrf.mxu2  ;;  %v7825_v58 = vpop.f32.mrf.mxu1 }
 0xb0a   : > { %v7912_v46 = vadd.f32 %v7911_v13, %v7823_v63 }
 0xb0b   : > { %v8000_v5 = vpop.f32.mrf.mxu3  ;;  %v7736_v19 = vpop.f32.mrf.mxu0 }
 0xb0c   : > { %v7737_v26 = vadd.f32 %v7736_v19, %v14126_v49  ;;  %v14139_v33 = vadd.f32 %v8000_v5, %v7912_v46  ;;  %7864 = vmatmul.bf16.gmra.mxu1 %v15371_v55 }
 0xb0e   : > { %v7826_v48 = vadd.f32 %v7825_v58, %v7737_v26  ;;  %7775 = vmatmul.bf16.gmra.mxu0 %v15370_v7  ;;  %7953 = vmatmul.bf16.gmra.mxu2 %v15372_v3  ;;  %v15374_v7 = vld [vmem:[#allocation50_spill] sm:$0xff] }
 0xb10   : > { %8042 = vmatmul.bf16.gmra.mxu3 %v15373_v37 }
 0xb11   : > { %v7914_v43 = vpop.f32.mrf.mxu2  ;;  %v7827_v17 = vpop.f32.mrf.mxu1 }
 0xb12   : > { %v7915_v22 = vadd.f32 %v7914_v43, %v7826_v48  ;;  %v15375_v48 = vld [vmem:[#allocation66_spill] sm:$0xff] }
 0xb13   : > { %v8003_v59 = vpop.f32.mrf.mxu3  ;;  %v7738_v13 = vpop.f32.mrf.mxu0  ;;  %v15376_v43 = vld [vmem:[#allocation82_spill] sm:$0xff] }
 0xb14   : > { %v7739_v50 = vadd.f32 %v7738_v13, %v14126_v49  ;;  %v14146_v63 = vadd.f32 %v8003_v59, %v7915_v22  ;;  %v15377_v13 = vld [vmem:[#allocation98_spill] sm:$0xff]  ;;  %v11344_v59 = vld [vmem:[#allocation8 + $0x4a4] sm:$0xf0] }
 0xb15   : > { %v11994_v22 = vld [vmem:[#allocation8 + $0x49c] sm:$0xf] }
 0xb16   : > { %v7828_v16 = vadd.f32 %v7827_v17, %v7739_v50  ;;  %v11946_v50 = vld [vmem:[#allocation8 + $0x31c] sm:$0xf]  ;;  %v11347_v17 = vor.u32 %v11994_v22, %v11344_v59 }
 0xb18   : > { %8262 = vmatpush.bf16.msrb.mxu2 %v11347_v17 }
 0xb19   : > { %v7916_v46 = vpop.f32.mrf.mxu2  ;;  %v7830_v55 = vpop.f32.mrf.mxu1 }
 0xb1a   : > { %v7917_v5 = vadd.f32 %v7916_v46, %v7828_v16  ;;  %v11152_v16 = vld [vmem:[#allocation8 + $0x324] sm:$0xf0]  ;;  %v12018_v46 = vld [vmem:[#allocation8 + $0x55c] sm:$0xf] }
 0xb1b   : > { %v8005_v19 = vpop.f32.mrf.mxu3  ;;  %v7741_v26 = vpop.f32.mrf.mxu0  ;;  %v11155_v11 = vor.u32 %v11946_v50, %v11152_v16 }
 0xb1c   : > { %v7742_v58 = vadd.f32 %v7741_v26, %v14126_v49  ;;  %v14149_v3 = vadd.f32 %v8005_v19, %v7917_v5  ;;  %7869 = vmatmul.bf16.gmra.mxu1 %v15375_v48  ;;  %v11443_v5 = vor.u32 %v12018_v46, %v11440_v39 }
 0xb1d   : > { %8084 = vmatpush.bf16.msrb.mxu0 %v11155_v11  ;;  %v15379_v11 = vld [vmem:[#allocation67_spill] sm:$0xff] }
 0xb1e   : > { %v7831_v37 = vadd.f32 %v7830_v55, %v7742_v58  ;;  %7780 = vmatmul.bf16.gmra.mxu0 %v15374_v7  ;;  %7958 = vmatmul.bf16.gmra.mxu2 %v15376_v43  ;;  %v11970_v43 = vld [vmem:[#allocation8 + $0x3dc] sm:$0xf] }
 0xb1f   : > { %8351 = vmatpush.bf16.msrb.mxu3 %v11443_v5  ;;  %v11251_v59 = vor.u32 %v11970_v43, %v11248_v8  ;;  %v15380_v5 = vld [vmem:[#allocation83_spill] sm:$0xff] }
 0xb20   : > { %8047 = vmatmul.bf16.gmra.mxu3 %v15377_v13 }
 0xb21   : > { %v7919_v26 = vpop.f32.mrf.mxu2  ;;  %v7832_v7 = vpop.f32.mrf.mxu1  ;;  %8173 = vmatpush.bf16.msrb.mxu1 %v11251_v59 }
 0xb22   : > { %v7920_v19 = vadd.f32 %v7919_v26, %v7831_v37  ;;  %v15378_v26 = vld [vmem:[#allocation51_spill] sm:$0xff] }
 0xb23   : > { %v8008_v55 = vpop.f32.mrf.mxu3  ;;  %v7743_v58 = vpop.f32.mrf.mxu0 }
 0xb24   : > { %v7744_v48 = vadd.f32 %v7743_v58, %v14126_v49  ;;  %v14156_v13 = vadd.f32 %v8008_v55, %v7920_v19  ;;  %v15381_v19 = vld [vmem:[#allocation99_spill] sm:$0xff] }
 0xb26   : > { %v7833_v22 = vadd.f32 %v7832_v7, %v7744_v48 }
 0xb29   : > { %v7921_v60 = vpop.f32.mrf.mxu2  ;;  %v7835_v16 = vpop.f32.mrf.mxu1 }
 0xb2a   : > { %v7922_v57 = vadd.f32 %v7921_v60, %v7833_v22 }
 0xb2b   : > { %v8010_v50 = vpop.f32.mrf.mxu3  ;;  %v7746_v39 = vpop.f32.mrf.mxu0 }
 0xb2c   : > { %v7747_v37 = vadd.f32 %v7746_v39, %v14126_v49  ;;  %v14159_v17 = vadd.f32 %v8010_v50, %v7922_v57  ;;  %7874 = vmatmul.bf16.gmra.mxu1 %v15379_v11  ;;  %v15382_v11 = vld [vmem:[#allocation52_spill] sm:$0xff] }
 0xb2e   : > { %v7836_v46 = vadd.f32 %v7835_v16, %v7747_v37  ;;  %7785 = vmatmul.bf16.gmra.mxu0 %v15378_v26  ;;  %7963 = vmatmul.bf16.gmra.mxu2 %v15380_v5  ;;  %v11428_v26 = vld [vmem:[#allocation8 + $0x54c] sm:$0xf0] }
 0xb30   : > { %8052 = vmatmul.bf16.gmra.mxu3 %v15381_v19 }
 0xb31   : > { %v7924_v8 = vpop.f32.mrf.mxu2  ;;  %v7837_v55 = vpop.f32.mrf.mxu1 }
 0xb32   : > { %v7925_v7 = vadd.f32 %v7924_v8, %v7836_v46  ;;  %v15383_v46 = vld [vmem:[#allocation68_spill] sm:$0xff] }
 0xb33   : > { %v8013_v48 = vpop.f32.mrf.mxu3  ;;  %v7748_v60 = vpop.f32.mrf.mxu0  ;;  %v15384_v8 = vld [vmem:[#allocation84_spill] sm:$0xff] }
 0xb34   : > { %v7749_v43 = vadd.f32 %v7748_v60, %v14126_v49  ;;  %v14166_v58 = vadd.f32 %v8013_v48, %v7925_v7  ;;  %v15385_v60 = vld [vmem:[#allocation100_spill] sm:$0xff]  ;;  %v11991_v7 = vld [vmem:[#allocation8 + $0x484] sm:$0xf]  ;;  %v11332_v48 = vld [vmem:[#allocation8 + $0x48c] sm:$0xf0] }
 0xb36   : > { %v7838_v57 = vadd.f32 %v7837_v55, %v7749_v43  ;;  %v11943_v43 = vld [vmem:[#allocation8 + $0x304] sm:$0xf]  ;;  %v11335_v55 = vor.u32 %v11991_v7, %v11332_v48 }
 0xb38   : > { %8263 = vmatpush.bf16.msrb.mxu2 %v11335_v55 }
 0xb39   : > { %v7926_v22 = vpop.f32.mrf.mxu2  ;;  %v7840_v16 = vpop.f32.mrf.mxu1 }
 0xb3a   : > { %v7927_v59 = vadd.f32 %v7926_v22, %v7838_v57  ;;  %v11140_v57 = vld [vmem:[#allocation8 + $0x30c] sm:$0xf0]  ;;  %v12015_v22 = vld [vmem:[#allocation8 + $0x544] sm:$0xf] }
 0xb3b   : > { %v8015_v50 = vpop.f32.mrf.mxu3  ;;  %v7751_v39 = vpop.f32.mrf.mxu0  ;;  %v11143_v9 = vor.u32 %v11943_v43, %v11140_v57 }
 0xb3c   : > { %v7752_v37 = vadd.f32 %v7751_v39, %v14126_v49  ;;  %v14169_v5 = vadd.f32 %v8015_v50, %v7927_v59  ;;  %7879 = vmatmul.bf16.gmra.mxu1 %v15383_v46  ;;  %v11431_v59 = vor.u32 %v12015_v22, %v11428_v26 }
 0xb3d   : > { %8085 = vmatpush.bf16.msrb.mxu0 %v11143_v9  ;;  %v15387_v9 = vld [vmem:[#allocation69_spill] sm:$0xff] }
 0xb3e   : > { %v7841_v19 = vadd.f32 %v7840_v16, %v7752_v37  ;;  %7790 = vmatmul.bf16.gmra.mxu0 %v15382_v11  ;;  %7968 = vmatmul.bf16.gmra.mxu2 %v15384_v8  ;;  %v11967_v8 = vld [vmem:[#allocation8 + $0x3c4] sm:$0xf] }
 0xb3f   : > { %8352 = vmatpush.bf16.msrb.mxu3 %v11431_v59  ;;  %v11239_v48 = vor.u32 %v11967_v8, %v11236_v2  ;;  %v15388_v59 = vld [vmem:[#allocation85_spill] sm:$0xff] }
 0xb40   : > { %8057 = vmatmul.bf16.gmra.mxu3 %v15385_v60 }
 0xb41   : > { %v7929_v39 = vpop.f32.mrf.mxu2  ;;  %v7842_v11 = vpop.f32.mrf.mxu1  ;;  %8174 = vmatpush.bf16.msrb.mxu1 %v11239_v48 }
 0xb42   : > { %v7930_v50 = vadd.f32 %v7929_v39, %v7841_v19  ;;  %v15386_v39 = vld [vmem:[#allocation53_spill] sm:$0xff] }
 0xb43   : > { %v8018_v37 = vpop.f32.mrf.mxu3  ;;  %v7753_v16 = vpop.f32.mrf.mxu0 }
 0xb44   : > { %v7754_v46 = vadd.f32 %v7753_v16, %v14126_v49  ;;  %v14176_v60 = vadd.f32 %v8018_v37, %v7930_v50  ;;  %v15389_v50 = vld [vmem:[#allocation101_spill] sm:$0xff] }
 0xb46   : > { %v7843_v7 = vadd.f32 %v7842_v11, %v7754_v46 }
 0xb49   : > { %v7931_v29 = vpop.f32.mrf.mxu2  ;;  %v7845_v57 = vpop.f32.mrf.mxu1 }
 0xb4a   : > { %v7932_v44 = vadd.f32 %v7931_v29, %v7843_v7 }
 0xb4b   : > { %v8020_v43 = vpop.f32.mrf.mxu3  ;;  %v7756_v26 = vpop.f32.mrf.mxu0 }
 0xb4c   : > { %v7757_v19 = vadd.f32 %v7756_v26, %v14126_v49  ;;  %v14179_v55 = vadd.f32 %v8020_v43, %v7932_v44  ;;  %7884 = vmatmul.bf16.gmra.mxu1 %v15387_v9  ;;  %v15390_v9 = vld [vmem:[#allocation54_spill] sm:$0xff] }
 0xb4e   : > { %v7846_v22 = vadd.f32 %v7845_v57, %v7757_v19  ;;  %7795 = vmatmul.bf16.gmra.mxu0 %v15386_v39  ;;  %7973 = vmatmul.bf16.gmra.mxu2 %v15388_v59  ;;  %v11942_v39 = vld [vmem:[#allocation8 + $0x2f8] sm:$0xf0] }
 0xb50   : > { %8062 = vmatmul.bf16.gmra.mxu3 %v15389_v50 }
 0xb51   : > { %v7934_v2 = vpop.f32.mrf.mxu2  ;;  %v7847_v37 = vpop.f32.mrf.mxu1 }
 0xb52   : > { %v7935_v11 = vadd.f32 %v7934_v2, %v7846_v22  ;;  %v15391_v22 = vld [vmem:[#allocation70_spill] sm:$0xff] }
 0xb53   : > { %v8023_v46 = vpop.f32.mrf.mxu3  ;;  %v7758_v29 = vpop.f32.mrf.mxu0  ;;  %v15392_v2 = vld [vmem:[#allocation86_spill] sm:$0xff] }
 0xb54   : > { %v7759_v8 = vadd.f32 %v7758_v29, %v14126_v49  ;;  %v14186_v16 = vadd.f32 %v8023_v46, %v7935_v11  ;;  %v15393_v29 = vld [vmem:[#allocation102_spill] sm:$0xff]  ;;  %v11038_v11 = vld [vmem:[#allocation8 + $0x230] sm:$0xf] }
 0xb55   : > { %v11918_v46 = vld [vmem:[#allocation8 + $0x238] sm:$0xf0] }
 0xb56   : > { %v7848_v44 = vadd.f32 %v7847_v37, %v7759_v8  ;;  %v10846_v8 = vld [vmem:[#allocation8 + $0xb0] sm:$0xf]  ;;  %v11039_v37 = vor.u32 %v11918_v46, %v11038_v11 }
 0xb58   : > { %8612 = vmatpush.bf16.msra.mxu2 %v11039_v37 }
 0xb59   : > { %v7936_v7 = vpop.f32.mrf.mxu2  ;;  %v7850_v57 = vpop.f32.mrf.mxu1 }
 0xb5a   : > { %v7937_v48 = vadd.f32 %v7936_v7, %v7848_v44  ;;  %v11870_v44 = vld [vmem:[#allocation8 + $0xb8] sm:$0xf0]  ;;  %v11134_v7 = vld [vmem:[#allocation8 + $0x2f0] sm:$0xf] }
 0xb5b   : > { %v8025_v43 = vpop.f32.mrf.mxu3  ;;  %v7761_v26 = vpop.f32.mrf.mxu0  ;;  %v10847_v12 = vor.u32 %v11870_v44, %v10846_v8 }
 0xb5c   : > { %v7762_v19 = vadd.f32 %v7761_v26, %v14126_v49  ;;  %v14189_v59 = vadd.f32 %v8025_v43, %v7937_v48  ;;  %7889 = vmatmul.bf16.gmra.mxu1 %v15391_v22  ;;  %v11135_v48 = vor.u32 %v11942_v39, %v11134_v7 }
 0xb5d   : > { %8434 = vmatpush.bf16.msra.mxu0 %v10847_v12  ;;  %v15395_v12 = vld [vmem:[#allocation71_spill] sm:$0xff] }
 0xb5e   : > { %v7851_v50 = vadd.f32 %v7850_v57, %v7762_v19  ;;  %7800 = vmatmul.bf16.gmra.mxu0 %v15390_v9  ;;  %7978 = vmatmul.bf16.gmra.mxu2 %v15392_v2  ;;  %v10942_v2 = vld [vmem:[#allocation8 + $0x170] sm:$0xf] }
 0xb5f   : > { %8701 = vmatpush.bf16.msra.mxu3 %v11135_v48  ;;  %v10943_v46 = vor.u32 %v11894_v40, %v10942_v2  ;;  %v15396_v48 = vld [vmem:[#allocation87_spill] sm:$0xff] }
 0xb60   : > { %8067 = vmatmul.bf16.gmra.mxu3 %v15393_v29 }
 0xb61   : > { %v7939_v26 = vpop.f32.mrf.mxu2  ;;  %v7852_v9 = vpop.f32.mrf.mxu1  ;;  %8523 = vmatpush.bf16.msra.mxu1 %v10943_v46 }
 0xb62   : > { %v7940_v43 = vadd.f32 %v7939_v26, %v7851_v50  ;;  %v15394_v26 = vld [vmem:[#allocation55_spill] sm:$0xff] }
 0xb63   : > { %v8028_v19 = vpop.f32.mrf.mxu3  ;;  %v7763_v57 = vpop.f32.mrf.mxu0 }
 0xb64   : > { %v7764_v22 = vadd.f32 %v7763_v57, %v14126_v49  ;;  %v14196_v29 = vadd.f32 %v8028_v19, %v7940_v43  ;;  %v15397_v43 = vld [vmem:[#allocation103_spill] sm:$0xff] }
 0xb66   : > { %v7853_v11 = vadd.f32 %v7852_v9, %v7764_v22 }
 0xb69   : > { %v7941_v28 = vpop.f32.mrf.mxu2  ;;  %v7855_v44 = vpop.f32.mrf.mxu1 }
 0xb6a   : > { %v7942_v42 = vadd.f32 %v7941_v28, %v7853_v11 }
 0xb6b   : > { %v8030_v8 = vpop.f32.mrf.mxu3  ;;  %v7766_v39 = vpop.f32.mrf.mxu0 }
 0xb6c   : > { %v7767_v50 = vadd.f32 %v7766_v39, %v14126_v49  ;;  %v14199_v37 = vadd.f32 %v8030_v8, %v7942_v42  ;;  %7894 = vmatmul.bf16.gmra.mxu1 %v15395_v12  ;;  %v15400_v12 = vld [vmem:[#allocation104_spill] sm:$0xff] }
 0xb6e   : > { %v7856_v7 = vadd.f32 %v7855_v44, %v7767_v50  ;;  %7805 = vmatmul.bf16.gmra.mxu0 %v15394_v26  ;;  %7983 = vmatmul.bf16.gmra.mxu2 %v15396_v48  ;;  %v11939_v26 = vld [vmem:[#allocation8 + $0x2e0] sm:$0xf0] }
 0xb70   : > { %8072 = vmatmul.bf16.gmra.mxu3 %v15397_v43 }
 0xb71   : > { %v7944_v40 = vpop.f32.mrf.mxu2  ;;  %v7857_v19 = vpop.f32.mrf.mxu1 }
 0xb72   : > { %v7945_v9 = vadd.f32 %v7944_v40, %v7856_v7  ;;  %v15401_v7 = vld [vmem:[#allocation120_spill] sm:$0xff] }
 0xb73   : > { %v8033_v22 = vpop.f32.mrf.mxu3  ;;  %v7768_v28 = vpop.f32.mrf.mxu0  ;;  %v15402_v40 = vld [vmem:[#allocation136_spill] sm:$0xff] }
 0xb74   : > { %v7769_v2 = vadd.f32 %v7768_v28, %v14126_v49  ;;  %v14206_v57 = vadd.f32 %v8033_v22, %v7945_v9  ;;  %v15403_v28 = vld [vmem:[#allocation17_spill] sm:$0xff]  ;;  %v11026_v9 = vld [vmem:[#allocation8 + $0x218] sm:$0xf]  ;;  %v11915_v22 = vld [vmem:[#allocation8 + $0x220] sm:$0xf0] }
 0xb76   : > { %15398 = vst [vmem:[#allocation37_spill] sm:$0xff] %v14206_v57  ;;  %v7858_v42 = vadd.f32 %v7857_v19, %v7769_v2  ;;  %v10834_v2 = vld [vmem:[#allocation8 + $0x98] sm:$0xf]  ;;  %v11027_v19 = vor.u32 %v11915_v22, %v11026_v9 }
 0xb78   : > { %8613 = vmatpush.bf16.msra.mxu2 %v11027_v19 }
 0xb79   : > { %v7946_v11 = vpop.f32.mrf.mxu2  ;;  %v7860_v44 = vpop.f32.mrf.mxu1 }
 0xb7a   : > { %v7947_v46 = vadd.f32 %v7946_v11, %v7858_v42  ;;  %v11867_v42 = vld [vmem:[#allocation8 + $0xa0] sm:$0xf0]  ;;  %v11122_v11 = vld [vmem:[#allocation8 + $0x2d8] sm:$0xf] }
 0xb7b   : > { %v8035_v8 = vpop.f32.mrf.mxu3  ;;  %v7771_v39 = vpop.f32.mrf.mxu0  ;;  %v10835_v56 = vor.u32 %v11867_v42, %v10834_v2 }
 0xb7c   : > { %v7772_v50 = vadd.f32 %v7771_v39, %v14126_v49  ;;  %v14209_v48 = vadd.f32 %v8035_v8, %v7947_v46  ;;  %8175 = vmatmul.bf16.vlgmr.msrb.gmra.mxu1 %v15401_v7  ;;  %v11123_v46 = vor.u32 %v11939_v26, %v11122_v11 }
 0xb7d   : > { %8435 = vmatpush.bf16.msra.mxu0 %v10835_v56  ;;  %v15407_v56 = vld [vmem:[#allocation121_spill] sm:$0xff] }
 0xb7e   : > { %15399 = vst [vmem:[#allocation38_spill] sm:$0xff] %v14209_v48  ;;  %v7861_v43 = vadd.f32 %v7860_v44, %v7772_v50  ;;  %8086 = vmatmul.bf16.vlgmr.msrb.gmra.mxu0 %v15400_v12  ;;  %8264 = vmatmul.bf16.vlgmr.msrb.gmra.mxu2 %v15402_v40  ;;  %v10930_v40 = vld [vmem:[#allocation8 + $0x158] sm:$0xf]  ;;  %v11891_v48 = vld [vmem:[#allocation8 + $0x160] sm:$0xf0] }
 0xb7f   : > { %8702 = vmatpush.bf16.msra.mxu3 %v11123_v46  ;;  %v10931_v22 = vor.u32 %v11891_v48, %v10930_v40  ;;  %v15408_v46 = vld [vmem:[#allocation137_spill] sm:$0xff] }
 0xb80   : > { %8353 = vmatmul.bf16.vlgmr.msrb.gmra.mxu3 %v15403_v28 }
 0xb81   : > { %v7949_v39 = vpop.f32.mrf.mxu2  ;;  %v7862_v12 = vpop.f32.mrf.mxu1  ;;  %8524 = vmatpush.bf16.msra.mxu1 %v10931_v22 }
 0xb82   : > { %v7950_v8 = vadd.f32 %v7949_v39, %v7861_v43  ;;  %v15406_v39 = vld [vmem:[#allocation105_spill] sm:$0xff] }
 0xb83   : > { %v8038_v50 = vpop.f32.mrf.mxu3  ;;  %v7773_v44 = vpop.f32.mrf.mxu0 }
 0xb84   : > { %v7774_v7 = vadd.f32 %v7773_v44, %v14126_v49  ;;  %v14216_v28 = vadd.f32 %v8038_v50, %v7950_v8  ;;  %v15409_v8 = vld [vmem:[#allocation18_spill] sm:$0xff] }
 0xb86   : > { %15404 = vst [vmem:[#allocation39_spill] sm:$0xff] %v14216_v28  ;;  %v7863_v9 = vadd.f32 %v7862_v12, %v7774_v7 }
 0xb89   : > { %v7951_v10 = vpop.f32.mrf.mxu2  ;;  %v7865_v42 = vpop.f32.mrf.mxu1 }
 0xb8a   : > { %v7952_v18 = vadd.f32 %v7951_v10, %v7863_v9 }
 0xb8b   : > { %v8040_v2 = vpop.f32.mrf.mxu3  ;;  %v7776_v26 = vpop.f32.mrf.mxu0 }
 0xb8c   : > { %v7777_v43 = vadd.f32 %v7776_v26, %v14126_v49  ;;  %v14219_v19 = vadd.f32 %v8040_v2, %v7952_v18  ;;  %8180 = vmatmul.bf16.gmra.mxu1 %v15407_v56  ;;  %v15412_v56 = vld [vmem:[#allocation106_spill] sm:$0xff] }
 0xb8e   : > { %15405 = vst [vmem:[#allocation41_spill] sm:$0xff] %v14219_v19  ;;  %v7866_v11 = vadd.f32 %v7865_v42, %v7777_v43  ;;  %8091 = vmatmul.bf16.gmra.mxu0 %v15406_v39  ;;  %8269 = vmatmul.bf16.gmra.mxu2 %v15408_v46  ;;  %v11936_v39 = vld [vmem:[#allocation8 + $0x2c8] sm:$0xf0] }
 0xb90   : > { %8358 = vmatmul.bf16.gmra.mxu3 %v15409_v8 }
 0xb91   : > { %v7954_v12 = vpop.f32.mrf.mxu2  ;;  %v7867_v50 = vpop.f32.mrf.mxu1 }
 0xb92   : > { %v7955_v48 = vadd.f32 %v7954_v12, %v7866_v11  ;;  %v15413_v11 = vld [vmem:[#allocation122_spill] sm:$0xff] }
 0xb93   : > { %v8043_v7 = vpop.f32.mrf.mxu3  ;;  %v7778_v10 = vpop.f32.mrf.mxu0  ;;  %v15414_v12 = vld [vmem:[#allocation138_spill] sm:$0xff] }
 0xb94   : > { %v7779_v40 = vadd.f32 %v7778_v10, %v14126_v49  ;;  %v14226_v44 = vadd.f32 %v8043_v7, %v7955_v48  ;;  %v15415_v10 = vld [vmem:[#allocation19_spill] sm:$0xff]  ;;  %v11912_v7 = vld [vmem:[#allocation8 + $0x208] sm:$0xf0] }
 0xb95   : > { %v11014_v48 = vld [vmem:[#allocation8 + $0x200] sm:$0xf] }
 0xb96   : > { %15410 = vst [vmem:[#allocation42_spill] sm:$0xff] %v14226_v44  ;;  %v7868_v18 = vadd.f32 %v7867_v50, %v7779_v40  ;;  %v10822_v40 = vld [vmem:[#allocation8 + $0x80] sm:$0xf]  ;;  %v11015_v50 = vor.u32 %v11912_v7, %v11014_v48 }
 0xb98   : > { %8614 = vmatpush.bf16.msra.mxu2 %v11015_v50 }
 0xb99   : > { %v7956_v9 = vpop.f32.mrf.mxu2  ;;  %v7870_v42 = vpop.f32.mrf.mxu1 }
 0xb9a   : > { %v7957_v22 = vadd.f32 %v7956_v9, %v7868_v18  ;;  %v11864_v18 = vld [vmem:[#allocation8 + $0x88] sm:$0xf0]  ;;  %v11110_v9 = vld [vmem:[#allocation8 + $0x2c0] sm:$0xf] }
 0xb9b   : > { %v8045_v2 = vpop.f32.mrf.mxu3  ;;  %v7781_v26 = vpop.f32.mrf.mxu0  ;;  %v10823_v44 = vor.u32 %v11864_v18, %v10822_v40 }
 0xb9c   : > { %v7782_v43 = vadd.f32 %v7781_v26, %v14126_v49  ;;  %v14229_v46 = vadd.f32 %v8045_v2, %v7957_v22  ;;  %8185 = vmatmul.bf16.gmra.mxu1 %v15413_v11  ;;  %v11111_v22 = vor.u32 %v11936_v39, %v11110_v9 }
 0xb9d   : > { %8436 = vmatpush.bf16.msra.mxu0 %v10823_v44  ;;  %v15419_v44 = vld [vmem:[#allocation123_spill] sm:$0xff] }
 0xb9e   : > { %15411 = vst [vmem:[#allocation43_spill] sm:$0xff] %v14229_v46  ;;  %v7871_v8 = vadd.f32 %v7870_v42, %v7782_v43  ;;  %8096 = vmatmul.bf16.gmra.mxu0 %v15412_v56  ;;  %8274 = vmatmul.bf16.gmra.mxu2 %v15414_v12  ;;  %v10918_v12 = vld [vmem:[#allocation8 + $0x140] sm:$0xf]  ;;  %v11888_v46 = vld [vmem:[#allocation8 + $0x148] sm:$0xf0] }
 0xb9f   : > { %8703 = vmatpush.bf16.msra.mxu3 %v11111_v22  ;;  %v10919_v7 = vor.u32 %v11888_v46, %v10918_v12  ;;  %v15420_v22 = vld [vmem:[#allocation139_spill] sm:$0xff] }
 0xba0   : > { %8363 = vmatmul.bf16.gmra.mxu3 %v15415_v10 }
 0xba1   : > { %v7959_v26 = vpop.f32.mrf.mxu2  ;;  %v7872_v56 = vpop.f32.mrf.mxu1  ;;  %8525 = vmatpush.bf16.msra.mxu1 %v10919_v7 }
 0xba2   : > { %v7960_v2 = vadd.f32 %v7959_v26, %v7871_v8  ;;  %v15418_v26 = vld [vmem:[#allocation107_spill] sm:$0xff] }
 0xba3   : > { %v8048_v43 = vpop.f32.mrf.mxu3  ;;  %v7783_v42 = vpop.f32.mrf.mxu0 }
 0xba4   : > { %v7784_v11 = vadd.f32 %v7783_v42, %v14126_v49  ;;  %v14236_v10 = vadd.f32 %v8048_v43, %v7960_v2  ;;  %v15421_v2 = vld [vmem:[#allocation21_spill] sm:$0xff] }
 0xba6   : > { %15416 = vst [vmem:[#allocation44_spill] sm:$0xff] %v14236_v10  ;;  %v7873_v48 = vadd.f32 %v7872_v56, %v7784_v11 }
 0xba9   : > { %v7961_v19 = vpop.f32.mrf.mxu2  ;;  %v7875_v18 = vpop.f32.mrf.mxu1 }
 0xbaa   : > { %v7962_v28 = vadd.f32 %v7961_v19, %v7873_v48 }
 0xbab   : > { %v8050_v40 = vpop.f32.mrf.mxu3  ;;  %v7786_v39 = vpop.f32.mrf.mxu0 }
 0xbac   : > { %v7787_v8 = vadd.f32 %v7786_v39, %v14126_v49  ;;  %v14239_v50 = vadd.f32 %v8050_v40, %v7962_v28  ;;  %8190 = vmatmul.bf16.gmra.mxu1 %v15419_v44  ;;  %v15424_v44 = vld [vmem:[#allocation108_spill] sm:$0xff] }
 0xbae   : > { %15417 = vst [vmem:[#allocation111_spill] sm:$0xff] %v14239_v50  ;;  %v7876_v9 = vadd.f32 %v7875_v18, %v7787_v8  ;;  %8101 = vmatmul.bf16.gmra.mxu0 %v15418_v26  ;;  %8279 = vmatmul.bf16.gmra.mxu2 %v15420_v22  ;;  %v11933_v26 = vld [vmem:[#allocation8 + $0x2b0] sm:$0xf0] }
 0xbb0   : > { %8368 = vmatmul.bf16.gmra.mxu3 %v15421_v2 }
 0xbb1   : > { %v7964_v56 = vpop.f32.mrf.mxu2  ;;  %v7877_v43 = vpop.f32.mrf.mxu1 }
 0xbb2   : > { %v7965_v46 = vadd.f32 %v7964_v56, %v7876_v9  ;;  %v15425_v9 = vld [vmem:[#allocation124_spill] sm:$0xff] }
 0xbb3   : > { %v8053_v11 = vpop.f32.mrf.mxu3  ;;  %v7788_v19 = vpop.f32.mrf.mxu0  ;;  %v15426_v56 = vld [vmem:[#allocation140_spill] sm:$0xff] }
 0xbb4   : > { %v7789_v12 = vadd.f32 %v7788_v19, %v14126_v49  ;;  %v14246_v42 = vadd.f32 %v8053_v11, %v7965_v46  ;;  %v15427_v19 = vld [vmem:[#allocation22_spill] sm:$0xff]  ;;  %v11002_v46 = vld [vmem:[#allocation8 + $0x1e8] sm:$0xf]  ;;  %v11909_v11 = vld [vmem:[#allocation8 + $0x1f0] sm:$0xf0] }
 0xbb6   : > { %15422 = vst [vmem:[#allocation127_spill] sm:$0xff] %v14246_v42  ;;  %v7878_v28 = vadd.f32 %v7877_v43, %v7789_v12  ;;  %v10810_v12 = vld [vmem:[#allocation8 + $0x68] sm:$0xf]  ;;  %v11003_v43 = vor.u32 %v11909_v11, %v11002_v46 }
 0xbb8   : > { %8615 = vmatpush.bf16.msra.mxu2 %v11003_v43 }
 0xbb9   : > { %v7966_v48 = vpop.f32.mrf.mxu2  ;;  %v7880_v18 = vpop.f32.mrf.mxu1 }
 0xbba   : > { %v7967_v7 = vadd.f32 %v7966_v48, %v7878_v28  ;;  %v11861_v28 = vld [vmem:[#allocation8 + $0x70] sm:$0xf0]  ;;  %v11098_v48 = vld [vmem:[#allocation8 + $0x2a8] sm:$0xf] }
 0xbbb   : > { %v8055_v40 = vpop.f32.mrf.mxu3  ;;  %v7791_v39 = vpop.f32.mrf.mxu0  ;;  %v10811_v42 = vor.u32 %v11861_v28, %v10810_v12 }
 0xbbc   : > { %v7792_v8 = vadd.f32 %v7791_v39, %v14126_v49  ;;  %v14249_v22 = vadd.f32 %v8055_v40, %v7967_v7  ;;  %8195 = vmatmul.bf16.gmra.mxu1 %v15425_v9  ;;  %v11099_v7 = vor.u32 %v11933_v26, %v11098_v48 }
 0xbbd   : > { %8437 = vmatpush.bf16.msra.mxu0 %v10811_v42  ;;  %v15431_v42 = vld [vmem:[#allocation125_spill] sm:$0xff] }
 0xbbe   : > { %15423 = vst [vmem:[#allocation113_spill] sm:$0xff] %v14249_v22  ;;  %v7881_v2 = vadd.f32 %v7880_v18, %v7792_v8  ;;  %8106 = vmatmul.bf16.gmra.mxu0 %v15424_v44  ;;  %8284 = vmatmul.bf16.gmra.mxu2 %v15426_v56  ;;  %v10906_v56 = vld [vmem:[#allocation8 + $0x128] sm:$0xf]  ;;  %v11885_v22 = vld [vmem:[#allocation8 + $0x130] sm:$0xf0] }
 0xbbf   : > { %8704 = vmatpush.bf16.msra.mxu3 %v11099_v7  ;;  %v10907_v11 = vor.u32 %v11885_v22, %v10906_v56  ;;  %v15432_v7 = vld [vmem:[#allocation141_spill] sm:$0xff] }
 0xbc0   : > { %8373 = vmatmul.bf16.gmra.mxu3 %v15427_v19 }
 0xbc1   : > { %v7969_v39 = vpop.f32.mrf.mxu2  ;;  %v7882_v44 = vpop.f32.mrf.mxu1  ;;  %8526 = vmatpush.bf16.msra.mxu1 %v10907_v11 }
 0xbc2   : > { %v7970_v40 = vadd.f32 %v7969_v39, %v7881_v2  ;;  %v15430_v39 = vld [vmem:[#allocation109_spill] sm:$0xff] }
 0xbc3   : > { %v8058_v8 = vpop.f32.mrf.mxu3  ;;  %v7793_v18 = vpop.f32.mrf.mxu0 }
 0xbc4   : > { %v7794_v9 = vadd.f32 %v7793_v18, %v14126_v49  ;;  %v14256_v19 = vadd.f32 %v8058_v8, %v7970_v40  ;;  %v15433_v40 = vld [vmem:[#allocation23_spill] sm:$0xff] }
 0xbc6   : > { %15428 = vst [vmem:[#allocation129_spill] sm:$0xff] %v14256_v19  ;;  %v7883_v46 = vadd.f32 %v7882_v44, %v7794_v9 }
 0xbc9   : > { %v7971_v50 = vpop.f32.mrf.mxu2  ;;  %v7885_v28 = vpop.f32.mrf.mxu1 }
 0xbca   : > { %v7972_v10 = vadd.f32 %v7971_v50, %v7883_v46 }
 0xbcb   : > { %v8060_v12 = vpop.f32.mrf.mxu3  ;;  %v7796_v26 = vpop.f32.mrf.mxu0 }
 0xbcc   : > { %v7797_v2 = vadd.f32 %v7796_v26, %v14126_v49  ;;  %v14259_v43 = vadd.f32 %v8060_v12, %v7972_v10  ;;  %8200 = vmatmul.bf16.gmra.mxu1 %v15431_v42  ;;  %v15436_v42 = vld [vmem:[#allocation110_spill] sm:$0xff] }
 0xbce   : > { %15429 = vst [vmem:[#allocation114_spill] sm:$0xff] %v14259_v43  ;;  %v7886_v48 = vadd.f32 %v7885_v28, %v7797_v2  ;;  %8111 = vmatmul.bf16.gmra.mxu0 %v15430_v39  ;;  %8289 = vmatmul.bf16.gmra.mxu2 %v15432_v7  ;;  %v11930_v39 = vld [vmem:[#allocation8 + $0x298] sm:$0xf0] }
 0xbd0   : > { %8378 = vmatmul.bf16.gmra.mxu3 %v15433_v40 }
 0xbd1   : > { %v7974_v44 = vpop.f32.mrf.mxu2  ;;  %v7887_v8 = vpop.f32.mrf.mxu1 }
 0xbd2   : > { %v7975_v22 = vadd.f32 %v7974_v44, %v7886_v48  ;;  %v15437_v48 = vld [vmem:[#allocation126_spill] sm:$0xff] }
 0xbd3   : > { %v8063_v9 = vpop.f32.mrf.mxu3  ;;  %v7798_v50 = vpop.f32.mrf.mxu0  ;;  %v15438_v44 = vld [vmem:[#allocation142_spill] sm:$0xff] }
 0xbd4   : > { %v7799_v56 = vadd.f32 %v7798_v50, %v14126_v49  ;;  %v14266_v18 = vadd.f32 %v8063_v9, %v7975_v22  ;;  %v15439_v50 = vld [vmem:[#allocation24_spill] sm:$0xff]  ;;  %v10990_v22 = vld [vmem:[#allocation8 + $0x1d0] sm:$0xf]  ;;  %v11906_v9 = vld [vmem:[#allocation8 + $0x1d8] sm:$0xf0] }
 0xbd6   : > { %15434 = vst [vmem:[#allocation130_spill] sm:$0xff] %v14266_v18  ;;  %v7888_v10 = vadd.f32 %v7887_v8, %v7799_v56  ;;  %v10798_v56 = vld [vmem:[#allocation8 + $0x50] sm:$0xf]  ;;  %v10991_v8 = vor.u32 %v11906_v9, %v10990_v22  ;;  %v11882_v22 = vld [vmem:[#allocation8 + $0x118] sm:$0xf0] }
 0xbd8   : > { %8616 = vmatpush.bf16.msra.mxu2 %v10991_v8 }
 0xbd9   : > { %v7976_v46 = vpop.f32.mrf.mxu2  ;;  %v7890_v28 = vpop.f32.mrf.mxu1 }
 0xbda   : > { %v7977_v11 = vadd.f32 %v7976_v46, %v7888_v10  ;;  %v11858_v10 = vld [vmem:[#allocation8 + $0x58] sm:$0xf0]  ;;  %v11086_v46 = vld [vmem:[#allocation8 + $0x290] sm:$0xf] }
 0xbdb   : > { %v8065_v12 = vpop.f32.mrf.mxu3  ;;  %v7801_v26 = vpop.f32.mrf.mxu0  ;;  %v10799_v18 = vor.u32 %v11858_v10, %v10798_v56 }
 0xbdc   : > { %v7802_v2 = vadd.f32 %v7801_v26, %v14126_v49  ;;  %v14269_v7 = vadd.f32 %v8065_v12, %v7977_v11  ;;  %8205 = vmatmul.bf16.gmra.mxu1 %v15437_v48  ;;  %v11087_v11 = vor.u32 %v11930_v39, %v11086_v46 }
 0xbdd   : > { %8438 = vmatpush.bf16.msra.mxu0 %v10799_v18 }
 0xbde   : > { %15435 = vst [vmem:[#allocation115_spill] sm:$0xff] %v14269_v7  ;;  %v7891_v40 = vadd.f32 %v7890_v28, %v7802_v2  ;;  %8116 = vmatmul.bf16.gmra.mxu0 %v15436_v42  ;;  %8294 = vmatmul.bf16.gmra.mxu2 %v15438_v44  ;;  %v10894_v7 = vld [vmem:[#allocation8 + $0x110] sm:$0xf] }
 0xbdf   : > { %8705 = vmatpush.bf16.msra.mxu3 %v11087_v11  ;;  %v10895_v43 = vor.u32 %v11882_v22, %v10894_v7 }
 0xbe0   : > { %8383 = vmatmul.bf16.gmra.mxu3 %v15439_v50 }
 0xbe1   : > { %v7979_v26 = vpop.f32.mrf.mxu2  ;;  %v7892_v42 = vpop.f32.mrf.mxu1  ;;  %8527 = vmatpush.bf16.msra.mxu1 %v10895_v43 }
 0xbe2   : > { %v7980_v12 = vadd.f32 %v7979_v26, %v7891_v40 }
 0xbe3   : > { %v8068_v2 = vpop.f32.mrf.mxu3  ;;  %v7803_v28 = vpop.f32.mrf.mxu0 }
 0xbe4   : > { %v7804_v48 = vadd.f32 %v7803_v28, %v14126_v49  ;;  %v14276_v50 = vadd.f32 %v8068_v2, %v7980_v12 }
 0xbe6   : > { %v7893_v44 = vadd.f32 %v7892_v42, %v7804_v48 }
 0xbe9   : > { %v7981_v9 = vpop.f32.mrf.mxu2  ;;  %v7895_v40 = vpop.f32.mrf.mxu1 }
 0xbea   : > { %v7982_v19 = vadd.f32 %v7981_v9, %v7893_v44  ;;  %v15440_v9 = vld [vmem:[#allocation128_spill] sm:$0xff] }
 0xbeb   : > { %v8070_v57 = vpop.f32.mrf.mxu3  ;;  %v7806_v56 = vpop.f32.mrf.mxu0 }
 0xbec   : > { %v7807_v39 = vadd.f32 %v7806_v56, %v14126_v49  ;;  %v14279_v8 = vadd.f32 %v8070_v57, %v7982_v19  ;;  %8210 = vmatmul.bf16.gmra.mxu1 %v15312_v23  ;;  %v15441_v56 = vld [vmem:[#allocation15_spill] sm:$0xff] }
 0xbee   : > { %v7896_v10 = vadd.f32 %v7895_v40, %v7807_v39  ;;  %8121 = vmatmul.bf16.gmra.mxu0 %v15311_v24  ;;  %8299 = vmatmul.bf16.gmra.mxu2 %v13638_v51  ;;  %v10978_v40 = vld [vmem:[#allocation8 + $0x1b8] sm:$0xf] }
 0xbf0   : > { %8388 = vmatmul.bf16.gmra.mxu3 %v13768_v34 }
 0xbf1   : > { %v7984_v42 = vpop.f32.mrf.mxu2  ;;  %v7897_v46 = vpop.f32.mrf.mxu1 }
 0xbf2   : > { %v7985_v7 = vadd.f32 %v7984_v42, %v7896_v10  ;;  %v11903_v10 = vld [vmem:[#allocation8 + $0x1c0] sm:$0xf0]  ;;  %v10786_v42 = vld [vmem:[#allocation8 + $0x38] sm:$0xf] }
 0xbf3   : > { %v8073_v18 = vpop.f32.mrf.mxu3  ;;  %v7808_v48 = vpop.f32.mrf.mxu0 }
 0xbf4   : > { %v7809_v44 = vadd.f32 %v7808_v48, %v14126_v49  ;;  %v14286_v26 = vadd.f32 %v8073_v18, %v7985_v7  ;;  %v15442_v49 = vld [vmem:[#allocation27_spill] sm:$0xff]  ;;  %v10979_v18 = vor.u32 %v11903_v10, %v10978_v40  ;;  %v10882_v40 = vld [vmem:[#allocation8 + $0xf8] sm:$0xf] }
 0xbf5   : > { %v11855_v48 = vld [vmem:[#allocation8 + $0x40] sm:$0xf0] }
 0xbf6   : > { %v7898_v57 = vadd.f32 %v7897_v46, %v7809_v44  ;;  %v11074_v44 = vld [vmem:[#allocation8 + $0x278] sm:$0xf]  ;;  %v11927_v46 = vld [vmem:[#allocation8 + $0x280] sm:$0xf0]  ;;  %8617 = vmatpush.bf16.msra.mxu2 %v10979_v18 }
 0xbf7   : > { %v11879_v10 = vld [vmem:[#allocation8 + $0x100] sm:$0xf0] }
 0xbf9   : > { %v7986_v19 = vpop.f32.mrf.mxu2  ;;  %v8176_v2 = vpop.f32.mrf.mxu1 }
 0xbfa   : > { %v7987_v43 = vadd.f32 %v7986_v19, %v7898_v57 }
 0xbfb   : > { %v8075_v11 = vpop.f32.mrf.mxu3  ;;  %v8087_v12 = vpop.f32.mrf.mxu0 }
 0xbfc   : > { %v14288_v28 = vadd.f32 %v8075_v11, %v7987_v43  ;;  %v8088_v22 = vadd.f32 %v8087_v12, %v14136_v54  ;;  %8215 = vmatmul.bf16.gmra.mxu1 %v15440_v9  ;;  %v10787_v43 = vor.u32 %v11855_v48, %v10786_v42  ;;  %v11075_v11 = vor.u32 %v11927_v46, %v11074_v44 }
 0xbfe   : > { %8126 = vmatmul.bf16.gmra.mxu0 %v15313_v53  ;;  %8304 = vmatmul.bf16.gmra.mxu2 %v15441_v56  ;;  %v8177_v39 = vadd.f32 %v8176_v2, %v8088_v22  ;;  %v10883_v53 = vor.u32 %v11879_v10, %v10882_v40 }
 0xbff   : > { %8439 = vmatpush.bf16.msra.mxu0 %v10787_v43  ;;  %8706 = vmatpush.bf16.msra.mxu3 %v11075_v11 }
 0xc00   : > { %8393 = vmatmul.bf16.gmra.mxu3 %v15442_v49  ;;  %8528 = vmatpush.bf16.msra.mxu1 %v10883_v53 }
 0xc01   : > { %v8265_v7 = vpop.f32.mrf.mxu2  ;;  %v8178_v12 = vpop.f32.mrf.mxu1 }
 0xc02   : > { %v8266_v57 = vadd.f32 %v8265_v7, %v8177_v39 }
 0xc03   : > { %v8354_v54 = vpop.f32.mrf.mxu3  ;;  %v8089_v19 = vpop.f32.mrf.mxu0 }
 0xc04   : > { %v8355_v56 = vadd.f32 %v8354_v54, %v8266_v57  ;;  %v8090_v49 = vadd.f32 %v8089_v19, %v14139_v33 }
 0xc06   : > { %v9147_v2 = vmax.f32 %v8355_v56, 0.0  ;;  %v8179_v22 = vadd.f32 %v8178_v12, %v8090_v49 }
 0xc08   : > { %9243 = vst [vmem:[%s14001_s23 + $0x8] sm:$0xff] %v9147_v2 }
 0xc09   : > { %v8267_v9 = vpop.f32.mrf.mxu2  ;;  %v8181_v42 = vpop.f32.mrf.mxu1 }
 0xc0a   : > { %v8268_v39 = vadd.f32 %v8267_v9, %v8179_v22 }
 0xc0b   : > { %v8356_v7 = vpop.f32.mrf.mxu3  ;;  %v8092_v34 = vpop.f32.mrf.mxu0 }
 0xc0c   : > { %v8357_v48 = vadd.f32 %v8356_v7, %v8268_v39  ;;  %v8093_v18 = vadd.f32 %v8092_v34, %v14146_v63  ;;  %8220 = vmatmul.bf16.gmra.mxu1 %v15316_v35  ;;  %v15443_v39 = vld [vmem:[#allocation16_spill] sm:$0xff] }
 0xc0e   : > { %8131 = vmatmul.bf16.gmra.mxu0 %v15315_v20  ;;  %v9150_v33 = vmax.f32 %v8357_v48, 0.0  ;;  %8309 = vmatmul.bf16.gmra.mxu2 %v13654_v25  ;;  %v8182_v56 = vadd.f32 %v8181_v42, %v8093_v18  ;;  %v10966_v42 = vld [vmem:[#allocation8 + $0x1a0] sm:$0xf]  ;;  %v11900_v48 = vld [vmem:[#allocation8 + $0x1a8] sm:$0xf0] }
 0xc10   : > { %8398 = vmatmul.bf16.gmra.mxu3 %v13784_v27  ;;  %9246 = vst [vmem:[%s14001_s23 + $0x20] sm:$0xff] %v9150_v33  ;;  %v10967_v33 = vor.u32 %v11900_v48, %v10966_v42 }
 0xc11   : > { %v8270_v9 = vpop.f32.mrf.mxu2  ;;  %v8183_v53 = vpop.f32.mrf.mxu1 }
 0xc12   : > { %v8271_v49 = vadd.f32 %v8270_v9, %v8182_v56  ;;  %v10774_v56 = vld [vmem:[#allocation8 + $0x20] sm:$0xf]  ;;  %v11852_v9 = vld [vmem:[#allocation8 + $0x28] sm:$0xf0]  ;;  %8618 = vmatpush.bf16.msra.mxu2 %v10967_v33 }
 0xc13   : > { %v8359_v44 = vpop.f32.mrf.mxu3  ;;  %v8094_v46 = vpop.f32.mrf.mxu0 }
 0xc14   : > { %v8360_v57 = vadd.f32 %v8359_v44, %v8271_v49  ;;  %v8095_v34 = vadd.f32 %v8094_v46, %v14149_v3  ;;  %v15444_v3 = vld [vmem:[#allocation28_spill] sm:$0xff]  ;;  %v11062_v49 = vld [vmem:[#allocation8 + $0x260] sm:$0xf] }
 0xc16   : > { %v9153_v63 = vmax.f32 %v8360_v57, 0.0  ;;  %v8184_v54 = vadd.f32 %v8183_v53, %v8095_v34  ;;  %v10775_v53 = vor.u32 %v11852_v9, %v10774_v56  ;;  %v11924_v57 = vld [vmem:[#allocation8 + $0x268] sm:$0xf0] }
 0xc18   : > { %9249 = vst [vmem:[%s14001_s23 + $0x38] sm:$0xff] %v9153_v63  ;;  %v11063_v63 = vor.u32 %v11924_v57, %v11062_v49  ;;  %8440 = vmatpush.bf16.msra.mxu0 %v10775_v53 }
 0xc19   : > { %v8272_v19 = vpop.f32.mrf.mxu2  ;;  %v8186_v2 = vpop.f32.mrf.mxu1 }
 0xc1a   : > { %v8273_v43 = vadd.f32 %v8272_v19, %v8184_v54  ;;  %8707 = vmatpush.bf16.msra.mxu3 %v11063_v63 }
 0xc1b   : > { %v8361_v11 = vpop.f32.mrf.mxu3  ;;  %v8097_v12 = vpop.f32.mrf.mxu0 }
 0xc1c   : > { %v8362_v22 = vadd.f32 %v8361_v11, %v8273_v43  ;;  %v8098_v40 = vadd.f32 %v8097_v12, %v14156_v13  ;;  %8225 = vmatmul.bf16.gmra.mxu1 %v15318_v41  ;;  %v10870_v12 = vld [vmem:[#allocation8 + $0xe0] sm:$0xf] }
 0xc1e   : > { %8136 = vmatmul.bf16.gmra.mxu0 %v15317_v32  ;;  %v9156_v10 = vmax.f32 %v8362_v22, 0.0  ;;  %8314 = vmatmul.bf16.gmra.mxu2 %v15443_v39  ;;  %v8187_v7 = vadd.f32 %v8186_v2, %v8098_v40  ;;  %v11876_v2 = vld [vmem:[#allocation8 + $0xe8] sm:$0xf0] }
 0xc1f   : > { %v10871_v40 = vor.u32 %v11876_v2, %v10870_v12 }
 0xc20   : > { %8403 = vmatmul.bf16.gmra.mxu3 %v15444_v3  ;;  %9252 = vst [vmem:[%s14001_s23 + $0x50] sm:$0xff] %v9156_v10 }
 0xc21   : > { %v8275_v18 = vpop.f32.mrf.mxu2  ;;  %v8188_v34 = vpop.f32.mrf.mxu1  ;;  %8529 = vmatpush.bf16.msra.mxu1 %v10871_v40  ;;  %v10954_v40 = vld [vmem:[#allocation8 + $0x188] sm:$0xf] }
 0xc22   : > { %v8276_v13 = vadd.f32 %v8275_v18, %v8187_v7 }
 0xc23   : > { %v8364_v44 = vpop.f32.mrf.mxu3  ;;  %v8099_v46 = vpop.f32.mrf.mxu0 }
 0xc24   : > { %v8365_v54 = vadd.f32 %v8364_v44, %v8276_v13  ;;  %v8100_v19 = vadd.f32 %v8099_v46, %v14159_v17 }
 0xc26   : > { %v9159_v43 = vmax.f32 %v8365_v54, 0.0  ;;  %v8189_v11 = vadd.f32 %v8188_v34, %v8100_v19 }
 0xc28   : > { %9255 = vst [vmem:[%s14001_s23 + $0x68] sm:$0xff] %v9159_v43 }
 0xc29   : > { %v8277_v22 = vpop.f32.mrf.mxu2  ;;  %v8191_v48 = vpop.f32.mrf.mxu1 }
 0xc2a   : > { %v8278_v10 = vadd.f32 %v8277_v22, %v8189_v11 }
 0xc2b   : > { %v8366_v7 = vpop.f32.mrf.mxu3  ;;  %v8102_v42 = vpop.f32.mrf.mxu0 }
 0xc2c   : > { %v8367_v18 = vadd.f32 %v8366_v7, %v8278_v10  ;;  %v8103_v33 = vadd.f32 %v8102_v42, %v14166_v58  ;;  %8230 = vmatmul.bf16.gmra.mxu1 %v15320_v30  ;;  %v11897_v10 = vld [vmem:[#allocation8 + $0x190] sm:$0xf0] }
 0xc2d   : > { %v10955_v42 = vor.u32 %v11897_v10, %v10954_v40 }
 0xc2e   : > { %8141 = vmatmul.bf16.gmra.mxu0 %v15319_v6  ;;  %v9162_v17 = vmax.f32 %v8367_v18, 0.0  ;;  %8319 = vmatmul.bf16.gmra.mxu2 %v13670_v1  ;;  %v8192_v56 = vadd.f32 %v8191_v48, %v8103_v33  ;;  %v10762_v48 = vld [vmem:[#allocation8 + $0x8] sm:$0xf]  ;;  %v11849_v18 = vld [vmem:[#allocation8 + $0x10] sm:$0xf0] }
 0xc2f   : > { %v11050_v33 = vld [vmem:[#allocation8 + $0x248] sm:$0xf]  ;;  %8619 = vmatpush.bf16.msra.mxu2 %v10955_v42 }
 0xc30   : > { %8408 = vmatmul.bf16.gmra.mxu3 %v13800_v38  ;;  %9258 = vst [vmem:[%s14001_s23 + $0x80] sm:$0xff] %v9162_v17 }
 0xc31   : > { %v8280_v9 = vpop.f32.mrf.mxu2  ;;  %v8193_v46 = vpop.f32.mrf.mxu1 }
 0xc32   : > { %v8281_v49 = vadd.f32 %v8280_v9, %v8192_v56  ;;  %v10763_v9 = vor.u32 %v11849_v18, %v10762_v48 }
 0xc33   : > { %v8369_v13 = vpop.f32.mrf.mxu3  ;;  %v8104_v44 = vpop.f32.mrf.mxu0 }
 0xc34   : > { %v8370_v53 = vadd.f32 %v8369_v13, %v8281_v49  ;;  %v8105_v58 = vadd.f32 %v8104_v44, %v14169_v5  ;;  %v11921_v49 = vld [vmem:[#allocation8 + $0x250] sm:$0xf0]  ;;  %8441 = vmatpush.bf16.msra.mxu0 %v10763_v9 }
 0xc35   : > { %v11051_v44 = vor.u32 %v11921_v49, %v11050_v33 }
 0xc36   : > { %v9165_v57 = vmax.f32 %v8370_v53, 0.0  ;;  %v8194_v34 = vadd.f32 %v8193_v46, %v8105_v58 }
 0xc37   : > { %8708 = vmatpush.bf16.msra.mxu3 %v11051_v44 }
 0xc38   : > { %9261 = vst [vmem:[%s14001_s23 + $0x98] sm:$0xff] %v9165_v57 }
 0xc39   : > { %v8282_v63 = vpop.f32.mrf.mxu2  ;;  %v8196_v11 = vpop.f32.mrf.mxu1 }
 0xc3a   : > { %v8283_v54 = vadd.f32 %v8282_v63, %v8194_v34  ;;  %v10858_v34 = vld [vmem:[#allocation8 + $0xc8] sm:$0xf]  ;;  %v11873_v63 = vld [vmem:[#allocation8 + $0xd0] sm:$0xf0] }
 0xc3b   : > { %v8371_v19 = vpop.f32.mrf.mxu3  ;;  %v8107_v43 = vpop.f32.mrf.mxu0 }
 0xc3c   : > { %v8372_v12 = vadd.f32 %v8371_v19, %v8283_v54  ;;  %v8108_v2 = vadd.f32 %v8107_v43, %v14176_v60  ;;  %8235 = vmatmul.bf16.gmra.mxu1 %v15322_v0  ;;  %v10859_v19 = vor.u32 %v11873_v63, %v10858_v34  ;;  %v12014_v34 = vld [vmem:[#allocation8 + $0x538] sm:$0xf0] }
 0xc3e   : > { %8146 = vmatmul.bf16.gmra.mxu0 %v15321_v31  ;;  %v9168_v22 = vmax.f32 %v8372_v12, 0.0  ;;  %8324 = vmatmul.bf16.gmra.mxu2 %v13678_v14  ;;  %v8197_v5 = vadd.f32 %v8196_v11, %v8108_v2 }
 0xc3f   : > { %8530 = vmatpush.bf16.msra.mxu1 %v10859_v19  ;;  %v11230_v19 = vld [vmem:[#allocation8 + $0x3b0] sm:$0xf] }
 0xc40   : > { %8413 = vmatmul.bf16.gmra.mxu3 %v13808_v62  ;;  %9264 = vst [vmem:[%s14001_s23 + $0xb0] sm:$0xff] %v9168_v22 }
 0xc41   : > { %v8285_v7 = vpop.f32.mrf.mxu2  ;;  %v8198_v13 = vpop.f32.mrf.mxu1 }
 0xc42   : > { %v8286_v60 = vadd.f32 %v8285_v7, %v8197_v5 }
 0xc43   : > { %v8374_v17 = vpop.f32.mrf.mxu3  ;;  %v8109_v56 = vpop.f32.mrf.mxu0 }
 0xc44   : > { %v8375_v46 = vadd.f32 %v8374_v17, %v8286_v60  ;;  %v8110_v53 = vadd.f32 %v8109_v56, %v14179_v55 }
 0xc46   : > { %v9171_v58 = vmax.f32 %v8375_v46, 0.0  ;;  %v8199_v57 = vadd.f32 %v8198_v13, %v8110_v53 }
 0xc48   : > { %9267 = vst [vmem:[%s14001_s23 + $0xc8] sm:$0xff] %v9171_v58 }
 0xc49   : > { %v8287_v54 = vpop.f32.mrf.mxu2  ;;  %v8201_v2 = vpop.f32.mrf.mxu1 }
 0xc4a   : > { %v8288_v43 = vadd.f32 %v8287_v54, %v8199_v57  ;;  %v11422_v57 = vld [vmem:[#allocation8 + $0x530] sm:$0xf] }
 0xc4b   : > { %v8376_v11 = vpop.f32.mrf.mxu3  ;;  %v8112_v12 = vpop.f32.mrf.mxu0  ;;  %v11423_v54 = vor.u32 %v12014_v34, %v11422_v57  ;;  %v15449_v57 = vld [vmem:[#allocation29_spill] sm:$0xff] }
 0xc4c   : > { %v8377_v22 = vadd.f32 %v8376_v11, %v8288_v43  ;;  %v8113_v5 = vadd.f32 %v8112_v12, %v14186_v16  ;;  %8240 = vmatmul.bf16.gmra.mxu1 %v15324_v47  ;;  %v11966_v43 = vld [vmem:[#allocation8 + $0x3b8] sm:$0xf0]  ;;  %v11518_v11 = vld [vmem:[#allocation8 + $0x5f0] sm:$0xf] }
 0xc4d   : > { %8968 = vmatpush.bf16.msrb.mxu2 %v11423_v54 }
 0xc4e   : > { %8151 = vmatmul.bf16.gmra.mxu0 %v15323_v21  ;;  %v9174_v55 = vmax.f32 %v8377_v22, 0.0  ;;  %8329 = vmatmul.bf16.gmra.mxu2 %v13686_v45  ;;  %v8202_v40 = vadd.f32 %v8201_v2, %v8113_v5  ;;  %v11231_v22 = vor.u32 %v11966_v43, %v11230_v19  ;;  %v12038_v5 = vld [vmem:[#allocation8 + $0x5f8] sm:$0xf0] }
 0xc50   : > { %8418 = vmatmul.bf16.gmra.mxu3 %v13816_v36  ;;  %9270 = vst [vmem:[%s14001_s23 + $0xe0] sm:$0xff] %v9174_v55  ;;  %8790 = vmatpush.bf16.msrb.mxu0 %v11231_v22 }
 0xc51   : > { %v8290_v10 = vpop.f32.mrf.mxu2  ;;  %v8203_v18 = vpop.f32.mrf.mxu1 }
 0xc52   : > { %v8291_v7 = vadd.f32 %v8290_v10, %v8202_v40  ;;  %v11519_v40 = vor.u32 %v12038_v5, %v11518_v11 }
 0xc53   : > { %v8379_v42 = vpop.f32.mrf.mxu3  ;;  %v8114_v48 = vpop.f32.mrf.mxu0 }
 0xc54   : > { %v8380_v33 = vadd.f32 %v8379_v42, %v8291_v7  ;;  %v8115_v16 = vadd.f32 %v8114_v48, %v14189_v59  ;;  %9057 = vmatpush.bf16.msrb.mxu3 %v11519_v40 }
 0xc56   : > { %v9177_v60 = vmax.f32 %v8380_v33, 0.0  ;;  %v8204_v17 = vadd.f32 %v8203_v18, %v8115_v16  ;;  %v11326_v18 = vld [vmem:[#allocation8 + $0x470] sm:$0xf]  ;;  %v11990_v33 = vld [vmem:[#allocation8 + $0x478] sm:$0xf0] }
 0xc58   : > { %9273 = vst [vmem:[%s14001_s23 + $0xf8] sm:$0xff] %v9177_v60  ;;  %v11327_v60 = vor.u32 %v11990_v33, %v11326_v18  ;;  %v15451_v18 = vld [vmem:[#allocation39_spill] sm:$0xff] }
 0xc59   : > { %v8292_v56 = vpop.f32.mrf.mxu2  ;;  %v8206_v44 = vpop.f32.mrf.mxu1 }
 0xc5a   : > { %v8293_v9 = vadd.f32 %v8292_v56, %v8204_v17  ;;  %8879 = vmatpush.bf16.msrb.mxu1 %v11327_v60 }
 0xc5b   : > { %v8381_v49 = vpop.f32.mrf.mxu3  ;;  %v8117_v13 = vpop.f32.mrf.mxu0 }
 0xc5c   : > { %v8382_v46 = vadd.f32 %v8381_v49, %v8293_v9  ;;  %v8118_v53 = vadd.f32 %v8117_v13, %v14196_v29  ;;  %8245 = vmatmul.bf16.gmra.mxu1 %v15326_v15 }
 0xc5e   : > { %8156 = vmatmul.bf16.gmra.mxu0 %v15325_v52  ;;  %v9180_v58 = vmax.f32 %v8382_v46, 0.0  ;;  %8334 = vmatmul.bf16.gmra.mxu2 %v13694_v61  ;;  %v8207_v59 = vadd.f32 %v8206_v44, %v8118_v53  ;;  %v15445_v44 = vld [vmem:[#allocation37_spill] sm:$0xff]  ;;  %v15446_v53 = vld [vmem:[#allocation119_spill] sm:$0xff] }
 0xc60   : > { %8423 = vmatmul.bf16.gmra.mxu3 %v13824_v4  ;;  %9276 = vst [vmem:[%s14001_s23 + $0x110] sm:$0xff] %v9180_v58  ;;  %v15447_v58 = vld [vmem:[#allocation135_spill] sm:$0xff] }
 0xc61   : > { %v8295_v63 = vpop.f32.mrf.mxu2  ;;  %v8208_v55 = vpop.f32.mrf.mxu1 }
 0xc62   : > { %v8296_v29 = vadd.f32 %v8295_v63, %v8207_v59  ;;  %v15448_v59 = vld [vmem:[#allocation143_spill] sm:$0xff] }
 0xc63   : > { %v8384_v12 = vpop.f32.mrf.mxu3  ;;  %v8119_v2 = vpop.f32.mrf.mxu0 }
 0xc64   : > { %v8385_v10 = vadd.f32 %v8384_v12, %v8296_v29  ;;  %v8120_v7 = vadd.f32 %v8119_v2, %v14199_v37  ;;  %v15450_v12 = vld [vmem:[#allocation38_spill] sm:$0xff] }
 0xc66   : > { %v9183_v42 = vmax.f32 %v8385_v10, 0.0  ;;  %v8209_v48 = vadd.f32 %v8208_v55, %v8120_v7 }
 0xc68   : > { %9279 = vst [vmem:[%s14001_s23 + $0x128] sm:$0xff] %v9183_v42 }
 0xc69   : > { %v8297_v16 = vpop.f32.mrf.mxu2  ;;  %v8211_v49 = vpop.f32.mrf.mxu1 }
 0xc6a   : > { %v8298_v17 = vadd.f32 %v8297_v16, %v8209_v48  ;;  %v15452_v16 = vld [vmem:[#allocation20_spill] sm:$0xff] }
 0xc6b   : > { %v8386_v56 = vpop.f32.mrf.mxu3  ;;  %v8122_v9 = vpop.f32.mrf.mxu0 }
 0xc6c   : > { %v8387_v13 = vadd.f32 %v8386_v56, %v8298_v17  ;;  %v8123_v46 = vadd.f32 %v8122_v9, %v15445_v44  ;;  %8250 = vmatmul.bf16.gmra.mxu1 %v15447_v58  ;;  %v15453_v17 = vld [vmem:[#allocation56_spill] sm:$0xff]  ;;  %v12011_v44 = vld [vmem:[#allocation8 + $0x520] sm:$0xf0] }
 0xc6d   : > { %v15454_v56 = vld [vmem:[#allocation72_spill] sm:$0xff] }
 0xc6e   : > { %8161 = vmatmul.bf16.gmra.mxu0 %v15446_v53  ;;  %v9186_v37 = vmax.f32 %v8387_v13, 0.0  ;;  %8339 = vmatmul.bf16.gmra.mxu2 %v15448_v59  ;;  %v8212_v34 = vadd.f32 %v8211_v49, %v8123_v46  ;;  %v15455_v9 = vld [vmem:[#allocation88_spill] sm:$0xff]  ;;  %v11410_v13 = vld [vmem:[#allocation8 + $0x518] sm:$0xf] }
 0xc70   : > { %8428 = vmatmul.bf16.gmra.mxu3 %v15449_v57  ;;  %9282 = vst [vmem:[%s14001_s23 + $0x140] sm:$0xff] %v9186_v37  ;;  %v11411_v37 = vor.u32 %v12011_v44, %v11410_v13  ;;  %v15458_v44 = vld [vmem:[#allocation25_spill] sm:$0xff] }
 0xc71   : > { %v8300_v63 = vpop.f32.mrf.mxu2  ;;  %v8213_v11 = vpop.f32.mrf.mxu1  ;;  %v15534_v57 = vld [vmem:[#allocation105_spill] sm:$0xff] }
 0xc72   : > { %v8301_v54 = vadd.f32 %v8300_v63, %v8212_v34  ;;  %v11218_v34 = vld [vmem:[#allocation8 + $0x398] sm:$0xf]  ;;  %v11963_v63 = vld [vmem:[#allocation8 + $0x3a0] sm:$0xf0]  ;;  %8969 = vmatpush.bf16.msrb.mxu2 %v11411_v37  ;;  %v15459_v37 = vld [vmem:[#allocation57_spill] sm:$0xff] }
 0xc73   : > { %v8389_v19 = vpop.f32.mrf.mxu3  ;;  %v8124_v43 = vpop.f32.mrf.mxu0 }
 0xc74   : > { %v8390_v29 = vadd.f32 %v8389_v19, %v8301_v54  ;;  %v8125_v2 = vadd.f32 %v8124_v43, %v15450_v12  ;;  %v11506_v54 = vld [vmem:[#allocation8 + $0x5d8] sm:$0xf]  ;;  %v12035_v12 = vld [vmem:[#allocation8 + $0x5e0] sm:$0xf0] }
 0xc76   : > { %v9189_v22 = vmax.f32 %v8390_v29, 0.0  ;;  %v8214_v5 = vadd.f32 %v8213_v11, %v8125_v2  ;;  %v11219_v29 = vor.u32 %v11963_v63, %v11218_v34  ;;  %v15460_v34 = vld [vmem:[#allocation73_spill] sm:$0xff] }
 0xc77   : > { %v15461_v63 = vld [vmem:[#allocation89_spill] sm:$0xff] }
 0xc78   : > { %9285 = vst [vmem:[%s14001_s23 + $0x158] sm:$0xff] %v9189_v22  ;;  %v11507_v22 = vor.u32 %v12035_v12, %v11506_v54  ;;  %8791 = vmatpush.bf16.msrb.mxu0 %v11219_v29 }
 0xc79   : > { %v8302_v55 = vpop.f32.mrf.mxu2  ;;  %v8216_v42 = vpop.f32.mrf.mxu1 }
 0xc7a   : > { %v8303_v40 = vadd.f32 %v8302_v55, %v8214_v5  ;;  %v15456_v55 = vld [vmem:[#allocation41_spill] sm:$0xff]  ;;  %9058 = vmatpush.bf16.msrb.mxu3 %v11507_v22  ;;  %v15462_v22 = vld [vmem:[#allocation43_spill] sm:$0xff] }
 0xc7b   : > { %v8391_v10 = vpop.f32.mrf.mxu3  ;;  %v8127_v7 = vpop.f32.mrf.mxu0 }
 0xc7c   : > { %v8392_v48 = vadd.f32 %v8391_v10, %v8303_v40  ;;  %v8128_v33 = vadd.f32 %v8127_v7, %v15451_v18  ;;  %8531 = vmatmul.bf16.vlgmr.msra.gmra.mxu1 %v15453_v17 }
 0xc7e   : > { %8442 = vmatmul.bf16.vlgmr.msra.gmra.mxu0 %v15452_v16  ;;  %v9192_v60 = vmax.f32 %v8392_v48, 0.0  ;;  %8620 = vmatmul.bf16.vlgmr.msra.gmra.mxu2 %v15454_v56  ;;  %v8217_v49 = vadd.f32 %v8216_v42, %v8128_v33  ;;  %v11314_v42 = vld [vmem:[#allocation8 + $0x458] sm:$0xf]  ;;  %v11987_v48 = vld [vmem:[#allocation8 + $0x460] sm:$0xf0] }
 0xc7f   : > { %v11315_v33 = vor.u32 %v11987_v48, %v11314_v42 }
 0xc80   : > { %8709 = vmatmul.bf16.vlgmr.msra.gmra.mxu3 %v15455_v9  ;;  %9288 = vst [vmem:[%s14001_s23 + $0x170] sm:$0xff] %v9192_v60 }
 0xc81   : > { %v8305_v46 = vpop.f32.mrf.mxu2  ;;  %v8218_v2 = vpop.f32.mrf.mxu1  ;;  %8880 = vmatpush.bf16.msrb.mxu1 %v11315_v33 }
 0xc82   : > { %v8306_v19 = vadd.f32 %v8305_v46, %v8217_v49  ;;  %v15457_v49 = vld [vmem:[#allocation42_spill] sm:$0xff] }
 0xc83   : > { %v8394_v43 = vpop.f32.mrf.mxu3  ;;  %v8129_v11 = vpop.f32.mrf.mxu0 }
 0xc84   : > { %v8395_v5 = vadd.f32 %v8394_v43, %v8306_v19  ;;  %v8130_v40 = vadd.f32 %v8129_v11, %v15456_v55 }
 0xc86   : > { %v9195_v10 = vmax.f32 %v8395_v5, 0.0  ;;  %v8219_v7 = vadd.f32 %v8218_v2, %v8130_v40 }
 0xc88   : > { %9291 = vst [vmem:[%s14001_s23 + $0x188] sm:$0xff] %v9195_v10 }
 0xc89   : > { %v8307_v18 = vpop.f32.mrf.mxu2  ;;  %v8221_v56 = vpop.f32.mrf.mxu1 }
 0xc8a   : > { %v8308_v16 = vadd.f32 %v8307_v18, %v8219_v7 }
 0xc8b   : > { %v8396_v60 = vpop.f32.mrf.mxu3  ;;  %v8132_v17 = vpop.f32.mrf.mxu0 }
 0xc8c   : > { %v8397_v9 = vadd.f32 %v8396_v60, %v8308_v16  ;;  %v8133_v13 = vadd.f32 %v8132_v17, %v15457_v49  ;;  %8536 = vmatmul.bf16.gmra.mxu1 %v15459_v37  ;;  %v15463_v16 = vld [vmem:[#allocation44_spill] sm:$0xff]  ;;  %v15464_v17 = vld [vmem:[#allocation30_spill] sm:$0xff] }
 0xc8d   : > { %v15466_v49 = vld [vmem:[#allocation74_spill] sm:$0xff]  ;;  %v12008_v37 = vld [vmem:[#allocation8 + $0x508] sm:$0xf0] }
 0xc8e   : > { %8447 = vmatmul.bf16.gmra.mxu0 %v15458_v44  ;;  %v9198_v46 = vmax.f32 %v8397_v9, 0.0  ;;  %8625 = vmatmul.bf16.gmra.mxu2 %v15460_v34  ;;  %v8222_v54 = vadd.f32 %v8221_v56, %v8133_v13  ;;  %v15465_v9 = vld [vmem:[#allocation58_spill] sm:$0xff] }
 0xc8f   : > { %v15467_v13 = vld [vmem:[#allocation90_spill] sm:$0xff] }
 0xc90   : > { %8714 = vmatmul.bf16.gmra.mxu3 %v15461_v63  ;;  %9294 = vst [vmem:[%s14001_s23 + $0x1a0] sm:$0xff] %v9198_v46  ;;  %v11398_v46 = vld [vmem:[#allocation8 + $0x500] sm:$0xf] }
 0xc91   : > { %v8310_v19 = vpop.f32.mrf.mxu2  ;;  %v8223_v12 = vpop.f32.mrf.mxu1  ;;  %v11399_v63 = vor.u32 %v12008_v37, %v11398_v46  ;;  %v15470_v37 = vld [vmem:[#allocation35_spill] sm:$0xff] }
 0xc92   : > { %v8311_v43 = vadd.f32 %v8310_v19, %v8222_v54  ;;  %v11206_v54 = vld [vmem:[#allocation8 + $0x380] sm:$0xf]  ;;  %v11960_v19 = vld [vmem:[#allocation8 + $0x388] sm:$0xf0] }
 0xc93   : > { %v8399_v11 = vpop.f32.mrf.mxu3  ;;  %v8134_v29 = vpop.f32.mrf.mxu0  ;;  %8970 = vmatpush.bf16.msrb.mxu2 %v11399_v63  ;;  %v15471_v63 = vld [vmem:[#allocation59_spill] sm:$0xff] }
 0xc94   : > { %v8400_v2 = vadd.f32 %v8399_v11, %v8311_v43  ;;  %v8135_v5 = vadd.f32 %v8134_v29, %v15462_v22  ;;  %v11494_v43 = vld [vmem:[#allocation8 + $0x5c0] sm:$0xf]  ;;  %v12032_v22 = vld [vmem:[#allocation8 + $0x5c8] sm:$0xf0] }
 0xc96   : > { %v9201_v55 = vmax.f32 %v8400_v2, 0.0  ;;  %v8224_v40 = vadd.f32 %v8223_v12, %v8135_v5  ;;  %v11207_v2 = vor.u32 %v11960_v19, %v11206_v54  ;;  %v15472_v54 = vld [vmem:[#allocation75_spill] sm:$0xff] }
 0xc97   : > { %v15473_v19 = vld [vmem:[#allocation91_spill] sm:$0xff] }
 0xc98   : > { %9297 = vst [vmem:[%s14001_s23 + $0x1b8] sm:$0xff] %v9201_v55  ;;  %v11495_v55 = vor.u32 %v12032_v22, %v11494_v43  ;;  %8792 = vmatpush.bf16.msrb.mxu0 %v11207_v2 }
 0xc99   : > { %v8312_v10 = vpop.f32.mrf.mxu2  ;;  %v8226_v18 = vpop.f32.mrf.mxu1 }
 0xc9a   : > { %v8313_v7 = vadd.f32 %v8312_v10, %v8224_v40  ;;  %v15468_v10 = vld [vmem:[#allocation111_spill] sm:$0xff]  ;;  %9059 = vmatpush.bf16.msrb.mxu3 %v11495_v55  ;;  %v15474_v55 = vld [vmem:[#allocation113_spill] sm:$0xff] }
 0xc9b   : > { %v8401_v42 = vpop.f32.mrf.mxu3  ;;  %v8137_v48 = vpop.f32.mrf.mxu0 }
 0xc9c   : > { %v8402_v33 = vadd.f32 %v8401_v42, %v8313_v7  ;;  %v8138_v60 = vadd.f32 %v8137_v48, %v15463_v16  ;;  %8541 = vmatmul.bf16.gmra.mxu1 %v15465_v9 }
 0xc9e   : > { %8452 = vmatmul.bf16.gmra.mxu0 %v15464_v17  ;;  %v9204_v56 = vmax.f32 %v8402_v33, 0.0  ;;  %8630 = vmatmul.bf16.gmra.mxu2 %v15466_v49  ;;  %v8227_v44 = vadd.f32 %v8226_v18, %v8138_v60  ;;  %v11302_v18 = vld [vmem:[#allocation8 + $0x440] sm:$0xf]  ;;  %v11984_v33 = vld [vmem:[#allocation8 + $0x448] sm:$0xf0] }
 0xc9f   : > { %v11303_v60 = vor.u32 %v11984_v33, %v11302_v18 }
 0xca0   : > { %8719 = vmatmul.bf16.gmra.mxu3 %v15467_v13  ;;  %9300 = vst [vmem:[%s14001_s23 + $0x1d0] sm:$0xff] %v9204_v56 }
 0xca1   : > { %v8315_v34 = vpop.f32.mrf.mxu2  ;;  %v8228_v5 = vpop.f32.mrf.mxu1  ;;  %8881 = vmatpush.bf16.msrb.mxu1 %v11303_v60 }
 0xca2   : > { %v8316_v11 = vadd.f32 %v8315_v34, %v8227_v44  ;;  %v15469_v44 = vld [vmem:[#allocation127_spill] sm:$0xff] }
 0xca3   : > { %v8404_v29 = vpop.f32.mrf.mxu3  ;;  %v8139_v12 = vpop.f32.mrf.mxu0 }
 0xca4   : > { %v8405_v40 = vadd.f32 %v8404_v29, %v8316_v11  ;;  %v8140_v7 = vadd.f32 %v8139_v12, %v15468_v10 }
 0xca6   : > { %v9207_v42 = vmax.f32 %v8405_v40, 0.0  ;;  %v8229_v48 = vadd.f32 %v8228_v5, %v8140_v7 }
 0xca8   : > { %9303 = vst [vmem:[%s14001_s23 + $0x1e8] sm:$0xff] %v9207_v42 }
 0xca9   : > { %v8317_v16 = vpop.f32.mrf.mxu2  ;;  %v8231_v49 = vpop.f32.mrf.mxu1 }
 0xcaa   : > { %v8318_v17 = vadd.f32 %v8317_v16, %v8229_v48 }
 0xcab   : > { %v8406_v56 = vpop.f32.mrf.mxu3  ;;  %v8142_v9 = vpop.f32.mrf.mxu0 }
 0xcac   : > { %v8407_v13 = vadd.f32 %v8406_v56, %v8318_v17  ;;  %v8143_v46 = vadd.f32 %v8142_v9, %v15469_v44  ;;  %8546 = vmatmul.bf16.gmra.mxu1 %v15471_v63  ;;  %v15475_v17 = vld [vmem:[#allocation129_spill] sm:$0xff]  ;;  %v15476_v9 = vld [vmem:[#allocation40_spill] sm:$0xff] }
 0xcad   : > { %v15478_v44 = vld [vmem:[#allocation76_spill] sm:$0xff]  ;;  %v12005_v63 = vld [vmem:[#allocation8 + $0x4f0] sm:$0xf0] }
 0xcae   : > { %8457 = vmatmul.bf16.gmra.mxu0 %v15470_v37  ;;  %v9210_v34 = vmax.f32 %v8407_v13, 0.0  ;;  %8635 = vmatmul.bf16.gmra.mxu2 %v15472_v54  ;;  %v8232_v43 = vadd.f32 %v8231_v49, %v8143_v46  ;;  %v15477_v13 = vld [vmem:[#allocation60_spill] sm:$0xff] }
 0xcaf   : > { %v15479_v46 = vld [vmem:[#allocation92_spill] sm:$0xff] }
 0xcb0   : > { %8724 = vmatmul.bf16.gmra.mxu3 %v15473_v19  ;;  %9306 = vst [vmem:[%s14001_s23 + $0x200] sm:$0xff] %v9210_v34  ;;  %v11386_v34 = vld [vmem:[#allocation8 + $0x4e8] sm:$0xf] }
 0xcb1   : > { %v8320_v11 = vpop.f32.mrf.mxu2  ;;  %v8233_v22 = vpop.f32.mrf.mxu1  ;;  %v11387_v19 = vor.u32 %v12005_v63, %v11386_v34  ;;  %v15482_v63 = vld [vmem:[#allocation45_spill] sm:$0xff] }
 0xcb2   : > { %v8321_v29 = vadd.f32 %v8320_v11, %v8232_v43  ;;  %v11194_v43 = vld [vmem:[#allocation8 + $0x368] sm:$0xf]  ;;  %v11957_v11 = vld [vmem:[#allocation8 + $0x370] sm:$0xf0] }
 0xcb3   : > { %v8409_v12 = vpop.f32.mrf.mxu3  ;;  %v8144_v2 = vpop.f32.mrf.mxu0  ;;  %8971 = vmatpush.bf16.msrb.mxu2 %v11387_v19  ;;  %v15483_v19 = vld [vmem:[#allocation61_spill] sm:$0xff] }
 0xcb4   : > { %v8410_v5 = vadd.f32 %v8409_v12, %v8321_v29  ;;  %v8145_v40 = vadd.f32 %v8144_v2, %v15474_v55  ;;  %v11482_v29 = vld [vmem:[#allocation8 + $0x5a8] sm:$0xf]  ;;  %v12029_v55 = vld [vmem:[#allocation8 + $0x5b0] sm:$0xf0] }
 0xcb6   : > { %v9213_v10 = vmax.f32 %v8410_v5, 0.0  ;;  %v8234_v7 = vadd.f32 %v8233_v22, %v8145_v40  ;;  %v11195_v5 = vor.u32 %v11957_v11, %v11194_v43  ;;  %v15484_v43 = vld [vmem:[#allocation77_spill] sm:$0xff] }
 0xcb7   : > { %v15485_v11 = vld [vmem:[#allocation93_spill] sm:$0xff] }
 0xcb8   : > { %9309 = vst [vmem:[%s14001_s23 + $0x218] sm:$0xff] %v9213_v10  ;;  %v11483_v10 = vor.u32 %v12029_v55, %v11482_v29  ;;  %8793 = vmatpush.bf16.msrb.mxu0 %v11195_v5 }
 0xcb9   : > { %v8322_v42 = vpop.f32.mrf.mxu2  ;;  %v8236_v16 = vpop.f32.mrf.mxu1 }
 0xcba   : > { %v8323_v48 = vadd.f32 %v8322_v42, %v8234_v7  ;;  %v15480_v42 = vld [vmem:[#allocation114_spill] sm:$0xff]  ;;  %9060 = vmatpush.bf16.msrb.mxu3 %v11483_v10  ;;  %v15486_v10 = vld [vmem:[#allocation115_spill] sm:$0xff] }
 0xcbb   : > { %v8411_v18 = vpop.f32.mrf.mxu3  ;;  %v8147_v33 = vpop.f32.mrf.mxu0 }
 0xcbc   : > { %v8412_v60 = vadd.f32 %v8411_v18, %v8323_v48  ;;  %v8148_v56 = vadd.f32 %v8147_v33, %v15475_v17  ;;  %8551 = vmatmul.bf16.gmra.mxu1 %v15477_v13 }
 0xcbe   : > { %8462 = vmatmul.bf16.gmra.mxu0 %v15476_v9  ;;  %v9216_v49 = vmax.f32 %v8412_v60, 0.0  ;;  %8640 = vmatmul.bf16.gmra.mxu2 %v15478_v44  ;;  %v8237_v37 = vadd.f32 %v8236_v16, %v8148_v56  ;;  %v11290_v16 = vld [vmem:[#allocation8 + $0x428] sm:$0xf]  ;;  %v11981_v60 = vld [vmem:[#allocation8 + $0x430] sm:$0xf0] }
 0xcbf   : > { %v11291_v56 = vor.u32 %v11981_v60, %v11290_v16 }
 0xcc0   : > { %8729 = vmatmul.bf16.gmra.mxu3 %v15479_v46  ;;  %9312 = vst [vmem:[%s14001_s23 + $0x230] sm:$0xff] %v9216_v49 }
 0xcc1   : > { %v8325_v54 = vpop.f32.mrf.mxu2  ;;  %v8238_v40 = vpop.f32.mrf.mxu1  ;;  %8882 = vmatpush.bf16.msrb.mxu1 %v11291_v56 }
 0xcc2   : > { %v8326_v12 = vadd.f32 %v8325_v54, %v8237_v37  ;;  %v15481_v37 = vld [vmem:[#allocation130_spill] sm:$0xff] }
 0xcc3   : > { %v8414_v2 = vpop.f32.mrf.mxu3  ;;  %v8149_v22 = vpop.f32.mrf.mxu0 }
 0xcc4   : > { %v8415_v7 = vadd.f32 %v8414_v2, %v8326_v12  ;;  %v8150_v48 = vadd.f32 %v8149_v22, %v15480_v42 }
 0xcc6   : > { %v9219_v18 = vmax.f32 %v8415_v7, 0.0  ;;  %v8239_v33 = vadd.f32 %v8238_v40, %v8150_v48 }
 0xcc8   : > { %9315 = vst [vmem:[%s14001_s23 + $0x248] sm:$0xff] %v9219_v18 }
 0xcc9   : > { %v8327_v17 = vpop.f32.mrf.mxu2  ;;  %v8241_v44 = vpop.f32.mrf.mxu1 }
 0xcca   : > { %v8328_v9 = vadd.f32 %v8327_v17, %v8239_v33 }
 0xccb   : > { %v8416_v49 = vpop.f32.mrf.mxu3  ;;  %v8152_v13 = vpop.f32.mrf.mxu0 }
 0xccc   : > { %v8417_v46 = vadd.f32 %v8416_v49, %v8328_v9  ;;  %v8153_v34 = vadd.f32 %v8152_v13, %v15481_v37  ;;  %8556 = vmatmul.bf16.gmra.mxu1 %v15483_v19  ;;  %v15487_v49 = vld [vmem:[#allocation46_spill] sm:$0xff] }
 0xccd   : > { %v15490_v37 = vld [vmem:[#allocation94_spill] sm:$0xff] }
 0xcce   : > { %8467 = vmatmul.bf16.gmra.mxu0 %v15482_v63  ;;  %v9222_v54 = vmax.f32 %v8417_v46, 0.0  ;;  %8645 = vmatmul.bf16.gmra.mxu2 %v15484_v43  ;;  %v8242_v29 = vadd.f32 %v8241_v44, %v8153_v34  ;;  %v15488_v44 = vld [vmem:[#allocation62_spill] sm:$0xff]  ;;  %v11374_v63 = vld [vmem:[#allocation8 + $0x4d0] sm:$0xf] }
 0xccf   : > { %v15489_v46 = vld [vmem:[#allocation78_spill] sm:$0xff] }
 0xcd0   : > { %8734 = vmatmul.bf16.gmra.mxu3 %v15485_v11  ;;  %9318 = vst [vmem:[%s14001_s23 + $0x260] sm:$0xff] %v9222_v54  ;;  %v12002_v54 = vld [vmem:[#allocation8 + $0x4d8] sm:$0xf0]  ;;  %v11182_v11 = vld [vmem:[#allocation8 + $0x350] sm:$0xf] }
 0xcd1   : > { %v8330_v12 = vpop.f32.mrf.mxu2  ;;  %v8243_v55 = vpop.f32.mrf.mxu1  ;;  %v11375_v43 = vor.u32 %v12002_v54, %v11374_v63  ;;  %v15493_v63 = vld [vmem:[#allocation79_spill] sm:$0xff] }
 0xcd2   : > { %v8331_v2 = vadd.f32 %v8330_v12, %v8242_v29  ;;  %v11954_v29 = vld [vmem:[#allocation8 + $0x358] sm:$0xf0]  ;;  %v11470_v12 = vld [vmem:[#allocation8 + $0x590] sm:$0xf]  ;;  %v15494_v54 = vld [vmem:[#allocation95_spill] sm:$0xff] }
 0xcd3   : > { %v8419_v22 = vpop.f32.mrf.mxu3  ;;  %v8154_v5 = vpop.f32.mrf.mxu0  ;;  %8972 = vmatpush.bf16.msrb.mxu2 %v11375_v43 }
 0xcd4   : > { %v8420_v40 = vadd.f32 %v8419_v22, %v8331_v2  ;;  %v8155_v7 = vadd.f32 %v8154_v5, %v15486_v10  ;;  %v11183_v5 = vor.u32 %v11954_v29, %v11182_v11 }
 0xcd6   : > { %v9225_v42 = vmax.f32 %v8420_v40, 0.0  ;;  %v8244_v48 = vadd.f32 %v8243_v55, %v8155_v7  ;;  %v12026_v55 = vld [vmem:[#allocation8 + $0x598] sm:$0xf0]  ;;  %8794 = vmatpush.bf16.msrb.mxu0 %v11183_v5  ;;  %v12134_v5 = vld [vmem:[%s14717_s4] sm:$0x7] }
 0xcd7   : > { %v11471_v10 = vor.u32 %v12026_v55, %v11470_v12  ;;  %v14419_v55 = vperm.slane %v12134_v5, 2  ;;  %v11975_v5 = vld [vmem:[#allocation8 + $0x400] sm:$0xf0] }
 0xcd8   : > { %9321 = vst [vmem:[%s14001_s23 + $0x278] sm:$0xff] %v9225_v42 }
 0xcd9   : > { %v8332_v18 = vpop.f32.mrf.mxu2  ;;  %v8246_v17 = vpop.f32.mrf.mxu1  ;;  %9061 = vmatpush.bf16.msrb.mxu3 %v11471_v10 }
 0xcda   : > { %v8333_v33 = vadd.f32 %v8332_v18, %v8244_v48  ;;  %v11278_v48 = vld [vmem:[#allocation8 + $0x410] sm:$0xf]  ;;  %v11978_v18 = vld [vmem:[#allocation8 + $0x418] sm:$0xf0] }
 0xcdb   : > { %v8421_v16 = vpop.f32.mrf.mxu3  ;;  %v8157_v60 = vpop.f32.mrf.mxu0 }
 0xcdc   : > { %v8422_v56 = vadd.f32 %v8421_v16, %v8333_v33  ;;  %v8158_v9 = vadd.f32 %v8157_v60, %v14276_v50  ;;  %8561 = vmatmul.bf16.gmra.mxu1 %v15488_v44  ;;  %v11279_v33 = vor.u32 %v11978_v18, %v11278_v48 }
 0xcde   : > { %8472 = vmatmul.bf16.gmra.mxu0 %v15487_v49  ;;  %v9228_v13 = vmax.f32 %v8422_v56, 0.0  ;;  %8650 = vmatmul.bf16.gmra.mxu2 %v15489_v46  ;;  %v8247_v34 = vadd.f32 %v8246_v17, %v8158_v9 }
 0xcdf   : > { %8883 = vmatpush.bf16.msrb.mxu1 %v11279_v33 }
 0xce0   : > { %8739 = vmatmul.bf16.gmra.mxu3 %v15490_v37  ;;  %9324 = vst [vmem:[%s14001_s23 + $0x290] sm:$0xff] %v9228_v13  ;;  %v15491_v37 = vld [vmem:[#allocation47_spill] sm:$0xff] }
 0xce1   : > { %v8335_v19 = vpop.f32.mrf.mxu2  ;;  %v8248_v40 = vpop.f32.mrf.mxu1 }
 0xce2   : > { %v8336_v2 = vadd.f32 %v8335_v19, %v8247_v34  ;;  %v15492_v34 = vld [vmem:[#allocation63_spill] sm:$0xff] }
 0xce3   : > { %v8424_v50 = vpop.f32.mrf.mxu3  ;;  %v8159_v22 = vpop.f32.mrf.mxu0 }
 0xce4   : > { %v8425_v7 = vadd.f32 %v8424_v50, %v8336_v2  ;;  %v8160_v42 = vadd.f32 %v8159_v22, %v14279_v8 }
 0xce6   : > { %v9231_v16 = vmax.f32 %v8425_v7, 0.0  ;;  %v8249_v60 = vadd.f32 %v8248_v40, %v8160_v42 }
 0xce8   : > { %9327 = vst [vmem:[%s14001_s23 + $0x2a8] sm:$0xff] %v9231_v16 }
 0xce9   : > { %v8337_v17 = vpop.f32.mrf.mxu2  ;;  %v8251_v13 = vpop.f32.mrf.mxu1 }
 0xcea   : > { %v8338_v56 = vadd.f32 %v8337_v17, %v8249_v60 }
 0xceb   : > { %v8426_v9 = vpop.f32.mrf.mxu3  ;;  %v8162_v49 = vpop.f32.mrf.mxu0 }
 0xcec   : > { %v8427_v44 = vadd.f32 %v8426_v9, %v8338_v56  ;;  %v8163_v46 = vadd.f32 %v8162_v49, %v14286_v26  ;;  %8566 = vmatmul.bf16.gmra.mxu1 %v15492_v34  ;;  %v15496_v56 = vld [vmem:[#allocation64_spill] sm:$0xff]  ;;  %v11458_v34 = vld [vmem:[#allocation8 + $0x578] sm:$0xf] }
 0xced   : > { %v15497_v9 = vld [vmem:[#allocation80_spill] sm:$0xff] }
 0xcee   : > { %8477 = vmatmul.bf16.gmra.mxu0 %v15491_v37  ;;  %v9234_v8 = vmax.f32 %v8427_v44, 0.0  ;;  %8655 = vmatmul.bf16.gmra.mxu2 %v15493_v63  ;;  %v8252_v19 = vadd.f32 %v8251_v13, %v8163_v46  ;;  %v15498_v49 = vld [vmem:[#allocation96_spill] sm:$0xff]  ;;  %v11362_v13 = vld [vmem:[#allocation8 + $0x4b8] sm:$0xf]  ;;  %v11999_v44 = vld [vmem:[#allocation8 + $0x4c0] sm:$0xf0] }
 0xcef   : > { %v11170_v46 = vld [vmem:[#allocation8 + $0x338] sm:$0xf]  ;;  %v11363_v37 = vor.u32 %v11999_v44, %v11362_v13 }
 0xcf0   : > { %8744 = vmatmul.bf16.gmra.mxu3 %v15494_v54  ;;  %9330 = vst [vmem:[%s14001_s23 + $0x2c0] sm:$0xff] %v9234_v8  ;;  %v11951_v8 = vld [vmem:[#allocation8 + $0x340] sm:$0xf0] }
 0xcf1   : > { %v8340_v43 = vpop.f32.mrf.mxu2  ;;  %v8253_v2 = vpop.f32.mrf.mxu1  ;;  %v11171_v54 = vor.u32 %v11951_v8, %v11170_v46  ;;  %8973 = vmatpush.bf16.msrb.mxu2 %v11363_v37 }
 0xcf2   : > { %v8341_v11 = vadd.f32 %v8340_v43, %v8252_v19  ;;  %v12023_v19 = vld [vmem:[#allocation8 + $0x580] sm:$0xf0] }
 0xcf3   : > { %v8429_v29 = vpop.f32.mrf.mxu3  ;;  %v8164_v12 = vpop.f32.mrf.mxu0  ;;  %8795 = vmatpush.bf16.msrb.mxu0 %v11171_v54 }
 0xcf4   : > { %v8430_v50 = vadd.f32 %v8429_v29, %v8341_v11  ;;  %v8165_v26 = vadd.f32 %v8164_v12, %v14288_v28  ;;  %v15495_v28 = vld [vmem:[#allocation48_spill] sm:$0xff]  ;;  %v11459_v12 = vor.u32 %v12023_v19, %v11458_v34 }
 0xcf6   : > { %v9237_v22 = vmax.f32 %v8430_v50, 0.0  ;;  %v8254_v40 = vadd.f32 %v8253_v2, %v8165_v26  ;;  %9062 = vmatpush.bf16.msrb.mxu3 %v11459_v12 }
 0xcf8   : > { %9333 = vst [vmem:[%s14001_s23 + $0x2d8] sm:$0xff] %v9237_v22  ;;  %v11266_v22 = vld [vmem:[#allocation8 + $0x3f8] sm:$0xf] }
 0xcf9   : > { %v8342_v10 = vpop.f32.mrf.mxu2  ;;  %v8532_v33 = vpop.f32.mrf.mxu1 }
 0xcfa   : > { %v8343_v7 = vadd.f32 %v8342_v10, %v8254_v40  ;;  %v11267_v10 = vor.u32 %v11975_v5, %v11266_v22  ;;  %v15503_v5 = vld [vmem:[#allocation50_spill] sm:$0xff] }
 0xcfb   : > { %v8431_v42 = vpop.f32.mrf.mxu3  ;;  %v8443_v48 = vpop.f32.mrf.mxu0 }
 0xcfc   : > { %v8444_v18 = vadd.f32 %v8443_v48, %v14419_v55  ;;  %v8432_v16 = vadd.f32 %v8431_v42, %v8343_v7  ;;  %8571 = vmatmul.bf16.gmra.mxu1 %v15496_v56  ;;  %v15500_v56 = vld [vmem:[#allocation65_spill] sm:$0xff] }
 0xcfd   : > { %8884 = vmatpush.bf16.msrb.mxu1 %v11267_v10  ;;  %v15505_v10 = vld [vmem:[#allocation82_spill] sm:$0xff] }
 0xcfe   : > { %v8533_v60 = vadd.f32 %v8532_v33, %v8444_v18  ;;  %8482 = vmatmul.bf16.gmra.mxu0 %v15495_v28  ;;  %v9240_v17 = vmax.f32 %v8432_v16, 0.0  ;;  %8660 = vmatmul.bf16.gmra.mxu2 %v15497_v9  ;;  %v15501_v9 = vld [vmem:[#allocation81_spill] sm:$0xff] }
 0xd00   : > { %8749 = vmatmul.bf16.gmra.mxu3 %v15498_v49  ;;  %9336 = vst [vmem:[%s14001_s23 + $0x2f0] sm:$0xff] %v9240_v17  ;;  %v15499_v17 = vld [vmem:[#allocation49_spill] sm:$0xff] }
 0xd01   : > { %v8621_v63 = vpop.f32.mrf.mxu2  ;;  %v8534_v50 = vpop.f32.mrf.mxu1  ;;  %v15502_v49 = vld [vmem:[#allocation97_spill] sm:$0xff] }
 0xd02   : > { %v8622_v43 = vadd.f32 %v8621_v63, %v8533_v60 }
 0xd03   : > { %v8710_v11 = vpop.f32.mrf.mxu3  ;;  %v8445_v29 = vpop.f32.mrf.mxu0 }
 0xd04   : > { %v8446_v2 = vadd.f32 %v8445_v29, %v14419_v55  ;;  %v14429_v26 = vadd.f32 %v8710_v11, %v8622_v43 }
 0xd06   : > { %v8535_v40 = vadd.f32 %v8534_v50, %v8446_v2 }
 0xd09   : > { %v8623_v7 = vpop.f32.mrf.mxu2  ;;  %v8537_v16 = vpop.f32.mrf.mxu1 }
 0xd0a   : > { %v8624_v42 = vadd.f32 %v8623_v7, %v8535_v40  ;;  %v15504_v40 = vld [vmem:[#allocation66_spill] sm:$0xff] }
 0xd0b   : > { %v8712_v48 = vpop.f32.mrf.mxu3  ;;  %v8448_v18 = vpop.f32.mrf.mxu0  ;;  %v15506_v7 = vld [vmem:[#allocation98_spill] sm:$0xff] }
 0xd0c   : > { %v8449_v33 = vadd.f32 %v8448_v18, %v14419_v55  ;;  %v14432_v60 = vadd.f32 %v8712_v48, %v8624_v42  ;;  %8576 = vmatmul.bf16.gmra.mxu1 %v15500_v56  ;;  %v11350_v42 = vld [vmem:[#allocation8 + $0x4a0] sm:$0xf]  ;;  %v11996_v48 = vld [vmem:[#allocation8 + $0x4a8] sm:$0xf0] }
 0xd0d   : > { %v11158_v18 = vld [vmem:[#allocation8 + $0x320] sm:$0xf] }
 0xd0e   : > { %v8538_v28 = vadd.f32 %v8537_v16, %v8449_v33  ;;  %8487 = vmatmul.bf16.gmra.mxu0 %v15499_v17  ;;  %8665 = vmatmul.bf16.gmra.mxu2 %v15501_v9  ;;  %v11351_v33 = vor.u32 %v11996_v48, %v11350_v42  ;;  %v11948_v16 = vld [vmem:[#allocation8 + $0x328] sm:$0xf0]  ;;  %v15507_v42 = vld [vmem:[#allocation51_spill] sm:$0xff] }
 0xd0f   : > { %v12020_v17 = vld [vmem:[#allocation8 + $0x568] sm:$0xf0]  ;;  %v11159_v9 = vor.u32 %v11948_v16, %v11158_v18  ;;  %v15508_v48 = vld [vmem:[#allocation67_spill] sm:$0xff] }
 0xd10   : > { %8754 = vmatmul.bf16.gmra.mxu3 %v15502_v49  ;;  %8974 = vmatpush.bf16.msrb.mxu2 %v11351_v33  ;;  %v15509_v18 = vld [vmem:[#allocation83_spill] sm:$0xff] }
 0xd11   : > { %v8626_v13 = vpop.f32.mrf.mxu2  ;;  %v8539_v34 = vpop.f32.mrf.mxu1  ;;  %8796 = vmatpush.bf16.msrb.mxu0 %v11159_v9  ;;  %v15510_v33 = vld [vmem:[#allocation99_spill] sm:$0xff] }
 0xd12   : > { %v8627_v44 = vadd.f32 %v8626_v13, %v8538_v28  ;;  %v11446_v28 = vld [vmem:[#allocation8 + $0x560] sm:$0xf] }
 0xd13   : > { %v8715_v46 = vpop.f32.mrf.mxu3  ;;  %v8450_v37 = vpop.f32.mrf.mxu0  ;;  %v11447_v49 = vor.u32 %v12020_v17, %v11446_v28 }
 0xd14   : > { %v8451_v8 = vadd.f32 %v8450_v37, %v14419_v55  ;;  %v14439_v63 = vadd.f32 %v8715_v46, %v8627_v44 }
 0xd15   : > { %9063 = vmatpush.bf16.msrb.mxu3 %v11447_v49 }
 0xd16   : > { %v8540_v54 = vadd.f32 %v8539_v34, %v8451_v8 }
 0xd19   : > { %v8628_v19 = vpop.f32.mrf.mxu2  ;;  %v8542_v2 = vpop.f32.mrf.mxu1 }
 0xd1a   : > { %v8629_v43 = vadd.f32 %v8628_v19, %v8540_v54  ;;  %v11254_v54 = vld [vmem:[#allocation8 + $0x3e0] sm:$0xf]  ;;  %v11972_v19 = vld [vmem:[#allocation8 + $0x3e8] sm:$0xf0] }
 0xd1b   : > { %v8717_v11 = vpop.f32.mrf.mxu3  ;;  %v8453_v29 = vpop.f32.mrf.mxu0 }
 0xd1c   : > { %v8454_v12 = vadd.f32 %v8453_v29, %v14419_v55  ;;  %v14442_v50 = vadd.f32 %v8717_v11, %v8629_v43  ;;  %8581 = vmatmul.bf16.gmra.mxu1 %v15504_v40  ;;  %v11255_v11 = vor.u32 %v11972_v19, %v11254_v54 }
 0xd1e   : > { %v8543_v22 = vadd.f32 %v8542_v2, %v8454_v12  ;;  %8492 = vmatmul.bf16.gmra.mxu0 %v15503_v5  ;;  %8670 = vmatmul.bf16.gmra.mxu2 %v15505_v10 }
 0xd1f   : > { %8885 = vmatpush.bf16.msrb.mxu1 %v11255_v11 }
 0xd20   : > { %8759 = vmatmul.bf16.gmra.mxu3 %v15506_v7 }
 0xd21   : > { %v8631_v56 = vpop.f32.mrf.mxu2  ;;  %v8544_v8 = vpop.f32.mrf.mxu1 }
 0xd22   : > { %v8632_v13 = vadd.f32 %v8631_v56, %v8543_v22 }
 0xd23   : > { %v8720_v44 = vpop.f32.mrf.mxu3  ;;  %v8455_v46 = vpop.f32.mrf.mxu0 }
 0xd24   : > { %v8456_v37 = vadd.f32 %v8455_v46, %v14419_v55  ;;  %v14449_v34 = vadd.f32 %v8720_v44, %v8632_v13 }
 0xd26   : > { %v8545_v43 = vadd.f32 %v8544_v8, %v8456_v37 }
 0xd29   : > { %v8633_v29 = vpop.f32.mrf.mxu2  ;;  %v8547_v40 = vpop.f32.mrf.mxu1 }
 0xd2a   : > { %v8634_v12 = vadd.f32 %v8633_v29, %v8545_v43 }
 0xd2b   : > { %v8722_v2 = vpop.f32.mrf.mxu3  ;;  %v8458_v5 = vpop.f32.mrf.mxu0 }
 0xd2c   : > { %v8459_v22 = vadd.f32 %v8458_v5, %v14419_v55  ;;  %v14452_v10 = vadd.f32 %v8722_v2, %v8634_v12  ;;  %8586 = vmatmul.bf16.gmra.mxu1 %v15508_v48  ;;  %v15511_v12 = vld [vmem:[#allocation52_spill] sm:$0xff] }
 0xd2d   : > { %v15512_v2 = vld [vmem:[#allocation68_spill] sm:$0xff] }
 0xd2e   : > { %v8548_v7 = vadd.f32 %v8547_v40, %v8459_v22  ;;  %8497 = vmatmul.bf16.gmra.mxu0 %v15507_v42  ;;  %8675 = vmatmul.bf16.gmra.mxu2 %v15509_v18  ;;  %v15513_v5 = vld [vmem:[#allocation84_spill] sm:$0xff]  ;;  %v11945_v18 = vld [vmem:[#allocation8 + $0x310] sm:$0xf0] }
 0xd2f   : > { %v15514_v22 = vld [vmem:[#allocation100_spill] sm:$0xff] }
 0xd30   : > { %8764 = vmatmul.bf16.gmra.mxu3 %v15510_v33  ;;  %v11338_v40 = vld [vmem:[#allocation8 + $0x488] sm:$0xf] }
 0xd31   : > { %v8636_v16 = vpop.f32.mrf.mxu2  ;;  %v8549_v49 = vpop.f32.mrf.mxu1  ;;  %v11146_v42 = vld [vmem:[#allocation8 + $0x308] sm:$0xf] }
 0xd32   : > { %v8637_v28 = vadd.f32 %v8636_v16, %v8548_v7  ;;  %v11993_v7 = vld [vmem:[#allocation8 + $0x490] sm:$0xf0]  ;;  %v11434_v33 = vld [vmem:[#allocation8 + $0x548] sm:$0xf] }
 0xd33   : > { %v8725_v17 = vpop.f32.mrf.mxu3  ;;  %v8460_v56 = vpop.f32.mrf.mxu0  ;;  %v11339_v48 = vor.u32 %v11993_v7, %v11338_v40  ;;  %v12017_v16 = vld [vmem:[#allocation8 + $0x550] sm:$0xf0] }
 0xd34   : > { %v8461_v9 = vadd.f32 %v8460_v56, %v14419_v55  ;;  %v14459_v13 = vadd.f32 %v8725_v17, %v8637_v28  ;;  %v11147_v17 = vor.u32 %v11945_v18, %v11146_v42  ;;  %v11435_v56 = vor.u32 %v12017_v16, %v11434_v33  ;;  %v15515_v18 = vld [vmem:[#allocation53_spill] sm:$0xff] }
 0xd35   : > { %8975 = vmatpush.bf16.msrb.mxu2 %v11339_v48  ;;  %v15516_v33 = vld [vmem:[#allocation69_spill] sm:$0xff] }
 0xd36   : > { %v8550_v44 = vadd.f32 %v8549_v49, %v8461_v9  ;;  %8797 = vmatpush.bf16.msrb.mxu0 %v11147_v17  ;;  %9064 = vmatpush.bf16.msrb.mxu3 %v11435_v56  ;;  %v15517_v16 = vld [vmem:[#allocation85_spill] sm:$0xff] }
 0xd39   : > { %v8638_v46 = vpop.f32.mrf.mxu2  ;;  %v8552_v43 = vpop.f32.mrf.mxu1 }
 0xd3a   : > { %v8639_v37 = vadd.f32 %v8638_v46, %v8550_v44 }
 0xd3b   : > { %v8727_v8 = vpop.f32.mrf.mxu3  ;;  %v8463_v54 = vpop.f32.mrf.mxu0 }
 0xd3c   : > { %v8464_v19 = vadd.f32 %v8463_v54, %v14419_v55  ;;  %v14462_v11 = vadd.f32 %v8727_v8, %v8639_v37  ;;  %8591 = vmatmul.bf16.gmra.mxu1 %v15512_v2  ;;  %v11242_v54 = vld [vmem:[#allocation8 + $0x3c8] sm:$0xf] }
 0xd3e   : > { %v8553_v29 = vadd.f32 %v8552_v43, %v8464_v19  ;;  %8502 = vmatmul.bf16.gmra.mxu0 %v15511_v12  ;;  %8680 = vmatmul.bf16.gmra.mxu2 %v15513_v5  ;;  %v11969_v19 = vld [vmem:[#allocation8 + $0x3d0] sm:$0xf0] }
 0xd3f   : > { %v11243_v12 = vor.u32 %v11969_v19, %v11242_v54 }
 0xd40   : > { %8769 = vmatmul.bf16.gmra.mxu3 %v15514_v22 }
 0xd41   : > { %v8641_v28 = vpop.f32.mrf.mxu2  ;;  %v8554_v37 = vpop.f32.mrf.mxu1  ;;  %8886 = vmatpush.bf16.msrb.mxu1 %v11243_v12 }
 0xd42   : > { %v8642_v9 = vadd.f32 %v8641_v28, %v8553_v29  ;;  %v15518_v28 = vld [vmem:[#allocation101_spill] sm:$0xff] }
 0xd43   : > { %v8730_v49 = vpop.f32.mrf.mxu3  ;;  %v8465_v44 = vpop.f32.mrf.mxu0 }
 0xd44   : > { %v8466_v46 = vadd.f32 %v8465_v44, %v14419_v55  ;;  %v14469_v8 = vadd.f32 %v8730_v49, %v8642_v9 }
 0xd46   : > { %v8555_v43 = vadd.f32 %v8554_v37, %v8466_v46 }
 0xd49   : > { %v8643_v2 = vpop.f32.mrf.mxu2  ;;  %v8557_v7 = vpop.f32.mrf.mxu1 }
 0xd4a   : > { %v8644_v5 = vadd.f32 %v8643_v2, %v8555_v43 }
 0xd4b   : > { %v8732_v22 = vpop.f32.mrf.mxu3  ;;  %v8468_v40 = vpop.f32.mrf.mxu0 }
 0xd4c   : > { %v8469_v29 = vadd.f32 %v8468_v40, %v14419_v55  ;;  %v14472_v42 = vadd.f32 %v8732_v22, %v8644_v5  ;;  %8596 = vmatmul.bf16.gmra.mxu1 %v15516_v33  ;;  %v15522_v33 = vld [vmem:[#allocation102_spill] sm:$0xff] }
 0xd4e   : > { %v8558_v48 = vadd.f32 %v8557_v7, %v8469_v29  ;;  %8507 = vmatmul.bf16.gmra.mxu0 %v15515_v18  ;;  %8685 = vmatmul.bf16.gmra.mxu2 %v15517_v16  ;;  %v15519_v7 = vld [vmem:[#allocation54_spill] sm:$0xff] }
 0xd4f   : > { %v15521_v18 = vld [vmem:[#allocation86_spill] sm:$0xff] }
 0xd50   : > { %8774 = vmatmul.bf16.gmra.mxu3 %v15518_v28 }
 0xd51   : > { %v8646_v17 = vpop.f32.mrf.mxu2  ;;  %v8559_v46 = vpop.f32.mrf.mxu1 }
 0xd52   : > { %v8647_v56 = vadd.f32 %v8646_v17, %v8558_v48  ;;  %v15520_v48 = vld [vmem:[#allocation70_spill] sm:$0xff] }
 0xd53   : > { %v8735_v9 = vpop.f32.mrf.mxu3  ;;  %v8470_v49 = vpop.f32.mrf.mxu0 }
 0xd54   : > { %v8471_v44 = vadd.f32 %v8470_v49, %v14419_v55  ;;  %v14479_v37 = vadd.f32 %v8735_v9, %v8647_v56 }
 0xd56   : > { %v8560_v54 = vadd.f32 %v8559_v46, %v8471_v44 }
 0xd59   : > { %v8648_v19 = vpop.f32.mrf.mxu2  ;;  %v8562_v22 = vpop.f32.mrf.mxu1 }
 0xd5a   : > { %v8649_v43 = vadd.f32 %v8648_v19, %v8560_v54 }
 0xd5b   : > { %v8737_v12 = vpop.f32.mrf.mxu3  ;;  %v8473_v2 = vpop.f32.mrf.mxu0 }
 0xd5c   : > { %v8474_v5 = vadd.f32 %v8473_v2, %v14419_v55  ;;  %v14482_v40 = vadd.f32 %v8737_v12, %v8649_v43  ;;  %8601 = vmatmul.bf16.gmra.mxu1 %v15520_v48  ;;  %v15523_v48 = vld [vmem:[#allocation55_spill] sm:$0xff] }
 0xd5e   : > { %v8563_v29 = vadd.f32 %v8562_v22, %v8474_v5  ;;  %8512 = vmatmul.bf16.gmra.mxu0 %v15519_v7  ;;  %8690 = vmatmul.bf16.gmra.mxu2 %v15521_v18  ;;  %v15525_v18 = vld [vmem:[#allocation87_spill] sm:$0xff] }
 0xd60   : > { %8779 = vmatmul.bf16.gmra.mxu3 %v15522_v33  ;;  %v15526_v33 = vld [vmem:[#allocation103_spill] sm:$0xff] }
 0xd61   : > { %v8651_v16 = vpop.f32.mrf.mxu2  ;;  %v8564_v49 = vpop.f32.mrf.mxu1 }
 0xd62   : > { %v8652_v28 = vadd.f32 %v8651_v16, %v8563_v29  ;;  %v15524_v29 = vld [vmem:[#allocation71_spill] sm:$0xff] }
 0xd63   : > { %v8740_v17 = vpop.f32.mrf.mxu3  ;;  %v8475_v56 = vpop.f32.mrf.mxu0 }
 0xd64   : > { %v8476_v9 = vadd.f32 %v8475_v56, %v14419_v55  ;;  %v14489_v44 = vadd.f32 %v8740_v17, %v8652_v28 }
 0xd66   : > { %v8565_v46 = vadd.f32 %v8564_v49, %v8476_v9 }
 0xd69   : > { %v8653_v54 = vpop.f32.mrf.mxu2  ;;  %v8567_v5 = vpop.f32.mrf.mxu1 }
 0xd6a   : > { %v8654_v19 = vadd.f32 %v8653_v54, %v8565_v46 }
 0xd6b   : > { %v8742_v43 = vpop.f32.mrf.mxu3  ;;  %v8478_v12 = vpop.f32.mrf.mxu0 }
 0xd6c   : > { %v8479_v2 = vadd.f32 %v8478_v12, %v14419_v55  ;;  %v14492_v22 = vadd.f32 %v8742_v43, %v8654_v19  ;;  %8606 = vmatmul.bf16.gmra.mxu1 %v15524_v29 }
 0xd6e   : > { %v8568_v7 = vadd.f32 %v8567_v5, %v8479_v2  ;;  %8517 = vmatmul.bf16.gmra.mxu0 %v15523_v48  ;;  %8695 = vmatmul.bf16.gmra.mxu2 %v15525_v18 }
 0xd70   : > { %8784 = vmatmul.bf16.gmra.mxu3 %v15526_v33  ;;  %v15528_v33 = vld [vmem:[#allocation104_spill] sm:$0xff] }
 0xd71   : > { %v8656_v16 = vpop.f32.mrf.mxu2  ;;  %v8569_v49 = vpop.f32.mrf.mxu1 }
 0xd72   : > { %v8657_v28 = vadd.f32 %v8656_v16, %v8568_v7  ;;  %v15529_v7 = vld [vmem:[#allocation120_spill] sm:$0xff] }
 0xd73   : > { %v8745_v17 = vpop.f32.mrf.mxu3  ;;  %v8480_v56 = vpop.f32.mrf.mxu0  ;;  %v15530_v16 = vld [vmem:[#allocation136_spill] sm:$0xff] }
 0xd74   : > { %v8481_v9 = vadd.f32 %v8480_v56, %v14419_v55  ;;  %v14499_v46 = vadd.f32 %v8745_v17, %v8657_v28  ;;  %v15531_v56 = vld [vmem:[#allocation17_spill] sm:$0xff] }
 0xd76   : > { %v8570_v54 = vadd.f32 %v8569_v49, %v8481_v9 }
 0xd79   : > { %v8658_v19 = vpop.f32.mrf.mxu2  ;;  %v8572_v48 = vpop.f32.mrf.mxu1 }
 0xd7a   : > { %v8659_v43 = vadd.f32 %v8658_v19, %v8570_v54 }
 0xd7b   : > { %v8747_v12 = vpop.f32.mrf.mxu3  ;;  %v8483_v2 = vpop.f32.mrf.mxu0 }
 0xd7c   : > { %v8484_v5 = vadd.f32 %v8483_v2, %v14419_v55  ;;  %v14502_v29 = vadd.f32 %v8747_v12, %v8659_v43  ;;  %8887 = vmatmul.bf16.vlgmr.msrb.gmra.mxu1 %v15529_v7 }
 0xd7e   : > { %15527 = vst [vmem:[#allocation131_spill] sm:$0xff] %v14502_v29  ;;  %v8573_v18 = vadd.f32 %v8572_v48, %v8484_v5  ;;  %8798 = vmatmul.bf16.vlgmr.msrb.gmra.mxu0 %v15528_v33  ;;  %8976 = vmatmul.bf16.vlgmr.msrb.gmra.mxu2 %v15530_v16 }
 0xd80   : > { %9065 = vmatmul.bf16.vlgmr.msrb.gmra.mxu3 %v15531_v56 }
 0xd81   : > { %v8661_v28 = vpop.f32.mrf.mxu2  ;;  %v8574_v19 = vpop.f32.mrf.mxu1 }
 0xd82   : > { %v8662_v17 = vadd.f32 %v8661_v28, %v8573_v18  ;;  %v15535_v18 = vld [vmem:[#allocation121_spill] sm:$0xff] }
 0xd83   : > { %v8750_v9 = vpop.f32.mrf.mxu3  ;;  %v8485_v49 = vpop.f32.mrf.mxu0  ;;  %v15536_v28 = vld [vmem:[#allocation137_spill] sm:$0xff] }
 0xd84   : > { %v8486_v54 = vadd.f32 %v8485_v49, %v14419_v55  ;;  %v14509_v2 = vadd.f32 %v8750_v9, %v8662_v17  ;;  %v15537_v49 = vld [vmem:[#allocation18_spill] sm:$0xff] }
 0xd86   : > { %15532 = vst [vmem:[#allocation116_spill] sm:$0xff] %v14509_v2  ;;  %v8575_v43 = vadd.f32 %v8574_v19, %v8486_v54  ;;  %v15540_v2 = vld [vmem:[#allocation106_spill] sm:$0xff] }
 0xd89   : > { %v8663_v12 = vpop.f32.mrf.mxu2  ;;  %v8577_v29 = vpop.f32.mrf.mxu1 }
 0xd8a   : > { %v8664_v5 = vadd.f32 %v8663_v12, %v8575_v43 }
 0xd8b   : > { %v8752_v48 = vpop.f32.mrf.mxu3  ;;  %v8488_v33 = vpop.f32.mrf.mxu0 }
 0xd8c   : > { %v8489_v7 = vadd.f32 %v8488_v33, %v14419_v55  ;;  %v14512_v16 = vadd.f32 %v8752_v48, %v8664_v5  ;;  %8892 = vmatmul.bf16.gmra.mxu1 %v15535_v18 }
 0xd8e   : > { %15533 = vst [vmem:[#allocation132_spill] sm:$0xff] %v14512_v16  ;;  %v8578_v56 = vadd.f32 %v8577_v29, %v8489_v7  ;;  %8803 = vmatmul.bf16.gmra.mxu0 %v15534_v57  ;;  %8981 = vmatmul.bf16.gmra.mxu2 %v15536_v28 }
 0xd90   : > { %9070 = vmatmul.bf16.gmra.mxu3 %v15537_v49 }
 0xd91   : > { %v8666_v17 = vpop.f32.mrf.mxu2  ;;  %v8579_v12 = vpop.f32.mrf.mxu1 }
 0xd92   : > { %v8667_v9 = vadd.f32 %v8666_v17, %v8578_v56  ;;  %v15541_v56 = vld [vmem:[#allocation122_spill] sm:$0xff] }
 0xd93   : > { %v8755_v54 = vpop.f32.mrf.mxu3  ;;  %v8490_v19 = vpop.f32.mrf.mxu0  ;;  %v15542_v17 = vld [vmem:[#allocation138_spill] sm:$0xff] }
 0xd94   : > { %v8491_v43 = vadd.f32 %v8490_v19, %v14419_v55  ;;  %v14519_v33 = vadd.f32 %v8755_v54, %v8667_v9  ;;  %v15543_v19 = vld [vmem:[#allocation19_spill] sm:$0xff] }
 0xd96   : > { %15538 = vst [vmem:[#allocation117_spill] sm:$0xff] %v14519_v33  ;;  %v8580_v5 = vadd.f32 %v8579_v12, %v8491_v43  ;;  %v15546_v33 = vld [vmem:[#allocation107_spill] sm:$0xff] }
 0xd99   : > { %v8668_v48 = vpop.f32.mrf.mxu2  ;;  %v8582_v16 = vpop.f32.mrf.mxu1 }
 0xd9a   : > { %v8669_v29 = vadd.f32 %v8668_v48, %v8580_v5 }
 0xd9b   : > { %v8757_v7 = vpop.f32.mrf.mxu3  ;;  %v8493_v57 = vpop.f32.mrf.mxu0 }
 0xd9c   : > { %v8494_v18 = vadd.f32 %v8493_v57, %v14419_v55  ;;  %v14522_v28 = vadd.f32 %v8757_v7, %v8669_v29  ;;  %8897 = vmatmul.bf16.gmra.mxu1 %v15541_v56 }
 0xd9e   : > { %15539 = vst [vmem:[#allocation133_spill] sm:$0xff] %v14522_v28  ;;  %v8583_v49 = vadd.f32 %v8582_v16, %v8494_v18  ;;  %8808 = vmatmul.bf16.gmra.mxu0 %v15540_v2  ;;  %8986 = vmatmul.bf16.gmra.mxu2 %v15542_v17 }
 0xda0   : > { %9075 = vmatmul.bf16.gmra.mxu3 %v15543_v19 }
 0xda1   : > { %v8671_v9 = vpop.f32.mrf.mxu2  ;;  %v8584_v48 = vpop.f32.mrf.mxu1 }
 0xda2   : > { %v8672_v54 = vadd.f32 %v8671_v9, %v8583_v49  ;;  %v15547_v49 = vld [vmem:[#allocation123_spill] sm:$0xff] }
 0xda3   : > { %v8760_v43 = vpop.f32.mrf.mxu3  ;;  %v8495_v12 = vpop.f32.mrf.mxu0  ;;  %v15548_v9 = vld [vmem:[#allocation139_spill] sm:$0xff] }
 0xda4   : > { %v8496_v5 = vadd.f32 %v8495_v12, %v14419_v55  ;;  %v14529_v57 = vadd.f32 %v8760_v43, %v8672_v54  ;;  %v15549_v12 = vld [vmem:[#allocation21_spill] sm:$0xff] }
 0xda6   : > { %15544 = vst [vmem:[#allocation118_spill] sm:$0xff] %v14529_v57  ;;  %v8585_v29 = vadd.f32 %v8584_v48, %v8496_v5  ;;  %v15552_v57 = vld [vmem:[#allocation108_spill] sm:$0xff] }
 0xda9   : > { %v8673_v7 = vpop.f32.mrf.mxu2  ;;  %v8587_v28 = vpop.f32.mrf.mxu1 }
 0xdaa   : > { %v8674_v16 = vadd.f32 %v8673_v7, %v8585_v29 }
 0xdab   : > { %v8762_v18 = vpop.f32.mrf.mxu3  ;;  %v8498_v2 = vpop.f32.mrf.mxu0 }
 0xdac   : > { %v8499_v56 = vadd.f32 %v8498_v2, %v14419_v55  ;;  %v14532_v17 = vadd.f32 %v8762_v18, %v8674_v16  ;;  %8902 = vmatmul.bf16.gmra.mxu1 %v15547_v49 }
 0xdae   : > { %15545 = vst [vmem:[#allocation134_spill] sm:$0xff] %v14532_v17  ;;  %v8588_v19 = vadd.f32 %v8587_v28, %v8499_v56  ;;  %8813 = vmatmul.bf16.gmra.mxu0 %v15546_v33  ;;  %8991 = vmatmul.bf16.gmra.mxu2 %v15548_v9 }
 0xdb0   : > { %9080 = vmatmul.bf16.gmra.mxu3 %v15549_v12 }
 0xdb1   : > { %v8676_v54 = vpop.f32.mrf.mxu2  ;;  %v8589_v7 = vpop.f32.mrf.mxu1 }
 0xdb2   : > { %v8677_v43 = vadd.f32 %v8676_v54, %v8588_v19  ;;  %v15553_v19 = vld [vmem:[#allocation124_spill] sm:$0xff] }
 0xdb3   : > { %v8765_v5 = vpop.f32.mrf.mxu3  ;;  %v8500_v48 = vpop.f32.mrf.mxu0  ;;  %v15554_v54 = vld [vmem:[#allocation140_spill] sm:$0xff] }
 0xdb4   : > { %v8501_v29 = vadd.f32 %v8500_v48, %v14419_v55  ;;  %v14539_v2 = vadd.f32 %v8765_v5, %v8677_v43  ;;  %v15555_v48 = vld [vmem:[#allocation22_spill] sm:$0xff] }
 0xdb6   : > { %15550 = vst [vmem:[#allocation31_spill] sm:$0xff] %v14539_v2  ;;  %v8590_v16 = vadd.f32 %v8589_v7, %v8501_v29  ;;  %v15558_v2 = vld [vmem:[#allocation109_spill] sm:$0xff] }
 0xdb9   : > { %v8678_v18 = vpop.f32.mrf.mxu2  ;;  %v8592_v17 = vpop.f32.mrf.mxu1 }
 0xdba   : > { %v8679_v28 = vadd.f32 %v8678_v18, %v8590_v16 }
 0xdbb   : > { %v8767_v56 = vpop.f32.mrf.mxu3  ;;  %v8503_v33 = vpop.f32.mrf.mxu0 }
 0xdbc   : > { %v8504_v49 = vadd.f32 %v8503_v33, %v14419_v55  ;;  %v14542_v9 = vadd.f32 %v8767_v56, %v8679_v28  ;;  %8907 = vmatmul.bf16.gmra.mxu1 %v15553_v19 }
 0xdbe   : > { %15551 = vst [vmem:[#allocation32_spill] sm:$0xff] %v14542_v9  ;;  %v8593_v12 = vadd.f32 %v8592_v17, %v8504_v49  ;;  %8818 = vmatmul.bf16.gmra.mxu0 %v15552_v57  ;;  %8996 = vmatmul.bf16.gmra.mxu2 %v15554_v54 }
 0xdc0   : > { %9085 = vmatmul.bf16.gmra.mxu3 %v15555_v48 }
 0xdc1   : > { %v8681_v43 = vpop.f32.mrf.mxu2  ;;  %v8594_v18 = vpop.f32.mrf.mxu1 }
 0xdc2   : > { %v8682_v5 = vadd.f32 %v8681_v43, %v8593_v12  ;;  %v15559_v12 = vld [vmem:[#allocation125_spill] sm:$0xff] }
 0xdc3   : > { %v8770_v29 = vpop.f32.mrf.mxu3  ;;  %v8505_v7 = vpop.f32.mrf.mxu0  ;;  %v15560_v43 = vld [vmem:[#allocation141_spill] sm:$0xff] }
 0xdc4   : > { %v8506_v16 = vadd.f32 %v8505_v7, %v14419_v55  ;;  %v14549_v33 = vadd.f32 %v8770_v29, %v8682_v5  ;;  %v15561_v7 = vld [vmem:[#allocation23_spill] sm:$0xff] }
 0xdc6   : > { %15556 = vst [vmem:[#allocation33_spill] sm:$0xff] %v14549_v33  ;;  %v8595_v28 = vadd.f32 %v8594_v18, %v8506_v16  ;;  %v15563_v33 = vld [vmem:[#allocation110_spill] sm:$0xff] }
 0xdc9   : > { %v8683_v56 = vpop.f32.mrf.mxu2  ;;  %v8597_v9 = vpop.f32.mrf.mxu1 }
 0xdca   : > { %v8684_v17 = vadd.f32 %v8683_v56, %v8595_v28 }
 0xdcb   : > { %v8772_v49 = vpop.f32.mrf.mxu3  ;;  %v8508_v57 = vpop.f32.mrf.mxu0 }
 0xdcc   : > { %v8509_v19 = vadd.f32 %v8508_v57, %v14419_v55  ;;  %v14552_v54 = vadd.f32 %v8772_v49, %v8684_v17  ;;  %8912 = vmatmul.bf16.gmra.mxu1 %v15559_v12 }
 0xdce   : > { %15557 = vst [vmem:[#allocation34_spill] sm:$0xff] %v14552_v54  ;;  %v8598_v48 = vadd.f32 %v8597_v9, %v8509_v19  ;;  %8823 = vmatmul.bf16.gmra.mxu0 %v15558_v2  ;;  %9001 = vmatmul.bf16.gmra.mxu2 %v15560_v43 }
 0xdd0   : > { %9090 = vmatmul.bf16.gmra.mxu3 %v15561_v7 }
 0xdd1   : > { %v8686_v5 = vpop.f32.mrf.mxu2  ;;  %v8599_v56 = vpop.f32.mrf.mxu1 }
 0xdd2   : > { %v8687_v29 = vadd.f32 %v8686_v5, %v8598_v48  ;;  %v15564_v48 = vld [vmem:[#allocation126_spill] sm:$0xff] }
 0xdd3   : > { %v8775_v16 = vpop.f32.mrf.mxu3  ;;  %v8510_v18 = vpop.f32.mrf.mxu0  ;;  %v15565_v5 = vld [vmem:[#allocation142_spill] sm:$0xff] }
 0xdd4   : > { %v8511_v28 = vadd.f32 %v8510_v18, %v14419_v55  ;;  %v14559_v57 = vadd.f32 %v8775_v16, %v8687_v29  ;;  %v15566_v18 = vld [vmem:[#allocation24_spill] sm:$0xff] }
 0xdd6   : > { %v8600_v17 = vadd.f32 %v8599_v56, %v8511_v28 }
 0xdd9   : > { %v8688_v49 = vpop.f32.mrf.mxu2  ;;  %v8602_v54 = vpop.f32.mrf.mxu1 }
 0xdda   : > { %v8689_v9 = vadd.f32 %v8688_v49, %v8600_v17 }
 0xddb   : > { %v8777_v19 = vpop.f32.mrf.mxu3  ;;  %v8513_v2 = vpop.f32.mrf.mxu0 }
 0xddc   : > { %v8514_v12 = vadd.f32 %v8513_v2, %v14419_v55  ;;  %v14562_v43 = vadd.f32 %v8777_v19, %v8689_v9  ;;  %8917 = vmatmul.bf16.gmra.mxu1 %v15564_v48 }
 0xdde   : > { %15562 = vst [vmem:[#allocation36_spill] sm:$0xff] %v14562_v43  ;;  %v8603_v7 = vadd.f32 %v8602_v54, %v8514_v12  ;;  %8828 = vmatmul.bf16.gmra.mxu0 %v15563_v33  ;;  %9006 = vmatmul.bf16.gmra.mxu2 %v15565_v5 }
 0xde0   : > { %9095 = vmatmul.bf16.gmra.mxu3 %v15566_v18 }
 0xde1   : > { %v8691_v29 = vpop.f32.mrf.mxu2  ;;  %v8604_v49 = vpop.f32.mrf.mxu1 }
 0xde2   : > { %v8692_v16 = vadd.f32 %v8691_v29, %v8603_v7  ;;  %v15567_v7 = vld [vmem:[#allocation26_spill] sm:$0xff] }
 0xde3   : > { %v8780_v28 = vpop.f32.mrf.mxu3  ;;  %v8515_v56 = vpop.f32.mrf.mxu0 }
 0xde4   : > { %v8516_v17 = vadd.f32 %v8515_v56, %v14419_v55  ;;  %v14569_v2 = vadd.f32 %v8780_v28, %v8692_v16 }
 0xde6   : > { %v8605_v9 = vadd.f32 %v8604_v49, %v8516_v17 }
 0xde9   : > { %v8693_v19 = vpop.f32.mrf.mxu2  ;;  %v8607_v43 = vpop.f32.mrf.mxu1 }
 0xdea   : > { %v8694_v54 = vadd.f32 %v8693_v19, %v8605_v9 }
 0xdeb   : > { %v8782_v12 = vpop.f32.mrf.mxu3  ;;  %v8518_v33 = vpop.f32.mrf.mxu0 }
 0xdec   : > { %v8519_v48 = vadd.f32 %v8518_v33, %v14419_v55  ;;  %v14572_v5 = vadd.f32 %v8782_v12, %v8694_v54  ;;  %8922 = vmatmul.bf16.gmra.mxu1 %v15312_v23 }
 0xdee   : > { %v8608_v18 = vadd.f32 %v8607_v43, %v8519_v48  ;;  %8833 = vmatmul.bf16.gmra.mxu0 %v15311_v24  ;;  %9011 = vmatmul.bf16.gmra.mxu2 %v13638_v51  ;;  %v15569_v48 = vld [vmem:[#allocation112_spill] sm:$0xff] }
 0xdf0   : > { %9100 = vmatmul.bf16.gmra.mxu3 %v15567_v7  ;;  %v15571_v7 = vld [vmem:[#allocation15_spill] sm:$0xff] }
 0xdf1   : > { %v8696_v29 = vpop.f32.mrf.mxu2  ;;  %v8609_v49 = vpop.f32.mrf.mxu1 }
 0xdf2   : > { %v8697_v16 = vadd.f32 %v8696_v29, %v8608_v18  ;;  %v15570_v18 = vld [vmem:[#allocation128_spill] sm:$0xff] }
 0xdf3   : > { %v8785_v28 = vpop.f32.mrf.mxu3  ;;  %v8520_v56 = vpop.f32.mrf.mxu0 }
 0xdf4   : > { %v8521_v17 = vadd.f32 %v8520_v56, %v14419_v55  ;;  %v14579_v9 = vadd.f32 %v8785_v28, %v8697_v16  ;;  %v15572_v55 = vld [vmem:[#allocation27_spill] sm:$0xff] }
 0xdf6   : > { %v8610_v19 = vadd.f32 %v8609_v49, %v8521_v17 }
 0xdf9   : > { %v8698_v54 = vpop.f32.mrf.mxu2  ;;  %v8888_v33 = vpop.f32.mrf.mxu1 }
 0xdfa   : > { %v8699_v43 = vadd.f32 %v8698_v54, %v8610_v19 }
 0xdfb   : > { %v8787_v12 = vpop.f32.mrf.mxu3  ;;  %v8799_v24 = vpop.f32.mrf.mxu0 }
 0xdfc   : > { %v14581_v23 = vadd.f32 %v8787_v12, %v8699_v43  ;;  %v8800_v51 = vadd.f32 %v8799_v24, %v14429_v26  ;;  %8927 = vmatmul.bf16.gmra.mxu1 %v15570_v18 }
 0xdfe   : > { %15568 = vst [vmem:[#allocation16_spill] sm:$0xff] %v14581_v23  ;;  %8838 = vmatmul.bf16.gmra.mxu0 %v15569_v48  ;;  %9016 = vmatmul.bf16.gmra.mxu2 %v15571_v7  ;;  %v8889_v29 = vadd.f32 %v8888_v33, %v8800_v51 }
 0xe00   : > { %9105 = vmatmul.bf16.gmra.mxu3 %v15572_v55 }
 0xe01   : > { %v8977_v16 = vpop.f32.mrf.mxu2  ;;  %v8890_v49 = vpop.f32.mrf.mxu1 }
 0xe02   : > { %v8978_v28 = vadd.f32 %v8977_v16, %v8889_v29 }
 0xe03   : > { %v9066_v56 = vpop.f32.mrf.mxu3  ;;  %v8801_v17 = vpop.f32.mrf.mxu0 }
 0xe04   : > { %v9067_v19 = vadd.f32 %v9066_v56, %v8978_v28  ;;  %v8802_v54 = vadd.f32 %v8801_v17, %v14432_v60 }
 0xe06   : > { %v9148_v43 = vmax.f32 %v9067_v19, 0.0  ;;  %v8891_v26 = vadd.f32 %v8890_v49, %v8802_v54 }
 0xe08   : > { %9244 = vst [vmem:[%s14001_s23 + $0x10] sm:$0xff] %v9148_v43 }
 0xe09   : > { %v8979_v12 = vpop.f32.mrf.mxu2  ;;  %v8893_v7 = vpop.f32.mrf.mxu1 }
 0xe0a   : > { %v8980_v24 = vadd.f32 %v8979_v12, %v8891_v26 }
 0xe0b   : > { %v9068_v48 = vpop.f32.mrf.mxu3  ;;  %v8804_v18 = vpop.f32.mrf.mxu0 }
 0xe0c   : > { %v9069_v23 = vadd.f32 %v9068_v48, %v8980_v24  ;;  %v8805_v33 = vadd.f32 %v8804_v18, %v14439_v63  ;;  %8932 = vmatmul.bf16.gmra.mxu1 %v15316_v35 }
 0xe0e   : > { %8843 = vmatmul.bf16.gmra.mxu0 %v15315_v20  ;;  %v9151_v51 = vmax.f32 %v9069_v23, 0.0  ;;  %9021 = vmatmul.bf16.gmra.mxu2 %v13654_v25  ;;  %v8894_v60 = vadd.f32 %v8893_v7, %v8805_v33 }
 0xe10   : > { %9110 = vmatmul.bf16.gmra.mxu3 %v13784_v27  ;;  %9247 = vst [vmem:[%s14001_s23 + $0x28] sm:$0xff] %v9151_v51 }
 0xe11   : > { %v8982_v55 = vpop.f32.mrf.mxu2  ;;  %v8895_v56 = vpop.f32.mrf.mxu1 }
 0xe12   : > { %v8983_v29 = vadd.f32 %v8982_v55, %v8894_v60 }
 0xe13   : > { %v9071_v16 = vpop.f32.mrf.mxu3  ;;  %v8806_v28 = vpop.f32.mrf.mxu0 }
 0xe14   : > { %v9072_v17 = vadd.f32 %v9071_v16, %v8983_v29  ;;  %v8807_v63 = vadd.f32 %v8806_v28, %v14442_v50 }
 0xe16   : > { %v9154_v49 = vmax.f32 %v9072_v17, 0.0  ;;  %v8896_v20 = vadd.f32 %v8895_v56, %v8807_v63 }
 0xe18   : > { %9250 = vst [vmem:[%s14001_s23 + $0x40] sm:$0xff] %v9154_v49 }
 0xe19   : > { %v8984_v23 = vpop.f32.mrf.mxu2  ;;  %v8898_v54 = vpop.f32.mrf.mxu1 }
 0xe1a   : > { %v8985_v35 = vadd.f32 %v8984_v23, %v8896_v20 }
 0xe1b   : > { %v9073_v19 = vpop.f32.mrf.mxu3  ;;  %v8809_v25 = vpop.f32.mrf.mxu0 }
 0xe1c   : > { %v9074_v27 = vadd.f32 %v9073_v19, %v8985_v35  ;;  %v8810_v43 = vadd.f32 %v8809_v25, %v14449_v34  ;;  %8937 = vmatmul.bf16.gmra.mxu1 %v15318_v41 }
 0xe1e   : > { %8848 = vmatmul.bf16.gmra.mxu0 %v15317_v32  ;;  %v9157_v26 = vmax.f32 %v9074_v27, 0.0  ;;  %9026 = vmatmul.bf16.gmra.mxu2 %v15443_v39  ;;  %v8899_v50 = vadd.f32 %v8898_v54, %v8810_v43 }
 0xe20   : > { %9115 = vmatmul.bf16.gmra.mxu3 %v15444_v3  ;;  %9253 = vst [vmem:[%s14001_s23 + $0x58] sm:$0xff] %v9157_v26 }
 0xe21   : > { %v8987_v12 = vpop.f32.mrf.mxu2  ;;  %v8900_v7 = vpop.f32.mrf.mxu1 }
 0xe22   : > { %v8988_v24 = vadd.f32 %v8987_v12, %v8899_v50 }
 0xe23   : > { %v9076_v48 = vpop.f32.mrf.mxu3  ;;  %v8811_v18 = vpop.f32.mrf.mxu0 }
 0xe24   : > { %v9077_v33 = vadd.f32 %v9076_v48, %v8988_v24  ;;  %v8812_v34 = vadd.f32 %v8811_v18, %v14452_v10 }
 0xe26   : > { %v9160_v51 = vmax.f32 %v9077_v33, 0.0  ;;  %v8901_v32 = vadd.f32 %v8900_v7, %v8812_v34 }
 0xe28   : > { %9256 = vst [vmem:[%s14001_s23 + $0x70] sm:$0xff] %v9160_v51 }
 0xe29   : > { %v8989_v60 = vpop.f32.mrf.mxu2  ;;  %v8903_v29 = vpop.f32.mrf.mxu1 }
 0xe2a   : > { %v8990_v41 = vadd.f32 %v8989_v60, %v8901_v32 }
 0xe2b   : > { %v9078_v55 = vpop.f32.mrf.mxu3  ;;  %v8814_v39 = vpop.f32.mrf.mxu0 }
 0xe2c   : > { %v9079_v3 = vadd.f32 %v9078_v55, %v8990_v41  ;;  %v8815_v16 = vadd.f32 %v8814_v39, %v14459_v13  ;;  %8942 = vmatmul.bf16.gmra.mxu1 %v15320_v30 }
 0xe2e   : > { %8853 = vmatmul.bf16.gmra.mxu0 %v15319_v6  ;;  %v9163_v28 = vmax.f32 %v9079_v3, 0.0  ;;  %9031 = vmatmul.bf16.gmra.mxu2 %v13670_v1  ;;  %v8904_v10 = vadd.f32 %v8903_v29, %v8815_v16 }
 0xe30   : > { %9120 = vmatmul.bf16.gmra.mxu3 %v13800_v38  ;;  %9259 = vst [vmem:[%s14001_s23 + $0x88] sm:$0xff] %v9163_v28 }
 0xe31   : > { %v8992_v56 = vpop.f32.mrf.mxu2  ;;  %v8905_v20 = vpop.f32.mrf.mxu1 }
 0xe32   : > { %v8993_v17 = vadd.f32 %v8992_v56, %v8904_v10 }
 0xe33   : > { %v9081_v63 = vpop.f32.mrf.mxu3  ;;  %v8816_v49 = vpop.f32.mrf.mxu0 }
 0xe34   : > { %v9082_v23 = vadd.f32 %v9081_v63, %v8993_v17  ;;  %v8817_v13 = vadd.f32 %v8816_v49, %v14462_v11 }
 0xe36   : > { %v9166_v35 = vmax.f32 %v9082_v23, 0.0  ;;  %v8906_v6 = vadd.f32 %v8905_v20, %v8817_v13 }
 0xe38   : > { %9262 = vst [vmem:[%s14001_s23 + $0xa0] sm:$0xff] %v9166_v35 }
 0xe39   : > { %v8994_v19 = vpop.f32.mrf.mxu2  ;;  %v8908_v54 = vpop.f32.mrf.mxu1 }
 0xe3a   : > { %v8995_v30 = vadd.f32 %v8994_v19, %v8906_v6 }
 0xe3b   : > { %v9083_v25 = vpop.f32.mrf.mxu3  ;;  %v8819_v1 = vpop.f32.mrf.mxu0 }
 0xe3c   : > { %v9084_v38 = vadd.f32 %v9083_v25, %v8995_v30  ;;  %v8820_v27 = vadd.f32 %v8819_v1, %v14469_v8  ;;  %8947 = vmatmul.bf16.gmra.mxu1 %v15322_v0 }
 0xe3e   : > { %8858 = vmatmul.bf16.gmra.mxu0 %v15321_v31  ;;  %v9169_v43 = vmax.f32 %v9084_v38, 0.0  ;;  %9036 = vmatmul.bf16.gmra.mxu2 %v13678_v14  ;;  %v8909_v11 = vadd.f32 %v8908_v54, %v8820_v27 }
 0xe40   : > { %9125 = vmatmul.bf16.gmra.mxu3 %v13808_v62  ;;  %9265 = vst [vmem:[%s14001_s23 + $0xb8] sm:$0xff] %v9169_v43 }
 0xe41   : > { %v8997_v26 = vpop.f32.mrf.mxu2  ;;  %v8910_v48 = vpop.f32.mrf.mxu1 }
 0xe42   : > { %v8998_v50 = vadd.f32 %v8997_v26, %v8909_v11 }
 0xe43   : > { %v9086_v12 = vpop.f32.mrf.mxu3  ;;  %v8821_v24 = vpop.f32.mrf.mxu0 }
 0xe44   : > { %v9087_v18 = vadd.f32 %v9086_v12, %v8998_v50  ;;  %v8822_v8 = vadd.f32 %v8821_v24, %v14472_v42 }
 0xe46   : > { %v9172_v7 = vmax.f32 %v9087_v18, 0.0  ;;  %v8911_v31 = vadd.f32 %v8910_v48, %v8822_v8 }
 0xe48   : > { %9268 = vst [vmem:[%s14001_s23 + $0xd0] sm:$0xff] %v9172_v7 }
 0xe49   : > { %v8999_v33 = vpop.f32.mrf.mxu2  ;;  %v8913_v51 = vpop.f32.mrf.mxu1 }
 0xe4a   : > { %v9000_v0 = vadd.f32 %v8999_v33, %v8911_v31 }
 0xe4b   : > { %v9088_v34 = vpop.f32.mrf.mxu3  ;;  %v8824_v14 = vpop.f32.mrf.mxu0 }
 0xe4c   : > { %v9089_v62 = vadd.f32 %v9088_v34, %v9000_v0  ;;  %v8825_v32 = vadd.f32 %v8824_v14, %v14479_v37  ;;  %8952 = vmatmul.bf16.gmra.mxu1 %v15324_v47  ;;  %v15575_v34 = vld [vmem:[#allocation116_spill] sm:$0xff] }
 0xe4e   : > { %8863 = vmatmul.bf16.gmra.mxu0 %v15323_v21  ;;  %v9175_v60 = vmax.f32 %v9089_v62, 0.0  ;;  %9041 = vmatmul.bf16.gmra.mxu2 %v13686_v45  ;;  %v8914_v42 = vadd.f32 %v8913_v51, %v8825_v32 }
 0xe50   : > { %9130 = vmatmul.bf16.gmra.mxu3 %v13816_v36  ;;  %9271 = vst [vmem:[%s14001_s23 + $0xe8] sm:$0xff] %v9175_v60 }
 0xe51   : > { %v9002_v41 = vpop.f32.mrf.mxu2  ;;  %v8915_v3 = vpop.f32.mrf.mxu1 }
 0xe52   : > { %v9003_v55 = vadd.f32 %v9002_v41, %v8914_v42 }
 0xe53   : > { %v9091_v39 = vpop.f32.mrf.mxu3  ;;  %v8826_v29 = vpop.f32.mrf.mxu0 }
 0xe54   : > { %v9092_v16 = vadd.f32 %v9091_v39, %v9003_v55  ;;  %v8827_v37 = vadd.f32 %v8826_v29, %v14482_v40  ;;  %v15576_v29 = vld [vmem:[#allocation132_spill] sm:$0xff] }
 0xe56   : > { %v9178_v28 = vmax.f32 %v9092_v16, 0.0  ;;  %v8916_v21 = vadd.f32 %v8915_v3, %v8827_v37 }
 0xe58   : > { %9274 = vst [vmem:[%s14001_s23 + $0x100] sm:$0xff] %v9178_v28 }
 0xe59   : > { %v9004_v10 = vpop.f32.mrf.mxu2  ;;  %v8918_v17 = vpop.f32.mrf.mxu1 }
 0xe5a   : > { %v9005_v47 = vadd.f32 %v9004_v10, %v8916_v21 }
 0xe5b   : > { %v9093_v56 = vpop.f32.mrf.mxu3  ;;  %v8829_v45 = vpop.f32.mrf.mxu0 }
 0xe5c   : > { %v9094_v36 = vadd.f32 %v9093_v56, %v9005_v47  ;;  %v8830_v63 = vadd.f32 %v8829_v45, %v14489_v44  ;;  %8957 = vmatmul.bf16.gmra.mxu1 %v15326_v15 }
 0xe5e   : > { %8868 = vmatmul.bf16.gmra.mxu0 %v15325_v52  ;;  %v9181_v49 = vmax.f32 %v9094_v36, 0.0  ;;  %9046 = vmatmul.bf16.gmra.mxu2 %v13694_v61  ;;  %v8919_v40 = vadd.f32 %v8918_v17, %v8830_v63  ;;  %v15577_v17 = vld [vmem:[#allocation117_spill] sm:$0xff] }
 0xe60   : > { %9135 = vmatmul.bf16.gmra.mxu3 %v13824_v4  ;;  %9277 = vst [vmem:[%s14001_s23 + $0x118] sm:$0xff] %v9181_v49 }
 0xe61   : > { %v9007_v20 = vpop.f32.mrf.mxu2  ;;  %v8920_v6 = vpop.f32.mrf.mxu1 }
 0xe62   : > { %v9008_v23 = vadd.f32 %v9007_v20, %v8919_v40 }
 0xe63   : > { %v9096_v13 = vpop.f32.mrf.mxu3  ;;  %v8831_v35 = vpop.f32.mrf.mxu0 }
 0xe64   : > { %v9097_v19 = vadd.f32 %v9096_v13, %v9008_v23  ;;  %v8832_v44 = vadd.f32 %v8831_v35, %v14492_v22  ;;  %v15573_v22 = vld [vmem:[#allocation29_spill] sm:$0xff] }
 0xe66   : > { %v9184_v30 = vmax.f32 %v9097_v19, 0.0  ;;  %v8921_v52 = vadd.f32 %v8920_v6, %v8832_v44  ;;  %v15578_v19 = vld [vmem:[#allocation133_spill] sm:$0xff] }
 0xe68   : > { %9280 = vst [vmem:[%s14001_s23 + $0x130] sm:$0xff] %v9184_v30 }
 0xe69   : > { %v9009_v25 = vpop.f32.mrf.mxu2  ;;  %v8923_v54 = vpop.f32.mrf.mxu1 }
 0xe6a   : > { %v9010_v15 = vadd.f32 %v9009_v25, %v8921_v52 }
 0xe6b   : > { %v9098_v1 = vpop.f32.mrf.mxu3  ;;  %v8834_v61 = vpop.f32.mrf.mxu0 }
 0xe6c   : > { %v9099_v4 = vadd.f32 %v9098_v1, %v9010_v15  ;;  %v8835_v38 = vadd.f32 %v8834_v61, %v14499_v46  ;;  %8962 = vmatmul.bf16.gmra.mxu1 %v15447_v58  ;;  %v15574_v46 = vld [vmem:[#allocation131_spill] sm:$0xff] }
 0xe6e   : > { %8873 = vmatmul.bf16.gmra.mxu0 %v15446_v53  ;;  %v9187_v27 = vmax.f32 %v9099_v4, 0.0  ;;  %9051 = vmatmul.bf16.gmra.mxu2 %v15448_v59  ;;  %v8924_v43 = vadd.f32 %v8923_v54, %v8835_v38  ;;  %v15579_v38 = vld [vmem:[#allocation118_spill] sm:$0xff] }
 0xe70   : > { %9140 = vmatmul.bf16.gmra.mxu3 %v15573_v22  ;;  %9283 = vst [vmem:[%s14001_s23 + $0x148] sm:$0xff] %v9187_v27 }
 0xe71   : > { %v9012_v11 = vpop.f32.mrf.mxu2  ;;  %v8925_v24 = vpop.f32.mrf.mxu1 }
 0xe72   : > { %v9013_v26 = vadd.f32 %v9012_v11, %v8924_v43 }
 0xe73   : > { %v9101_v50 = vpop.f32.mrf.mxu3  ;;  %v8836_v12 = vpop.f32.mrf.mxu0 }
 0xe74   : > { %v9102_v48 = vadd.f32 %v9101_v50, %v9013_v26  ;;  %v8837_v18 = vadd.f32 %v8836_v12, %v15574_v46  ;;  %v15580_v46 = vld [vmem:[#allocation134_spill] sm:$0xff] }
 0xe76   : > { %v9190_v8 = vmax.f32 %v9102_v48, 0.0  ;;  %v8926_v53 = vadd.f32 %v8925_v24, %v8837_v18 }
 0xe78   : > { %9286 = vst [vmem:[%s14001_s23 + $0x160] sm:$0xff] %v9190_v8 }
 0xe79   : > { %v9014_v7 = vpop.f32.mrf.mxu2  ;;  %v8928_v33 = vpop.f32.mrf.mxu1 }
 0xe7a   : > { %v9015_v58 = vadd.f32 %v9014_v7, %v8926_v53 }
 0xe7b   : > { %v9103_v31 = vpop.f32.mrf.mxu3  ;;  %v8839_v59 = vpop.f32.mrf.mxu0 }
 0xe7c   : > { %v9104_v0 = vadd.f32 %v9103_v31, %v9015_v58  ;;  %v8840_v14 = vadd.f32 %v8839_v59, %v15575_v34  ;;  %v15581_v34 = vld [vmem:[#allocation31_spill] sm:$0xff] }
 0xe7e   : > { %v9193_v51 = vmax.f32 %v9104_v0, 0.0  ;;  %v8929_v62 = vadd.f32 %v8928_v33, %v8840_v14 }
 0xe80   : > { %9289 = vst [vmem:[%s14001_s23 + $0x178] sm:$0xff] %v9193_v51 }
 0xe81   : > { %v9017_v32 = vpop.f32.mrf.mxu2  ;;  %v8930_v55 = vpop.f32.mrf.mxu1 }
 0xe82   : > { %v9018_v60 = vadd.f32 %v9017_v32, %v8929_v62 }
 0xe83   : > { %v9106_v42 = vpop.f32.mrf.mxu3  ;;  %v8841_v41 = vpop.f32.mrf.mxu0 }
 0xe84   : > { %v9107_v39 = vadd.f32 %v9106_v42, %v9018_v60  ;;  %v8842_v3 = vadd.f32 %v8841_v41, %v15576_v29  ;;  %v15582_v29 = vld [vmem:[#allocation32_spill] sm:$0xff] }
 0xe86   : > { %v9196_v16 = vmax.f32 %v9107_v39, 0.0  ;;  %v8931_v37 = vadd.f32 %v8930_v55, %v8842_v3 }
 0xe88   : > { %9292 = vst [vmem:[%s14001_s23 + $0x190] sm:$0xff] %v9196_v16 }
 0xe89   : > { %v9019_v28 = vpop.f32.mrf.mxu2  ;;  %v8933_v56 = vpop.f32.mrf.mxu1 }
 0xe8a   : > { %v9020_v21 = vadd.f32 %v9019_v28, %v8931_v37 }
 0xe8b   : > { %v9108_v10 = vpop.f32.mrf.mxu3  ;;  %v8844_v47 = vpop.f32.mrf.mxu0 }
 0xe8c   : > { %v9109_v45 = vadd.f32 %v9108_v10, %v9020_v21  ;;  %v8845_v36 = vadd.f32 %v8844_v47, %v15577_v17  ;;  %v15583_v17 = vld [vmem:[#allocation33_spill] sm:$0xff] }
 0xe8e   : > { %v9199_v63 = vmax.f32 %v9109_v45, 0.0  ;;  %v8934_v49 = vadd.f32 %v8933_v56, %v8845_v36 }
 0xe90   : > { %9295 = vst [vmem:[%s14001_s23 + $0x1a8] sm:$0xff] %v9199_v63 }
 0xe91   : > { %v9022_v40 = vpop.f32.mrf.mxu2  ;;  %v8935_v35 = vpop.f32.mrf.mxu1 }
 0xe92   : > { %v9023_v20 = vadd.f32 %v9022_v40, %v8934_v49 }
 0xe93   : > { %v9111_v23 = vpop.f32.mrf.mxu3  ;;  %v8846_v13 = vpop.f32.mrf.mxu0 }
 0xe94   : > { %v9112_v6 = vadd.f32 %v9111_v23, %v9023_v20  ;;  %v8847_v44 = vadd.f32 %v8846_v13, %v15578_v19  ;;  %v15584_v19 = vld [vmem:[#allocation34_spill] sm:$0xff] }
 0xe96   : > { %v9202_v30 = vmax.f32 %v9112_v6, 0.0  ;;  %v8936_v52 = vadd.f32 %v8935_v35, %v8847_v44 }
 0xe98   : > { %9298 = vst [vmem:[%s14001_s23 + $0x1c0] sm:$0xff] %v9202_v30 }
 0xe99   : > { %v9024_v25 = vpop.f32.mrf.mxu2  ;;  %v8938_v54 = vpop.f32.mrf.mxu1 }
 0xe9a   : > { %v9025_v15 = vadd.f32 %v9024_v25, %v8936_v52 }
 0xe9b   : > { %v9113_v1 = vpop.f32.mrf.mxu3  ;;  %v8849_v61 = vpop.f32.mrf.mxu0 }
 0xe9c   : > { %v9114_v4 = vadd.f32 %v9113_v1, %v9025_v15  ;;  %v8850_v27 = vadd.f32 %v8849_v61, %v15579_v38 }
 0xe9e   : > { %v9205_v22 = vmax.f32 %v9114_v4, 0.0  ;;  %v8939_v43 = vadd.f32 %v8938_v54, %v8850_v27 }
 0xea0   : > { %9301 = vst [vmem:[%s14001_s23 + $0x1d8] sm:$0xff] %v9205_v22 }
 0xea1   : > { %v9027_v11 = vpop.f32.mrf.mxu2  ;;  %v8940_v24 = vpop.f32.mrf.mxu1 }
 0xea2   : > { %v9028_v26 = vadd.f32 %v9027_v11, %v8939_v43 }
 0xea3   : > { %v9116_v50 = vpop.f32.mrf.mxu3  ;;  %v8851_v12 = vpop.f32.mrf.mxu0 }
 0xea4   : > { %v9117_v48 = vadd.f32 %v9116_v50, %v9028_v26  ;;  %v8852_v18 = vadd.f32 %v8851_v12, %v15580_v46 }
 0xea6   : > { %v9208_v8 = vmax.f32 %v9117_v48, 0.0  ;;  %v8941_v53 = vadd.f32 %v8940_v24, %v8852_v18  ;;  %v15585_v48 = vld [vmem:[#allocation36_spill] sm:$0xff] }
 0xea8   : > { %9304 = vst [vmem:[%s14001_s23 + $0x1f0] sm:$0xff] %v9208_v8 }
 0xea9   : > { %v9029_v7 = vpop.f32.mrf.mxu2  ;;  %v8943_v33 = vpop.f32.mrf.mxu1 }
 0xeaa   : > { %v9030_v58 = vadd.f32 %v9029_v7, %v8941_v53 }
 0xeab   : > { %v9118_v31 = vpop.f32.mrf.mxu3  ;;  %v8854_v59 = vpop.f32.mrf.mxu0 }
 0xeac   : > { %v9119_v0 = vadd.f32 %v9118_v31, %v9030_v58  ;;  %v8855_v14 = vadd.f32 %v8854_v59, %v15581_v34 }
 0xeae   : > { %v9211_v51 = vmax.f32 %v9119_v0, 0.0  ;;  %v8944_v62 = vadd.f32 %v8943_v33, %v8855_v14 }
 0xeb0   : > { %9307 = vst [vmem:[%s14001_s23 + $0x208] sm:$0xff] %v9211_v51 }
 0xeb1   : > { %v9032_v32 = vpop.f32.mrf.mxu2  ;;  %v8945_v55 = vpop.f32.mrf.mxu1 }
 0xeb2   : > { %v9033_v60 = vadd.f32 %v9032_v32, %v8944_v62 }
 0xeb3   : > { %v9121_v42 = vpop.f32.mrf.mxu3  ;;  %v8856_v41 = vpop.f32.mrf.mxu0 }
 0xeb4   : > { %v9122_v39 = vadd.f32 %v9121_v42, %v9033_v60  ;;  %v8857_v3 = vadd.f32 %v8856_v41, %v15582_v29 }
 0xeb6   : > { %v9214_v16 = vmax.f32 %v9122_v39, 0.0  ;;  %v8946_v37 = vadd.f32 %v8945_v55, %v8857_v3 }
 0xeb8   : > { %9310 = vst [vmem:[%s14001_s23 + $0x220] sm:$0xff] %v9214_v16 }
 0xeb9   : > { %v9034_v28 = vpop.f32.mrf.mxu2  ;;  %v8948_v56 = vpop.f32.mrf.mxu1 }
 0xeba   : > { %v9035_v21 = vadd.f32 %v9034_v28, %v8946_v37 }
 0xebb   : > { %v9123_v10 = vpop.f32.mrf.mxu3  ;;  %v8859_v47 = vpop.f32.mrf.mxu0 }
 0xebc   : > { %v9124_v45 = vadd.f32 %v9123_v10, %v9035_v21  ;;  %v8860_v36 = vadd.f32 %v8859_v47, %v15583_v17 }
 0xebe   : > { %v9217_v63 = vmax.f32 %v9124_v45, 0.0  ;;  %v8949_v49 = vadd.f32 %v8948_v56, %v8860_v36 }
 0xec0   : > { %9313 = vst [vmem:[%s14001_s23 + $0x238] sm:$0xff] %v9217_v63  ;;  %v15586_v63 = vld [vmem:[#allocation16_spill] sm:$0xff] }
 0xec1   : > { %v9037_v40 = vpop.f32.mrf.mxu2  ;;  %v8950_v35 = vpop.f32.mrf.mxu1 }
 0xec2   : > { %v9038_v20 = vadd.f32 %v9037_v40, %v8949_v49 }
 0xec3   : > { %v9126_v23 = vpop.f32.mrf.mxu3  ;;  %v8861_v13 = vpop.f32.mrf.mxu0 }
 0xec4   : > { %v9127_v6 = vadd.f32 %v9126_v23, %v9038_v20  ;;  %v8862_v44 = vadd.f32 %v8861_v13, %v15584_v19 }
 0xec6   : > { %v9220_v30 = vmax.f32 %v9127_v6, 0.0  ;;  %v8951_v52 = vadd.f32 %v8950_v35, %v8862_v44 }
 0xec8   : > { %9316 = vst [vmem:[%s14001_s23 + $0x250] sm:$0xff] %v9220_v30 }
 0xec9   : > { %v9039_v25 = vpop.f32.mrf.mxu2  ;;  %v8953_v54 = vpop.f32.mrf.mxu1 }
 0xeca   : > { %v9040_v15 = vadd.f32 %v9039_v25, %v8951_v52 }
 0xecb   : > { %v9128_v1 = vpop.f32.mrf.mxu3  ;;  %v8864_v61 = vpop.f32.mrf.mxu0 }
 0xecc   : > { %v9129_v4 = vadd.f32 %v9128_v1, %v9040_v15  ;;  %v8865_v38 = vadd.f32 %v8864_v61, %v14559_v57 }
 0xece   : > { %v9223_v27 = vmax.f32 %v9129_v4, 0.0  ;;  %v8954_v22 = vadd.f32 %v8953_v54, %v8865_v38 }
 0xed0   : > { %9319 = vst [vmem:[%s14001_s23 + $0x268] sm:$0xff] %v9223_v27 }
 0xed1   : > { %v9042_v43 = vpop.f32.mrf.mxu2  ;;  %v8955_v12 = vpop.f32.mrf.mxu1 }
 0xed2   : > { %v9043_v11 = vadd.f32 %v9042_v43, %v8954_v22 }
 0xed3   : > { %v9131_v26 = vpop.f32.mrf.mxu3  ;;  %v8866_v50 = vpop.f32.mrf.mxu0 }
 0xed4   : > { %v9132_v24 = vadd.f32 %v9131_v26, %v9043_v11  ;;  %v8867_v46 = vadd.f32 %v8866_v50, %v15585_v48 }
 0xed6   : > { %v9226_v18 = vmax.f32 %v9132_v24, 0.0  ;;  %v8956_v8 = vadd.f32 %v8955_v12, %v8867_v46 }
 0xed8   : > { %9322 = vst [vmem:[%s14001_s23 + $0x280] sm:$0xff] %v9226_v18 }
 0xed9   : > { %v9044_v53 = vpop.f32.mrf.mxu2  ;;  %v8958_v31 = vpop.f32.mrf.mxu1 }
 0xeda   : > { %v9045_v7 = vadd.f32 %v9044_v53, %v8956_v8 }
 0xedb   : > { %v9133_v58 = vpop.f32.mrf.mxu3  ;;  %v8869_v57 = vpop.f32.mrf.mxu0 }
 0xedc   : > { %v9134_v59 = vadd.f32 %v9133_v58, %v9045_v7  ;;  %v8870_v33 = vadd.f32 %v8869_v57, %v14569_v2 }
 0xede   : > { %v9229_v0 = vmax.f32 %v9134_v59, 0.0  ;;  %v8959_v34 = vadd.f32 %v8958_v31, %v8870_v33 }
 0xee0   : > { %9325 = vst [vmem:[%s14001_s23 + $0x298] sm:$0xff] %v9229_v0 }
 0xee1   : > { %v9047_v14 = vpop.f32.mrf.mxu2  ;;  %v8960_v60 = vpop.f32.mrf.mxu1 }
 0xee2   : > { %v9048_v51 = vadd.f32 %v9047_v14, %v8959_v34 }
 0xee3   : > { %v9136_v62 = vpop.f32.mrf.mxu3  ;;  %v8871_v32 = vpop.f32.mrf.mxu0 }
 0xee4   : > { %v9137_v42 = vadd.f32 %v9136_v62, %v9048_v51  ;;  %v8872_v41 = vadd.f32 %v8871_v32, %v14572_v5 }
 0xee6   : > { %v9232_v55 = vmax.f32 %v9137_v42, 0.0  ;;  %v8961_v39 = vadd.f32 %v8960_v60, %v8872_v41 }
 0xee8   : > { %9328 = vst [vmem:[%s14001_s23 + $0x2b0] sm:$0xff] %v9232_v55 }
 0xee9   : > { %v9049_v29 = vpop.f32.mrf.mxu2  ;;  %v8963_v21 = vpop.f32.mrf.mxu1 }
 0xeea   : > { %v9050_v3 = vadd.f32 %v9049_v29, %v8961_v39 }
 0xeeb   : > { %v9138_v16 = vpop.f32.mrf.mxu3  ;;  %v8874_v2 = vpop.f32.mrf.mxu0 }
 0xeec   : > { %v9139_v37 = vadd.f32 %v9138_v16, %v9050_v3  ;;  %v8875_v28 = vadd.f32 %v8874_v2, %v14579_v9 }
 0xeee   : > { %v9235_v10 = vmax.f32 %v9139_v37, 0.0  ;;  %v8964_v47 = vadd.f32 %v8963_v21, %v8875_v28 }
 0xef0   : > { %9331 = vst [vmem:[%s14001_s23 + $0x2c8] sm:$0xff] %v9235_v10 }
 0xef1   : > { %v9052_v56 = vpop.f32.mrf.mxu2  ;;  %v8965_v20 = vpop.f32.mrf.mxu1 }
 0xef2   : > { %v9053_v45 = vadd.f32 %v9052_v56, %v8964_v47 }
 0xef3   : > { %v9141_v5 = vpop.f32.mrf.mxu3  ;;  %v8876_v17 = vpop.f32.mrf.mxu0 }
 0xef4   : > { %v9142_v36 = vadd.f32 %v9141_v5, %v9053_v45  ;;  %v8877_v49 = vadd.f32 %v8876_v17, %v15586_v63 }
 0xef6   : > { %v9238_v40 = vmax.f32 %v9142_v36, 0.0  ;;  %v8966_v9 = vadd.f32 %v8965_v20, %v8877_v49 }
 0xef8   : > { %9334 = vst [vmem:[%s14001_s23 + $0x2e0] sm:$0xff] %v9238_v40 }
 0xef9   : > { %v9054_v23 = vpop.f32.mrf.mxu2 }
 0xefa   : > { %v9055_v13 = vadd.f32 %v9054_v23, %v8966_v9 }
 0xefb   : > { %v9143_v35 = vpop.f32.mrf.mxu3 }
 0xefc   : > { %v9144_v6 = vadd.f32 %v9143_v35, %v9055_v13 }
 0xefe   : > { %v9241_v19 = vmax.f32 %v9144_v6, 0.0 }
 0xf00   : > { %9337 = vst [vmem:[%s14001_s23 + $0x2f8] sm:$0xff] %v9241_v19 }
 0xf01   : > { %12282 = shalt.err (!%p12279_p10)
}
 0xf02   : > { %s12340_s17 = smov 384   ;;  %s12341_s23 = smov 24  }
 0xf03   : > { %12055 = dma.vmem_to_hbm [thread:$0]  (%p12455_p7), %s9353_s8, 12288, %s9355_s28, %s9339_s22, %s12340_s17, %s12340_s17, %s12341_s23  }
 0xf04 PF: > { %s9369_s12 = sand.u32 1, %s12317_s18   ;;  %p15587_p12 = scmp.ge.s32.totalorder %s12329_s21, 2 }
 0xf05   : > { %s9370_s13 = scalar_lea.sflag [#allocation4], %s9369_s12 }
 0xf06   : > { %p12072_p13 = pnand %p15587_p12, %p12407_p6 }
 0xf08   : > { %p12073_p0 = pneg %p12072_p13 }
 0xf0a   : > { %12312 = dma.done.wait (%p12073_p0), %s9370_s13, 12288  }
 0xf0b   : > { %12314 = vsyncadd (%p12073_p0), %s9370_s13, 4294955008  ;;  %p20_p3 = scmp.ge.s32.totalorder %s12441_s30, 4   ;;  %s15588_s18 = smov %s12321_s19 }
 0xf0c   : > { %s15589_s19 = smov %s12325_s20  ;;  %s15590_s20 = smov %s12451_s9 }
 0xf0d   : > { %s15591_s21 = smov %s12441_s30  ;;  %22 = sbr.rel (!%p20_p3) target bundleno = 7 (0x7), region = 97 }
 0xf12   :  { %9376 = vsyncpa [#allocation3], 1 }
 0xf13   :  { %9378 = vsyncpa [#allocation3 + $0x1], 1 }
 0xf14   :  { %9379 = vsyncpa [#allocation6], 1 }
 0xf15   :  { %9380 = vsyncpa [#allocation9], 1 }
 0xf16   :  { %9381 = vsyncpa [#allocation4], 1 }
 0xf17   :  { %9383 = vsyncpa [#allocation4 + $0x1], 1 }

</bundles_post_ra>
